<compile_context>
chip_gen: v5e
topology: v5e:2x2
jax: 0.10.0
libtpu: 0.0.40
codegen_flags: <defaults>
</compile_context>

<pallas_src>
import jax
import jax.numpy as jnp
from jax import lax
from jax.experimental import pallas as pl
from jax.experimental.pallas import tpu as pltpu

BN_EPS = 1e-5
LANE = 128
SUBLANE = 8


def _round_up(x, m):
    return ((x + m - 1) // m) * m


def _cdiv(a, b):
    return -(-a // b)


def _vmem_physical_bytes():
    try:
        return int(pltpu.get_tpu_info().vmem_capacity_bytes)
    except Exception:
        return 64 * 1024 * 1024  # conservative (v7x per-TC VMEM)


def _resident_spec(shape):
    """Constant-index (resident) block; single-buffered where the API supports it."""
    idx = lambda n, h: (0,) * len(shape)
    try:
        return pl.BlockSpec(shape, idx, pipeline_mode=pl.Buffered(1))
    except Exception:
        return pl.BlockSpec(shape, idx)


# --------------------- kernel 1: BatchNorm batch statistics ---------------------- #

def _bn_stats_kernel(x_ref, sum_ref, sq_ref):
    """Per-image partial per-channel sum / sum-of-squares (accumulated over row chunks)."""
    @pl.when(pl.program_id(1) == 0)
    def _():
        sum_ref[...] = jnp.zeros_like(sum_ref)
        sq_ref[...] = jnp.zeros_like(sq_ref)

    x = x_ref[...].astype(jnp.float32)                      # (1, TH, W, C)
    sum_ref[...] += jnp.sum(x, axis=(1, 2)).reshape(sum_ref.shape)
    sq_ref[...] += jnp.sum(x * x, axis=(1, 2)).reshape(sq_ref.shape)


def _bn_batch_stats(x):
    """x: (N, H, W, Cp). Returns (mean, var) of shape (Cp,), training-mode (biased) stats.

    Large (~4 MiB) row chunks keep the pure-read pass near the HBM roofline; per-image
    output blocks let the batch axis be 'parallel' (v7x megacore); N-reduction in JAX."""
    N, H, W, Cp = x.shape
    row_bytes = W * Cp * jnp.dtype(x.dtype).itemsize
    max_rows = max(SUBLANE, (4 * 1024 * 1024) // row_bytes)
    n_h = _cdiv(H, max_rows)
    th = _cdiv(H, n_h)
    Hp = n_h * th
    x_al = jnp.pad(x, ((0, 0), (0, Hp - H), (0, 0), (0, 0)))  # zero rows: no effect on sums

    sums, sqs = pl.pallas_call(
        _bn_stats_kernel,
        out_shape=(jax.ShapeDtypeStruct((N, 1, Cp), jnp.float32),
                   jax.ShapeDtypeStruct((N, 1, Cp), jnp.float32)),
        grid=(N, n_h),
        in_specs=[pl.BlockSpec((1, th, W, Cp), lambda n, h: (n, h, 0, 0))],
        out_specs=[pl.BlockSpec((1, 1, Cp), lambda n, h: (n, 0, 0)),
                   pl.BlockSpec((1, 1, Cp), lambda n, h: (n, 0, 0))],
        compiler_params=pltpu.CompilerParams(
            dimension_semantics=("parallel", "arbitrary")),
    )(x_al)

    cnt = float(N * H * W)
    mean = sums.sum(axis=0).reshape(Cp) / cnt
    var = jnp.maximum(sqs.sum(axis=0).reshape(Cp) / cnt - mean * mean, 0.0)
    return mean, var


# ----------- kernel 2: fused BN-normalize + ReLU + Conv3x3 (+ 1x1 skip) ---------- #
# Also emits the *next* layer's BN statistics from the epilogue (per-image partials).

def _make_fused_kernel(H, W, Wc, TH, n_h, Cout_p, with_skip, stat_stride, out_dtype):

    def kernel(*refs):
        if with_skip:
            (x_hbm, scale_ref, shift_ref, w_ref, b_ref, xs_ref, ws_ref,
             o_ref, sum_ref, sq_ref, buf, sem) = refs
        else:
            (x_hbm, scale_ref, shift_ref, w_ref, b_ref,
             o_ref, sum_ref, sq_ref, buf, sem) = refs

        n = pl.program_id(0)
        h = pl.program_id(1)
        slot = h % 2
        Cin_p = buf.shape[-1]
        Wa = buf.shape[2]

        def tile_copy(h_idx, s):
            return pltpu.make_async_copy(
                x_hbm.at[n, pl.ds(h_idx * TH, TH + 2)], buf.at[s], sem.at[s])

        # Prime at the first row-tile of every image (the batch axis is "parallel", so no
        # cross-image pipeline state is allowed -> each image primes its own pipeline).
        # TODO(synk): cross-image prefetch would hide this DMA but requires the batch axis
        # to become "arbitrary" (single-core); we keep megacore sharding instead.
        @pl.when(h == 0)
        def _():
            tile_copy(0, slot).start()

        # Prefetch the next row-tile of this image into the other slot.
        @pl.when(h + 1 < n_h)
        def _():
            tile_copy(h + 1, 1 - slot).start()

        # Wait for the current haloed tile -- rebuilt with indices identical to its start.
        tile_copy(h, slot).wait()

        xt = buf[slot].astype(jnp.float32)                       # (TH+2, Wa, Cin_p)

        # fused BatchNorm (precomputed scale/shift) + ReLU
        y = jnp.maximum(xt * scale_ref[...] + shift_ref[...], 0.0)

        # zero the conv zero-padding ring / alignment padding AFTER normalization
        gr = lax.broadcasted_iota(jnp.int32, (TH + 2, 1, 1), 0) + h * TH
        gc = lax.broadcasted_iota(jnp.int32, (1, Wa, 1), 1)
        valid = (gr >= 1) & (gr <= H) & (gc >= 1) & (gc <= W)
        y = jnp.where(valid, y, 0.0).astype(jnp.bfloat16)        # bf16 MXU operand

        # pack the 3 dx taps along the contraction dim: one lane-dim concat, then 3
        # row-shifted views -> 3 K=3*Cin_p matmuls instead of 9 K=Cin_p matmuls.
        packed = jnp.concatenate(
            [y[:, 0:Wc, :], y[:, 1:Wc + 1, :], y[:, 2:Wc + 2, :]], axis=-1)

        # bias folded into the accumulator init (hoisted out of the dy loop)
        acc = jnp.broadcast_to(b_ref[...].reshape(1, Cout_p),
                               (TH * Wc, Cout_p)).astype(jnp.float32)
        for dy in range(3):
            lhs = packed[dy:dy + TH].reshape(TH * Wc, 3 * Cin_p)
            acc = acc + jnp.dot(lhs, w_ref[dy], preferred_element_type=jnp.float32)

        if with_skip:
            Cs = ws_ref.shape[0]
            xs = xs_ref[...].reshape(TH, W, Cs)                  # already bf16
            if Wc != W:
                xs = jnp.concatenate(
                    [xs, jnp.zeros((TH, Wc - W, Cs), xs.dtype)], axis=1)
            acc = acc + jnp.dot(xs.reshape(TH * Wc, Cs), ws_ref[...],
                                preferred_element_type=jnp.float32)

        res = acc.reshape(TH, Wc, Cout_p)
        orow = lax.broadcasted_iota(jnp.int32, (TH, 1, 1), 0) + h * TH
        res = jnp.where(orow < H, res, 0.0)                      # zero row-alignment rows
        res_q = res.astype(out_dtype)
        o_ref[...] = res_q[:, :W, :].reshape(1, TH, W, Cout_p)

        # fused next-layer BN statistics of the (optionally strided) output, per image.
        @pl.when(h == 0)
        def _():
            sum_ref[...] = jnp.zeros_like(sum_ref)
            sq_ref[...] = jnp.zeros_like(sq_ref)
        ocol = lax.broadcasted_iota(jnp.int32, (1, Wc, 1), 1)
        smask = (orow < H) & (ocol < W)
        if stat_stride > 1:
            smask = smask & ((orow % stat_stride) == 0) & ((ocol % stat_stride) == 0)
        rs = jnp.where(smask, res_q.astype(jnp.float32), 0.0)
        sum_ref[...] += jnp.sum(rs, axis=(0, 1)).reshape(1, 1, Cout_p)
        sq_ref[...] += jnp.sum(rs * rs, axis=(0, 1)).reshape(1, 1, Cout_p)

    return kernel


def _normact_conv3x3(x, mean, var, gamma, beta, w_oihw, bias, *,
                     stat_stride=1, skip_x=None, skip_w=None,
                     tile_h=None, out_dtype=jnp.float32):
    """Fused training-mode BatchNorm + ReLU + Conv3x3(pad=1, stride=1), optionally fused
    with a 1x1-conv residual skip added into the same accumulator.

    x:       (N, H, W, Cp)   channel-padded activations (Cp % 128 == 0), f32 or bf16
    mean/var:(Cp,)           batch statistics of x
    skip_x:  (N, H, W, Cs)   channel-padded skip input, optional
    skip_w:  (Cout, Cin)     1x1 conv weight, optional
    returns: (out (N, H, W, Cout_p), mean_next (Cout_p,), var_next (Cout_p,)) where the
             next-layer stats are taken over out[:, ::stat_stride, ::stat_stride].
    """
    N, H, W, Cp = x.shape
    Cout, Cin = w_oihw.shape[0], w_oihw.shape[1]
    Cout_p = _round_up(Cout, LANE)
    Wc = _round_up(W, SUBLANE)           # internal compute width (8-aligned)
    Wa = _round_up(Wc + 2, SUBLANE)      # haloed, sublane-aligned scratch width

    x_bytes = jnp.dtype(x.dtype).itemsize
    out_bytes = jnp.dtype(out_dtype).itemsize
    with_skip = skip_x is not None
    Cs = skip_x.shape[-1] if with_skip else 0

    # ---- tile-size / VMEM budget (per-generation) ----
    phys = _vmem_physical_bytes()
    fixed = (3 * 3 * Cp * Cout_p * 2                          # packed conv weights (bf16)
             + (Cs * Cout_p * 2 if with_skip else 0)          # skip weight
             + (2 * Cp + Cout_p) * 4 + 4 * Cout_p * 4)        # scale/shift/bias + stats
    per_row = (2 * Wa * Cp * x_bytes                          # haloed DMA scratch (x2)
               + 2 * W * Cout_p * out_bytes                   # output block (x2)
               + (2 * W * Cs * 2 if with_skip else 0)         # skip rows (bf16, x2)
               + Wc * 3 * Cp * 2                              # packed-K slab (bf16)
               + Wc * Cp * 4 + Wc * Cout_p * 4)               # normalized tile + f32 acc
    if tile_h is None:
        budget = int(phys * 0.40)
        tile_h = max(SUBLANE, (budget - fixed) // per_row)
    TH = max(1, min(int(tile_h), H))
    n_h = _cdiv(H, TH)
    TH = _cdiv(H, n_h)
    Hp = n_h * TH

    est = fixed + TH * per_row + (2 << 20)
    vmem_limit = int(min(max(32 * 1024 * 1024, 2 * est), phys * 3 // 4))
    vmem_limit = max(vmem_limit, est)

    # ---- operand preparation (plain-JAX glue) ----
    # haloed + row/width aligned activations (extra cols/rows are zero and masked in-kernel)
    x_hal = jnp.pad(x, ((0, 0), (1, Hp - H + 1), (1, Wa - W - 1), (0, 0)))

    g = jnp.pad(gamma.astype(jnp.float32), (0, Cp - gamma.shape[0]))
    bt = jnp.pad(beta.astype(jnp.float32), (0, Cp - beta.shape[0]))
    inv = lax.rsqrt(var.astype(jnp.float32) + BN_EPS)
    scale = (g * inv).reshape(1, 1, Cp)
    shift = (bt - mean.astype(jnp.float32) * g * inv).reshape(1, 1, Cp)

    wt = jnp.transpose(w_oihw.astype(jnp.float32), (2, 3, 1, 0))   # (3,3,Cin,Cout)
    wt = jnp.pad(wt, ((0, 0), (0, 0), (0, Cp - Cin), (0, Cout_p - Cout)))
    wt = wt.reshape(3, 3 * Cp, Cout_p).astype(jnp.bfloat16)        # K-packed weights
    b_p = jnp.pad(bias.astype(jnp.float32), (0, Cout_p - Cout)).reshape(1, 1, Cout_p)

    args = [x_hal, scale, shift, wt, b_p]
    in_specs = [
        pl.BlockSpec(memory_space=pl.ANY),        # haloed acts: manual double-buffered DMA
        _resident_spec((1, 1, Cp)),               # BN scale
        _resident_spec((1, 1, Cp)),               # BN shift
        _resident_spec((3, 3 * Cp, Cout_p)),      # packed conv weights
        _resident_spec((1, 1, Cout_p)),           # bias
    ]
    if with_skip:
        sx = jnp.pad(skip_x.astype(jnp.bfloat16), ((0, 0), (0, Hp - H), (0, 0), (0, 0)))
        ws = jnp.pad(skip_w.T.astype(jnp.float32),
                     ((0, Cs - skip_w.shape[1]), (0, Cout_p - Cout))).astype(jnp.bfloat16)
        args += [sx, ws]
        in_specs += [
            pl.BlockSpec((1, TH, W, Cs), lambda n, h: (n, h, 0, 0)),  # skip rows (pipelined)
            _resident_spec((Cs, Cout_p)),                             # skip weight
        ]

    kernel = _make_fused_kernel(H, W, Wc, TH, n_h, Cout_p, with_skip, stat_stride, out_dtype)
    out, ssum, ssq = pl.pallas_call(
        kernel,
        out_shape=(jax.ShapeDtypeStruct((N, Hp, W, Cout_p), out_dtype),
                   jax.ShapeDtypeStruct((N, 1, Cout_p), jnp.float32),
                   jax.ShapeDtypeStruct((N, 1, Cout_p), jnp.float32)),
        grid=(N, n_h),
        in_specs=in_specs,
        out_specs=[pl.BlockSpec((1, TH, W, Cout_p), lambda n, h: (n, h, 0, 0)),
                   pl.BlockSpec((1, 1, Cout_p), lambda n, h: (n, 0, 0)),
                   pl.BlockSpec((1, 1, Cout_p), lambda n, h: (n, 0, 0))],
        scratch_shapes=[pltpu.VMEM((2, TH + 2, Wa, Cp), x.dtype),   # double-buffered halo
                        pltpu.SemaphoreType.DMA((2,))],
        compiler_params=pltpu.CompilerParams(
            dimension_semantics=("parallel", "arbitrary"),
            vmem_limit_bytes=vmem_limit),
    )(*args)

    cnt = float(N * _cdiv(H, stat_stride) * _cdiv(W, stat_stride))
    mean_n = ssum.sum(axis=0).reshape(Cout_p) / cnt
    var_n = jnp.maximum(ssq.sum(axis=0).reshape(Cout_p) / cnt - mean_n * mean_n, 0.0)
    return out[:, :H], mean_n, var_n


# --------------------------------- forward pass ---------------------------------- #

def res_conv_forward_nhwc(x_nhwc, params, stride=1, tile_h=None):
    """ResConv forward, NHWC in / NHWC out (core path, no layout transposes)."""
    N, H, W, Cin = x_nhwc.shape
    Cout = params["w1"].shape[0]
    Cin_p = _round_up(Cin, LANE)
    x_cp = jnp.pad(x_nhwc.astype(jnp.float32),
                   ((0, 0), (0, 0), (0, 0), (0, Cin_p - Cin)))

    # BN1 batch statistics of the input (large-block, per-image-partial reduction kernel)
    mean1, var1 = _bn_batch_stats(x_cp)

    # stage 1: NormAct(Cin) + Conv3x3(pad=1) at stride 1, bf16 intermediate; stage-2 BN
    # statistics are fused into this kernel's epilogue (stride-aware mask).
    h1, mean2, var2 = _normact_conv3x3(
        x_cp, mean1, var1, params["bn1_gamma"], params["bn1_beta"],
        params["w1"], params["b1"], stat_stride=stride,
        tile_h=tile_h, out_dtype=jnp.bfloat16)                     # (N, H, W, Cout_p) bf16

    if stride > 1:
        # TODO(synk): write only the strided rows/cols from the stage-1 epilogue (strided
        # output block) instead of materializing full-res h1 and subsampling here.
        h1 = h1[:, ::stride, ::stride, :]
        x_skip = x_cp[:, ::stride, ::stride, :]
    else:
        x_skip = x_cp
    x_skip = x_skip.astype(jnp.bfloat16)

    # stage 2: NormAct(Cout) + Conv3x3(stride 1) fused with the 1x1 skip; biases folded.
    out, _, _ = _normact_conv3x3(
        h1, mean2, var2, params["bn2_gamma"], params["bn2_beta"],
        params["w2"], params["b2"] + params["bskip"],
        stat_stride=1, skip_x=x_skip, skip_w=params["wskip"][:, :, 0, 0],
        tile_h=tile_h, out_dtype=jnp.float32)                      # (N, Ho, Wo, Cout_p)
    return out[..., :Cout]


def res_conv_forward(x_nchw, params, stride=1, tile_h=None):
    """PyTorch-compatible entry point: NCHW in / NCHW out."""
    x = jnp.transpose(x_nchw, (0, 2, 3, 1))
    y = res_conv_forward_nhwc(x, params, stride=stride, tile_h=tile_h)
    return jnp.transpose(y, (0, 3, 1, 2))


# ----------------------------- reference & parameters ----------------------------- #

def res_conv_reference(x_nchw, params, stride=1):
    """Pure-JAX f32 reference (matches PyTorch training-mode forward)."""
    def bn_relu(x, gamma, beta):
        mean = jnp.mean(x, axis=(0, 2, 3), keepdims=True)
        var = jnp.mean((x - mean) ** 2, axis=(0, 2, 3), keepdims=True)
        y = (x - mean) * lax.rsqrt(var + BN_EPS)
        y = y * gamma[None, :, None, None] + beta[None, :, None, None]
        return jnp.maximum(y, 0.0)

    def conv(x, w, b, s, p):
        y = lax.conv_general_dilated(
            x, w, (s, s), [(p, p), (p, p)],
            dimension_numbers=("NCHW", "OIHW", "NCHW"))
        return y + b[None, :, None, None]

    h = bn_relu(x_nchw, params["bn1_gamma"], params["bn1_beta"])
    h = conv(h, params["w1"], params["b1"], stride, 1)
    h = bn_relu(h, params["bn2_gamma"], params["bn2_beta"])
    h = conv(h, params["w2"], params["b2"], 1, 1)
    skip = conv(x_nchw, params["wskip"], params["bskip"], stride, 0)
    return h + skip


def init_params(key, in_channels, out_channels):
    ks = jax.random.split(key, 10)
    f32 = jnp.float32
    return {
        "bn1_gamma": 1.0 + 0.1 * jax.random.normal(ks[0], (in_channels,), f32),
        "bn1_beta": 0.1 * jax.random.normal(ks[1], (in_channels,), f32),
        "w1": 0.1 * jax.random.normal(ks[2], (out_channels, in_channels, 3, 3), f32),
        "b1": 0.1 * jax.random.normal(ks[3], (out_channels,), f32),
        "bn2_gamma": 1.0 + 0.1 * jax.random.normal(ks[4], (out_channels,), f32),
        "bn2_beta": 0.1 * jax.random.normal(ks[5], (out_channels,), f32),
        "w2": 0.1 * jax.random.normal(ks[6], (out_channels, out_channels, 3, 3), f32),
        "b2": 0.1 * jax.random.normal(ks[7], (out_channels,), f32),
        "wskip": 0.1 * jax.random.normal(ks[8], (out_channels, in_channels, 1, 1), f32),
        "bskip": 0.1 * jax.random.normal(ks[9], (out_channels,), f32),
    }


# --------------------------------------- main ------------------------------------- #

if __name__ == "__main__":
    key = jax.random.PRNGKey(0)
    k_x, k_p = jax.random.split(key)

    N, Cin, H, W = 2, 4, 16, 16
    Cout = 8

    x = jax.random.normal(k_x, (N, Cin, H, W), jnp.float32)
    params = init_params(k_p, Cin, Cout)

    fwd = jax.jit(res_conv_forward, static_argnames=("stride", "tile_h"))

    for stride in (1, 2):
        out = jax.block_until_ready(fwd(x, params, stride=stride))
        ref = jax.block_until_ready(res_conv_reference(x, params, stride=stride))
        assert out.shape == ref.shape, (out.shape, ref.shape)
        if not bool(jnp.allclose(out, ref, atol=3e-2, rtol=3e-2)):
            max_err = float(jnp.max(jnp.abs(out - ref)))
            raise AssertionError(
                f"Pallas ResConv mismatch vs reference (stride={stride}), max_err={max_err}")

    print("KERNEL_OK")
</pallas_src>

<mosaic_0001>
module attributes {stable_mosaic.version = 11 : i64} {
  func.func @_bn_stats_kernel(%arg0: i32, %arg1: i32, %arg2: memref<1x16x16x128xf32, #tpu.memory_space<vmem>>, %arg3: memref<1x1x128xf32, #tpu.memory_space<vmem>>, %arg4: memref<1x1x128xf32, #tpu.memory_space<vmem>>) attributes {dimension_semantics = [#tpu.dimension_semantics<parallel>, #tpu.dimension_semantics<arbitrary>], iteration_bounds = array<i64: 2, 1>, scalar_prefetch = 0 : i64, scratch_operands = 0 : i64, tpu.core_type = #tpu.core_type<tc>, window_params = [{transform_indices = @transform_0, window_bounds = array<i64: 1, 16, 16, 128>}, {transform_indices = @transform_1, window_bounds = array<i64: 1, 1, 128>}, {transform_indices = @transform_2, window_bounds = array<i64: 1, 1, 128>}]} {
    %c0_i32 = arith.constant 0 : i32
    %0 = arith.cmpi eq, %arg1, %c0_i32 : i32
    %1 = arith.extui %0 : i1 to i32
    %c0_i32_0 = arith.constant 0 : i32
    %2 = arith.cmpi ne, %1, %c0_i32_0 : i32
    scf.if %2 {
      %cst_17 = arith.constant 0.000000e+00 : f32
      %15 = vector.broadcast %cst_17 : f32 to vector<1x1x128xf32>
      %c0_18 = arith.constant 0 : index
      %c0_19 = arith.constant 0 : index
      %c0_20 = arith.constant 0 : index
      %16 = vector.load %arg3[%c0_18, %c0_19, %c0_20] : memref<1x1x128xf32, #tpu.memory_space<vmem>>, vector<1x1x128xf32>
      tpu.vector_store %arg3[%c0_18, %c0_19, %c0_20], %15 {strides = array<i32>} : memref<1x1x128xf32, #tpu.memory_space<vmem>>, vector<1x1x128xf32>,
      %cst_21 = arith.constant 0.000000e+00 : f32
      %17 = vector.broadcast %cst_21 : f32 to vector<1x1x128xf32>
      %c0_22 = arith.constant 0 : index
      %c0_23 = arith.constant 0 : index
      %c0_24 = arith.constant 0 : index
      %18 = vector.load %arg4[%c0_22, %c0_23, %c0_24] : memref<1x1x128xf32, #tpu.memory_space<vmem>>, vector<1x1x128xf32>
      tpu.vector_store %arg4[%c0_22, %c0_23, %c0_24], %17 {strides = array<i32>} : memref<1x1x128xf32, #tpu.memory_space<vmem>>, vector<1x1x128xf32>,
    } else {
    }
    %c0 = arith.constant 0 : index
    %c0_1 = arith.constant 0 : index
    %c0_2 = arith.constant 0 : index
    %c0_3 = arith.constant 0 : index
    %3 = vector.load %arg2[%c0, %c0_1, %c0_2, %c0_3] : memref<1x16x16x128xf32, #tpu.memory_space<vmem>>, vector<1x16x16x128xf32>
    %c0_4 = arith.constant 0 : index
    %c0_5 = arith.constant 0 : index
    %c0_6 = arith.constant 0 : index
    %4 = vector.load %arg3[%c0_4, %c0_5, %c0_6] : memref<1x1x128xf32, #tpu.memory_space<vmem>>, vector<1x1x128xf32>
    %cst = arith.constant dense<0.000000e+00> : vector<1x128xf32>
    %5 = vector.multi_reduction <add>, %3, %cst [1, 2] : vector<1x16x16x128xf32> to vector<1x128xf32>
    %6 = vector.shape_cast %5 : vector<1x128xf32> to vector<1x1x128xf32>
    %7 = arith.addf %4, %6 : vector<1x1x128xf32>
    %c0_7 = arith.constant 0 : index
    %c0_8 = arith.constant 0 : index
    %c0_9 = arith.constant 0 : index
    %8 = vector.load %arg3[%c0_7, %c0_8, %c0_9] : memref<1x1x128xf32, #tpu.memory_space<vmem>>, vector<1x1x128xf32>
    tpu.vector_store %arg3[%c0_7, %c0_8, %c0_9], %7 {strides = array<i32>} : memref<1x1x128xf32, #tpu.memory_space<vmem>>, vector<1x1x128xf32>,
    %c0_10 = arith.constant 0 : index
    %c0_11 = arith.constant 0 : index
    %c0_12 = arith.constant 0 : index
    %9 = vector.load %arg4[%c0_10, %c0_11, %c0_12] : memref<1x1x128xf32, #tpu.memory_space<vmem>>, vector<1x1x128xf32>
    %10 = arith.mulf %3, %3 : vector<1x16x16x128xf32>
    %cst_13 = arith.constant dense<0.000000e+00> : vector<1x128xf32>
    %11 = vector.multi_reduction <add>, %10, %cst_13 [1, 2] : vector<1x16x16x128xf32> to vector<1x128xf32>
    %12 = vector.shape_cast %11 : vector<1x128xf32> to vector<1x1x128xf32>
    %13 = arith.addf %9, %12 : vector<1x1x128xf32>
    %c0_14 = arith.constant 0 : index
    %c0_15 = arith.constant 0 : index
    %c0_16 = arith.constant 0 : index
    %14 = vector.load %arg4[%c0_14, %c0_15, %c0_16] : memref<1x1x128xf32, #tpu.memory_space<vmem>>, vector<1x1x128xf32>
    tpu.vector_store %arg4[%c0_14, %c0_15, %c0_16], %13 {strides = array<i32>} : memref<1x1x128xf32, #tpu.memory_space<vmem>>, vector<1x1x128xf32>,
    return
  }
  func.func @transform_0(%arg0: i32, %arg1: i32) -> (i32, i32, i32, i32) {
    %c0_i32 = arith.constant 0 : i32
    %c0_i32_0 = arith.constant 0 : i32
    %c0_i32_1 = arith.constant 0 : i32
    return %arg0, %arg1, %c0_i32, %c0_i32_0 : i32, i32, i32, i32
  }
  func.func @transform_1(%arg0: i32, %arg1: i32) -> (i32, i32, i32) {
    %c0_i32 = arith.constant 0 : i32
    %c0_i32_0 = arith.constant 0 : i32
    %c0_i32_1 = arith.constant 0 : i32
    return %arg0, %c0_i32, %c0_i32_0 : i32, i32, i32
  }
  func.func @transform_2(%arg0: i32, %arg1: i32) -> (i32, i32, i32) {
    %c0_i32 = arith.constant 0 : i32
    %c0_i32_0 = arith.constant 0 : i32
    %c0_i32_1 = arith.constant 0 : i32
    return %arg0, %c0_i32, %c0_i32_0 : i32, i32, i32
  }
}

module attributes {stable_mosaic.version = 11 : i64} {
  func.func @kernel(%arg0: i32, %arg1: i32, %arg2: memref<2x18x24x128xf32, #tpu.memory_space<any>>, %arg3: memref<1x1x128xf32, #tpu.memory_space<vmem>>, %arg4: memref<1x1x128xf32, #tpu.memory_space<vmem>>, %arg5: memref<3x384x128xbf16, #tpu.memory_space<vmem>>, %arg6: memref<1x1x128xf32, #tpu.memory_space<vmem>>, %arg7: memref<1x16x16x128xbf16, #tpu.memory_space<vmem>>, %arg8: memref<1x1x128xf32, #tpu.memory_space<vmem>>, %arg9: memref<1x1x128xf32, #tpu.memory_space<vmem>>, %arg10: memref<2x18x24x128xf32, #tpu.memory_space<vmem>>, %arg11: memref<2x!tpu.dma_semaphore, #tpu.memory_space<semaphore_mem>>) attributes {dimension_semantics = [#tpu.dimension_semantics<parallel>, #tpu.dimension_semantics<arbitrary>], iteration_bounds = array<i64: 2, 1>, scalar_prefetch = 0 : i64, scratch_operands = 2 : i64, tpu.core_type = #tpu.core_type<tc>, window_params = [{}, {pipeline_mode = #tpu.pipeline_mode<synchronous>, transform_indices = @transform_1, window_bounds = array<i64: 1, 1, 128>}, {pipeline_mode = #tpu.pipeline_mode<synchronous>, transform_indices = @transform_2, window_bounds = array<i64: 1, 1, 128>}, {pipeline_mode = #tpu.pipeline_mode<synchronous>, transform_indices = @transform_3, window_bounds = array<i64: 3, 384, 128>}, {pipeline_mode = #tpu.pipeline_mode<synchronous>, transform_indices = @transform_4, window_bounds = array<i64: 1, 1, 128>}, {transform_indices = @transform_5, window_bounds = array<i64: 1, 16, 16, 128>}, {transform_indices = @transform_6, window_bounds = array<i64: 1, 1, 128>}, {transform_indices = @transform_7, window_bounds = array<i64: 1, 1, 128>}]} {
    %c2_i32 = arith.constant 2 : i32
    %c0_i32 = arith.constant 0 : i32
    %0 = arith.cmpi eq, %c2_i32, %c0_i32 : i32
    %c1_i32 = arith.constant 1 : i32
    %1 = arith.select %0, %c1_i32, %c2_i32 : i32
    %2 = arith.remsi %arg1, %1 : i32
    %c0_i32_0 = arith.constant 0 : i32
    %3 = arith.cmpi ne, %2, %c0_i32_0 : i32
    %c0_i32_1 = arith.constant 0 : i32
    %4 = arith.cmpi slt, %2, %c0_i32_1 : i32
    %c0_i32_2 = arith.constant 0 : i32
    %5 = arith.cmpi slt, %1, %c0_i32_2 : i32
    %6 = arith.xori %4, %5 : i1
    %7 = arith.andi %6, %3 : i1
    %8 = arith.addi %2, %1 : i32
    %9 = arith.select %7, %8, %2 : i32
    %c0_i32_3 = arith.constant 0 : i32
    %10 = arith.cmpi eq, %arg1, %c0_i32_3 : i32
    %11 = arith.extui %10 : i1 to i32
    %c0_i32_4 = arith.constant 0 : i32
    %12 = arith.cmpi ne, %11, %c0_i32_4 : i32
    scf.if %12 {
      %c0_i32_66 = arith.constant 0 : i32
      %c0_i32_67 = arith.constant 0 : i32
      %c0_i32_68 = arith.constant 0 : i32
      %126 = tpu.memref_slice %arg2[%arg0, %c0_i32_66, %c0_i32_67, %c0_i32_68] : memref<2x18x24x128xf32, #tpu.memory_space<any>> -> memref<1x18x24x128xf32, #tpu.memory_space<any>>
      %127 = tpu.memref_squeeze %126 : memref<1x18x24x128xf32, #tpu.memory_space<any>> -> memref<18x24x128xf32, #tpu.memory_space<any>>
      %c0_i32_69 = arith.constant 0 : i32
      %c0_i32_70 = arith.constant 0 : i32
      %c0_i32_71 = arith.constant 0 : i32
      %128 = tpu.memref_slice %arg10[%9, %c0_i32_69, %c0_i32_70, %c0_i32_71] : memref<2x18x24x128xf32, #tpu.memory_space<vmem>> -> memref<1x18x24x128xf32, #tpu.memory_space<vmem>>
      %129 = tpu.memref_squeeze %128 : memref<1x18x24x128xf32, #tpu.memory_space<vmem>> -> memref<18x24x128xf32, #tpu.memory_space<vmem>>
      %130 = tpu.memref_slice %arg11[%9] : memref<2x!tpu.dma_semaphore, #tpu.memory_space<semaphore_mem>> -> memref<1x!tpu.dma_semaphore, #tpu.memory_space<semaphore_mem>>
      %131 = tpu.memref_squeeze %130 : memref<1x!tpu.dma_semaphore, #tpu.memory_space<semaphore_mem>> -> memref<!tpu.dma_semaphore, #tpu.memory_space<semaphore_mem>>
      tpu.enqueue_dma source(%127 : memref<18x24x128xf32, #tpu.memory_space<any>>) target(%129 : memref<18x24x128xf32, #tpu.memory_space<vmem>>) target_semaphore(%131 : memref<!tpu.dma_semaphore, #tpu.memory_space<semaphore_mem>>)
    } else {
    }
    %c1_i32_5 = arith.constant 1 : i32
    %13 = arith.addi %arg1, %c1_i32_5 : i32
    %c1_i32_6 = arith.constant 1 : i32
    %14 = arith.cmpi slt, %13, %c1_i32_6 : i32
    %15 = arith.extui %14 : i1 to i32
    %c0_i32_7 = arith.constant 0 : i32
    %16 = arith.cmpi ne, %15, %c0_i32_7 : i32
    scf.if %16 {
      %c1_i32_66 = arith.constant 1 : i32
      %126 = arith.addi %arg1, %c1_i32_66 : i32
      %c1_i32_67 = arith.constant 1 : i32
      %127 = arith.subi %c1_i32_67, %9 : i32
      %c16_i32_68 = arith.constant 16 : i32
      %128 = arith.muli %126, %c16_i32_68 : i32
      %c0_i32_69 = arith.constant 0 : i32
      %c0_i32_70 = arith.constant 0 : i32
      %129 = tpu.memref_slice %arg2[%arg0, %128, %c0_i32_69, %c0_i32_70] : memref<2x18x24x128xf32, #tpu.memory_space<any>> -> memref<1x18x24x128xf32, #tpu.memory_space<any>>
      %130 = tpu.memref_squeeze %129 : memref<1x18x24x128xf32, #tpu.memory_space<any>> -> memref<18x24x128xf32, #tpu.memory_space<any>>
      %c0_i32_71 = arith.constant 0 : i32
      %c0_i32_72 = arith.constant 0 : i32
      %c0_i32_73 = arith.constant 0 : i32
      %131 = tpu.memref_slice %arg10[%127, %c0_i32_71, %c0_i32_72, %c0_i32_73] : memref<2x18x24x128xf32, #tpu.memory_space<vmem>> -> memref<1x18x24x128xf32, #tpu.memory_space<vmem>>
      %132 = tpu.memref_squeeze %131 : memref<1x18x24x128xf32, #tpu.memory_space<vmem>> -> memref<18x24x128xf32, #tpu.memory_space<vmem>>
      %133 = tpu.memref_slice %arg11[%127] : memref<2x!tpu.dma_semaphore, #tpu.memory_space<semaphore_mem>> -> memref<1x!tpu.dma_semaphore, #tpu.memory_space<semaphore_mem>>
      %134 = tpu.memref_squeeze %133 : memref<1x!tpu.dma_semaphore, #tpu.memory_space<semaphore_mem>> -> memref<!tpu.dma_semaphore, #tpu.memory_space<semaphore_mem>>
      tpu.enqueue_dma source(%130 : memref<18x24x128xf32, #tpu.memory_space<any>>) target(%132 : memref<18x24x128xf32, #tpu.memory_space<vmem>>) target_semaphore(%134 : memref<!tpu.dma_semaphore, #tpu.memory_space<semaphore_mem>>)
    } else {
    }
    %c16_i32 = arith.constant 16 : i32
    %17 = arith.muli %arg1, %c16_i32 : i32
    %c0_i32_8 = arith.constant 0 : i32
    %c0_i32_9 = arith.constant 0 : i32
    %18 = tpu.memref_slice %arg2[%arg0, %17, %c0_i32_8, %c0_i32_9] : memref<2x18x24x128xf32, #tpu.memory_space<any>> -> memref<1x18x24x128xf32, #tpu.memory_space<any>>
    %19 = tpu.memref_squeeze %18 : memref<1x18x24x128xf32, #tpu.memory_space<any>> -> memref<18x24x128xf32, #tpu.memory_space<any>>
    %c0_i32_10 = arith.constant 0 : i32
    %c0_i32_11 = arith.constant 0 : i32
    %c0_i32_12 = arith.constant 0 : i32
    %20 = tpu.memref_slice %arg10[%9, %c0_i32_10, %c0_i32_11, %c0_i32_12] : memref<2x18x24x128xf32, #tpu.memory_space<vmem>> -> memref<1x18x24x128xf32, #tpu.memory_space<vmem>>
    %21 = tpu.memref_squeeze %20 : memref<1x18x24x128xf32, #tpu.memory_space<vmem>> -> memref<18x24x128xf32, #tpu.memory_space<vmem>>
    %22 = tpu.memref_slice %arg11[%9] : memref<2x!tpu.dma_semaphore, #tpu.memory_space<semaphore_mem>> -> memref<1x!tpu.dma_semaphore, #tpu.memory_space<semaphore_mem>>
    %23 = tpu.memref_squeeze %22 : memref<1x!tpu.dma_semaphore, #tpu.memory_space<semaphore_mem>> -> memref<!tpu.dma_semaphore, #tpu.memory_space<semaphore_mem>>
    tpu.wait_dma2 semaphore(%23 : memref<!tpu.dma_semaphore, #tpu.memory_space<semaphore_mem>>) src(%19 : memref<18x24x128xf32, #tpu.memory_space<any>>) dst(%21 : memref<18x24x128xf32, #tpu.memory_space<vmem>>)
    %24 = arith.index_cast %9 : i32 to index
    %c0 = arith.constant 0 : index
    %c0_13 = arith.constant 0 : index
    %c0_14 = arith.constant 0 : index
    %25 = vector.load %arg10[%24, %c0, %c0_13, %c0_14] : memref<2x18x24x128xf32, #tpu.memory_space<vmem>>, vector<1x18x24x128xf32>
    %26 = vector.shape_cast %25 : vector<1x18x24x128xf32> to vector<18x24x128xf32>
    %c0_15 = arith.constant 0 : index
    %c0_16 = arith.constant 0 : index
    %c0_17 = arith.constant 0 : index
    %27 = vector.load %arg3[%c0_15, %c0_16, %c0_17] : memref<1x1x128xf32, #tpu.memory_space<vmem>>, vector<1x1x128xf32>
    %28 = vector.broadcast %27 : vector<1x1x128xf32> to vector<18x24x128xf32>
    %29 = arith.mulf %26, %28 : vector<18x24x128xf32>
    %c0_18 = arith.constant 0 : index
    %c0_19 = arith.constant 0 : index
    %c0_20 = arith.constant 0 : index
    %30 = vector.load %arg4[%c0_18, %c0_19, %c0_20] : memref<1x1x128xf32, #tpu.memory_space<vmem>>, vector<1x1x128xf32>
    %31 = vector.broadcast %30 : vector<1x1x128xf32> to vector<18x24x128xf32>
    %32 = arith.addf %29, %31 : vector<18x24x128xf32>
    %cst = arith.constant 0.000000e+00 : f32
    %33 = vector.broadcast %cst : f32 to vector<18x24x128xf32>
    %34 = arith.maximumf %32, %33 : vector<18x24x128xf32>
    %35 = tpu.iota {dimensions = array<i32: 0>} : vector<18x1x1xi32>
    %c16_i32_21 = arith.constant 16 : i32
    %36 = arith.muli %arg1, %c16_i32_21 : i32
    %37 = vector.broadcast %36 : i32 to vector<18x1x1xi32>
    %38 = arith.addi %35, %37 : vector<18x1x1xi32>
    %39 = tpu.iota {dimensions = array<i32: 1>} : vector<1x24x1xi32>
    %c1_i32_22 = arith.constant 1 : i32
    %40 = vector.broadcast %c1_i32_22 : i32 to vector<18x1x1xi32>
    %41 = arith.cmpi sge, %38, %40 : vector<18x1x1xi32>
    %c16_i32_23 = arith.constant 16 : i32
    %42 = vector.broadcast %c16_i32_23 : i32 to vector<18x1x1xi32>
    %43 = arith.cmpi sle, %38, %42 : vector<18x1x1xi32>
    %44 = arith.andi %41, %43 : vector<18x1x1xi1>
    %c1_i32_24 = arith.constant 1 : i32
    %45 = vector.broadcast %c1_i32_24 : i32 to vector<1x24x1xi32>
    %46 = arith.cmpi sge, %39, %45 : vector<1x24x1xi32>
    %47 = vector.broadcast %44 : vector<18x1x1xi1> to vector<18x24x1xi1>
    %48 = vector.broadcast %46 : vector<1x24x1xi1> to vector<18x24x1xi1>
    %49 = arith.andi %47, %48 : vector<18x24x1xi1>
    %c16_i32_25 = arith.constant 16 : i32
    %50 = vector.broadcast %c16_i32_25 : i32 to vector<1x24x1xi32>
    %51 = arith.cmpi sle, %39, %50 : vector<1x24x1xi32>
    %52 = vector.broadcast %51 : vector<1x24x1xi1> to vector<18x24x1xi1>
    %53 = arith.andi %49, %52 : vector<18x24x1xi1>
    %cst_26 = arith.constant 0.000000e+00 : f32
    %54 = vector.shape_cast %53 : vector<18x24x1xi1> to vector<18x24x1xi1>
    %55 = vector.broadcast %54 : vector<18x24x1xi1> to vector<18x24x128xi1>
    %56 = vector.broadcast %cst_26 : f32 to vector<18x24x128xf32>
    %57 = arith.select %55, %34, %56 : vector<18x24x128xi1>, vector<18x24x128xf32>
    %58 = arith.truncf %57 : vector<18x24x128xf32> to vector<18x24x128xbf16>
    %59 = vector.extract_strided_slice %58 {offsets = [0, 0, 0], sizes = [18, 16, 128], strides = [1, 1, 1]} : vector<18x24x128xbf16> to vector<18x16x128xbf16>
    %60 = vector.extract_strided_slice %58 {offsets = [0, 1, 0], sizes = [18, 16, 128], strides = [1, 1, 1]} : vector<18x24x128xbf16> to vector<18x16x128xbf16>
    %61 = vector.extract_strided_slice %58 {offsets = [0, 2, 0], sizes = [18, 16, 128], strides = [1, 1, 1]} : vector<18x24x128xbf16> to vector<18x16x128xbf16>
    %62 = tpu.concatenate %59, %60, %61 in 2 : vector<18x16x128xbf16>, vector<18x16x128xbf16>, vector<18x16x128xbf16> -> vector<18x16x384xbf16>
    %c0_27 = arith.constant 0 : index
    %c0_28 = arith.constant 0 : index
    %c0_29 = arith.constant 0 : index
    %63 = vector.load %arg6[%c0_27, %c0_28, %c0_29] : memref<1x1x128xf32, #tpu.memory_space<vmem>>, vector<1x1x128xf32>
    %64 = vector.shape_cast %63 : vector<1x1x128xf32> to vector<1x128xf32>
    %65 = vector.shape_cast %64 : vector<1x128xf32> to vector<1x128xf32>
    %66 = vector.broadcast %65 : vector<1x128xf32> to vector<256x128xf32>
    %67 = vector.extract_strided_slice %62 {offsets = [0, 0, 0], sizes = [16, 16, 384], strides = [1, 1, 1]} : vector<18x16x384xbf16> to vector<16x16x384xbf16>
    %68 = vector.shape_cast %67 : vector<16x16x384xbf16> to vector<256x384xbf16>
    %c0_30 = arith.constant 0 : index
    %c0_31 = arith.constant 0 : index
    %c0_32 = arith.constant 0 : index
    %69 = vector.load %arg5[%c0_30, %c0_31, %c0_32] : memref<3x384x128xbf16, #tpu.memory_space<vmem>>, vector<1x384x128xbf16>
    %70 = vector.shape_cast %69 : vector<1x384x128xbf16> to vector<384x128xbf16>
    %cst_33 = arith.constant dense<0.000000e+00> : vector<256x128xf32>
    %71 = tpu.matmul %68, %70, %cst_33 {dimension_numbers = #tpu.dot_dimension_numbers<[1], [0], [0], [1], [0, 0, 1, 1], [], []>} : vector<256x384xbf16>, vector<384x128xbf16>, vector<256x128xf32> -> vector<256x128xf32>
    %72 = arith.addf %66, %71 : vector<256x128xf32>
    %73 = vector.extract_strided_slice %62 {offsets = [1, 0, 0], sizes = [16, 16, 384], strides = [1, 1, 1]} : vector<18x16x384xbf16> to vector<16x16x384xbf16>
    %74 = vector.shape_cast %73 : vector<16x16x384xbf16> to vector<256x384xbf16>
    %c1 = arith.constant 1 : index
    %c0_34 = arith.constant 0 : index
    %c0_35 = arith.constant 0 : index
    %75 = vector.load %arg5[%c1, %c0_34, %c0_35] : memref<3x384x128xbf16, #tpu.memory_space<vmem>>, vector<1x384x128xbf16>
    %76 = vector.shape_cast %75 : vector<1x384x128xbf16> to vector<384x128xbf16>
    %cst_36 = arith.constant dense<0.000000e+00> : vector<256x128xf32>
    %77 = tpu.matmul %74, %76, %cst_36 {dimension_numbers = #tpu.dot_dimension_numbers<[1], [0], [0], [1], [0, 0, 1, 1], [], []>} : vector<256x384xbf16>, vector<384x128xbf16>, vector<256x128xf32> -> vector<256x128xf32>
    %78 = arith.addf %72, %77 : vector<256x128xf32>
    %79 = vector.extract_strided_slice %62 {offsets = [2, 0, 0], sizes = [16, 16, 384], strides = [1, 1, 1]} : vector<18x16x384xbf16> to vector<16x16x384xbf16>
    %80 = vector.shape_cast %79 : vector<16x16x384xbf16> to vector<256x384xbf16>
    %c2 = arith.constant 2 : index
    %c0_37 = arith.constant 0 : index
    %c0_38 = arith.constant 0 : index
    %81 = vector.load %arg5[%c2, %c0_37, %c0_38] : memref<3x384x128xbf16, #tpu.memory_space<vmem>>, vector<1x384x128xbf16>
    %82 = vector.shape_cast %81 : vector<1x384x128xbf16> to vector<384x128xbf16>
    %cst_39 = arith.constant dense<0.000000e+00> : vector<256x128xf32>
    %83 = tpu.matmul %80, %82, %cst_39 {dimension_numbers = #tpu.dot_dimension_numbers<[1], [0], [0], [1], [0, 0, 1, 1], [], []>} : vector<256x384xbf16>, vector<384x128xbf16>, vector<256x128xf32> -> vector<256x128xf32>
    %84 = arith.addf %78, %83 : vector<256x128xf32>
    %85 = vector.shape_cast %84 : vector<256x128xf32> to vector<16x16x128xf32>
    %86 = tpu.iota {dimensions = array<i32: 0>} : vector<16x1x1xi32>
    %c16_i32_40 = arith.constant 16 : i32
    %87 = arith.muli %arg1, %c16_i32_40 : i32
    %88 = vector.broadcast %87 : i32 to vector<16x1x1xi32>
    %89 = arith.addi %86, %88 : vector<16x1x1xi32>
    %c16_i32_41 = arith.constant 16 : i32
    %90 = vector.broadcast %c16_i32_41 : i32 to vector<16x1x1xi32>
    %91 = arith.cmpi slt, %89, %90 : vector<16x1x1xi32>
    %cst_42 = arith.constant 0.000000e+00 : f32
    %92 = vector.shape_cast %91 : vector<16x1x1xi1> to vector<16x1x1xi1>
    %93 = vector.broadcast %92 : vector<16x1x1xi1> to vector<16x16x128xi1>
    %94 = vector.broadcast %cst_42 : f32 to vector<16x16x128xf32>
    %95 = arith.select %93, %85, %94 : vector<16x16x128xi1>, vector<16x16x128xf32>
    %96 = arith.truncf %95 : vector<16x16x128xf32> to vector<16x16x128xbf16>
    %97 = vector.shape_cast %96 : vector<16x16x128xbf16> to vector<1x16x16x128xbf16>
    %c0_43 = arith.constant 0 : index
    %c0_44 = arith.constant 0 : index
    %c0_45 = arith.constant 0 : index
    %c0_46 = arith.constant 0 : index
    %98 = vector.load %arg7[%c0_43, %c0_44, %c0_45, %c0_46] : memref<1x16x16x128xbf16, #tpu.memory_space<vmem>>, vector<1x16x16x128xbf16>
    tpu.vector_store %arg7[%c0_43, %c0_44, %c0_45, %c0_46], %97 {strides = array<i32>} : memref<1x16x16x128xbf16, #tpu.memory_space<vmem>>, vector<1x16x16x128xbf16>,
    %c0_i32_47 = arith.constant 0 : i32
    %99 = arith.cmpi eq, %arg1, %c0_i32_47 : i32
    %100 = arith.extui %99 : i1 to i32
    %c0_i32_48 = arith.constant 0 : i32
    %101 = arith.cmpi ne, %100, %c0_i32_48 : i32
    scf.if %101 {
      %cst_66 = arith.constant 0.000000e+00 : f32
      %126 = vector.broadcast %cst_66 : f32 to vector<1x1x128xf32>
      %c0_67 = arith.constant 0 : index
      %c0_68 = arith.constant 0 : index
      %c0_69 = arith.constant 0 : index
      %127 = vector.load %arg8[%c0_67, %c0_68, %c0_69] : memref<1x1x128xf32, #tpu.memory_space<vmem>>, vector<1x1x128xf32>
      tpu.vector_store %arg8[%c0_67, %c0_68, %c0_69], %126 {strides = array<i32>} : memref<1x1x128xf32, #tpu.memory_space<vmem>>, vector<1x1x128xf32>,
      %cst_70 = arith.constant 0.000000e+00 : f32
      %128 = vector.broadcast %cst_70 : f32 to vector<1x1x128xf32>
      %c0_71 = arith.constant 0 : index
      %c0_72 = arith.constant 0 : index
      %c0_73 = arith.constant 0 : index
      %129 = vector.load %arg9[%c0_71, %c0_72, %c0_73] : memref<1x1x128xf32, #tpu.memory_space<vmem>>, vector<1x1x128xf32>
      tpu.vector_store %arg9[%c0_71, %c0_72, %c0_73], %128 {strides = array<i32>} : memref<1x1x128xf32, #tpu.memory_space<vmem>>, vector<1x1x128xf32>,
    } else {
    }
    %102 = tpu.iota {dimensions = array<i32: 1>} : vector<1x16x1xi32>
    %c16_i32_49 = arith.constant 16 : i32
    %103 = vector.broadcast %c16_i32_49 : i32 to vector<16x1x1xi32>
    %104 = arith.cmpi slt, %89, %103 : vector<16x1x1xi32>
    %c16_i32_50 = arith.constant 16 : i32
    %105 = vector.broadcast %c16_i32_50 : i32 to vector<1x16x1xi32>
    %106 = arith.cmpi slt, %102, %105 : vector<1x16x1xi32>
    %107 = vector.broadcast %104 : vector<16x1x1xi1> to vector<16x16x1xi1>
    %108 = vector.broadcast %106 : vector<1x16x1xi1> to vector<16x16x1xi1>
    %109 = arith.andi %107, %108 : vector<16x16x1xi1>
    %110 = arith.extf %96 : vector<16x16x128xbf16> to vector<16x16x128xf32>
    %cst_51 = arith.constant 0.000000e+00 : f32
    %111 = vector.shape_cast %109 : vector<16x16x1xi1> to vector<16x16x1xi1>
    %112 = vector.broadcast %111 : vector<16x16x1xi1> to vector<16x16x128xi1>
    %113 = vector.broadcast %cst_51 : f32 to vector<16x16x128xf32>
    %114 = arith.select %112, %110, %113 : vector<16x16x128xi1>, vector<16x16x128xf32>
    %c0_52 = arith.constant 0 : index
    %c0_53 = arith.constant 0 : index
    %c0_54 = arith.constant 0 : index
    %115 = vector.load %arg8[%c0_52, %c0_53, %c0_54] : memref<1x1x128xf32, #tpu.memory_space<vmem>>, vector<1x1x128xf32>
    %cst_55 = arith.constant dense<0.000000e+00> : vector<128xf32>
    %116 = vector.multi_reduction <add>, %114, %cst_55 [0, 1] : vector<16x16x128xf32> to vector<128xf32>
    %117 = vector.shape_cast %116 : vector<128xf32> to vector<1x1x128xf32>
    %118 = arith.addf %115, %117 : vector<1x1x128xf32>
    %c0_56 = arith.constant 0 : index
    %c0_57 = arith.constant 0 : index
    %c0_58 = arith.constant 0 : index
    %119 = vector.load %arg8[%c0_56, %c0_57, %c0_58] : memref<1x1x128xf32, #tpu.memory_space<vmem>>, vector<1x1x128xf32>
    tpu.vector_store %arg8[%c0_56, %c0_57, %c0_58], %118 {strides = array<i32>} : memref<1x1x128xf32, #tpu.memory_space<vmem>>, vector<1x1x128xf32>,
    %c0_59 = arith.constant 0 : index
    %c0_60 = arith.constant 0 : index
    %c0_61 = arith.constant 0 : index
    %120 = vector.load %arg9[%c0_59, %c0_60, %c0_61] : memref<1x1x128xf32, #tpu.memory_space<vmem>>, vector<1x1x128xf32>
    %121 = arith.mulf %114, %114 : vector<16x16x128xf32>
    %cst_62 = arith.constant dense<0.000000e+00> : vector<128xf32>
    %122 = vector.multi_reduction <add>, %121, %cst_62 [0, 1] : vector<16x16x128xf32> to vector<128xf32>
    %123 = vector.shape_cast %122 : vector<128xf32> to vector<1x1x128xf32>
    %124 = arith.addf %120, %123 : vector<1x1x128xf32>
    %c0_63 = arith.constant 0 : index
    %c0_64 = arith.constant 0 : index
    %c0_65 = arith.constant 0 : index
    %125 = vector.load %arg9[%c0_63, %c0_64, %c0_65] : memref<1x1x128xf32, #tpu.memory_space<vmem>>, vector<1x1x128xf32>
    tpu.vector_store %arg9[%c0_63, %c0_64, %c0_65], %124 {strides = array<i32>} : memref<1x1x128xf32, #tpu.memory_space<vmem>>, vector<1x1x128xf32>,
    return
  }
  func.func @transform_1(%arg0: i32, %arg1: i32) -> (i32, i32, i32) {
    %c0_i32 = arith.constant 0 : i32
    %c0_i32_0 = arith.constant 0 : i32
    %c0_i32_1 = arith.constant 0 : i32
    %c0_i32_2 = arith.constant 0 : i32
    return %c0_i32, %c0_i32_0, %c0_i32_1 : i32, i32, i32
  }
  func.func @transform_2(%arg0: i32, %arg1: i32) -> (i32, i32, i32) {
    %c0_i32 = arith.constant 0 : i32
    %c0_i32_0 = arith.constant 0 : i32
    %c0_i32_1 = arith.constant 0 : i32
    %c0_i32_2 = arith.constant 0 : i32
    return %c0_i32, %c0_i32_0, %c0_i32_1 : i32, i32, i32
  }
  func.func @transform_3(%arg0: i32, %arg1: i32) -> (i32, i32, i32) {
    %c0_i32 = arith.constant 0 : i32
    %c0_i32_0 = arith.constant 0 : i32
    %c0_i32_1 = arith.constant 0 : i32
    %c0_i32_2 = arith.constant 0 : i32
    return %c0_i32, %c0_i32_0, %c0_i32_1 : i32, i32, i32
  }
  func.func @transform_4(%arg0: i32, %arg1: i32) -> (i32, i32, i32) {
    %c0_i32 = arith.constant 0 : i32
    %c0_i32_0 = arith.constant 0 : i32
    %c0_i32_1 = arith.constant 0 : i32
    %c0_i32_2 = arith.constant 0 : i32
    return %c0_i32, %c0_i32_0, %c0_i32_1 : i32, i32, i32
  }
  func.func @transform_5(%arg0: i32, %arg1: i32) -> (i32, i32, i32, i32) {
    %c0_i32 = arith.constant 0 : i32
    %c0_i32_0 = arith.constant 0 : i32
    %c0_i32_1 = arith.constant 0 : i32
    return %arg0, %arg1, %c0_i32, %c0_i32_0 : i32, i32, i32, i32
  }
  func.func @transform_6(%arg0: i32, %arg1: i32) -> (i32, i32, i32) {
    %c0_i32 = arith.constant 0 : i32
    %c0_i32_0 = arith.constant 0 : i32
    %c0_i32_1 = arith.constant 0 : i32
    return %arg0, %c0_i32, %c0_i32_0 : i32, i32, i32
  }
  func.func @transform_7(%arg0: i32, %arg1: i32) -> (i32, i32, i32) {
    %c0_i32 = arith.constant 0 : i32
    %c0_i32_0 = arith.constant 0 : i32
    %c0_i32_1 = arith.constant 0 : i32
    return %arg0, %c0_i32, %c0_i32_0 : i32, i32, i32
  }
}

module attributes {stable_mosaic.version = 11 : i64} {
  func.func @kernel(%arg0: i32, %arg1: i32, %arg2: memref<2x18x24x128xbf16, #tpu.memory_space<any>>, %arg3: memref<1x1x128xf32, #tpu.memory_space<vmem>>, %arg4: memref<1x1x128xf32, #tpu.memory_space<vmem>>, %arg5: memref<3x384x128xbf16, #tpu.memory_space<vmem>>, %arg6: memref<1x1x128xf32, #tpu.memory_space<vmem>>, %arg7: memref<1x16x16x128xbf16, #tpu.memory_space<vmem>>, %arg8: memref<128x128xbf16, #tpu.memory_space<vmem>>, %arg9: memref<1x16x16x128xf32, #tpu.memory_space<vmem>>, %arg10: memref<1x1x128xf32, #tpu.memory_space<vmem>>, %arg11: memref<1x1x128xf32, #tpu.memory_space<vmem>>, %arg12: memref<2x18x24x128xbf16, #tpu.memory_space<vmem>>, %arg13: memref<2x!tpu.dma_semaphore, #tpu.memory_space<semaphore_mem>>) attributes {dimension_semantics = [#tpu.dimension_semantics<parallel>, #tpu.dimension_semantics<arbitrary>], iteration_bounds = array<i64: 2, 1>, scalar_prefetch = 0 : i64, scratch_operands = 2 : i64, tpu.core_type = #tpu.core_type<tc>, window_params = [{}, {pipeline_mode = #tpu.pipeline_mode<synchronous>, transform_indices = @transform_1, window_bounds = array<i64: 1, 1, 128>}, {pipeline_mode = #tpu.pipeline_mode<synchronous>, transform_indices = @transform_2, window_bounds = array<i64: 1, 1, 128>}, {pipeline_mode = #tpu.pipeline_mode<synchronous>, transform_indices = @transform_3, window_bounds = array<i64: 3, 384, 128>}, {pipeline_mode = #tpu.pipeline_mode<synchronous>, transform_indices = @transform_4, window_bounds = array<i64: 1, 1, 128>}, {transform_indices = @transform_5, window_bounds = array<i64: 1, 16, 16, 128>}, {pipeline_mode = #tpu.pipeline_mode<synchronous>, transform_indices = @transform_6, window_bounds = array<i64: 128, 128>}, {transform_indices = @transform_7, window_bounds = array<i64: 1, 16, 16, 128>}, {transform_indices = @transform_8, window_bounds = array<i64: 1, 1, 128>}, {transform_indices = @transform_9, window_bounds = array<i64: 1, 1, 128>}]} {
    %c2_i32 = arith.constant 2 : i32
    %c0_i32 = arith.constant 0 : i32
    %0 = arith.cmpi eq, %c2_i32, %c0_i32 : i32
    %c1_i32 = arith.constant 1 : i32
    %1 = arith.select %0, %c1_i32, %c2_i32 : i32
    %2 = arith.remsi %arg1, %1 : i32
    %c0_i32_0 = arith.constant 0 : i32
    %3 = arith.cmpi ne, %2, %c0_i32_0 : i32
    %c0_i32_1 = arith.constant 0 : i32
    %4 = arith.cmpi slt, %2, %c0_i32_1 : i32
    %c0_i32_2 = arith.constant 0 : i32
    %5 = arith.cmpi slt, %1, %c0_i32_2 : i32
    %6 = arith.xori %4, %5 : i1
    %7 = arith.andi %6, %3 : i1
    %8 = arith.addi %2, %1 : i32
    %9 = arith.select %7, %8, %2 : i32
    %c0_i32_3 = arith.constant 0 : i32
    %10 = arith.cmpi eq, %arg1, %c0_i32_3 : i32
    %11 = arith.extui %10 : i1 to i32
    %c0_i32_4 = arith.constant 0 : i32
    %12 = arith.cmpi ne, %11, %c0_i32_4 : i32
    scf.if %12 {
      %c0_i32_73 = arith.constant 0 : i32
      %c0_i32_74 = arith.constant 0 : i32
      %c0_i32_75 = arith.constant 0 : i32
      %131 = tpu.memref_slice %arg2[%arg0, %c0_i32_73, %c0_i32_74, %c0_i32_75] : memref<2x18x24x128xbf16, #tpu.memory_space<any>> -> memref<1x18x24x128xbf16, #tpu.memory_space<any>>
      %132 = tpu.memref_squeeze %131 : memref<1x18x24x128xbf16, #tpu.memory_space<any>> -> memref<18x24x128xbf16, #tpu.memory_space<any>>
      %c0_i32_76 = arith.constant 0 : i32
      %c0_i32_77 = arith.constant 0 : i32
      %c0_i32_78 = arith.constant 0 : i32
      %133 = tpu.memref_slice %arg12[%9, %c0_i32_76, %c0_i32_77, %c0_i32_78] : memref<2x18x24x128xbf16, #tpu.memory_space<vmem>> -> memref<1x18x24x128xbf16, #tpu.memory_space<vmem>>
      %134 = tpu.memref_squeeze %133 : memref<1x18x24x128xbf16, #tpu.memory_space<vmem>> -> memref<18x24x128xbf16, #tpu.memory_space<vmem>>
      %135 = tpu.memref_slice %arg13[%9] : memref<2x!tpu.dma_semaphore, #tpu.memory_space<semaphore_mem>> -> memref<1x!tpu.dma_semaphore, #tpu.memory_space<semaphore_mem>>
      %136 = tpu.memref_squeeze %135 : memref<1x!tpu.dma_semaphore, #tpu.memory_space<semaphore_mem>> -> memref<!tpu.dma_semaphore, #tpu.memory_space<semaphore_mem>>
      tpu.enqueue_dma source(%132 : memref<18x24x128xbf16, #tpu.memory_space<any>>) target(%134 : memref<18x24x128xbf16, #tpu.memory_space<vmem>>) target_semaphore(%136 : memref<!tpu.dma_semaphore, #tpu.memory_space<semaphore_mem>>)
    } else {
    }
    %c1_i32_5 = arith.constant 1 : i32
    %13 = arith.addi %arg1, %c1_i32_5 : i32
    %c1_i32_6 = arith.constant 1 : i32
    %14 = arith.cmpi slt, %13, %c1_i32_6 : i32
    %15 = arith.extui %14 : i1 to i32
    %c0_i32_7 = arith.constant 0 : i32
    %16 = arith.cmpi ne, %15, %c0_i32_7 : i32
    scf.if %16 {
      %c1_i32_73 = arith.constant 1 : i32
      %131 = arith.addi %arg1, %c1_i32_73 : i32
      %c1_i32_74 = arith.constant 1 : i32
      %132 = arith.subi %c1_i32_74, %9 : i32
      %c16_i32_75 = arith.constant 16 : i32
      %133 = arith.muli %131, %c16_i32_75 : i32
      %c0_i32_76 = arith.constant 0 : i32
      %c0_i32_77 = arith.constant 0 : i32
      %134 = tpu.memref_slice %arg2[%arg0, %133, %c0_i32_76, %c0_i32_77] : memref<2x18x24x128xbf16, #tpu.memory_space<any>> -> memref<1x18x24x128xbf16, #tpu.memory_space<any>>
      %135 = tpu.memref_squeeze %134 : memref<1x18x24x128xbf16, #tpu.memory_space<any>> -> memref<18x24x128xbf16, #tpu.memory_space<any>>
      %c0_i32_78 = arith.constant 0 : i32
      %c0_i32_79 = arith.constant 0 : i32
      %c0_i32_80 = arith.constant 0 : i32
      %136 = tpu.memref_slice %arg12[%132, %c0_i32_78, %c0_i32_79, %c0_i32_80] : memref<2x18x24x128xbf16, #tpu.memory_space<vmem>> -> memref<1x18x24x128xbf16, #tpu.memory_space<vmem>>
      %137 = tpu.memref_squeeze %136 : memref<1x18x24x128xbf16, #tpu.memory_space<vmem>> -> memref<18x24x128xbf16, #tpu.memory_space<vmem>>
      %138 = tpu.memref_slice %arg13[%132] : memref<2x!tpu.dma_semaphore, #tpu.memory_space<semaphore_mem>> -> memref<1x!tpu.dma_semaphore, #tpu.memory_space<semaphore_mem>>
      %139 = tpu.memref_squeeze %138 : memref<1x!tpu.dma_semaphore, #tpu.memory_space<semaphore_mem>> -> memref<!tpu.dma_semaphore, #tpu.memory_space<semaphore_mem>>
      tpu.enqueue_dma source(%135 : memref<18x24x128xbf16, #tpu.memory_space<any>>) target(%137 : memref<18x24x128xbf16, #tpu.memory_space<vmem>>) target_semaphore(%139 : memref<!tpu.dma_semaphore, #tpu.memory_space<semaphore_mem>>)
    } else {
    }
    %c16_i32 = arith.constant 16 : i32
    %17 = arith.muli %arg1, %c16_i32 : i32
    %c0_i32_8 = arith.constant 0 : i32
    %c0_i32_9 = arith.constant 0 : i32
    %18 = tpu.memref_slice %arg2[%arg0, %17, %c0_i32_8, %c0_i32_9] : memref<2x18x24x128xbf16, #tpu.memory_space<any>> -> memref<1x18x24x128xbf16, #tpu.memory_space<any>>
    %19 = tpu.memref_squeeze %18 : memref<1x18x24x128xbf16, #tpu.memory_space<any>> -> memref<18x24x128xbf16, #tpu.memory_space<any>>
    %c0_i32_10 = arith.constant 0 : i32
    %c0_i32_11 = arith.constant 0 : i32
    %c0_i32_12 = arith.constant 0 : i32
    %20 = tpu.memref_slice %arg12[%9, %c0_i32_10, %c0_i32_11, %c0_i32_12] : memref<2x18x24x128xbf16, #tpu.memory_space<vmem>> -> memref<1x18x24x128xbf16, #tpu.memory_space<vmem>>
    %21 = tpu.memref_squeeze %20 : memref<1x18x24x128xbf16, #tpu.memory_space<vmem>> -> memref<18x24x128xbf16, #tpu.memory_space<vmem>>
    %22 = tpu.memref_slice %arg13[%9] : memref<2x!tpu.dma_semaphore, #tpu.memory_space<semaphore_mem>> -> memref<1x!tpu.dma_semaphore, #tpu.memory_space<semaphore_mem>>
    %23 = tpu.memref_squeeze %22 : memref<1x!tpu.dma_semaphore, #tpu.memory_space<semaphore_mem>> -> memref<!tpu.dma_semaphore, #tpu.memory_space<semaphore_mem>>
    tpu.wait_dma2 semaphore(%23 : memref<!tpu.dma_semaphore, #tpu.memory_space<semaphore_mem>>) src(%19 : memref<18x24x128xbf16, #tpu.memory_space<any>>) dst(%21 : memref<18x24x128xbf16, #tpu.memory_space<vmem>>)
    %24 = arith.index_cast %9 : i32 to index
    %c0 = arith.constant 0 : index
    %c0_13 = arith.constant 0 : index
    %c0_14 = arith.constant 0 : index
    %25 = vector.load %arg12[%24, %c0, %c0_13, %c0_14] : memref<2x18x24x128xbf16, #tpu.memory_space<vmem>>, vector<1x18x24x128xbf16>
    %26 = vector.shape_cast %25 : vector<1x18x24x128xbf16> to vector<18x24x128xbf16>
    %27 = arith.extf %26 : vector<18x24x128xbf16> to vector<18x24x128xf32>
    %c0_15 = arith.constant 0 : index
    %c0_16 = arith.constant 0 : index
    %c0_17 = arith.constant 0 : index
    %28 = vector.load %arg3[%c0_15, %c0_16, %c0_17] : memref<1x1x128xf32, #tpu.memory_space<vmem>>, vector<1x1x128xf32>
    %29 = vector.broadcast %28 : vector<1x1x128xf32> to vector<18x24x128xf32>
    %30 = arith.mulf %27, %29 : vector<18x24x128xf32>
    %c0_18 = arith.constant 0 : index
    %c0_19 = arith.constant 0 : index
    %c0_20 = arith.constant 0 : index
    %31 = vector.load %arg4[%c0_18, %c0_19, %c0_20] : memref<1x1x128xf32, #tpu.memory_space<vmem>>, vector<1x1x128xf32>
    %32 = vector.broadcast %31 : vector<1x1x128xf32> to vector<18x24x128xf32>
    %33 = arith.addf %30, %32 : vector<18x24x128xf32>
    %cst = arith.constant 0.000000e+00 : f32
    %34 = vector.broadcast %cst : f32 to vector<18x24x128xf32>
    %35 = arith.maximumf %33, %34 : vector<18x24x128xf32>
    %36 = tpu.iota {dimensions = array<i32: 0>} : vector<18x1x1xi32>
    %c16_i32_21 = arith.constant 16 : i32
    %37 = arith.muli %arg1, %c16_i32_21 : i32
    %38 = vector.broadcast %37 : i32 to vector<18x1x1xi32>
    %39 = arith.addi %36, %38 : vector<18x1x1xi32>
    %40 = tpu.iota {dimensions = array<i32: 1>} : vector<1x24x1xi32>
    %c1_i32_22 = arith.constant 1 : i32
    %41 = vector.broadcast %c1_i32_22 : i32 to vector<18x1x1xi32>
    %42 = arith.cmpi sge, %39, %41 : vector<18x1x1xi32>
    %c16_i32_23 = arith.constant 16 : i32
    %43 = vector.broadcast %c16_i32_23 : i32 to vector<18x1x1xi32>
    %44 = arith.cmpi sle, %39, %43 : vector<18x1x1xi32>
    %45 = arith.andi %42, %44 : vector<18x1x1xi1>
    %c1_i32_24 = arith.constant 1 : i32
    %46 = vector.broadcast %c1_i32_24 : i32 to vector<1x24x1xi32>
    %47 = arith.cmpi sge, %40, %46 : vector<1x24x1xi32>
    %48 = vector.broadcast %45 : vector<18x1x1xi1> to vector<18x24x1xi1>
    %49 = vector.broadcast %47 : vector<1x24x1xi1> to vector<18x24x1xi1>
    %50 = arith.andi %48, %49 : vector<18x24x1xi1>
    %c16_i32_25 = arith.constant 16 : i32
    %51 = vector.broadcast %c16_i32_25 : i32 to vector<1x24x1xi32>
    %52 = arith.cmpi sle, %40, %51 : vector<1x24x1xi32>
    %53 = vector.broadcast %52 : vector<1x24x1xi1> to vector<18x24x1xi1>
    %54 = arith.andi %50, %53 : vector<18x24x1xi1>
    %cst_26 = arith.constant 0.000000e+00 : f32
    %55 = vector.shape_cast %54 : vector<18x24x1xi1> to vector<18x24x1xi1>
    %56 = vector.broadcast %55 : vector<18x24x1xi1> to vector<18x24x128xi1>
    %57 = vector.broadcast %cst_26 : f32 to vector<18x24x128xf32>
    %58 = arith.select %56, %35, %57 : vector<18x24x128xi1>, vector<18x24x128xf32>
    %59 = arith.truncf %58 : vector<18x24x128xf32> to vector<18x24x128xbf16>
    %60 = vector.extract_strided_slice %59 {offsets = [0, 0, 0], sizes = [18, 16, 128], strides = [1, 1, 1]} : vector<18x24x128xbf16> to vector<18x16x128xbf16>
    %61 = vector.extract_strided_slice %59 {offsets = [0, 1, 0], sizes = [18, 16, 128], strides = [1, 1, 1]} : vector<18x24x128xbf16> to vector<18x16x128xbf16>
    %62 = vector.extract_strided_slice %59 {offsets = [0, 2, 0], sizes = [18, 16, 128], strides = [1, 1, 1]} : vector<18x24x128xbf16> to vector<18x16x128xbf16>
    %63 = tpu.concatenate %60, %61, %62 in 2 : vector<18x16x128xbf16>, vector<18x16x128xbf16>, vector<18x16x128xbf16> -> vector<18x16x384xbf16>
    %c0_27 = arith.constant 0 : index
    %c0_28 = arith.constant 0 : index
    %c0_29 = arith.constant 0 : index
    %64 = vector.load %arg6[%c0_27, %c0_28, %c0_29] : memref<1x1x128xf32, #tpu.memory_space<vmem>>, vector<1x1x128xf32>
    %65 = vector.shape_cast %64 : vector<1x1x128xf32> to vector<1x128xf32>
    %66 = vector.shape_cast %65 : vector<1x128xf32> to vector<1x128xf32>
    %67 = vector.broadcast %66 : vector<1x128xf32> to vector<256x128xf32>
    %68 = vector.extract_strided_slice %63 {offsets = [0, 0, 0], sizes = [16, 16, 384], strides = [1, 1, 1]} : vector<18x16x384xbf16> to vector<16x16x384xbf16>
    %69 = vector.shape_cast %68 : vector<16x16x384xbf16> to vector<256x384xbf16>
    %c0_30 = arith.constant 0 : index
    %c0_31 = arith.constant 0 : index
    %c0_32 = arith.constant 0 : index
    %70 = vector.load %arg5[%c0_30, %c0_31, %c0_32] : memref<3x384x128xbf16, #tpu.memory_space<vmem>>, vector<1x384x128xbf16>
    %71 = vector.shape_cast %70 : vector<1x384x128xbf16> to vector<384x128xbf16>
    %cst_33 = arith.constant dense<0.000000e+00> : vector<256x128xf32>
    %72 = tpu.matmul %69, %71, %cst_33 {dimension_numbers = #tpu.dot_dimension_numbers<[1], [0], [0], [1], [0, 0, 1, 1], [], []>} : vector<256x384xbf16>, vector<384x128xbf16>, vector<256x128xf32> -> vector<256x128xf32>
    %73 = arith.addf %67, %72 : vector<256x128xf32>
    %74 = vector.extract_strided_slice %63 {offsets = [1, 0, 0], sizes = [16, 16, 384], strides = [1, 1, 1]} : vector<18x16x384xbf16> to vector<16x16x384xbf16>
    %75 = vector.shape_cast %74 : vector<16x16x384xbf16> to vector<256x384xbf16>
    %c1 = arith.constant 1 : index
    %c0_34 = arith.constant 0 : index
    %c0_35 = arith.constant 0 : index
    %76 = vector.load %arg5[%c1, %c0_34, %c0_35] : memref<3x384x128xbf16, #tpu.memory_space<vmem>>, vector<1x384x128xbf16>
    %77 = vector.shape_cast %76 : vector<1x384x128xbf16> to vector<384x128xbf16>
    %cst_36 = arith.constant dense<0.000000e+00> : vector<256x128xf32>
    %78 = tpu.matmul %75, %77, %cst_36 {dimension_numbers = #tpu.dot_dimension_numbers<[1], [0], [0], [1], [0, 0, 1, 1], [], []>} : vector<256x384xbf16>, vector<384x128xbf16>, vector<256x128xf32> -> vector<256x128xf32>
    %79 = arith.addf %73, %78 : vector<256x128xf32>
    %80 = vector.extract_strided_slice %63 {offsets = [2, 0, 0], sizes = [16, 16, 384], strides = [1, 1, 1]} : vector<18x16x384xbf16> to vector<16x16x384xbf16>
    %81 = vector.shape_cast %80 : vector<16x16x384xbf16> to vector<256x384xbf16>
    %c2 = arith.constant 2 : index
    %c0_37 = arith.constant 0 : index
    %c0_38 = arith.constant 0 : index
    %82 = vector.load %arg5[%c2, %c0_37, %c0_38] : memref<3x384x128xbf16, #tpu.memory_space<vmem>>, vector<1x384x128xbf16>
    %83 = vector.shape_cast %82 : vector<1x384x128xbf16> to vector<384x128xbf16>
    %cst_39 = arith.constant dense<0.000000e+00> : vector<256x128xf32>
    %84 = tpu.matmul %81, %83, %cst_39 {dimension_numbers = #tpu.dot_dimension_numbers<[1], [0], [0], [1], [0, 0, 1, 1], [], []>} : vector<256x384xbf16>, vector<384x128xbf16>, vector<256x128xf32> -> vector<256x128xf32>
    %85 = arith.addf %79, %84 : vector<256x128xf32>
    %c0_40 = arith.constant 0 : index
    %c0_41 = arith.constant 0 : index
    %c0_42 = arith.constant 0 : index
    %c0_43 = arith.constant 0 : index
    %86 = vector.load %arg7[%c0_40, %c0_41, %c0_42, %c0_43] : memref<1x16x16x128xbf16, #tpu.memory_space<vmem>>, vector<1x16x16x128xbf16>
    %87 = vector.shape_cast %86 : vector<1x16x16x128xbf16> to vector<16x16x128xbf16>
    %88 = vector.shape_cast %87 : vector<16x16x128xbf16> to vector<256x128xbf16>
    %c0_44 = arith.constant 0 : index
    %c0_45 = arith.constant 0 : index
    %89 = vector.load %arg8[%c0_44, %c0_45] : memref<128x128xbf16, #tpu.memory_space<vmem>>, vector<128x128xbf16>
    %cst_46 = arith.constant dense<0.000000e+00> : vector<256x128xf32>
    %90 = tpu.matmul %88, %89, %cst_46 {dimension_numbers = #tpu.dot_dimension_numbers<[1], [0], [0], [1], [0, 0, 1, 1], [], []>} : vector<256x128xbf16>, vector<128x128xbf16>, vector<256x128xf32> -> vector<256x128xf32>
    %91 = arith.addf %85, %90 : vector<256x128xf32>
    %92 = vector.shape_cast %91 : vector<256x128xf32> to vector<16x16x128xf32>
    %93 = tpu.iota {dimensions = array<i32: 0>} : vector<16x1x1xi32>
    %c16_i32_47 = arith.constant 16 : i32
    %94 = arith.muli %arg1, %c16_i32_47 : i32
    %95 = vector.broadcast %94 : i32 to vector<16x1x1xi32>
    %96 = arith.addi %93, %95 : vector<16x1x1xi32>
    %c16_i32_48 = arith.constant 16 : i32
    %97 = vector.broadcast %c16_i32_48 : i32 to vector<16x1x1xi32>
    %98 = arith.cmpi slt, %96, %97 : vector<16x1x1xi32>
    %cst_49 = arith.constant 0.000000e+00 : f32
    %99 = vector.shape_cast %98 : vector<16x1x1xi1> to vector<16x1x1xi1>
    %100 = vector.broadcast %99 : vector<16x1x1xi1> to vector<16x16x128xi1>
    %101 = vector.broadcast %cst_49 : f32 to vector<16x16x128xf32>
    %102 = arith.select %100, %92, %101 : vector<16x16x128xi1>, vector<16x16x128xf32>
    %103 = vector.shape_cast %102 : vector<16x16x128xf32> to vector<1x16x16x128xf32>
    %c0_50 = arith.constant 0 : index
    %c0_51 = arith.constant 0 : index
    %c0_52 = arith.constant 0 : index
    %c0_53 = arith.constant 0 : index
    %104 = vector.load %arg9[%c0_50, %c0_51, %c0_52, %c0_53] : memref<1x16x16x128xf32, #tpu.memory_space<vmem>>, vector<1x16x16x128xf32>
    tpu.vector_store %arg9[%c0_50, %c0_51, %c0_52, %c0_53], %103 {strides = array<i32>} : memref<1x16x16x128xf32, #tpu.memory_space<vmem>>, vector<1x16x16x128xf32>,
    %c0_i32_54 = arith.constant 0 : i32
    %105 = arith.cmpi eq, %arg1, %c0_i32_54 : i32
    %106 = arith.extui %105 : i1 to i32
    %c0_i32_55 = arith.constant 0 : i32
    %107 = arith.cmpi ne, %106, %c0_i32_55 : i32
    scf.if %107 {
      %cst_73 = arith.constant 0.000000e+00 : f32
      %131 = vector.broadcast %cst_73 : f32 to vector<1x1x128xf32>
      %c0_74 = arith.constant 0 : index
      %c0_75 = arith.constant 0 : index
      %c0_76 = arith.constant 0 : index
      %132 = vector.load %arg10[%c0_74, %c0_75, %c0_76] : memref<1x1x128xf32, #tpu.memory_space<vmem>>, vector<1x1x128xf32>
      tpu.vector_store %arg10[%c0_74, %c0_75, %c0_76], %131 {strides = array<i32>} : memref<1x1x128xf32, #tpu.memory_space<vmem>>, vector<1x1x128xf32>,
      %cst_77 = arith.constant 0.000000e+00 : f32
      %133 = vector.broadcast %cst_77 : f32 to vector<1x1x128xf32>
      %c0_78 = arith.constant 0 : index
      %c0_79 = arith.constant 0 : index
      %c0_80 = arith.constant 0 : index
      %134 = vector.load %arg11[%c0_78, %c0_79, %c0_80] : memref<1x1x128xf32, #tpu.memory_space<vmem>>, vector<1x1x128xf32>
      tpu.vector_store %arg11[%c0_78, %c0_79, %c0_80], %133 {strides = array<i32>} : memref<1x1x128xf32, #tpu.memory_space<vmem>>, vector<1x1x128xf32>,
    } else {
    }
    %108 = tpu.iota {dimensions = array<i32: 1>} : vector<1x16x1xi32>
    %c16_i32_56 = arith.constant 16 : i32
    %109 = vector.broadcast %c16_i32_56 : i32 to vector<16x1x1xi32>
    %110 = arith.cmpi slt, %96, %109 : vector<16x1x1xi32>
    %c16_i32_57 = arith.constant 16 : i32
    %111 = vector.broadcast %c16_i32_57 : i32 to vector<1x16x1xi32>
    %112 = arith.cmpi slt, %108, %111 : vector<1x16x1xi32>
    %113 = vector.broadcast %110 : vector<16x1x1xi1> to vector<16x16x1xi1>
    %114 = vector.broadcast %112 : vector<1x16x1xi1> to vector<16x16x1xi1>
    %115 = arith.andi %113, %114 : vector<16x16x1xi1>
    %cst_58 = arith.constant 0.000000e+00 : f32
    %116 = vector.shape_cast %115 : vector<16x16x1xi1> to vector<16x16x1xi1>
    %117 = vector.broadcast %116 : vector<16x16x1xi1> to vector<16x16x128xi1>
    %118 = vector.broadcast %cst_58 : f32 to vector<16x16x128xf32>
    %119 = arith.select %117, %102, %118 : vector<16x16x128xi1>, vector<16x16x128xf32>
    %c0_59 = arith.constant 0 : index
    %c0_60 = arith.constant 0 : index
    %c0_61 = arith.constant 0 : index
    %120 = vector.load %arg10[%c0_59, %c0_60, %c0_61] : memref<1x1x128xf32, #tpu.memory_space<vmem>>, vector<1x1x128xf32>
    %cst_62 = arith.constant dense<0.000000e+00> : vector<128xf32>
    %121 = vector.multi_reduction <add>, %119, %cst_62 [0, 1] : vector<16x16x128xf32> to vector<128xf32>
    %122 = vector.shape_cast %121 : vector<128xf32> to vector<1x1x128xf32>
    %123 = arith.addf %120, %122 : vector<1x1x128xf32>
    %c0_63 = arith.constant 0 : index
    %c0_64 = arith.constant 0 : index
    %c0_65 = arith.constant 0 : index
    %124 = vector.load %arg10[%c0_63, %c0_64, %c0_65] : memref<1x1x128xf32, #tpu.memory_space<vmem>>, vector<1x1x128xf32>
    tpu.vector_store %arg10[%c0_63, %c0_64, %c0_65], %123 {strides = array<i32>} : memref<1x1x128xf32, #tpu.memory_space<vmem>>, vector<1x1x128xf32>,
    %c0_66 = arith.constant 0 : index
    %c0_67 = arith.constant 0 : index
    %c0_68 = arith.constant 0 : index
    %125 = vector.load %arg11[%c0_66, %c0_67, %c0_68] : memref<1x1x128xf32, #tpu.memory_space<vmem>>, vector<1x1x128xf32>
    %126 = arith.mulf %119, %119 : vector<16x16x128xf32>
    %cst_69 = arith.constant dense<0.000000e+00> : vector<128xf32>
    %127 = vector.multi_reduction <add>, %126, %cst_69 [0, 1] : vector<16x16x128xf32> to vector<128xf32>
    %128 = vector.shape_cast %127 : vector<128xf32> to vector<1x1x128xf32>
    %129 = arith.addf %125, %128 : vector<1x1x128xf32>
    %c0_70 = arith.constant 0 : index
    %c0_71 = arith.constant 0 : index
    %c0_72 = arith.constant 0 : index
    %130 = vector.load %arg11[%c0_70, %c0_71, %c0_72] : memref<1x1x128xf32, #tpu.memory_space<vmem>>, vector<1x1x128xf32>
    tpu.vector_store %arg11[%c0_70, %c0_71, %c0_72], %129 {strides = array<i32>} : memref<1x1x128xf32, #tpu.memory_space<vmem>>, vector<1x1x128xf32>,
    return
  }
  func.func @transform_1(%arg0: i32, %arg1: i32) -> (i32, i32, i32) {
    %c0_i32 = arith.constant 0 : i32
    %c0_i32_0 = arith.constant 0 : i32
    %c0_i32_1 = arith.constant 0 : i32
    %c0_i32_2 = arith.constant 0 : i32
    return %c0_i32, %c0_i32_0, %c0_i32_1 : i32, i32, i32
  }
  func.func @transform_2(%arg0: i32, %arg1: i32) -> (i32, i32, i32) {
    %c0_i32 = arith.constant 0 : i32
    %c0_i32_0 = arith.constant 0 : i32
    %c0_i32_1 = arith.constant 0 : i32
    %c0_i32_2 = arith.constant 0 : i32
    return %c0_i32, %c0_i32_0, %c0_i32_1 : i32, i32, i32
  }
  func.func @transform_3(%arg0: i32, %arg1: i32) -> (i32, i32, i32) {
    %c0_i32 = arith.constant 0 : i32
    %c0_i32_0 = arith.constant 0 : i32
    %c0_i32_1 = arith.constant 0 : i32
    %c0_i32_2 = arith.constant 0 : i32
    return %c0_i32, %c0_i32_0, %c0_i32_1 : i32, i32, i32
  }
  func.func @transform_4(%arg0: i32, %arg1: i32) -> (i32, i32, i32) {
    %c0_i32 = arith.constant 0 : i32
    %c0_i32_0 = arith.constant 0 : i32
    %c0_i32_1 = arith.constant 0 : i32
    %c0_i32_2 = arith.constant 0 : i32
    return %c0_i32, %c0_i32_0, %c0_i32_1 : i32, i32, i32
  }
  func.func @transform_5(%arg0: i32, %arg1: i32) -> (i32, i32, i32, i32) {
    %c0_i32 = arith.constant 0 : i32
    %c0_i32_0 = arith.constant 0 : i32
    %c0_i32_1 = arith.constant 0 : i32
    return %arg0, %arg1, %c0_i32, %c0_i32_0 : i32, i32, i32, i32
  }
  func.func @transform_6(%arg0: i32, %arg1: i32) -> (i32, i32) {
    %c0_i32 = arith.constant 0 : i32
    %c0_i32_0 = arith.constant 0 : i32
    %c0_i32_1 = arith.constant 0 : i32
    return %c0_i32, %c0_i32_0 : i32, i32
  }
  func.func @transform_7(%arg0: i32, %arg1: i32) -> (i32, i32, i32, i32) {
    %c0_i32 = arith.constant 0 : i32
    %c0_i32_0 = arith.constant 0 : i32
    %c0_i32_1 = arith.constant 0 : i32
    return %arg0, %arg1, %c0_i32, %c0_i32_0 : i32, i32, i32, i32
  }
  func.func @transform_8(%arg0: i32, %arg1: i32) -> (i32, i32, i32) {
    %c0_i32 = arith.constant 0 : i32
    %c0_i32_0 = arith.constant 0 : i32
    %c0_i32_1 = arith.constant 0 : i32
    return %arg0, %c0_i32, %c0_i32_0 : i32, i32, i32
  }
  func.func @transform_9(%arg0: i32, %arg1: i32) -> (i32, i32, i32) {
    %c0_i32 = arith.constant 0 : i32
    %c0_i32_0 = arith.constant 0 : i32
    %c0_i32_1 = arith.constant 0 : i32
    return %arg0, %c0_i32, %c0_i32_0 : i32, i32, i32
  }
}

</mosaic_0001>

<bundles_post_ra>
// kernel: res_conv_forward.3
= control target key start
LH: loop header
LB: loop body
LE: loop exit
PB: predicated region body
PF: predicated region fallthrough
CT: control target
= control target key end

     0   :  { %s494_s9 = smov 0   ;;  %s496_s10 = smov 0   ;;  %s574_s0 = inlined_call_operand.vmem [shape: f32[2,16,16,128], index: 0, kind: input, shape index: {}]   ;;  %s575_s1 = inlined_call_operand.vmem [shape: f32[2,1,128], index: 1, kind: output, shape index: {0}]   ;;  %s576_s2 = inlined_call_operand.vmem [shape: f32[2,1,128], index: 2, kind: output, shape index: {1}]  }
   0x1   :  { %s498_s11 = smov 0  }
   0x2 LB: > { %s25_s12 = sadd.s32 1, %s472_s10  ;;  %p423_p0 = scmp.ge.s32.totalorder %s476_s11, 1  ;;  %s476_s11 = sphi %s498_s11, %s13_s11   ;;  %s472_s10 = sphi %s496_s10, %s578_s10   ;;  %s468_s9 = sphi %s494_s9, %s577_s9  }
   0x3   : > { %p27_p1 = scmp.ge.s32.totalorder %s25_s12, 2  ;;  %p135_p2 = scmp.lt.s32.totalorder %s476_s11, 3 }
   0x5   : > { %s580_s12 = smov (%p27_p1, %s25_s12), 0  ;;  %p136_p3 = pnand %p423_p0, %p135_p2 }
   0x6   : > { %p164_p4 = scmp.lt.s32.totalorder (!%p136_p3), %s468_s9, 1 }
   0x7   : > { %139 = sbr.rel (%p136_p3) target bundleno = 95 (0x5f), region = 24 }
   0xc   : > { %s582_s9 = smov (!%p164_p4, %s468_s9), 1  ;;  %v478_v0 = vmov 0.0  }
   0xd   : > { %s428_s13 = sshll.u32 %s582_s9, 8  ;;  %s515_s16 = scalar_lea.vmem %s575_s1, %s582_s9 }
   0xe   : > { %s520_s19 = scalar_lea.vmem %s574_s0, %s428_s13  ;;  %184 = vst [vmem:[%s515_s16] sm:$0x1] %v478_v0  ;;  %s526_s22 = scalar_lea.vmem %s576_s2, %s582_s9 }
   0xf   : > { %185 = vst [vmem:[%s526_s22] sm:$0x1] %v478_v0  ;;  %v186_v1 = vld [vmem:[%s520_s19] sm:$0xff]  ;;  %v187_v2 = vld [vmem:[%s520_s19 + $0x8] sm:$0xff]  ;;  %v188_v3 = vld [vmem:[%s520_s19 + $0x10] sm:$0xff] }
  0x10   : > { %v189_v4 = vld [vmem:[%s520_s19 + $0x18] sm:$0xff]  ;;  %v219_v5 = vadd.f32 %v187_v2, %v186_v1  ;;  %v259_v6 = vmul.f32 %v186_v1, %v186_v1  ;;  %v260_v7 = vmul.f32 %v187_v2, %v187_v2  ;;  %v261_v8 = vmul.f32 %v188_v3, %v188_v3  ;;  %v190_v9 = vld [vmem:[%s520_s19 + $0x20] sm:$0xff]  ;;  %v191_v13 = vld [vmem:[%s520_s19 + $0x28] sm:$0xff] }
  0x11   : > { %v262_v11 = vmul.f32 %v189_v4, %v189_v4  ;;  %v263_v15 = vmul.f32 %v190_v9, %v190_v9  ;;  %v192_v17 = vld [vmem:[%s520_s19 + $0x30] sm:$0xff]  ;;  %v264_v19 = vmul.f32 %v191_v13, %v191_v13  ;;  %v193_v21 = vld [vmem:[%s520_s19 + $0x38] sm:$0xff]  ;;  %v194_v25 = vld [vmem:[%s520_s19 + $0x40] sm:$0xff] }
  0x12   : > { %v220_v10 = vadd.f32 %v219_v5, %v188_v3  ;;  %v291_v12 = vadd.f32 %v260_v7, %v259_v6  ;;  %v265_v23 = vmul.f32 %v192_v17, %v192_v17  ;;  %v266_v27 = vmul.f32 %v193_v21, %v193_v21  ;;  %v195_v29 = vld [vmem:[%s520_s19 + $0x48] sm:$0xff]  ;;  %v196_v33 = vld [vmem:[%s520_s19 + $0x50] sm:$0xff]  ;;  %v197_v37 = vld [vmem:[%s520_s19 + $0x58] sm:$0xff] }
  0x13   : > { %v267_v31 = vmul.f32 %v194_v25, %v194_v25  ;;  %v268_v35 = vmul.f32 %v195_v29, %v195_v29  ;;  %v269_v39 = vmul.f32 %v196_v33, %v196_v33  ;;  %v198_v41 = vld [vmem:[%s520_s19 + $0x60] sm:$0xff]  ;;  %v270_v43 = vmul.f32 %v197_v37, %v197_v37  ;;  %v199_v45 = vld [vmem:[%s520_s19 + $0x68] sm:$0xff]  ;;  %v200_v49 = vld [vmem:[%s520_s19 + $0x70] sm:$0xff] }
  0x14   : > { %v221_v14 = vadd.f32 %v220_v10, %v189_v4  ;;  %v292_v16 = vadd.f32 %v291_v12, %v261_v8  ;;  %v271_v47 = vmul.f32 %v198_v41, %v198_v41  ;;  %v272_v51 = vmul.f32 %v199_v45, %v199_v45  ;;  %v201_v53 = vld [vmem:[%s520_s19 + $0x78] sm:$0xff]  ;;  %v202_v57 = vld [vmem:[%s520_s19 + $0x80] sm:$0xff]  ;;  %v203_v61 = vld [vmem:[%s520_s19 + $0x88] sm:$0xff] }
  0x15   : > { %v273_v55 = vmul.f32 %v200_v49, %v200_v49  ;;  %v274_v59 = vmul.f32 %v201_v53, %v201_v53  ;;  %v275_v63 = vmul.f32 %v202_v57, %v202_v57  ;;  %v204_v1 = vld [vmem:[%s520_s19 + $0x90] sm:$0xff]  ;;  %v276_v3 = vmul.f32 %v203_v61, %v203_v61  ;;  %v205_v5 = vld [vmem:[%s520_s19 + $0x98] sm:$0xff] }
  0x16   : > { %v222_v18 = vadd.f32 %v221_v14, %v190_v9  ;;  %v293_v20 = vadd.f32 %v292_v16, %v262_v11  ;;  %v277_v7 = vmul.f32 %v204_v1, %v204_v1  ;;  %v206_v9 = vld [vmem:[%s520_s19 + $0xa0] sm:$0xff]  ;;  %v278_v11 = vmul.f32 %v205_v5, %v205_v5 }
  0x18   : > { %v223_v22 = vadd.f32 %v222_v18, %v191_v13  ;;  %v294_v24 = vadd.f32 %v293_v20, %v263_v15  ;;  %v207_v13 = vld [vmem:[%s520_s19 + $0xa8] sm:$0xff]  ;;  %v279_v15 = vmul.f32 %v206_v9, %v206_v9 }
  0x1a   : > { %v224_v26 = vadd.f32 %v223_v22, %v192_v17  ;;  %v295_v28 = vadd.f32 %v294_v24, %v264_v19  ;;  %v208_v17 = vld [vmem:[%s520_s19 + $0xb0] sm:$0xff]  ;;  %v280_v19 = vmul.f32 %v207_v13, %v207_v13 }
  0x1c   : > { %v225_v30 = vadd.f32 %v224_v26, %v193_v21  ;;  %v296_v32 = vadd.f32 %v295_v28, %v265_v23  ;;  %v209_v21 = vld [vmem:[%s520_s19 + $0xb8] sm:$0xff]  ;;  %v281_v23 = vmul.f32 %v208_v17, %v208_v17 }
  0x1e   : > { %v226_v34 = vadd.f32 %v225_v30, %v194_v25  ;;  %v297_v36 = vadd.f32 %v296_v32, %v266_v27  ;;  %v210_v25 = vld [vmem:[%s520_s19 + $0xc0] sm:$0xff]  ;;  %v282_v27 = vmul.f32 %v209_v21, %v209_v21 }
  0x20   : > { %v227_v38 = vadd.f32 %v226_v34, %v195_v29  ;;  %v298_v40 = vadd.f32 %v297_v36, %v267_v31  ;;  %v211_v29 = vld [vmem:[%s520_s19 + $0xc8] sm:$0xff]  ;;  %v283_v31 = vmul.f32 %v210_v25, %v210_v25 }
  0x22   : > { %v228_v42 = vadd.f32 %v227_v38, %v196_v33  ;;  %v299_v44 = vadd.f32 %v298_v40, %v268_v35  ;;  %v212_v33 = vld [vmem:[%s520_s19 + $0xd0] sm:$0xff]  ;;  %v284_v35 = vmul.f32 %v211_v29, %v211_v29 }
  0x24   : > { %v229_v46 = vadd.f32 %v228_v42, %v197_v37  ;;  %v300_v48 = vadd.f32 %v299_v44, %v269_v39  ;;  %v213_v37 = vld [vmem:[%s520_s19 + $0xd8] sm:$0xff]  ;;  %v285_v39 = vmul.f32 %v212_v33, %v212_v33 }
  0x26   : > { %v230_v50 = vadd.f32 %v229_v46, %v198_v41  ;;  %v301_v52 = vadd.f32 %v300_v48, %v270_v43  ;;  %v214_v41 = vld [vmem:[%s520_s19 + $0xe0] sm:$0xff]  ;;  %v286_v43 = vmul.f32 %v213_v37, %v213_v37 }
  0x28   : > { %v231_v54 = vadd.f32 %v230_v50, %v199_v45  ;;  %v302_v56 = vadd.f32 %v301_v52, %v271_v47  ;;  %v215_v45 = vld [vmem:[%s520_s19 + $0xe8] sm:$0xff]  ;;  %v287_v47 = vmul.f32 %v214_v41, %v214_v41 }
  0x2a   : > { %v232_v58 = vadd.f32 %v231_v54, %v200_v49  ;;  %v303_v60 = vadd.f32 %v302_v56, %v272_v51  ;;  %v216_v49 = vld [vmem:[%s520_s19 + $0xf0] sm:$0xff]  ;;  %v288_v51 = vmul.f32 %v215_v45, %v215_v45 }
  0x2c   : > { %v233_v62 = vadd.f32 %v232_v58, %v201_v53  ;;  %v304_v0 = vadd.f32 %v303_v60, %v273_v55  ;;  %v217_v53 = vld [vmem:[%s520_s19 + $0xf8] sm:$0xff]  ;;  %v289_v55 = vmul.f32 %v216_v49, %v216_v49 }
  0x2d   : > { %v290_v58 = vmul.f32 %v217_v53, %v217_v53 }
  0x2e   : > { %v234_v2 = vadd.f32 %v233_v62, %v202_v57  ;;  %v305_v4 = vadd.f32 %v304_v0, %v274_v59 }
  0x30   : > { %v235_v6 = vadd.f32 %v234_v2, %v203_v61  ;;  %v306_v8 = vadd.f32 %v305_v4, %v275_v63 }
  0x32   : > { %v236_v10 = vadd.f32 %v235_v6, %v204_v1  ;;  %v307_v12 = vadd.f32 %v306_v8, %v276_v3 }
  0x34   : > { %v237_v14 = vadd.f32 %v236_v10, %v205_v5  ;;  %v308_v16 = vadd.f32 %v307_v12, %v277_v7  ;;  %v218_v7 = vld [vmem:[%s515_s16] sm:$0x1] }
  0x35   : > { %v258_v12 = vld [vmem:[%s526_s22] sm:$0x1] }
  0x36   : > { %v238_v18 = vadd.f32 %v237_v14, %v206_v9  ;;  %v309_v20 = vadd.f32 %v308_v16, %v278_v11 }
  0x38   : > { %v239_v22 = vadd.f32 %v238_v18, %v207_v13  ;;  %v310_v24 = vadd.f32 %v309_v20, %v279_v15 }
  0x3a   : > { %v240_v26 = vadd.f32 %v239_v22, %v208_v17  ;;  %v311_v28 = vadd.f32 %v310_v24, %v280_v19 }
  0x3c   : > { %v241_v30 = vadd.f32 %v240_v26, %v209_v21  ;;  %v312_v32 = vadd.f32 %v311_v28, %v281_v23 }
  0x3e   : > { %v242_v34 = vadd.f32 %v241_v30, %v210_v25  ;;  %v313_v36 = vadd.f32 %v312_v32, %v282_v27 }
  0x40   : > { %v243_v38 = vadd.f32 %v242_v34, %v211_v29  ;;  %v314_v40 = vadd.f32 %v313_v36, %v283_v31 }
  0x42   : > { %v244_v42 = vadd.f32 %v243_v38, %v212_v33  ;;  %v315_v44 = vadd.f32 %v314_v40, %v284_v35 }
  0x44   : > { %v245_v46 = vadd.f32 %v244_v42, %v213_v37  ;;  %v316_v48 = vadd.f32 %v315_v44, %v285_v39 }
  0x46   : > { %v246_v50 = vadd.f32 %v245_v46, %v214_v41  ;;  %v317_v52 = vadd.f32 %v316_v48, %v286_v43 }
  0x48   : > { %v247_v54 = vadd.f32 %v246_v50, %v215_v45  ;;  %v318_v56 = vadd.f32 %v317_v52, %v287_v47 }
  0x4a   : > { %v248_v57 = vadd.f32 %v247_v54, %v216_v49  ;;  %v319_v59 = vadd.f32 %v318_v56, %v288_v51 }
  0x4c   : > { %v249_v60 = vadd.f32 %v248_v57, %v217_v53  ;;  %v320_v61 = vadd.f32 %v319_v59, %v289_v55 }
  0x4e   : > { %v250_v62 = vrot.slane %v249_v60, 4  ;;  %v321_v63 = vadd.f32 %v320_v61, %v290_v58 }
  0x50   : > { %v251_v0 = vadd.f32 %v250_v62, %v249_v60  ;;  %v322_v1 = vrot.slane %v321_v63, 4 }
  0x52   : > { %v252_v2 = vrot.slane %v251_v0, 2  ;;  %v323_v3 = vadd.f32 %v322_v1, %v321_v63 }
  0x54   : > { %v253_v4 = vadd.f32 %v252_v2, %v251_v0  ;;  %v324_v5 = vrot.slane %v323_v3, 2 }
  0x56   : > { %v254_v6 = vrot.slane %v253_v4, 1  ;;  %v325_v8 = vadd.f32 %v324_v5, %v323_v3 }
  0x58   : > { %v255_v9 = vadd.f32 %v254_v6, %v253_v4  ;;  %v326_v10 = vrot.slane %v325_v8, 1 }
  0x5a   : > { %v256_v11 = vadd.f32 %v255_v9, %v218_v7  ;;  %v327_v13 = vadd.f32 %v326_v10, %v325_v8 }
  0x5c   : > { %257 = vst [vmem:[%s515_s16] sm:$0x1] %v256_v11  ;;  %v328_v14 = vadd.f32 %v327_v13, %v258_v12 }
  0x5e   : > { %329 = vst [vmem:[%s526_s22] sm:$0x1] %v328_v14 }
  0x5f PF: > { %s13_s11 = sadd.s32 1, %s476_s11   ;;  %s577_s9 = smov %s472_s10 }
  0x60   : > { %p10_p5 = scmp.ge.s32.totalorder %s13_s11, 4   ;;  %s578_s10 = smov %s580_s12 }
  0x62   :  { %12 = sbr.rel (!%p10_p5) target bundleno = 2 (0x2), region = 70 }

// kernel: res_conv_forward.4
= control target key start
LH: loop header
LB: loop body
LE: loop exit
PB: predicated region body
PF: predicated region fallthrough
CT: control target
= control target key end

     0   :  { %s4576_s24 = smov 0   ;;  %s4578_s25 = smov 0   ;;  %s5911_s0 = inlined_call_operand.vmem [shape: f32[2,18,24,128], index: 0, kind: input, shape index: {}]   ;;  %s5912_s1 = inlined_call_operand.vmem [shape: f32[1,1,128], index: 1, kind: input, shape index: {}]   ;;  %s5913_s2 = inlined_call_operand.vmem [shape: f32[1,1,128], index: 2, kind: input, shape index: {}]   ;;  %s5914_s3 = inlined_call_operand.vmem [shape: bf16[3,384,128], index: 3, kind: input, shape index: {}]   ;;  %s5915_s4 = inlined_call_operand.vmem [shape: f32[1,1,128], index: 4, kind: input, shape index: {}]   ;;  %s5916_s5 = inlined_call_operand.vmem [shape: bf16[2,16,16,128], index: 5, kind: output, shape index: {0}]   ;;  %s5917_s6 = inlined_call_operand.vmem [shape: f32[2,1,128], index: 6, kind: output, shape index: {1}]   ;;  %s5918_s7 = inlined_call_operand.vmem [shape: f32[2,1,128], index: 7, kind: output, shape index: {2}]  }
   0x1   :  { %s4580_s26 = smov 0  }
   0x2 LB: > { %s30_s27 = sadd.s32 1, %s4528_s25  ;;  %p3785_p0 = scmp.ge.s32.totalorder %s4532_s26, 1  ;;  %s4532_s26 = sphi %s4580_s26, %s18_s26   ;;  %s4528_s25 = sphi %s4578_s25, %s6091_s25   ;;  %s4524_s24 = sphi %s4576_s24, %s6090_s24  }
   0x3   : > { %p32_p1 = scmp.ge.s32.totalorder %s30_s27, 2  ;;  %p222_p2 = scmp.lt.s32.totalorder %s4532_s26, 3 }
   0x5   : > { %s6093_s27 = smov (%p32_p1, %s30_s27), 0  ;;  %p223_p3 = pnand %p3785_p0, %p222_p2 }
   0x7   : > { %226 = sbr.rel (%p223_p3) target bundleno = 796 (0x31c), region = 36 }
   0xc   : > { %p259_p4 = scmp.lt.s32.totalorder %s4524_s24, 1  ;;  %s291_s28 = smul.u32 432, %s4524_s24 }
   0xe   : > { %s6095_s24 = smov (!%p259_p4, %s4524_s24), 1  ;;  %s4597_s8 = scalar_lea.vmem %s5911_s0, %s291_s28 }
   0xf   : > { %s4284_s9 = sshll.u32 %s6095_s24, 7  ;;  %s4602_s12 = scalar_lea.vmem %s5917_s6, %s6095_s24  ;;  %v4605_v0 = vld [vmem:[%s4597_s8 + $0x18] sm:$0xff]  ;;  %v4608_v1 = vld [vmem:[%s4597_s8 + $0x20] sm:$0xff]  ;;  %v4611_v2 = vld [vmem:[%s4597_s8 + $0x28] sm:$0xff] }
  0x10   : > { %s4616_s15 = scalar_lea.vmem %s5916_s5, %s4284_s9  ;;  %s4621_s18 = scalar_lea.vmem %s5918_s7, %s6095_s24  ;;  %v4624_v3 = vld [vmem:[%s4597_s8 + $0x30] sm:$0xff]  ;;  %v4627_v4 = vld [vmem:[%s4597_s8 + $0x38] sm:$0xff]  ;;  %v4630_v5 = vld [vmem:[%s4597_s8 + $0x40] sm:$0xff] }
  0x11   : > { %v4633_v6 = vld [vmem:[%s4597_s8 + $0x48] sm:$0xff]  ;;  %v4636_v7 = vld [vmem:[%s4597_s8 + $0x50] sm:$0xff]  ;;  %v4639_v8 = vld [vmem:[%s4597_s8 + $0x58] sm:$0xff] }
  0x12   : > { %v330_v9 = vld [vmem:[%s4597_s8 + $0x60] sm:$0xff]  ;;  %v332_v10 = vld [vmem:[%s4597_s8 + $0x68] sm:$0xff]  ;;  %v4644_v11 = vld [vmem:[%s4597_s8 + $0x70] sm:$0xff] }
  0x13   : > { %v4647_v12 = vld [vmem:[%s4597_s8 + $0x78] sm:$0xff]  ;;  %v4650_v13 = vld [vmem:[%s4597_s8 + $0x80] sm:$0xff]  ;;  %v4653_v14 = vld [vmem:[%s4597_s8 + $0x88] sm:$0xff] }
  0x14   : > { %v4656_v15 = vld [vmem:[%s4597_s8 + $0x90] sm:$0xff]  ;;  %v4659_v16 = vld [vmem:[%s4597_s8 + $0x98] sm:$0xff]  ;;  %v4662_v17 = vld [vmem:[%s4597_s8 + $0xa0] sm:$0xff] }
  0x15   : > { %v4665_v18 = vld [vmem:[%s4597_s8 + $0xa8] sm:$0xff]  ;;  %v4668_v19 = vld [vmem:[%s4597_s8 + $0xb0] sm:$0xff]  ;;  %v4671_v20 = vld [vmem:[%s4597_s8 + $0xb8] sm:$0xff] }
  0x16   : > { %v354_v21 = vld [vmem:[%s4597_s8 + $0xc0] sm:$0xff]  ;;  %v356_v22 = vld [vmem:[%s4597_s8 + $0xc8] sm:$0xff]  ;;  %v4676_v23 = vld [vmem:[%s4597_s8 + $0xd0] sm:$0xff] }
  0x17   : > { %v4679_v24 = vld [vmem:[%s4597_s8 + $0xd8] sm:$0xff]  ;;  %v4682_v25 = vld [vmem:[%s4597_s8 + $0xe0] sm:$0xff]  ;;  %v4685_v26 = vld [vmem:[%s4597_s8 + $0xe8] sm:$0xff] }
  0x18   : > { %v4688_v27 = vld [vmem:[%s4597_s8 + $0xf0] sm:$0xff]  ;;  %v4691_v28 = vld [vmem:[%s4597_s8 + $0xf8] sm:$0xff]  ;;  %v4694_v29 = vld [vmem:[%s4597_s8 + $0x100] sm:$0xff] }
  0x19   : > { %v4697_v30 = vld [vmem:[%s4597_s8 + $0x108] sm:$0xff]  ;;  %v4700_v31 = vld [vmem:[%s4597_s8 + $0x110] sm:$0xff]  ;;  %v4703_v32 = vld [vmem:[%s4597_s8 + $0x118] sm:$0xff] }
  0x1a   : > { %v378_v33 = vld [vmem:[%s4597_s8 + $0x120] sm:$0xff]  ;;  %v380_v34 = vld [vmem:[%s4597_s8 + $0x128] sm:$0xff]  ;;  %v4708_v35 = vld [vmem:[%s4597_s8 + $0x130] sm:$0xff] }
  0x1b   : > { %v4711_v36 = vld [vmem:[%s4597_s8 + $0x138] sm:$0xff]  ;;  %v4714_v37 = vld [vmem:[%s4597_s8 + $0x140] sm:$0xff]  ;;  %v4717_v38 = vld [vmem:[%s4597_s8 + $0x148] sm:$0xff] }
  0x1c   : > { %v4720_v39 = vld [vmem:[%s4597_s8 + $0x150] sm:$0xff]  ;;  %v4723_v40 = vld [vmem:[%s4597_s8 + $0x158] sm:$0xff]  ;;  %v4726_v41 = vld [vmem:[%s4597_s8 + $0x160] sm:$0xff] }
  0x1d   : > { %v4729_v42 = vld [vmem:[%s4597_s8 + $0x168] sm:$0xff]  ;;  %v4732_v43 = vld [vmem:[%s4597_s8 + $0x170] sm:$0xff]  ;;  %v4735_v44 = vld [vmem:[%s4597_s8 + $0x178] sm:$0xff] }
  0x1e   : > { %v4738_v45 = vld [vmem:[%s4597_s8 + $0x180] sm:$0xff]  ;;  %v4741_v46 = vld [vmem:[%s4597_s8 + $0x188] sm:$0xff]  ;;  %v4744_v47 = vld [vmem:[%s4597_s8 + $0x190] sm:$0xff] }
  0x1f   : > { %5943 = vst [vmem:[#allocation7_spill] sm:$0xff] %v4744_v47 }
  0x20   : > { %419 = vsyncadd [#allocation3], 6912 }
  0x21   : > { %4520 = dma.done.wait [#allocation3], 6912 }
  0x22   : > { %4521 = vsyncadd [#allocation3], 4294960384  ;;  %v4292_v48 = vld [vmem:[%s5914_s3 + $0x38] sm:$0xff]  ;;  %v4291_v49 = vld [vmem:[%s5914_s3 + $0x30] sm:$0xff]  ;;  %v808_v54 = vlaneseq  ;;  %vm1406_vm2 = vsmask.f32 7424 }
  0x23   : > { %1910 = vmatpush.bf16.msra.mxu0 %v4292_v48  ;;  %4452 = vmatpush.bf16.msra.mxu1 %v4292_v48  ;;  %v4755_v50 = vld [vmem:[%s5912_s1] ss:$0 sm:$0xff]  ;;  %v4290_v53 = vld [vmem:[%s5914_s3 + $0x28] sm:$0xff]  ;;  %vm1641_vm3 = vcmask 1046528  }
  0x24   : > { %4453 = vmatpush.bf16.msra.mxu2 %v4292_v48  ;;  %4454 = vmatpush.bf16.msra.mxu3 %v4292_v48  ;;  %v636_v51 = vmul.f32 %v4755_v50, %v330_v9  ;;  %v4761_v52 = vld [vmem:[%s5913_s2] ss:$0 sm:$0xff]  ;;  %v648_v55 = vmul.f32 %v4755_v50, %v354_v21  ;;  %v660_v56 = vmul.f32 %v4755_v50, %v378_v33  ;;  %v4774_v61 = vshrl.u32 %v808_v54, 7  ;;  %v4288_v33 = vld [vmem:[%s5914_s3 + $0x18] sm:$0xff] }
  0x25   : > { %v637_v57 = vmul.f32 %v4755_v50, %v332_v10  ;;  %v649_v59 = vmul.f32 %v4755_v50, %v356_v22  ;;  %v4289_v60 = vld [vmem:[%s5914_s3 + $0x20] sm:$0xff]  ;;  %v661_v63 = vmul.f32 %v4755_v50, %v380_v34 }
  0x26   : > { %v694_v58 = vadd.f32 %v4761_v52, %v636_v51  ;;  %v706_v62 = vadd.f32 %v4761_v52, %v648_v55  ;;  %v718_v9 = vadd.f32 %v4761_v52, %v660_v56  ;;  %vm866_vm0 = vcmp.ge.s32.totalorder %v4774_v61, 1  ;;  %v4287_v55 = vld [vmem:[%s5914_s3 + $0x10] sm:$0xff] }
  0x27   : > { %1911 = vmatpush.bf16.msra.mxu0 %v4291_v49  ;;  %4455 = vmatpush.bf16.msra.mxu1 %v4291_v49  ;;  %v695_v10 = vadd.f32 %v4761_v52, %v637_v57  ;;  %v707_v22 = vadd.f32 %v4761_v52, %v649_v59  ;;  %v719_v34 = vadd.f32 %v4761_v52, %v661_v63 }
  0x28   : > { %4456 = vmatpush.bf16.msra.mxu2 %v4291_v49  ;;  %4457 = vmatpush.bf16.msra.mxu3 %v4291_v49  ;;  %v748_v21 = vmax.f32 %v694_v58, 0.0  ;;  %v760_v48 = vmax.f32 %v706_v62, 0.0  ;;  %v772_v49 = vmax.f32 %v718_v9, 0.0  ;;  %v627_v62 = vmul.f32 %v4755_v50, %v4605_v0 }
  0x29   : > { %v749_v51 = vmax.f32 %v695_v10, 0.0  ;;  %v761_v54 = vmax.f32 %v707_v22, 0.0  ;;  %v773_v57 = vmax.f32 %v719_v34, 0.0  ;;  %v639_v10 = vmul.f32 %v4755_v50, %v4647_v12 }
  0x2a   : > { %v1160_v56 = vsel %vm866_vm0, %v760_v48, 0.0  ;;  %v1172_v58 = vsel %vm866_vm0, %v772_v49, 0.0  ;;  %v651_v48 = vmul.f32 %v4755_v50, %v4679_v24  ;;  %v4534_v34 = vmov 0.0|0.0  }
  0x2b   : > { %1912 = vmatpush.bf16.msra.mxu0 %v4290_v53  ;;  %4458 = vmatpush.bf16.msra.mxu1 %v4290_v53  ;;  %v1214_v63 = vpack.c.bf16 %v1160_v56, %v1160_v56  ;;  %v1215_v9 = vpack.c.bf16 %v761_v54, %v761_v54  ;;  %v1226_v22 = vpack.c.bf16 %v1172_v58, %v1172_v58  ;;  %v1280_v0 = vunpack.c.l.b16 %v4534_v34 }
  0x2c   : > { %4459 = vmatpush.bf16.msra.mxu2 %v4290_v53  ;;  %4460 = vmatpush.bf16.msra.mxu3 %v4290_v53  ;;  %v1148_v53 = vsel %vm866_vm0, %v748_v21, 0.0  ;;  %v4286_v21 = vld [vmem:[%s5914_s3 + $0x8] sm:$0xff]  ;;  %v628_v49 = vmul.f32 %v4755_v50, %v4608_v1  ;;  %v663_v12 = vmul.f32 %v4755_v50, %v4711_v36  ;;  %v685_v54 = vadd.f32 %v4761_v52, %v627_v62  ;;  %v4285_v1 = vld [vmem:[%s5914_s3] sm:$0xff] }
  0x2d   : > { %v1202_v59 = vpack.c.bf16 %v1148_v53, %v1148_v53  ;;  %v640_v56 = vmul.f32 %v4755_v50, %v4650_v13  ;;  %v1297_v58 = vunpack.c.l.b16 %v1215_v9  ;;  %v697_v24 = vadd.f32 %v4761_v52, %v639_v10  ;;  %v4316_v9 = vld [vmem:[%s5914_s3 + $0xf8] sm:$0xff] }
  0x2e   : > { %v1304_v36 = vunpack.c.l.b16 %v1226_v22  ;;  %v664_v13 = vmul.f32 %v4755_v50, %v4714_v37  ;;  %v686_v62 = vadd.f32 %v4761_v52, %v628_v49  ;;  %v739_v10 = vmax.f32 %v685_v54, 0.0 }
  0x2f   : > { %1913 = vmatpush.bf16.msra.mxu0 %v4289_v60  ;;  %4461 = vmatpush.bf16.msra.mxu1 %v4289_v60  ;;  %v698_v22 = vadd.f32 %v4761_v52, %v640_v56  ;;  %v4307_v56 = vld [vmem:[%s5914_s3 + $0xb0] sm:$0xff] }
  0x30   : > { %4462 = vmatpush.bf16.msra.mxu2 %v4289_v60  ;;  %4463 = vmatpush.bf16.msra.mxu3 %v4289_v60  ;;  %v1203_v60 = vpack.c.bf16 %v749_v51, %v749_v51  ;;  %v1288_v51 = vunpack.c.l.b16 %v1202_v59  ;;  %v722_v47 = vadd.f32 %v4761_v52, %v664_v13 }
  0x32   : > { %v1289_v53 = vunpack.c.l.b16 %v1203_v60  ;;  %v709_v60 = vadd.f32 %v4761_v52, %v651_v48 }
  0x33   : > { %1914 = vmatpush.bf16.msra.mxu0 %v4288_v33  ;;  %4464 = vmatpush.bf16.msra.mxu1 %v4288_v33 }
  0x34   : > { %4465 = vmatpush.bf16.msra.mxu2 %v4288_v33  ;;  %4466 = vmatpush.bf16.msra.mxu3 %v4288_v33  ;;  %v1227_v33 = vpack.c.bf16 %v773_v57, %v773_v57  ;;  %v1296_v57 = vunpack.c.l.b16 %v1214_v63  ;;  %v721_v63 = vadd.f32 %v4761_v52, %v663_v12  ;;  %v4831_v37 = vpack.c.b16 %v1289_v53, %v1288_v51  ;;  %v4324_v51 = vld [vmem:[%s5914_s3 + $0x138] sm:$0xff] }
  0x35   : > { %v763_v12 = vmax.f32 %v709_v60, 0.0  ;;  %v740_v53 = vmax.f32 %v686_v62, 0.0  ;;  %v4299_v60 = vld [vmem:[%s5914_s3 + $0x70] sm:$0xff] }
  0x36   : > { %v1305_v59 = vunpack.c.l.b16 %v1227_v33  ;;  %v4829_v33 = vpack.c.b16 %v1280_v0, %v1280_v0  ;;  %5945 = vst [vmem:[#allocation9_spill] sm:$0xff] %v4831_v37  ;;  %v4834_v34 = vpack.c.b16 %v1297_v58, %v1296_v57  ;;  %v4300_v0 = vld [vmem:[%s5914_s3 + $0x78] sm:$0xff]  ;;  %v775_v54 = vmax.f32 %v721_v63, 0.0  ;;  %v4315_v57 = vld [vmem:[%s5914_s3 + $0xf0] sm:$0xff] }
  0x37   : > { %1915 = vmatpush.bf16.msra.mxu0 %v4287_v55  ;;  %4467 = vmatpush.bf16.msra.mxu1 %v4287_v55  ;;  %v1139_v58 = vsel %vm866_vm0, %v739_v10, 0.0  ;;  %v1194_v62 = vpack.c.bf16 %v740_v53, %v740_v53 }
  0x38   : > { %4468 = vmatpush.bf16.msra.mxu2 %v4287_v55  ;;  %4469 = vmatpush.bf16.msra.mxu3 %v4287_v55  ;;  %v652_v55 = vmul.f32 %v4755_v50, %v4682_v25  ;;  %v4308_v25 = vld [vmem:[%s5914_s3 + $0xb8] sm:$0xff]  ;;  %5944 = vst [vmem:[#allocation8_spill] sm:$0xff] %v4829_v33  ;;  %v4836_v49 = vpack.c.b16 %v1305_v59, %v1304_v36  ;;  %v1163_v36 = vsel %vm866_vm0, %v763_v12, 0.0  ;;  %v776_v59 = vmax.f32 %v722_v47, 0.0 }
  0x39   : > { %5946 = vst [vmem:[#allocation10_spill] sm:$0xff] %v4834_v34  ;;  %v1193_v13 = vpack.c.bf16 %v1139_v58, %v1139_v58  ;;  %v1175_v63 = vsel %vm866_vm0, %v775_v54, 0.0  ;;  %v1217_v12 = vpack.c.bf16 %v1163_v36, %v1163_v36  ;;  %v666_v54 = vmul.f32 %v4755_v50, %v4720_v39  ;;  %v4298_v58 = vld [vmem:[%s5914_s3 + $0x68] sm:$0xff]  ;;  %v4305_v39 = vld [vmem:[%s5914_s3 + $0xa0] sm:$0xff] }
  0x3a   : > { %v710_v48 = vadd.f32 %v4761_v52, %v652_v55  ;;  %v1230_v53 = vpack.c.bf16 %v776_v59, %v776_v59  ;;  %v4313_v36 = vld [vmem:[%s5914_s3 + $0xe0] sm:$0xff]  ;;  %v643_v59 = vmul.f32 %v4755_v50, %v4659_v16 }
  0x3b   : > { %1916 = vmatpush.bf16.msra.mxu0 %v4286_v21  ;;  %4470 = vmatpush.bf16.msra.mxu1 %v4286_v21  ;;  %v4297_v16 = vld [vmem:[%s5914_s3 + $0x60] sm:$0xff] }
  0x3c   : > { %4471 = vmatpush.bf16.msra.mxu2 %v4286_v21  ;;  %4472 = vmatpush.bf16.msra.mxu3 %v4286_v21  ;;  %v751_v21 = vmax.f32 %v697_v24, 0.0  ;;  %v752_v24 = vmax.f32 %v698_v22, 0.0  ;;  %v4306_v22 = vld [vmem:[%s5914_s3 + $0xa8] sm:$0xff] }
  0x3e   : > { %v1151_v55 = vsel %vm866_vm0, %v751_v21, 0.0  ;;  %v1206_v10 = vpack.c.bf16 %v752_v24, %v752_v24  ;;  %v4314_v21 = vld [vmem:[%s5914_s3 + $0xe8] sm:$0xff] }
  0x3f   : > { %1917 = vmatpush.bf16.msra.mxu0 %v4285_v1  ;;  %4473 = vmatpush.bf16.msra.mxu1 %v4285_v1  ;;  %v1205_v47 = vpack.c.bf16 %v1151_v55, %v1151_v55 }
  0x40   : > { %4474 = vmatpush.bf16.msra.mxu2 %v4285_v1  ;;  %4475 = vmatpush.bf16.msra.mxu3 %v4285_v1  ;;  %v764_v1 = vmax.f32 %v710_v48, 0.0  ;;  %v642_v48 = vmul.f32 %v4755_v50, %v4656_v15  ;;  %v4322_v15 = vld [vmem:[%s5914_s3 + $0x128] sm:$0xff] }
  0x41   : > { %v1290_v55 = vunpack.c.l.b16 %v1205_v47  ;;  %v667_v47 = vmul.f32 %v4755_v50, %v4723_v40 }
  0x42   : > { %1918 = vmatmul.bf16.vlgmr.msra.gmra.mxu0 %v4829_v33  ;;  %1938 = vmatmul.bf16.vlgmr.msra.gmra.mxu1 %v4831_v37 }
  0x43   : > { %1958 = vmatmul.bf16.vlgmr.msra.gmra.mxu2 %v4834_v34  ;;  %1978 = vmatmul.bf16.vlgmr.msra.gmra.mxu3 %v4836_v49 }
  0x44   : > { %2088 = vmatpush.bf16.msrb.mxu2 %v4308_v25  ;;  %2402 = vmatpush.bf16.msrb.mxu3 %v4316_v9  ;;  %v4323_v25 = vld [vmem:[%s5914_s3 + $0x130] sm:$0xff]  ;;  %v630_v9 = vmul.f32 %v4755_v50, %v4624_v3  ;;  %v654_v3 = vmul.f32 %v4755_v50, %v4688_v27  ;;  %v631_v27 = vmul.f32 %v4755_v50, %v4627_v4  ;;  %v1298_v4 = vunpack.c.l.b16 %v1217_v12  ;;  %v4304_v12 = vld [vmem:[%s5914_s3 + $0x98] sm:$0xff] }
  0x45   : > { %1999 = vmatpush.bf16.msrb.mxu1 %v4300_v0  ;;  %2491 = vmatpush.bf16.msrb.mxu0 %v4324_v51  ;;  %v1218_v0 = vpack.c.bf16 %v764_v1, %v764_v1  ;;  %v1229_v51 = vpack.c.bf16 %v1175_v63, %v1175_v63  ;;  %v1291_v1 = vunpack.c.l.b16 %v1206_v10  ;;  %v724_v10 = vadd.f32 %v4761_v52, %v666_v54 }
  0x46   : > { %v688_v24 = vadd.f32 %v4761_v52, %v630_v9  ;;  %v712_v63 = vadd.f32 %v4761_v52, %v654_v3  ;;  %v1307_v9 = vunpack.c.l.b16 %v1230_v53 }
  0x48   : > { %2089 = vmatpush.bf16.msrb.mxu2 %v4307_v56  ;;  %2403 = vmatpush.bf16.msrb.mxu3 %v4315_v57  ;;  %v1282_v56 = vunpack.c.l.b16 %v1193_v13  ;;  %v1283_v57 = vunpack.c.l.b16 %v1194_v62  ;;  %v1299_v13 = vunpack.c.l.b16 %v1218_v0  ;;  %v655_v62 = vmul.f32 %v4755_v50, %v4691_v28  ;;  %v4321_v28 = vld [vmem:[%s5914_s3 + $0x120] sm:$0xff]  ;;  %v4312_v0 = vld [vmem:[%s5914_s3 + $0xd8] sm:$0xff] }
  0x49   : > { %2000 = vmatpush.bf16.msrb.mxu1 %v4299_v60  ;;  %2492 = vmatpush.bf16.msrb.mxu0 %v4323_v25  ;;  %v700_v60 = vadd.f32 %v4761_v52, %v642_v48  ;;  %v1306_v25 = vunpack.c.l.b16 %v1229_v51  ;;  %v701_v48 = vadd.f32 %v4761_v52, %v643_v59  ;;  %v4923_v51 = vpack.c.b16 %v1291_v1, %v1290_v55  ;;  %v4303_v59 = vld [vmem:[%s5914_s3 + $0x90] sm:$0xff] }
  0x4a   : > { %v4921_v3 = vpack.c.b16 %v1283_v57, %v1282_v56  ;;  %v713_v53 = vadd.f32 %v4761_v52, %v655_v62  ;;  %v766_v54 = vmax.f32 %v712_v63, 0.0  ;;  %v4296_v56 = vld [vmem:[%s5914_s3 + $0x58] sm:$0xff] }
  0x4b   : > { %v754_v40 = vmax.f32 %v700_v60, 0.0  ;;  %5947 = vst [vmem:[#allocation11_spill] sm:$0xff] %v4923_v51  ;;  %v4320_v57 = vld [vmem:[%s5914_s3 + $0x118] sm:$0xff]  ;;  %v755_v1 = vmax.f32 %v701_v48, 0.0  ;;  %v4311_v60 = vld [vmem:[%s5914_s3 + $0xd0] sm:$0xff]  ;;  %v4302_v48 = vld [vmem:[%s5914_s3 + $0x88] sm:$0xff] }
  0x4c   : > { %2090 = vmatpush.bf16.msrb.mxu2 %v4306_v22  ;;  %2404 = vmatpush.bf16.msrb.mxu3 %v4314_v21  ;;  %v689_v22 = vadd.f32 %v4761_v52, %v631_v27  ;;  %v742_v21 = vmax.f32 %v688_v24, 0.0  ;;  %v725_v27 = vadd.f32 %v4761_v52, %v667_v47  ;;  %v778_v24 = vmax.f32 %v724_v10, 0.0  ;;  %v4295_v10 = vld [vmem:[%s5914_s3 + $0x50] sm:$0xff] }
  0x4d   : > { %2001 = vmatpush.bf16.msrb.mxu1 %v4298_v58  ;;  %2493 = vmatpush.bf16.msrb.mxu0 %v4322_v15  ;;  %v4926_v58 = vpack.c.b16 %v1299_v13, %v1298_v4  ;;  %v4928_v15 = vpack.c.b16 %v1307_v9, %v1306_v25  ;;  %v767_v4 = vmax.f32 %v713_v53, 0.0  ;;  %v1166_v13 = vsel %vm866_vm0, %v766_v54, 0.0 }
  0x4e   : > { %v1142_v55 = vsel %vm866_vm0, %v742_v21, 0.0  ;;  %v779_v62 = vmax.f32 %v725_v27, 0.0  ;;  %v1178_v63 = vsel %vm866_vm0, %v778_v24, 0.0  ;;  %v633_v21 = vmul.f32 %v4755_v50, %v4633_v6 }
  0x4f   : > { %v1196_v25 = vpack.c.bf16 %v1142_v55, %v1142_v55  ;;  %v645_v53 = vmul.f32 %v4755_v50, %v4665_v18  ;;  %v657_v27 = vmul.f32 %v4755_v50, %v4697_v30  ;;  %v634_v6 = vmul.f32 %v4755_v50, %v4636_v7  ;;  %v4318_v18 = vld [vmem:[%s5914_s3 + $0x108] sm:$0xff]  ;;  %v4301_v7 = vld [vmem:[%s5914_s3 + $0x80] sm:$0xff] }
  0x50   : > { %2091 = vmatpush.bf16.msrb.mxu2 %v4305_v39  ;;  %2405 = vmatpush.bf16.msrb.mxu3 %v4313_v36  ;;  %v743_v39 = vmax.f32 %v689_v22, 0.0  ;;  %v1154_v36 = vsel %vm866_vm0, %v754_v40, 0.0  ;;  %v1209_v22 = vpack.c.bf16 %v755_v1, %v755_v1  ;;  %v4310_v40 = vld [vmem:[%s5914_s3 + $0xc8] sm:$0xff]  ;;  %v1233_v54 = vpack.c.bf16 %v779_v62, %v779_v62 }
  0x51   : > { %2002 = vmatpush.bf16.msrb.mxu1 %v4297_v16  ;;  %2494 = vmatpush.bf16.msrb.mxu0 %v4321_v28  ;;  %v1208_v47 = vpack.c.bf16 %v1154_v36, %v1154_v36  ;;  %v4319_v16 = vld [vmem:[%s5914_s3 + $0x110] sm:$0xff]  ;;  %v1220_v28 = vpack.c.bf16 %v1166_v13, %v1166_v13  ;;  %v1284_v24 = vunpack.c.l.b16 %v1196_v25  ;;  %v691_v36 = vadd.f32 %v4761_v52, %v633_v21 }
  0x52   : > { %1923 = vmatmul.bf16.gmra.mxu0 %v4921_v3  ;;  %1943 = vmatmul.bf16.gmra.mxu1 %v4923_v51  ;;  %v1197_v9 = vpack.c.bf16 %v743_v39, %v743_v39  ;;  %v1293_v30 = vunpack.c.l.b16 %v1209_v22  ;;  %v703_v13 = vadd.f32 %v4761_v52, %v645_v53  ;;  %v1309_v62 = vunpack.c.l.b16 %v1233_v54 }
  0x53   : > { %1963 = vmatmul.bf16.gmra.mxu2 %v4926_v58  ;;  %1983 = vmatmul.bf16.gmra.mxu3 %v4928_v15  ;;  %v1292_v55 = vunpack.c.l.b16 %v1208_v47  ;;  %v1300_v1 = vunpack.c.l.b16 %v1220_v28  ;;  %v715_v25 = vadd.f32 %v4761_v52, %v657_v27  ;;  %v745_v21 = vmax.f32 %v691_v36, 0.0  ;;  %v4348_v36 = vld [vmem:[%s5914_s3 + $0x1f8] sm:$0xff] }
  0x54   : > { %2092 = vmatpush.bf16.msrb.mxu2 %v4304_v12  ;;  %2406 = vmatpush.bf16.msrb.mxu3 %v4312_v0  ;;  %v1221_v12 = vpack.c.bf16 %v767_v4, %v767_v4  ;;  %v1232_v0 = vpack.c.bf16 %v1178_v63, %v1178_v63  ;;  %v1285_v39 = vunpack.c.l.b16 %v1197_v9  ;;  %v646_v4 = vmul.f32 %v4755_v50, %v4668_v19  ;;  %v4317_v19 = vld [vmem:[%s5914_s3 + $0x100] sm:$0xff] }
  0x55   : > { %2003 = vmatpush.bf16.msrb.mxu1 %v4296_v56  ;;  %2495 = vmatpush.bf16.msrb.mxu0 %v4320_v57  ;;  %v669_v56 = vmul.f32 %v4755_v50, %v4729_v42  ;;  %v4294_v57 = vld [vmem:[%s5914_s3 + $0x48] sm:$0xff]  ;;  %v4309_v42 = vld [vmem:[%s5914_s3 + $0xc0] sm:$0xff]  ;;  %v658_v63 = vmul.f32 %v4755_v50, %v4700_v31  ;;  %v670_v9 = vmul.f32 %v4755_v50, %v4732_v43  ;;  %v769_v53 = vmax.f32 %v715_v25, 0.0 }
  0x56   : > { %v629_v31 = vmul.f32 %v4755_v50, %v4611_v2  ;;  %v5009_v22 = vpack.c.b16 %v1293_v30, %v1292_v55  ;;  %v692_v43 = vadd.f32 %v4761_v52, %v634_v6  ;;  %v1145_v6 = vsel %vm866_vm0, %v745_v21, 0.0 }
  0x57   : > { %v727_v47 = vadd.f32 %v4761_v52, %v669_v56  ;;  %v728_v2 = vadd.f32 %v4761_v52, %v670_v9  ;;  %v1169_v55 = vsel %vm866_vm0, %v769_v53, 0.0 }
  0x58   : > { %2093 = vmatpush.bf16.msrb.mxu2 %v4303_v59  ;;  %2407 = vmatpush.bf16.msrb.mxu3 %v4311_v60  ;;  %v1301_v59 = vunpack.c.l.b16 %v1221_v12  ;;  %v1308_v60 = vunpack.c.l.b16 %v1232_v0  ;;  %5948 = vst [vmem:[#allocation12_spill] sm:$0xff] %v5009_v22  ;;  %v716_v0 = vadd.f32 %v4761_v52, %v658_v63  ;;  %v687_v27 = vadd.f32 %v4761_v52, %v629_v31 }
  0x59   : > { %2004 = vmatpush.bf16.msrb.mxu1 %v4295_v10  ;;  %2496 = vmatpush.bf16.msrb.mxu0 %v4319_v16  ;;  %v4293_v10 = vld [vmem:[%s5914_s3 + $0x40] sm:$0xff]  ;;  %v5007_v16 = vpack.c.b16 %v1285_v39, %v1284_v24  ;;  %v781_v54 = vmax.f32 %v727_v47, 0.0  ;;  %v746_v24 = vmax.f32 %v692_v43, 0.0  ;;  %v5021_v39 = vadd.s32 16, %v4774_v61 }
  0x5a   : > { %v5012_v28 = vpack.c.b16 %v1301_v59, %v1300_v1  ;;  %v5015_v12 = vpack.c.b16 %v1309_v62, %v1308_v60  ;;  %v782_v30 = vmax.f32 %v728_v2, 0.0  ;;  %v4340_v1 = vld [vmem:[%s5914_s3 + $0x1b8] sm:$0xff]  ;;  %v741_v59 = vmax.f32 %v687_v27, 0.0 }
  0x5b   : > { %v4356_v60 = vld [vmem:[%s5914_s3 + $0x238] sm:$0xff]  ;;  %vm967_vm1 = vcmp.le.s32.totalorder %v5021_v39, 16  ;;  %v1223_v25 = vpack.c.bf16 %v1169_v55, %v1169_v55  ;;  %v632_v27 = vmul.f32 %v4755_v50, %v4630_v5  ;;  %v1410_v5 = vshll.u32 %v4829_v33, 16 }
  0x5c   : > { %2094 = vmatpush.bf16.msrb.mxu2 %v4302_v48  ;;  %2408 = vmatpush.bf16.msrb.mxu3 %v4310_v40  ;;  %v704_v48 = vadd.f32 %v4761_v52, %v646_v4  ;;  %v757_v40 = vmax.f32 %v703_v13, 0.0  ;;  %v1199_v4 = vpack.c.bf16 %v1145_v6, %v1145_v6  ;;  %v1200_v13 = vpack.c.bf16 %v746_v24, %v746_v24 }
  0x5d   : > { %2005 = vmatpush.bf16.msrb.mxu1 %v4294_v57  ;;  %2497 = vmatpush.bf16.msrb.mxu0 %v4318_v18  ;;  %v770_v18 = vmax.f32 %v716_v0, 0.0  ;;  %v690_v55 = vadd.f32 %v4761_v52, %v632_v27  ;;  %v1432_v27 = vshrl.u32 %v5007_v16, 16 }
  0x5e   : > { %v758_v56 = vmax.f32 %v704_v48, 0.0  ;;  %v1157_v57 = vsel %vm866_vm0, %v757_v40, 0.0  ;;  %v1287_v31 = vunpack.c.l.b16 %v1200_v13  ;;  %v1286_v43 = vunpack.c.l.b16 %v1199_v4 }
  0x5f   : > { %v1211_v62 = vpack.c.bf16 %v1157_v57, %v1157_v57  ;;  %v1224_v9 = vpack.c.bf16 %v770_v18, %v770_v18  ;;  %v1302_v40 = vunpack.c.l.b16 %v1223_v25 }
  0x60   : > { %2095 = vmatpush.bf16.msrb.mxu2 %v4301_v7  ;;  %2409 = vmatpush.bf16.msrb.mxu3 %v4309_v42  ;;  %v4332_v7 = vld [vmem:[%s5914_s3 + $0x178] sm:$0xff]  ;;  %v1181_v42 = vsel %vm866_vm0, %v781_v54, 0.0  ;;  %v1212_v63 = vpack.c.bf16 %v758_v56, %v758_v56  ;;  %v5052_v24 = vpack.c.b16 %v1287_v31, %v1286_v43 }
  0x61   : > { %2006 = vmatpush.bf16.msrb.mxu1 %v4293_v10  ;;  %2498 = vmatpush.bf16.msrb.mxu0 %v4317_v19  ;;  %v1235_v47 = vpack.c.bf16 %v1181_v42, %v1181_v42  ;;  %v1236_v10 = vpack.c.bf16 %v782_v30, %v782_v30  ;;  %v1141_v19 = vsel %vm967_vm1, %v741_v59, 0.0  ;;  %v1294_v21 = vunpack.c.l.b16 %v1211_v62 }
  0x62   : > { %1928 = vmatmul.bf16.gmra.mxu0 %v5007_v16  ;;  %1948 = vmatmul.bf16.gmra.mxu1 %v5009_v22  ;;  %v1295_v48 = vunpack.c.l.b16 %v1212_v63  ;;  %v1303_v0 = vunpack.c.l.b16 %v1224_v9  ;;  %v1195_v54 = vpack.c.bf16 %v1141_v19, %v1141_v19  ;;  %v1412_v42 = vrot.slane %v1410_v5, 1 }
  0x63   : > { %1968 = vmatmul.bf16.gmra.mxu2 %v5012_v28  ;;  %1988 = vmatmul.bf16.gmra.mxu3 %v5015_v12  ;;  %v1310_v53 = vunpack.c.l.b16 %v1235_v47  ;;  %v1311_v2 = vunpack.c.l.b16 %v1236_v10  ;;  %v1420_v59 = vshrl.u32 %v4921_v3, 16  ;;  %v635_v47 = vmul.f32 %v4755_v50, %v4639_v8 }
  0x64   : > { %2894 = vmatpush.bf16.msra.mxu2 %v4340_v1  ;;  %2983 = vmatpush.bf16.msra.mxu3 %v4348_v36  ;;  %v5054_v6 = vpack.c.b16 %v1295_v48, %v1294_v21  ;;  %v5056_v56 = vpack.c.b16 %v1303_v0, %v1302_v40  ;;  %v1371_v18 = vunpack.c.l.b16 %v1195_v54  ;;  %v1422_v1 = vshll.u32 %v4921_v3, 16  ;;  %v4339_v40 = vld [vmem:[%s5914_s3 + $0x1b0] sm:$0xff] }
  0x65   : > { %2580 = vmatpush.bf16.msra.mxu1 %v4332_v7  ;;  %3072 = vmatpush.bf16.msra.mxu0 %v4356_v60  ;;  %v5058_v57 = vpack.c.b16 %v1311_v2, %v1310_v53  ;;  %v744_v36 = vmax.f32 %v690_v55, 0.0  ;;  %v1408_v7 = vshrl.u32 %v4829_v33, 16  ;;  %v5919_v19 = vrot.slane %v4829_v33, 1  ;;  %v4347_v0 = vld [vmem:[%s5914_s3 + $0x1f0] sm:$0xff] }
  0x66   : > { %5949 = vst [vmem:[#allocation13_spill] sm:$0xff] %v5054_v6  ;;  %v1389_v30 = vpack.c.b16 %v1371_v18, %v1371_v18  ;;  %v1424_v60 = vrot.slane %v1422_v1, 1  ;;  %v693_v21 = vadd.f32 %v4761_v52, %v635_v47  ;;  %v1434_v8 = vshll.u32 %v5007_v16, 16  ;;  %v4331_v53 = vld [vmem:[%s5914_s3 + $0x170] sm:$0xff] }
  0x67   : > { %v1144_v13 = vsel %vm967_vm1, %v744_v36, 0.0  ;;  %v1413_v62 = vor.u32 %v1412_v42, %v1408_v7  ;;  %v4355_v54 = vld [vmem:[%s5914_s3 + $0x230] sm:$0xff] }
  0x68   : > { %v1427_v4 = vshll.u32 %v1389_v30, 16  ;;  %v1425_v63 = vor.u32 %v1424_v60, %v1420_v59  ;;  %v1198_v9 = vpack.c.bf16 %v1144_v13, %v1144_v13  ;;  %v747_v2 = vmax.f32 %v693_v21, 0.0  ;;  %2895 = vmatpush.bf16.msra.mxu2 %v4339_v40  ;;  %2984 = vmatpush.bf16.msra.mxu3 %v4347_v0 }
  0x69   : > { %v5074_v10 = vsel %vm1406_vm2, %v1413_v62, %v1412_v42  ;;  %2581 = vmatpush.bf16.msra.mxu1 %v4331_v53  ;;  %3073 = vmatpush.bf16.msra.mxu0 %v4355_v54  ;;  %v1436_v18 = vrot.slane %v1434_v8, 1  ;;  %v1645_v42 = vrot.slane %v4921_v3, 1  ;;  %v1646_v59 = vrot.slane %v1389_v30, 1 }
  0x6a   : > { %v1429_v25 = vrot.slane %v1427_v4, 1  ;;  %5950 = vst [vmem:[#allocation14_spill] sm:$0xff] %v5074_v10  ;;  %v1372_v43 = vunpack.c.l.b16 %v1198_v9  ;;  %v1147_v5 = vsel %vm967_vm1, %v747_v2, 0.0  ;;  %v638_v60 = vmul.f32 %v4755_v50, %v4644_v11 }
  0x6b   : > { %v1437_v1 = vor.u32 %v1436_v18, %v1432_v27  ;;  %v1201_v7 = vpack.c.bf16 %v1147_v5, %v1147_v5  ;;  %v5106_v62 = vsel %vm1641_vm3, %v1645_v42, %v1646_v59  ;;  %v1446_v11 = vshll.u32 %v5052_v24, 16  ;;  %v4346_v5 = vld [vmem:[%s5914_s3 + $0x1e8] sm:$0xff] }
  0x6c   : > { %v1430_v31 = vsel %vm1406_vm2, %v1425_v63, %v1429_v25  ;;  %v1390_v48 = vpack.c.b16 %v1372_v43, %v1372_v43  ;;  %v696_v63 = vadd.f32 %v4761_v52, %v638_v60  ;;  %v1444_v25 = vshrl.u32 %v5052_v24, 16  ;;  %2985 = vmatpush.bf16.msra.mxu3 %v4346_v5  ;;  %v4330_v59 = vld [vmem:[%s5914_s3 + $0x168] sm:$0xff] }
  0x6d   : > { %v1373_v13 = vunpack.c.l.b16 %v1201_v7  ;;  %v1448_v9 = vrot.slane %v1446_v11, 1  ;;  %v1648_v40 = vrot.slane %v5007_v16, 1  ;;  %v641_v53 = vmul.f32 %v4755_v50, %v4653_v14  ;;  %v4354_v60 = vld [vmem:[%s5914_s3 + $0x228] sm:$0xff]  ;;  %2582 = vmatpush.bf16.msra.mxu1 %v4330_v59 }
  0x6e   : > { %v1439_v55 = vshll.u32 %v1390_v48, 16  ;;  %v750_v30 = vmax.f32 %v696_v63, 0.0  ;;  %v1649_v0 = vrot.slane %v1390_v48, 1  ;;  %v1458_v14 = vshll.u32 %v4831_v37, 16  ;;  %3074 = vmatpush.bf16.msra.mxu0 %v4354_v60 }
  0x6f   : > { %v1449_v21 = vor.u32 %v1448_v9, %v1444_v25  ;;  %v699_v18 = vadd.f32 %v4761_v52, %v641_v53  ;;  %v1651_v25 = vrot.slane %v5052_v24, 1 }
  0x70   : > { %v1441_v36 = vrot.slane %v1439_v55, 1  ;;  %v1150_v43 = vsel %vm967_vm1, %v750_v30, 0.0  ;;  %v5123_v27 = vsel %vm1641_vm3, %v1648_v40, %v1649_v0  ;;  %v4338_v55 = vld [vmem:[%s5914_s3 + $0x1a8] sm:$0xff]  ;;  %v1460_v7 = vrot.slane %v1458_v14, 1 }
  0x71   : > { %2896 = vmatpush.bf16.msra.mxu2 %v4338_v55  ;;  %v1468_v0 = vshrl.u32 %v4923_v51, 16 }
  0x72   : > { %1933 = vmatmul.bf16.gmra.mxu0 %v5052_v24  ;;  %1953 = vmatmul.bf16.gmra.mxu1 %v5054_v6  ;;  %v5103_v4 = vsel %vm1406_vm2, %v1437_v1, %v1441_v36  ;;  %v753_v1 = vmax.f32 %v699_v18, 0.0  ;;  %v1456_v36 = vshrl.u32 %v4831_v37, 16 }
  0x73   : > { %1973 = vmatmul.bf16.gmra.mxu2 %v5056_v56  ;;  %1993 = vmatmul.bf16.gmra.mxu3 %v5058_v57 }
  0x74   : > { %v1461_v63 = vor.u32 %v1460_v7, %v1456_v36  ;;  %v647_v7 = vmul.f32 %v4755_v50, %v4671_v20 }
  0x82   : > { %2007 = vmatmul.bf16.vlgmr.msrb.gmra.mxu1 %v5074_v10  ;;  %2499 = vmatmul.bf16.vlgmr.msrb.gmra.mxu0 %v1430_v31 }
  0x83   : > { %2096 = vmatmul.bf16.vlgmr.msrb.gmra.mxu2 %v5919_v19  ;;  %2410 = vmatmul.bf16.vlgmr.msrb.gmra.mxu3 %v4921_v3  ;;  %v1391_v3 = vpack.c.b16 %v1373_v13, %v1373_v13  ;;  %v1153_v13 = vsel %vm967_vm1, %v753_v1, 0.0  ;;  %v1654_v1 = vrot.slane %v4831_v37, 1 }
  0x84   : > { %v1207_v30 = vpack.c.bf16 %v1153_v13, %v1153_v13 }
  0x85   : > { %v1451_v47 = vshll.u32 %v1391_v3, 16  ;;  %v1652_v9 = vrot.slane %v1391_v3, 1 }
  0x87   : > { %v1453_v8 = vrot.slane %v1451_v47, 1  ;;  %v644_v47 = vmul.f32 %v4755_v50, %v4662_v17  ;;  %v1470_v17 = vshll.u32 %v4923_v51, 16 }
  0x89   : > { %v5120_v2 = vsel %vm1406_vm2, %v1449_v21, %v1453_v8  ;;  %v1375_v21 = vunpack.c.l.b16 %v1207_v30  ;;  %v5153_v8 = vsel %vm1641_vm3, %v1651_v25, %v1652_v9  ;;  %v1472_v53 = vrot.slane %v1470_v17, 1  ;;  %v4337_v30 = vld [vmem:[%s5914_s3 + $0x1a0] sm:$0xff] }
  0x8a   : > { %v4345_v25 = vld [vmem:[%s5914_s3 + $0x1e0] sm:$0xff]  ;;  %2897 = vmatpush.bf16.msra.mxu2 %v4337_v30 }
  0x8b   : > { %v1393_v3 = vpack.c.b16 %v1375_v21, %v1375_v21  ;;  %v1473_v14 = vor.u32 %v1472_v53, %v1468_v0  ;;  %2986 = vmatpush.bf16.msra.mxu3 %v4345_v25 }
  0x92   : > { %2012 = vmatmul.bf16.gmra.mxu1 %v1430_v31  ;;  %2504 = vmatmul.bf16.gmra.mxu0 %v5103_v4  ;;  %v1204_v31 = vpack.c.bf16 %v1150_v43, %v1150_v43 }
  0x93   : > { %2101 = vmatmul.bf16.gmra.mxu2 %v5106_v62  ;;  %2415 = vmatmul.bf16.gmra.mxu3 %v5007_v16 }
  0x94   : > { %v1374_v54 = vunpack.c.l.b16 %v1204_v31  ;;  %v702_v31 = vadd.f32 %v4761_v52, %v644_v47 }
  0x96   : > { %v1392_v48 = vpack.c.b16 %v1374_v54, %v1374_v54  ;;  %v756_v40 = vmax.f32 %v702_v31, 0.0  ;;  %v1475_v54 = vshll.u32 %v1393_v3, 16 }
  0x98   : > { %v1463_v42 = vshll.u32 %v1392_v48, 16  ;;  %v1156_v18 = vsel %vm967_vm1, %v756_v40, 0.0  ;;  %v1477_v55 = vrot.slane %v1475_v54, 1  ;;  %v1655_v36 = vrot.slane %v1392_v48, 1  ;;  %v4329_v54 = vld [vmem:[%s5914_s3 + $0x160] sm:$0xff] }
  0x99   : > { %v1210_v5 = vpack.c.bf16 %v1156_v18, %v1156_v18  ;;  %v1482_v48 = vshll.u32 %v5009_v22, 16  ;;  %v1480_v40 = vshrl.u32 %v5009_v22, 16  ;;  %v4353_v18 = vld [vmem:[%s5914_s3 + $0x220] sm:$0xff]  ;;  %2583 = vmatpush.bf16.msra.mxu1 %v4329_v54 }
  0x9a   : > { %v1465_v11 = vrot.slane %v1463_v42, 1  ;;  %v5172_v60 = vsel %vm1406_vm2, %v1473_v14, %v1477_v55  ;;  %3075 = vmatpush.bf16.msra.mxu0 %v4353_v18 }
  0x9b   : > { %5952 = vst [vmem:[#allocation16_spill] sm:$0xff] %v5172_v60  ;;  %v1376_v13 = vunpack.c.l.b16 %v1210_v5  ;;  %v1484_v0 = vrot.slane %v1482_v48, 1 }
  0x9c   : > { %v5150_v43 = vsel %vm1406_vm2, %v1461_v63, %v1465_v11  ;;  %v5175_v63 = vsel %vm1641_vm3, %v1654_v1, %v1655_v36  ;;  %v705_v11 = vadd.f32 %v4761_v52, %v647_v7  ;;  %v1657_v36 = vrot.slane %v4923_v51, 1 }
  0x9d   : > { %5951 = vst [vmem:[#allocation15_spill] sm:$0xff] %v5150_v43  ;;  %v1394_v20 = vpack.c.b16 %v1376_v13, %v1376_v13  ;;  %v1485_v55 = vor.u32 %v1484_v0, %v1480_v40  ;;  %v1658_v7 = vrot.slane %v1393_v3, 1  ;;  %v650_v13 = vmul.f32 %v4755_v50, %v4676_v23 }
  0x9e   : > { %5953 = vst [vmem:[#allocation17_spill] sm:$0xff] %v5175_v63  ;;  %v759_v9 = vmax.f32 %v705_v11, 0.0 }
  0x9f   : > { %v1487_v53 = vshll.u32 %v1394_v20, 16  ;;  %v5221_v0 = vsel %vm1641_vm3, %v1657_v36, %v1658_v7  ;;  %v708_v3 = vadd.f32 %v4761_v52, %v650_v13  ;;  %v1661_v33 = vrot.slane %v1394_v20, 1 }
  0xa0   : > { %v1159_v14 = vsel %vm967_vm1, %v759_v9, 0.0  ;;  %5957 = vst [vmem:[#allocation21_spill] sm:$0xff] %v5221_v0 }
  0xa1   : > { %v1489_v5 = vrot.slane %v1487_v53, 1  ;;  %v1213_v1 = vpack.c.bf16 %v1159_v14, %v1159_v14  ;;  %v1494_v53 = vshll.u32 %v5054_v6, 16  ;;  %v762_v54 = vmax.f32 %v708_v3, 0.0 }
  0xa2   : > { %2017 = vmatmul.bf16.gmra.mxu1 %v5103_v4  ;;  %2509 = vmatmul.bf16.gmra.mxu0 %v5120_v2  ;;  %v1660_v3 = vrot.slane %v5009_v22, 1 }
  0xa3   : > { %2106 = vmatmul.bf16.gmra.mxu2 %v5123_v27  ;;  %2420 = vmatmul.bf16.gmra.mxu3 %v5052_v24  ;;  %v5218_v9 = vsel %vm1406_vm2, %v1485_v55, %v1489_v5  ;;  %v1377_v40 = vunpack.c.l.b16 %v1213_v1  ;;  %v1492_v1 = vshrl.u32 %v5054_v6, 16  ;;  %v1496_v36 = vrot.slane %v1494_v53, 1 }
  0xa4   : > { %5956 = vst [vmem:[#allocation20_spill] sm:$0xff] %v5218_v9  ;;  %v1162_v13 = vsel %vm967_vm1, %v762_v54, 0.0 }
  0xa5   : > { %v5228_v23 = vpack.c.b16 %v1377_v40, %v1377_v40  ;;  %v1497_v40 = vor.u32 %v1496_v36, %v1492_v1  ;;  %v1216_v10 = vpack.c.bf16 %v1162_v13, %v1162_v13  ;;  %v5258_v1 = vsel %vm1641_vm3, %v1660_v3, %v1661_v33 }
  0xa6   : > { %5962 = vst [vmem:[#allocation26_spill] sm:$0xff] %v5258_v1  ;;  %v1504_v13 = vshrl.u32 %v4834_v34, 16 }
  0xa7   : > { %v1499_v7 = vshll.u32 %v5228_v23, 16  ;;  %v1378_v54 = vunpack.c.l.b16 %v1216_v10  ;;  %v4336_v10 = vld [vmem:[%s5914_s3 + $0x198] sm:$0xff] }
  0xa8   : > { %2898 = vmatpush.bf16.msra.mxu2 %v4336_v10  ;;  %v4352_v10 = vld [vmem:[%s5914_s3 + $0x218] sm:$0xff] }
  0xa9   : > { %v1501_v19 = vrot.slane %v1499_v7, 1  ;;  %3076 = vmatpush.bf16.msra.mxu0 %v4352_v10 }
  0xb2   : > { %2022 = vmatmul.bf16.gmra.mxu1 %v5120_v2  ;;  %2514 = vmatmul.bf16.gmra.mxu0 %v5150_v43 }
  0xb3   : > { %2111 = vmatmul.bf16.gmra.mxu2 %v5153_v8  ;;  %2425 = vmatmul.bf16.gmra.mxu3 %v4831_v37 }
  0xbf   : > { %v5167_v42 = vpop.f32.mrf.mxu0  ;;  %v5169_v59 = vpop.f32.mrf.mxu1 }
  0xc2   : > { %2027 = vmatmul.bf16.gmra.mxu1 %v5150_v43  ;;  %2519 = vmatmul.bf16.gmra.mxu0 %v5172_v60 }
  0xc3   : > { %2116 = vmatmul.bf16.gmra.mxu2 %v5175_v63  ;;  %2430 = vmatmul.bf16.gmra.mxu3 %v4923_v51  ;;  %v5255_v51 = vsel %vm1406_vm2, %v1497_v40, %v1501_v19 }
  0xc4   : > { %5961 = vst [vmem:[#allocation25_spill] sm:$0xff] %v5255_v51 }
  0xc6   : > { %v5189_v47 = vpop.f32.mrf.mxu2  ;;  %v5191_v21 = vpop.f32.mrf.mxu3 }
  0xc7   : > { %5954 = vst [vmem:[#allocation18_spill] sm:$0xff] %v5191_v21  ;;  %v5193_v31 = vpop.f32.mrf.mxu0  ;;  %v5195_v17 = vpop.f32.mrf.mxu1 }
  0xce   : > { %v5209_v11 = vpop.f32.mrf.mxu2  ;;  %v5211_v48 = vpop.f32.mrf.mxu3 }
  0xcf   : > { %5955 = vst [vmem:[#allocation19_spill] sm:$0xff] %v5211_v48  ;;  %v5213_v30 = vpop.f32.mrf.mxu0  ;;  %v5215_v25 = vpop.f32.mrf.mxu1 }
  0xd2   : > { %2032 = vmatmul.bf16.gmra.mxu1 %v5172_v60  ;;  %2524 = vmatmul.bf16.gmra.mxu0 %v5218_v9 }
  0xd3   : > { %2121 = vmatmul.bf16.gmra.mxu2 %v5221_v0  ;;  %2435 = vmatmul.bf16.gmra.mxu3 %v5009_v22 }
  0xd6   : > { %v5231_v18 = vpop.f32.mrf.mxu2  ;;  %v5233_v14 = vpop.f32.mrf.mxu3 }
  0xd7   : > { %5958 = vst [vmem:[#allocation22_spill] sm:$0xff] %v5233_v14  ;;  %v5235_v55 = vpop.f32.mrf.mxu0  ;;  %v5237_v5 = vpop.f32.mrf.mxu1  ;;  %v653_v14 = vmul.f32 %v4755_v50, %v4685_v26  ;;  %v5265_v26 = vpack.c.b16 %v1378_v54, %v1378_v54  ;;  %v1506_v50 = vshll.u32 %v4834_v34, 16 }
  0xd9   : > { %v711_v20 = vadd.f32 %v4761_v52, %v653_v14  ;;  %v4344_v52 = vld [vmem:[%s5914_s3 + $0x1d8] sm:$0xff]  ;;  %v1508_v40 = vrot.slane %v1506_v50, 1  ;;  %v1511_v3 = vshll.u32 %v5265_v26, 16  ;;  %v1663_v50 = vrot.slane %v5054_v6, 1 }
  0xda   : > { %2987 = vmatpush.bf16.msra.mxu3 %v4344_v52 }
  0xdb   : > { %v765_v33 = vmax.f32 %v711_v20, 0.0  ;;  %v4328_v20 = vld [vmem:[%s5914_s3 + $0x158] sm:$0xff]  ;;  %v1509_v52 = vor.u32 %v1508_v40, %v1504_v13 }
  0xdc   : > { %2584 = vmatpush.bf16.msra.mxu1 %v4328_v20  ;;  %v5318_v20 = vld [vmem:[%s5913_s2] ss:$0 sm:$0xff] }
  0xdd   : > { %v1165_v54 = vsel %vm967_vm1, %v765_v33, 0.0  ;;  %v5297_v33 = vld [vmem:[%s5912_s1] ss:$0 sm:$0xff] }
  0xde   : > { %v5246_v48 = vpop.f32.mrf.mxu2  ;;  %v5248_v21 = vpop.f32.mrf.mxu3  ;;  %v656_v22 = vmul.f32 %v5297_v33, %v4694_v29 }
  0xdf   : > { %5959 = vst [vmem:[#allocation23_spill] sm:$0xff] %v5246_v48  ;;  %v5250_v60 = vpop.f32.mrf.mxu0  ;;  %v5252_v53 = vpop.f32.mrf.mxu1 }
  0xe0   : > { %5960 = vst [vmem:[#allocation24_spill] sm:$0xff] %v5248_v21  ;;  %v1219_v21 = vpack.c.bf16 %v1165_v54, %v1165_v54  ;;  %v714_v29 = vadd.f32 %v5318_v20, %v656_v22 }
  0xe2   : > { %2037 = vmatmul.bf16.gmra.mxu1 %v5218_v9  ;;  %2529 = vmatmul.bf16.gmra.mxu0 %v5255_v51  ;;  %v1664_v9 = vrot.slane %v5228_v23, 1  ;;  %v1379_v23 = vunpack.c.l.b16 %v1219_v21  ;;  %v1518_v21 = vshll.u32 %v4926_v58, 16 }
  0xe3   : > { %2126 = vmatmul.bf16.gmra.mxu2 %v5258_v1  ;;  %2440 = vmatmul.bf16.gmra.mxu3 %v5054_v6 }
  0xe4   : > { %v5313_v54 = vsel %vm1641_vm3, %v1663_v50, %v1664_v9  ;;  %v768_v9 = vmax.f32 %v714_v29, 0.0  ;;  %v659_v29 = vmul.f32 %v5297_v33, %v4703_v32 }
  0xe5   : > { %5968 = vst [vmem:[#allocation32_spill] sm:$0xff] %v5313_v54 }
  0xe6   : > { %v5274_v19 = vpop.f32.mrf.mxu2  ;;  %v5276_v14 = vpop.f32.mrf.mxu3 }
  0xe7   : > { %5963 = vst [vmem:[#allocation27_spill] sm:$0xff] %v5274_v19  ;;  %v5278_v36 = vpop.f32.mrf.mxu0  ;;  %v5280_v7 = vpop.f32.mrf.mxu1 }
  0xe8   : > { %5964 = vst [vmem:[#allocation28_spill] sm:$0xff] %v5276_v14  ;;  %v1513_v14 = vrot.slane %v1511_v3, 1 }
  0xea   : > { %v5310_v3 = vsel %vm1406_vm2, %v1509_v52, %v1513_v14  ;;  %v5325_v14 = vpack.c.b16 %v1379_v23, %v1379_v23  ;;  %v1168_v23 = vsel %vm967_vm1, %v768_v9, 0.0 }
  0xeb   : > { %5967 = vst [vmem:[#allocation31_spill] sm:$0xff] %v5310_v3  ;;  %v1222_v19 = vpack.c.bf16 %v1168_v23, %v1168_v23 }
  0xec   : > { %v1523_v6 = vshll.u32 %v5325_v14, 16 }
  0xed   : > { %v1380_v9 = vunpack.c.l.b16 %v1222_v19  ;;  %v4343_v19 = vld [vmem:[%s5914_s3 + $0x1d0] sm:$0xff] }
  0xee   : > { %v5301_v1 = vpop.f32.mrf.mxu2  ;;  %v5303_v0 = vpop.f32.mrf.mxu3  ;;  %2988 = vmatpush.bf16.msra.mxu3 %v4343_v19 }
  0xef   : > { %5965 = vst [vmem:[#allocation29_spill] sm:$0xff] %v5301_v1  ;;  %v5305_v13 = vpop.f32.mrf.mxu0  ;;  %v5307_v40 = vpop.f32.mrf.mxu1  ;;  %v1525_v1 = vrot.slane %v1523_v6, 1 }
  0xf0   : > { %5966 = vst [vmem:[#allocation30_spill] sm:$0xff] %v5303_v0  ;;  %v1516_v0 = vshrl.u32 %v4926_v58, 16 }
  0xf2   : > { %2042 = vmatmul.bf16.gmra.mxu1 %v5255_v51  ;;  %2534 = vmatmul.bf16.gmra.mxu0 %v5310_v3  ;;  %v1520_v51 = vrot.slane %v1518_v21, 1 }
  0xf3   : > { %2131 = vmatmul.bf16.gmra.mxu2 %v5313_v54  ;;  %2445 = vmatmul.bf16.gmra.mxu3 %v4834_v34 }
  0xf4   : > { %v1521_v54 = vor.u32 %v1520_v51, %v1516_v0  ;;  %v717_v51 = vadd.f32 %v5318_v20, %v659_v29  ;;  %v1530_v0 = vshll.u32 %v5012_v28, 16 }
  0xf6   : > { %v5328_v10 = vpop.f32.mrf.mxu2  ;;  %v5330_v52 = vpop.f32.mrf.mxu3  ;;  %v5349_v48 = vsel %vm1406_vm2, %v1521_v54, %v1525_v1  ;;  %v5361_v1 = vpack.c.b16 %v1380_v9, %v1380_v9  ;;  %v1532_v23 = vrot.slane %v1530_v0, 1 }
  0xf7   : > { %5969 = vst [vmem:[#allocation33_spill] sm:$0xff] %v5328_v10  ;;  %v5332_v50 = vpop.f32.mrf.mxu0  ;;  %v5334_v22 = vpop.f32.mrf.mxu1  ;;  %v1667_v10 = vrot.slane %v5265_v26, 1  ;;  %v771_v26 = vmax.f32 %v717_v51, 0.0 }
  0xf8   : > { %5970 = vst [vmem:[#allocation34_spill] sm:$0xff] %v5330_v52  ;;  %v1666_v52 = vrot.slane %v4834_v34, 1 }
  0xfa   : > { %v5354_v32 = vsel %vm1641_vm3, %v1666_v52, %v1667_v10  ;;  %v1528_v52 = vshrl.u32 %v5012_v28, 16 }
  0xfb   : > { %5973 = vst [vmem:[#allocation37_spill] sm:$0xff] %v5354_v32 }
  0xfe   : > { %v5344_v43 = vpop.f32.mrf.mxu2  ;;  %v5346_v37 = vpop.f32.mrf.mxu3 }
  0xff   : > { %5971 = vst [vmem:[#allocation35_spill] sm:$0xff] %v5344_v43  ;;  %v2008_v21 = vpop.f32.mrf.mxu1  ;;  %v2500_v63 = vpop.f32.mrf.mxu0 }
 0x100   : > { %5972 = vst [vmem:[#allocation36_spill] sm:$0xff] %v5346_v37  ;;  %v2009_v6 = vadd.f32 %v2008_v21, %v5167_v42  ;;  %v4335_v42 = vld [vmem:[%s5914_s3 + $0x190] sm:$0xff]  ;;  %v1535_v37 = vshll.u32 %v5361_v1, 16 }
 0x101   : > { %2899 = vmatpush.bf16.msra.mxu2 %v4335_v42  ;;  %v4327_v42 = vld [vmem:[%s5914_s3 + $0x150] sm:$0xff] }
 0x102   : > { %2047 = vmatmul.bf16.gmra.mxu1 %v5310_v3  ;;  %2539 = vmatmul.bf16.gmra.mxu0 %v5349_v48  ;;  %v1171_v3 = vsel %vm967_vm1, %v771_v26, 0.0  ;;  %v1537_v19 = vrot.slane %v1535_v37, 1 }
 0x103   : > { %2136 = vmatmul.bf16.gmra.mxu2 %v5354_v32  ;;  %2450 = vmatmul.bf16.gmra.mxu3 %v4926_v58  ;;  %v1225_v0 = vpack.c.bf16 %v1171_v3, %v1171_v3 }
 0x104   : > { %2585 = vmatpush.bf16.msra.mxu1 %v4327_v42 }
 0x106   : > { %v2097_v54 = vpop.f32.mrf.mxu2  ;;  %v2411_v10 = vpop.f32.mrf.mxu3 }
 0x107   : > { %v5370_v29 = vadd.f32 %v2097_v54, %v2009_v6  ;;  %v5372_v21 = vadd.f32 %v2500_v63, %v2411_v10  ;;  %v2010_v9 = vpop.f32.mrf.mxu1  ;;  %v2502_v51 = vpop.f32.mrf.mxu0  ;;  %v4351_v6 = vld [vmem:[%s5914_s3 + $0x210] sm:$0xff]  ;;  %v1533_v63 = vor.u32 %v1532_v23, %v1528_v52  ;;  %v1669_v54 = vrot.slane %v4926_v58, 1 }
 0x108   : > { %v2011_v34 = vadd.f32 %v2010_v9, %v5193_v31  ;;  %3077 = vmatpush.bf16.msra.mxu0 %v4351_v6  ;;  %v1670_v10 = vrot.slane %v5325_v14, 1  ;;  %v662_v31 = vmul.f32 %v5297_v33, %v4708_v35 }
 0x109   : > { %5974 = vst [vmem:[#allocation38_spill] sm:$0xff] %v5370_v29  ;;  %v5393_v37 = vsel %vm1406_vm2, %v1533_v63, %v1537_v19 }
 0x10a   : > { %5975 = vst [vmem:[#allocation39_spill] sm:$0xff] %v5372_v21  ;;  %v1381_v21 = vunpack.c.l.b16 %v1225_v0  ;;  %v5397_v23 = vsel %vm1641_vm3, %v1669_v54, %v1670_v10  ;;  %v720_v14 = vadd.f32 %v5318_v20, %v662_v31 }
 0x10c   : > { %v5402_v35 = vpack.c.b16 %v1381_v21, %v1381_v21 }
 0x10e   : > { %v2099_v26 = vpop.f32.mrf.mxu2  ;;  %v2413_v9 = vpop.f32.mrf.mxu3  ;;  %v1547_v0 = vshll.u32 %v5402_v35, 16 }
 0x10f   : > { %v5388_v29 = vadd.f32 %v2099_v26, %v2011_v34  ;;  %v5390_v32 = vadd.f32 %v2502_v51, %v2413_v9  ;;  %v2013_v43 = vpop.f32.mrf.mxu1  ;;  %v2505_v3 = vpop.f32.mrf.mxu0  ;;  %v1542_v34 = vshll.u32 %v5056_v56, 16  ;;  %v774_v51 = vmax.f32 %v720_v14, 0.0 }
 0x110   : > { %v2014_v52 = vadd.f32 %v2013_v43, %v5213_v30  ;;  %v1540_v30 = vshrl.u32 %v5056_v56, 16  ;;  %v1549_v9 = vrot.slane %v1547_v0, 1 }
 0x111   : > { %5976 = vst [vmem:[#allocation40_spill] sm:$0xff] %v5390_v32  ;;  %v1544_v6 = vrot.slane %v1542_v34, 1  ;;  %v1174_v31 = vsel %vm967_vm1, %v774_v51, 0.0  ;;  %v665_v32 = vmul.f32 %v5297_v33, %v4717_v38  ;;  %v1672_v34 = vrot.slane %v5012_v28, 1 }
 0x112   : > { %2052 = vmatmul.bf16.gmra.mxu1 %v5349_v48  ;;  %2544 = vmatmul.bf16.gmra.mxu0 %v5393_v37  ;;  %v1228_v14 = vpack.c.bf16 %v1174_v31, %v1174_v31 }
 0x113   : > { %2141 = vmatmul.bf16.gmra.mxu2 %v5397_v23  ;;  %2455 = vmatmul.bf16.gmra.mxu3 %v5012_v28  ;;  %v1545_v26 = vor.u32 %v1544_v6, %v1540_v30  ;;  %v723_v0 = vadd.f32 %v5318_v20, %v665_v32  ;;  %v4342_v32 = vld [vmem:[%s5914_s3 + $0x1c8] sm:$0xff] }
 0x114   : > { %v1382_v6 = vunpack.c.l.b16 %v1228_v14  ;;  %2989 = vmatpush.bf16.msra.mxu3 %v4342_v32 }
 0x116   : > { %v2102_v42 = vpop.f32.mrf.mxu2  ;;  %v2416_v43 = vpop.f32.mrf.mxu3 }
 0x117   : > { %v5409_v63 = vadd.f32 %v2102_v42, %v2014_v52  ;;  %v5411_v19 = vadd.f32 %v2505_v3, %v2416_v43  ;;  %v2015_v21 = vpop.f32.mrf.mxu1  ;;  %v2507_v54 = vpop.f32.mrf.mxu0  ;;  %v1673_v52 = vrot.slane %v5361_v1, 1  ;;  %v5421_v43 = vsel %vm1406_vm2, %v1545_v26, %v1549_v9 }
 0x118   : > { %v2016_v10 = vadd.f32 %v2015_v21, %v5235_v55  ;;  %v1554_v1 = vshll.u32 %v4836_v49, 16  ;;  %v1552_v9 = vshrl.u32 %v4836_v49, 16 }
 0x119   : > { %5977 = vst [vmem:[#allocation41_spill] sm:$0xff] %v5411_v19  ;;  %v5430_v21 = vsel %vm1641_vm3, %v1672_v34, %v1673_v52 }
 0x11a   : > { %v1556_v14 = vrot.slane %v1554_v1, 1 }
 0x11e   : > { %v2104_v42 = vpop.f32.mrf.mxu2  ;;  %v2418_v3 = vpop.f32.mrf.mxu3 }
 0x11f   : > { %v5423_v19 = vadd.f32 %v2104_v42, %v2016_v10  ;;  %v5425_v55 = vadd.f32 %v2507_v54, %v2418_v3  ;;  %v2018_v51 = vpop.f32.mrf.mxu1  ;;  %v2510_v30 = vpop.f32.mrf.mxu0  ;;  %v5437_v54 = vpack.c.b16 %v1382_v6, %v1382_v6  ;;  %v777_v10 = vmax.f32 %v723_v0, 0.0 }
 0x120   : > { %v2019_v38 = vadd.f32 %v2018_v51, %v5250_v60  ;;  %v4334_v60 = vld [vmem:[%s5914_s3 + $0x188] sm:$0xff] }
 0x121   : > { %5978 = vst [vmem:[#allocation42_spill] sm:$0xff] %v5423_v19  ;;  %2900 = vmatpush.bf16.msra.mxu2 %v4334_v60  ;;  %v1559_v51 = vshll.u32 %v5437_v54, 16  ;;  %v1177_v6 = vsel %vm967_vm1, %v777_v10, 0.0  ;;  %v4326_v60 = vld [vmem:[%s5914_s3 + $0x148] sm:$0xff] }
 0x122   : > { %5979 = vst [vmem:[#allocation43_spill] sm:$0xff] %v5425_v55  ;;  %2057 = vmatmul.bf16.gmra.mxu1 %v5393_v37  ;;  %2549 = vmatmul.bf16.gmra.mxu0 %v5421_v43  ;;  %v1231_v1 = vpack.c.bf16 %v1177_v6, %v1177_v6 }
 0x123   : > { %2146 = vmatmul.bf16.gmra.mxu2 %v5430_v21  ;;  %2460 = vmatmul.bf16.gmra.mxu3 %v5056_v56  ;;  %v1561_v32 = vrot.slane %v1559_v51, 1 }
 0x124   : > { %2586 = vmatpush.bf16.msra.mxu1 %v4326_v60 }
 0x126   : > { %v2107_v31 = vpop.f32.mrf.mxu2  ;;  %v2421_v26 = vpop.f32.mrf.mxu3 }
 0x127   : > { %v5446_v34 = vadd.f32 %v2107_v31, %v2019_v38  ;;  %v5448_v52 = vadd.f32 %v2510_v30, %v2421_v26  ;;  %v2020_v42 = vpop.f32.mrf.mxu1  ;;  %v2512_v3 = vpop.f32.mrf.mxu0  ;;  %v4350_v38 = vld [vmem:[%s5914_s3 + $0x208] sm:$0xff]  ;;  %v1557_v30 = vor.u32 %v1556_v14, %v1552_v9  ;;  %v1675_v31 = vrot.slane %v5056_v56, 1 }
 0x128   : > { %v2021_v0 = vadd.f32 %v2020_v42, %v5278_v36  ;;  %3078 = vmatpush.bf16.msra.mxu0 %v4350_v38  ;;  %v1676_v26 = vrot.slane %v5402_v35, 1  ;;  %v668_v36 = vmul.f32 %v5297_v33, %v4726_v41 }
 0x129   : > { %5980 = vst [vmem:[#allocation44_spill] sm:$0xff] %v5446_v34  ;;  %v5469_v9 = vsel %vm1406_vm2, %v1557_v30, %v1561_v32 }
 0x12a   : > { %5981 = vst [vmem:[#allocation45_spill] sm:$0xff] %v5448_v52  ;;  %v1383_v52 = vunpack.c.l.b16 %v1231_v1  ;;  %v5473_v51 = vsel %vm1641_vm3, %v1675_v31, %v1676_v26  ;;  %v726_v35 = vadd.f32 %v5318_v20, %v668_v36 }
 0x12c   : > { %v5478_v41 = vpack.c.b16 %v1383_v52, %v1383_v52 }
 0x12e   : > { %v2109_v10 = vpop.f32.mrf.mxu2  ;;  %v2423_v42 = vpop.f32.mrf.mxu3  ;;  %v1571_v1 = vshll.u32 %v5478_v41, 16 }
 0x12f   : > { %v5464_v34 = vadd.f32 %v2109_v10, %v2021_v0  ;;  %v5466_v55 = vadd.f32 %v2512_v3, %v2423_v42  ;;  %v2023_v19 = vpop.f32.mrf.mxu1  ;;  %v2515_v6 = vpop.f32.mrf.mxu0  ;;  %v1566_v3 = vshll.u32 %v4928_v15, 16  ;;  %v780_v0 = vmax.f32 %v726_v35, 0.0 }
 0x130   : > { %v2024_v14 = vadd.f32 %v2023_v19, %v5305_v13  ;;  %v1564_v19 = vshrl.u32 %v4928_v15, 16  ;;  %v1573_v42 = vrot.slane %v1571_v1, 1 }
 0x131   : > { %5982 = vst [vmem:[#allocation46_spill] sm:$0xff] %v5466_v55  ;;  %v1568_v38 = vrot.slane %v1566_v3, 1  ;;  %v1180_v36 = vsel %vm967_vm1, %v780_v0, 0.0  ;;  %v671_v55 = vmul.f32 %v5297_v33, %v4735_v44  ;;  %v1678_v3 = vrot.slane %v4836_v49, 1 }
 0x132   : > { %2062 = vmatmul.bf16.gmra.mxu1 %v5421_v43  ;;  %2554 = vmatmul.bf16.gmra.mxu0 %v5469_v9  ;;  %v1234_v35 = vpack.c.bf16 %v1180_v36, %v1180_v36 }
 0x133   : > { %2151 = vmatmul.bf16.gmra.mxu2 %v5473_v51  ;;  %2465 = vmatmul.bf16.gmra.mxu3 %v4836_v49  ;;  %v1569_v10 = vor.u32 %v1568_v38, %v1564_v19  ;;  %v729_v1 = vadd.f32 %v5318_v20, %v671_v55  ;;  %v4333_v55 = vld [vmem:[%s5914_s3 + $0x180] sm:$0xff] }
 0x134   : > { %v1384_v38 = vunpack.c.l.b16 %v1234_v35  ;;  %2901 = vmatpush.bf16.msra.mxu2 %v4333_v55  ;;  %v1576_v35 = vshrl.u32 %v5015_v12, 16 }
 0x136   : > { %v2112_v60 = vpop.f32.mrf.mxu2  ;;  %v2426_v13 = vpop.f32.mrf.mxu3 }
 0x137   : > { %v5485_v30 = vadd.f32 %v2112_v60, %v2024_v14  ;;  %v5487_v32 = vadd.f32 %v2515_v6, %v2426_v13  ;;  %v2025_v52 = vpop.f32.mrf.mxu1  ;;  %v2517_v31 = vpop.f32.mrf.mxu0  ;;  %v1679_v14 = vrot.slane %v5437_v54, 1  ;;  %v5497_v13 = vsel %vm1406_vm2, %v1569_v10, %v1573_v42 }
 0x138   : > { %v2026_v26 = vadd.f32 %v2025_v52, %v5332_v50  ;;  %v1578_v54 = vshll.u32 %v5015_v12, 16  ;;  %v5512_v52 = vpack.c.b16 %v1384_v38, %v1384_v38 }
 0x139   : > { %5983 = vst [vmem:[#allocation47_spill] sm:$0xff] %v5487_v32  ;;  %v5505_v44 = vsel %vm1641_vm3, %v1678_v3, %v1679_v14 }
 0x13a   : > { %v1580_v3 = vrot.slane %v1578_v54, 1  ;;  %v4349_v54 = vld [vmem:[%s5914_s3 + $0x200] sm:$0xff] }
 0x13b   : > { %3079 = vmatpush.bf16.msra.mxu0 %v4349_v54 }
 0x13c   : > { %v1581_v55 = vor.u32 %v1580_v3, %v1576_v35 }
 0x13e   : > { %v2114_v60 = vpop.f32.mrf.mxu2  ;;  %v2428_v6 = vpop.f32.mrf.mxu3 }
 0x13f   : > { %v5499_v32 = vadd.f32 %v2114_v60, %v2026_v26  ;;  %v5501_v50 = vadd.f32 %v2517_v31, %v2428_v6  ;;  %v2028_v0 = vpop.f32.mrf.mxu1  ;;  %v2520_v19 = vpop.f32.mrf.mxu0  ;;  %v783_v31 = vmax.f32 %v729_v1, 0.0  ;;  %v4341_v26 = vld [vmem:[%s5914_s3 + $0x1c0] sm:$0xff]  ;;  %v1583_v1 = vshll.u32 %v5512_v52, 16 }
 0x140   : > { %v2029_v36 = vadd.f32 %v2028_v0, %v5169_v59  ;;  %2990 = vmatpush.bf16.msra.mxu3 %v4341_v26  ;;  %v672_v59 = vmul.f32 %v5297_v33, %v4738_v45  ;;  %v4325_v0 = vld [vmem:[%s5914_s3 + $0x140] sm:$0xff]  ;;  %v1682_v45 = vrot.slane %v5478_v41, 1 }
 0x141   : > { %5984 = vst [vmem:[#allocation48_spill] sm:$0xff] %v5499_v32  ;;  %v1585_v26 = vrot.slane %v1583_v1, 1  ;;  %2587 = vmatpush.bf16.msra.mxu1 %v4325_v0 }
 0x142   : > { %5985 = vst [vmem:[#allocation49_spill] sm:$0xff] %v5501_v50  ;;  %2067 = vmatmul.bf16.gmra.mxu1 %v5469_v9  ;;  %2559 = vmatmul.bf16.gmra.mxu0 %v5497_v13  ;;  %v1183_v50 = vsel %vm967_vm1, %v783_v31, 0.0  ;;  %v1681_v31 = vrot.slane %v4928_v15, 1 }
 0x143   : > { %2156 = vmatmul.bf16.gmra.mxu2 %v5505_v44  ;;  %2470 = vmatmul.bf16.gmra.mxu3 %v4928_v15  ;;  %v5550_v54 = vsel %vm1406_vm2, %v1581_v55, %v1585_v26  ;;  %v1588_v26 = vshrl.u32 %v5058_v57, 16 }
 0x146   : > { %v2117_v10 = vpop.f32.mrf.mxu2  ;;  %v2431_v42 = vpop.f32.mrf.mxu3 }
 0x147   : > { %v5522_v14 = vadd.f32 %v2117_v10, %v2029_v36  ;;  %v5524_v60 = vadd.f32 %v2520_v19, %v2431_v42  ;;  %v2030_v6 = vpop.f32.mrf.mxu1  ;;  %v2522_v38 = vpop.f32.mrf.mxu0  ;;  %v1237_v19 = vpack.c.bf16 %v1183_v50, %v1183_v50  ;;  %v673_v36 = vmul.f32 %v5297_v33, %v4741_v46  ;;  %v5988_v42 = vld [vmem:[#allocation7_spill] sm:$0xff] }
 0x148   : > { %v730_v10 = vadd.f32 %v5318_v20, %v672_v59  ;;  %v5554_v59 = vsel %vm1641_vm3, %v1681_v31, %v1682_v45 }
 0x149   : > { %5986 = vst [vmem:[#allocation50_spill] sm:$0xff] %v5522_v14  ;;  %v2031_v14 = vadd.f32 %v2030_v6, %v5195_v17  ;;  %v1385_v35 = vunpack.c.l.b16 %v1237_v19  ;;  %v731_v41 = vadd.f32 %v5318_v20, %v673_v36 }
 0x14a   : > { %5987 = vst [vmem:[#allocation51_spill] sm:$0xff] %v5524_v60  ;;  %v674_v60 = vmul.f32 %v5297_v33, %v5988_v42  ;;  %v784_v33 = vmax.f32 %v730_v10, 0.0 }
 0x14b   : > { %v785_v6 = vmax.f32 %v731_v41, 0.0 }
 0x14c   : > { %v732_v17 = vadd.f32 %v5318_v20, %v674_v60 }
 0x14d   : > { %v1239_v41 = vpack.c.bf16 %v785_v6, %v785_v6 }
 0x14e   : > { %v2119_v32 = vpop.f32.mrf.mxu2  ;;  %v2433_v50 = vpop.f32.mrf.mxu3  ;;  %v786_v19 = vmax.f32 %v732_v17, 0.0 }
 0x14f   : > { %v5545_v3 = vadd.f32 %v2119_v32, %v2031_v14  ;;  %v5547_v1 = vadd.f32 %v2522_v38, %v2433_v50  ;;  %v2033_v0 = vpop.f32.mrf.mxu1  ;;  %v2525_v46 = vpop.f32.mrf.mxu0  ;;  %v5559_v32 = vpack.c.b16 %v1385_v35, %v1385_v35  ;;  %v1590_v14 = vshll.u32 %v5058_v57, 16 }
 0x150   : > { %v1184_v38 = vsel %vm866_vm0, %v784_v33, 0.0  ;;  %v2034_v55 = vadd.f32 %v2033_v0, %v5215_v25  ;;  %v1186_v61 = vsel %vm967_vm1, %v786_v19, 0.0  ;;  %v1313_v17 = vunpack.c.l.b16 %v1239_v41 }
 0x151   : > { %5989 = vst [vmem:[#allocation7_spill] sm:$0xff] %v5545_v3  ;;  %v1592_v36 = vrot.slane %v1590_v14, 1  ;;  %v1595_v31 = vshll.u32 %v5559_v32, 16  ;;  %v1238_v35 = vpack.c.bf16 %v1184_v38, %v1184_v38  ;;  %v1684_v14 = vrot.slane %v5015_v12, 1 }
 0x152   : > { %5990 = vst [vmem:[#allocation52_spill] sm:$0xff] %v5547_v1  ;;  %2072 = vmatmul.bf16.gmra.mxu1 %v5497_v13  ;;  %2564 = vmatmul.bf16.gmra.mxu0 %v5550_v54  ;;  %v1240_v1 = vpack.c.bf16 %v1186_v61, %v1186_v61  ;;  %v1685_v3 = vrot.slane %v5512_v52, 1 }
 0x153   : > { %2161 = vmatmul.bf16.gmra.mxu2 %v5554_v59  ;;  %2475 = vmatmul.bf16.gmra.mxu3 %v5015_v12  ;;  %v1593_v33 = vor.u32 %v1592_v36, %v1588_v26  ;;  %v1597_v25 = vrot.slane %v1595_v31, 1  ;;  %v1312_v0 = vunpack.c.l.b16 %v1238_v35 }
 0x154   : > { %v1386_v36 = vunpack.c.l.b16 %v1240_v1  ;;  %v5588_v31 = vsel %vm1641_vm3, %v1684_v14, %v1685_v3 }
 0x155   : > { %v5585_v26 = vpack.c.b16 %v1313_v17, %v1312_v0 }
 0x156   : > { %v2122_v20 = vpop.f32.mrf.mxu2  ;;  %v2436_v60 = vpop.f32.mrf.mxu3 }
 0x157   : > { %v5569_v45 = vadd.f32 %v2122_v20, %v2034_v55  ;;  %v5571_v10 = vadd.f32 %v2525_v46, %v2436_v60  ;;  %v2035_v42 = vpop.f32.mrf.mxu1  ;;  %v2527_v50 = vpop.f32.mrf.mxu0  ;;  %v5579_v60 = vsel %vm1406_vm2, %v1593_v33, %v1597_v25  ;;  %v1602_v52 = vshll.u32 %v5585_v26, 16 }
 0x158   : > { %v2036_v55 = vadd.f32 %v2035_v42, %v5237_v5  ;;  %v5594_v5 = vpack.c.b16 %v1386_v36, %v1386_v36  ;;  %v1600_v1 = vshrl.u32 %v5585_v26, 16 }
 0x159   : > { %v1604_v25 = vrot.slane %v1602_v52, 1 }
 0x15a   : > { %v1607_v0 = vshll.u32 %v5594_v5, 16 }
 0x15b   : > { %v1605_v17 = vor.u32 %v1604_v25, %v1600_v1 }
 0x15c   : > { %v1609_v14 = vrot.slane %v1607_v0, 1 }
 0x15e   : > { %v2124_v46 = vpop.f32.mrf.mxu2  ;;  %v2438_v20 = vpop.f32.mrf.mxu3  ;;  %v5612_v52 = vsel %vm1406_vm2, %v1605_v17, %v1609_v14 }
 0x15f   : > { %v5581_v6 = vadd.f32 %v2124_v46, %v2036_v55  ;;  %v5583_v39 = vadd.f32 %v2527_v50, %v2438_v20  ;;  %v2038_v38 = vpop.f32.mrf.mxu1  ;;  %v2530_v19 = vpop.f32.mrf.mxu0  ;;  %v1687_v55 = vrot.slane %v5058_v57, 1  ;;  %v1688_v46 = vrot.slane %v5559_v32, 1 }
 0x160   : > { %v2039_v42 = vadd.f32 %v2038_v38, %v5252_v53 }
 0x162   : > { %2077 = vmatmul.bf16.gmra.mxu1 %v5550_v54  ;;  %2569 = vmatmul.bf16.gmra.mxu0 %v5579_v60 }
 0x163   : > { %2166 = vmatmul.bf16.gmra.mxu2 %v5588_v31  ;;  %2480 = vmatmul.bf16.gmra.mxu3 %v5058_v57 }
 0x166   : > { %v2127_v50 = vpop.f32.mrf.mxu2  ;;  %v2441_v35 = vpop.f32.mrf.mxu3 }
 0x167   : > { %v5599_v3 = vadd.f32 %v2127_v50, %v2039_v42  ;;  %v5601_v41 = vadd.f32 %v2530_v19, %v2441_v35  ;;  %v2040_v61 = vpop.f32.mrf.mxu1  ;;  %v2532_v33 = vpop.f32.mrf.mxu0  ;;  %v5615_v35 = vsel %vm1641_vm3, %v1687_v55, %v1688_v46 }
 0x168   : > { %v2041_v53 = vadd.f32 %v2040_v61, %v5280_v7 }
 0x16e   : > { %v2129_v20 = vpop.f32.mrf.mxu2  ;;  %v2443_v38 = vpop.f32.mrf.mxu3 }
 0x16f   : > { %v5607_v36 = vadd.f32 %v2129_v20, %v2041_v53  ;;  %v5609_v42 = vadd.f32 %v2532_v33, %v2443_v38  ;;  %v2043_v19 = vpop.f32.mrf.mxu1  ;;  %v2535_v50 = vpop.f32.mrf.mxu0 }
 0x170   : > { %v2044_v7 = vadd.f32 %v2043_v19, %v5307_v40 }
 0x172   : > { %2082 = vmatmul.bf16.gmra.mxu1 %v5579_v60  ;;  %2574 = vmatmul.bf16.gmra.mxu0 %v5612_v52 }
 0x173   : > { %2171 = vmatmul.bf16.gmra.mxu2 %v5615_v35  ;;  %2485 = vmatmul.bf16.gmra.mxu3 %v5585_v26 }
 0x176   : > { %v2132_v32 = vpop.f32.mrf.mxu2  ;;  %v2446_v1 = vpop.f32.mrf.mxu3 }
 0x177   : > { %v5622_v61 = vadd.f32 %v2132_v32, %v2044_v7  ;;  %v5624_v33 = vadd.f32 %v2535_v50, %v2446_v1  ;;  %v2045_v25 = vpop.f32.mrf.mxu1  ;;  %v2537_v0 = vpop.f32.mrf.mxu0 }
 0x178   : > { %v2046_v17 = vadd.f32 %v2045_v25, %v5334_v22 }
 0x17e   : > { %v2134_v14 = vpop.f32.mrf.mxu2  ;;  %v2448_v55 = vpop.f32.mrf.mxu3 }
 0x17f   : > { %v5627_v46 = vadd.f32 %v2134_v14, %v2046_v17  ;;  %v5629_v53 = vadd.f32 %v2537_v0, %v2448_v55  ;;  %v2048_v20 = vpop.f32.mrf.mxu1  ;;  %v2540_v38 = vpop.f32.mrf.mxu0 }
 0x180   : > { %v2049_v40 = vadd.f32 %v2048_v20, %v5189_v47 }
 0x182   : > { %2588 = vmatmul.bf16.vlgmr.msra.gmra.mxu1 %v5106_v62  ;;  %3080 = vmatmul.bf16.vlgmr.msra.gmra.mxu0 %v5123_v27 }
 0x183   : > { %2902 = vmatmul.bf16.vlgmr.msra.gmra.mxu2 %v5007_v16  ;;  %2991 = vmatmul.bf16.vlgmr.msra.gmra.mxu3 %v5103_v4 }
 0x186   : > { %v2137_v19 = vpop.f32.mrf.mxu2  ;;  %v2451_v22 = vpop.f32.mrf.mxu3 }
 0x187   : > { %v5636_v50 = vadd.f32 %v2137_v19, %v2049_v40  ;;  %v5638_v7 = vadd.f32 %v2540_v38, %v2451_v22  ;;  %v2050_v32 = vpop.f32.mrf.mxu1  ;;  %v2542_v1 = vpop.f32.mrf.mxu0  ;;  %v5992_v22 = vld [vmem:[#allocation23_spill] sm:$0xff] }
 0x188   : > { %v2051_v25 = vadd.f32 %v2050_v32, %v5209_v11 }
 0x18e   : > { %v2139_v0 = vpop.f32.mrf.mxu2  ;;  %v2453_v62 = vpop.f32.mrf.mxu3 }
 0x18f   : > { %v5641_v17 = vadd.f32 %v2139_v0, %v2051_v25  ;;  %v5643_v14 = vadd.f32 %v2542_v1, %v2453_v62  ;;  %v2053_v16 = vpop.f32.mrf.mxu1  ;;  %v2545_v4 = vpop.f32.mrf.mxu0  ;;  %v5996_v62 = vld [vmem:[#allocation9_spill] sm:$0xff] }
 0x190   : > { %v2054_v47 = vadd.f32 %v2053_v16, %v5231_v18  ;;  %v5995_v18 = vld [vmem:[#allocation17_spill] sm:$0xff]  ;;  %v5997_v16 = vld [vmem:[#allocation15_spill] sm:$0xff] }
 0x192   : > { %2593 = vmatmul.bf16.gmra.mxu1 %v5123_v27  ;;  %3085 = vmatmul.bf16.gmra.mxu0 %v5153_v8 }
 0x193   : > { %2907 = vmatmul.bf16.gmra.mxu2 %v5052_v24  ;;  %2996 = vmatmul.bf16.gmra.mxu3 %v5120_v2 }
 0x196   : > { %v2142_v55 = vpop.f32.mrf.mxu2  ;;  %v2456_v11 = vpop.f32.mrf.mxu3 }
 0x197   : > { %v5650_v20 = vadd.f32 %v2142_v55, %v2054_v47  ;;  %v5652_v38 = vadd.f32 %v2545_v4, %v2456_v11  ;;  %v2055_v40 = vpop.f32.mrf.mxu1  ;;  %v2547_v19 = vpop.f32.mrf.mxu0  ;;  %v5998_v4 = vld [vmem:[#allocation27_spill] sm:$0xff] }
 0x198   : > { %v2056_v32 = vadd.f32 %v2055_v40, %v5992_v22 }
 0x199   : > { %5991 = vst [vmem:[#allocation53_spill] sm:$0xff] %v5652_v38 }
 0x19e   : > { %v2144_v1 = vpop.f32.mrf.mxu2  ;;  %v2458_v27 = vpop.f32.mrf.mxu3 }
 0x19f   : > { %v5655_v25 = vadd.f32 %v2144_v1, %v2056_v32  ;;  %v5657_v0 = vadd.f32 %v2547_v19, %v2458_v27  ;;  %v2058_v24 = vpop.f32.mrf.mxu1  ;;  %v2550_v2 = vpop.f32.mrf.mxu0  ;;  %v6001_v1 = vld [vmem:[#allocation29_spill] sm:$0xff] }
 0x1a0   : > { %v2059_v47 = vadd.f32 %v2058_v24, %v5998_v4  ;;  %v6004_v24 = vld [vmem:[#allocation21_spill] sm:$0xff]  ;;  %v6005_v4 = vld [vmem:[#allocation11_spill] sm:$0xff] }
 0x1a1   : > { %5993 = vst [vmem:[#allocation23_spill] sm:$0xff] %v5655_v25 }
 0x1a2   : > { %5994 = vst [vmem:[#allocation54_spill] sm:$0xff] %v5657_v0  ;;  %2598 = vmatmul.bf16.gmra.mxu1 %v5153_v8  ;;  %3090 = vmatmul.bf16.gmra.mxu0 %v5995_v18 }
 0x1a3   : > { %2912 = vmatmul.bf16.gmra.mxu2 %v5996_v62  ;;  %3001 = vmatmul.bf16.gmra.mxu3 %v5997_v16 }
 0x1a6   : > { %v2147_v55 = vpop.f32.mrf.mxu2  ;;  %v2461_v11 = vpop.f32.mrf.mxu3 }
 0x1a7   : > { %v5664_v40 = vadd.f32 %v2147_v55, %v2059_v47  ;;  %v5666_v22 = vadd.f32 %v2550_v2, %v2461_v11  ;;  %v2060_v19 = vpop.f32.mrf.mxu1  ;;  %v2552_v32 = vpop.f32.mrf.mxu0  ;;  %v6006_v2 = vld [vmem:[#allocation16_spill] sm:$0xff]  ;;  %v6007_v47 = vld [vmem:[#allocation33_spill] sm:$0xff] }
 0x1a8   : > { %v2061_v27 = vadd.f32 %v2060_v19, %v6001_v1 }
 0x1a9   : > { %5999 = vst [vmem:[#allocation17_spill] sm:$0xff] %v5664_v40 }
 0x1aa   : > { %6000 = vst [vmem:[#allocation9_spill] sm:$0xff] %v5666_v22 }
 0x1ae   : > { %v2149_v0 = vpop.f32.mrf.mxu2  ;;  %v2463_v8 = vpop.f32.mrf.mxu3 }
 0x1af   : > { %v5669_v25 = vadd.f32 %v2149_v0, %v2061_v27  ;;  %v5671_v38 = vadd.f32 %v2552_v32, %v2463_v8  ;;  %v2063_v62 = vpop.f32.mrf.mxu1  ;;  %v2555_v16 = vpop.f32.mrf.mxu0  ;;  %v6010_v8 = vld [vmem:[#allocation35_spill] sm:$0xff] }
 0x1b0   : > { %v2064_v55 = vadd.f32 %v2063_v62, %v6007_v47  ;;  %v6013_v62 = vld [vmem:[#allocation26_spill] sm:$0xff]  ;;  %v6014_v47 = vld [vmem:[#allocation12_spill] sm:$0xff] }
 0x1b1   : > { %6002 = vst [vmem:[#allocation15_spill] sm:$0xff] %v5669_v25 }
 0x1b2   : > { %6003 = vst [vmem:[#allocation27_spill] sm:$0xff] %v5671_v38  ;;  %2603 = vmatmul.bf16.gmra.mxu1 %v5995_v18  ;;  %3095 = vmatmul.bf16.gmra.mxu0 %v6004_v24 }
 0x1b3   : > { %2917 = vmatmul.bf16.gmra.mxu2 %v6005_v4  ;;  %3006 = vmatmul.bf16.gmra.mxu3 %v6006_v2 }
 0x1b6   : > { %v2152_v11 = vpop.f32.mrf.mxu2  ;;  %v2466_v19 = vpop.f32.mrf.mxu3 }
 0x1b7   : > { %v5678_v1 = vadd.f32 %v2152_v11, %v2064_v55  ;;  %v5680_v0 = vadd.f32 %v2555_v16, %v2466_v19  ;;  %v2065_v32 = vpop.f32.mrf.mxu1  ;;  %v2557_v27 = vpop.f32.mrf.mxu0  ;;  %v6015_v16 = vld [vmem:[#allocation20_spill] sm:$0xff]  ;;  %v6016_v55 = vld [vmem:[#allocation18_spill] sm:$0xff] }
 0x1b8   : > { %v2066_v38 = vadd.f32 %v2065_v32, %v6010_v8 }
 0x1b9   : > { %6008 = vst [vmem:[#allocation29_spill] sm:$0xff] %v5678_v1 }
 0x1ba   : > { %6009 = vst [vmem:[#allocation21_spill] sm:$0xff] %v5680_v0 }
 0x1be   : > { %v2154_v25 = vpop.f32.mrf.mxu2  ;;  %v2468_v18 = vpop.f32.mrf.mxu3 }
 0x1bf   : > { %v5683_v22 = vadd.f32 %v2154_v25, %v2066_v38  ;;  %v5685_v40 = vadd.f32 %v2557_v27, %v2468_v18  ;;  %v2068_v4 = vpop.f32.mrf.mxu1  ;;  %v2560_v2 = vpop.f32.mrf.mxu0  ;;  %v6019_v18 = vld [vmem:[#allocation19_spill] sm:$0xff] }
 0x1c0   : > { %v2069_v11 = vadd.f32 %v2068_v4, %v6016_v55  ;;  %v6022_v4 = vld [vmem:[#allocation32_spill] sm:$0xff]  ;;  %v6023_v55 = vld [vmem:[#allocation13_spill] sm:$0xff] }
 0x1c1   : > { %6011 = vst [vmem:[#allocation11_spill] sm:$0xff] %v5683_v22 }
 0x1c2   : > { %6012 = vst [vmem:[#allocation16_spill] sm:$0xff] %v5685_v40  ;;  %2608 = vmatmul.bf16.gmra.mxu1 %v6004_v24  ;;  %3100 = vmatmul.bf16.gmra.mxu0 %v6013_v62 }
 0x1c3   : > { %2922 = vmatmul.bf16.gmra.mxu2 %v6014_v47  ;;  %3011 = vmatmul.bf16.gmra.mxu3 %v6015_v16 }
 0x1c6   : > { %v2157_v19 = vpop.f32.mrf.mxu2  ;;  %v2471_v32 = vpop.f32.mrf.mxu3 }
 0x1c7   : > { %v5692_v8 = vadd.f32 %v2157_v19, %v2069_v11  ;;  %v5694_v38 = vadd.f32 %v2560_v2, %v2471_v32  ;;  %v2070_v25 = vpop.f32.mrf.mxu1  ;;  %v2562_v27 = vpop.f32.mrf.mxu0  ;;  %v6024_v2 = vld [vmem:[#allocation25_spill] sm:$0xff]  ;;  %v6025_v11 = vld [vmem:[#allocation22_spill] sm:$0xff] }
 0x1c8   : > { %v2071_v40 = vadd.f32 %v2070_v25, %v6019_v18 }
 0x1c9   : > { %6017 = vst [vmem:[#allocation33_spill] sm:$0xff] %v5692_v8 }
 0x1ca   : > { %6018 = vst [vmem:[#allocation35_spill] sm:$0xff] %v5694_v38 }
 0x1ce   : > { %v2159_v22 = vpop.f32.mrf.mxu2  ;;  %v2473_v24 = vpop.f32.mrf.mxu3 }
 0x1cf   : > { %v5697_v0 = vadd.f32 %v2159_v22, %v2071_v40  ;;  %v5699_v1 = vadd.f32 %v2562_v27, %v2473_v24  ;;  %v2073_v47 = vpop.f32.mrf.mxu1  ;;  %v2565_v16 = vpop.f32.mrf.mxu0  ;;  %v6028_v24 = vld [vmem:[#allocation24_spill] sm:$0xff] }
 0x1d0   : > { %v2074_v19 = vadd.f32 %v2073_v47, %v6025_v11  ;;  %v6031_v47 = vld [vmem:[#allocation37_spill] sm:$0xff]  ;;  %v6032_v11 = vld [vmem:[#allocation10_spill] sm:$0xff] }
 0x1d1   : > { %6020 = vst [vmem:[#allocation26_spill] sm:$0xff] %v5697_v0 }
 0x1d2   : > { %6021 = vst [vmem:[#allocation12_spill] sm:$0xff] %v5699_v1  ;;  %2613 = vmatmul.bf16.gmra.mxu1 %v6013_v62  ;;  %3105 = vmatmul.bf16.gmra.mxu0 %v6022_v4 }
 0x1d3   : > { %2927 = vmatmul.bf16.gmra.mxu2 %v6023_v55  ;;  %3016 = vmatmul.bf16.gmra.mxu3 %v6024_v2 }
 0x1d6   : > { %v2162_v32 = vpop.f32.mrf.mxu2  ;;  %v2476_v25 = vpop.f32.mrf.mxu3 }
 0x1d7   : > { %v5706_v18 = vadd.f32 %v2162_v32, %v2074_v19  ;;  %v5708_v40 = vadd.f32 %v2565_v16, %v2476_v25  ;;  %v2075_v22 = vpop.f32.mrf.mxu1  ;;  %v2567_v27 = vpop.f32.mrf.mxu0  ;;  %v6033_v16 = vld [vmem:[#allocation31_spill] sm:$0xff]  ;;  %v6034_v19 = vld [vmem:[#allocation28_spill] sm:$0xff] }
 0x1d8   : > { %v2076_v1 = vadd.f32 %v2075_v22, %v6028_v24 }
 0x1d9   : > { %6026 = vst [vmem:[#allocation20_spill] sm:$0xff] %v5706_v18 }
 0x1da   : > { %6027 = vst [vmem:[#allocation18_spill] sm:$0xff] %v5708_v40 }
 0x1de   : > { %v2164_v0 = vpop.f32.mrf.mxu2  ;;  %v2478_v62 = vpop.f32.mrf.mxu3 }
 0x1df   : > { %v5711_v38 = vadd.f32 %v2164_v0, %v2076_v1  ;;  %v5713_v8 = vadd.f32 %v2567_v27, %v2478_v62  ;;  %v2078_v55 = vpop.f32.mrf.mxu1  ;;  %v2570_v2 = vpop.f32.mrf.mxu0  ;;  %v6036_v62 = vld [vmem:[#allocation30_spill] sm:$0xff] }
 0x1e0   : > { %v2079_v32 = vadd.f32 %v2078_v55, %v6034_v19  ;;  %v6039_v55 = vld [vmem:[#allocation34_spill] sm:$0xff] }
 0x1e1   : > { %6029 = vst [vmem:[#allocation19_spill] sm:$0xff] %v5711_v38 }
 0x1e2   : > { %6030 = vst [vmem:[#allocation32_spill] sm:$0xff] %v5713_v8  ;;  %2618 = vmatmul.bf16.gmra.mxu1 %v6022_v4  ;;  %3110 = vmatmul.bf16.gmra.mxu0 %v6031_v47 }
 0x1e3   : > { %2932 = vmatmul.bf16.gmra.mxu2 %v6032_v11  ;;  %3021 = vmatmul.bf16.gmra.mxu3 %v6033_v16 }
 0x1e6   : > { %v2167_v25 = vpop.f32.mrf.mxu2  ;;  %v2481_v22 = vpop.f32.mrf.mxu3 }
 0x1e7   : > { %v5720_v24 = vadd.f32 %v2167_v25, %v2079_v32  ;;  %v5722_v1 = vadd.f32 %v2570_v2, %v2481_v22  ;;  %v2080_v0 = vpop.f32.mrf.mxu1  ;;  %v2572_v27 = vpop.f32.mrf.mxu0 }
 0x1e8   : > { %v2081_v8 = vadd.f32 %v2080_v0, %v6036_v62  ;;  %v6042_v0 = vld [vmem:[#allocation36_spill] sm:$0xff] }
 0x1e9   : > { %6035 = vst [vmem:[#allocation13_spill] sm:$0xff] %v5722_v1 }
 0x1ee   : > { %v2169_v38 = vpop.f32.mrf.mxu2  ;;  %v2483_v4 = vpop.f32.mrf.mxu3 }
 0x1ef   : > { %v5725_v40 = vadd.f32 %v2169_v38, %v2081_v8  ;;  %v5727_v18 = vadd.f32 %v2572_v27, %v2483_v4  ;;  %v2083_v11 = vpop.f32.mrf.mxu1  ;;  %v2575_v16 = vpop.f32.mrf.mxu0 }
 0x1f0   : > { %v2084_v2 = vadd.f32 %v2083_v11, %v6039_v55 }
 0x1f1   : > { %6037 = vst [vmem:[#allocation25_spill] sm:$0xff] %v5725_v40 }
 0x1f2   : > { %6038 = vst [vmem:[#allocation22_spill] sm:$0xff] %v5727_v18  ;;  %2623 = vmatmul.bf16.gmra.mxu1 %v6031_v47  ;;  %3115 = vmatmul.bf16.gmra.mxu0 %v5397_v23  ;;  %v5741_v47 = vld [vmem:[%s5915_s4] ss:$0 sm:$0xff] }
 0x1f3   : > { %2937 = vmatmul.bf16.gmra.mxu2 %v4926_v58  ;;  %3026 = vmatmul.bf16.gmra.mxu3 %v5349_v48 }
 0x1f6   : > { %v2172_v19 = vpop.f32.mrf.mxu2  ;;  %v2486_v32 = vpop.f32.mrf.mxu3 }
 0x1f7   : > { %v5734_v25 = vadd.f32 %v2172_v19, %v2084_v2  ;;  %v5736_v8 = vadd.f32 %v2575_v16, %v2486_v32  ;;  %v2085_v38 = vpop.f32.mrf.mxu1  ;;  %v2577_v22 = vpop.f32.mrf.mxu0  ;;  %v6045_v2 = vld [vmem:[#allocation38_spill] sm:$0xff]  ;;  %v6046_v19 = vld [vmem:[#allocation39_spill] sm:$0xff] }
 0x1f8   : > { %v2086_v27 = vadd.f32 %v2085_v38, %v6042_v0  ;;  %v2177_v16 = vadd.f32 %v5741_v47, %v6045_v2  ;;  %v6047_v2 = vld [vmem:[#allocation40_spill] sm:$0xff] }
 0x1f9   : > { %6040 = vst [vmem:[#allocation24_spill] sm:$0xff] %v5734_v25 }
 0x1fa   : > { %6041 = vst [vmem:[#allocation37_spill] sm:$0xff] %v5736_v8 }
 0x1fe   : > { %v2174_v58 = vpop.f32.mrf.mxu2  ;;  %v2488_v62 = vpop.f32.mrf.mxu3 }
 0x1ff   : > { %v5744_v48 = vadd.f32 %v2174_v58, %v2086_v27  ;;  %v5746_v4 = vadd.f32 %v2577_v22, %v2488_v62  ;;  %v2589_v11 = vpop.f32.mrf.mxu1  ;;  %v3081_v55 = vpop.f32.mrf.mxu0  ;;  %v2178_v62 = vadd.f32 %v5741_v47, %v5388_v29 }
 0x200   : > { %v2590_v32 = vadd.f32 %v2589_v11, %v6046_v19 }
 0x201   : > { %6043 = vst [vmem:[#allocation10_spill] sm:$0xff] %v5744_v48 }
 0x202   : > { %6044 = vst [vmem:[#allocation31_spill] sm:$0xff] %v5746_v4  ;;  %v2669_v8 = vadd.f32 %v2590_v32, %v2177_v16  ;;  %2628 = vmatmul.bf16.gmra.mxu1 %v5397_v23  ;;  %3120 = vmatmul.bf16.gmra.mxu0 %v5430_v21 }
 0x203   : > { %2942 = vmatmul.bf16.gmra.mxu2 %v5012_v28  ;;  %3031 = vmatmul.bf16.gmra.mxu3 %v5393_v37  ;;  %v2179_v37 = vadd.f32 %v5741_v47, %v5409_v63 }
 0x206   : > { %v2903_v38 = vpop.f32.mrf.mxu2  ;;  %v2992_v0 = vpop.f32.mrf.mxu3 }
 0x207   : > { %v2993_v22 = vadd.f32 %v2992_v0, %v2903_v38  ;;  %v2591_v27 = vpop.f32.mrf.mxu1  ;;  %v3083_v58 = vpop.f32.mrf.mxu0  ;;  %v6048_v38 = vld [vmem:[#allocation41_spill] sm:$0xff] }
 0x208   : > { %v2592_v4 = vadd.f32 %v2591_v27, %v6047_v2  ;;  %v6050_v2 = vld [vmem:[#allocation43_spill] sm:$0xff] }
 0x209   : > { %v3082_v11 = vadd.f32 %v3081_v55, %v2993_v22 }
 0x20a   : > { %v2670_v16 = vadd.f32 %v2592_v4, %v2178_v62 }
 0x20b   : > { %v3161_v19 = vadd.f32 %v3082_v11, %v2669_v8 }
 0x20d   : > { %v3273_v18 = vpack.c.bf16 %v3161_v19, %v3161_v19 }
 0x20e   : > { %v2905_v23 = vpop.f32.mrf.mxu2  ;;  %v2994_v32 = vpop.f32.mrf.mxu3 }
 0x20f   : > { %v2995_v48 = vadd.f32 %v2994_v32, %v2905_v23  ;;  %v2594_v25 = vpop.f32.mrf.mxu1  ;;  %v3086_v28 = vpop.f32.mrf.mxu0  ;;  %v3380_v8 = vunpack.c.l.bf16 %v3273_v18 }
 0x210   : > { %v2595_v0 = vadd.f32 %v2594_v25, %v6048_v38 }
 0x211   : > { %v3084_v40 = vadd.f32 %v3083_v58, %v2995_v48  ;;  %v6049_v58 = vld [vmem:[#allocation42_spill] sm:$0xff] }
 0x212   : > { %v2671_v1 = vadd.f32 %v2595_v0, %v2179_v37  ;;  %2633 = vmatmul.bf16.gmra.mxu1 %v5430_v21  ;;  %3125 = vmatmul.bf16.gmra.mxu0 %v5473_v51  ;;  %v2180_v21 = vadd.f32 %v5741_v47, %v6049_v58  ;;  %v6052_v58 = vld [vmem:[#allocation45_spill] sm:$0xff] }
 0x213   : > { %v3162_v29 = vadd.f32 %v3084_v40, %v2670_v16  ;;  %2947 = vmatmul.bf16.gmra.mxu2 %v5056_v56  ;;  %3036 = vmatmul.bf16.gmra.mxu3 %v5421_v43  ;;  %v3549_v40 = vmul.f32 %v3380_v8, %v3380_v8 }
 0x215   : > { %v3274_v4 = vpack.c.bf16 %v3162_v29, %v3162_v29  ;;  %v4360_v55 = vpack.c.bf16 %v3162_v29, %v3161_v19 }
 0x216   : > { %v2908_v22 = vpop.f32.mrf.mxu2  ;;  %v2997_v27 = vpop.f32.mrf.mxu3 }
 0x217   : > { %4361 = vst [vmem:[%s4616_s15] sm:$0xff] %v4360_v55   ;;  %v3381_v63 = vunpack.c.l.bf16 %v3274_v4  ;;  %v2998_v25 = vadd.f32 %v2997_v27, %v2908_v22  ;;  %v2596_v62 = vpop.f32.mrf.mxu1  ;;  %v3088_v48 = vpop.f32.mrf.mxu0  ;;  %v6051_v22 = vld [vmem:[#allocation44_spill] sm:$0xff] }
 0x218   : > { %v2597_v11 = vadd.f32 %v2596_v62, %v6050_v2  ;;  %v2181_v27 = vadd.f32 %v5741_v47, %v6051_v22 }
 0x219   : > { %v3509_v16 = vadd.f32 %v3381_v63, %v3380_v8  ;;  %v3550_v56 = vmul.f32 %v3381_v63, %v3381_v63  ;;  %v3087_v23 = vadd.f32 %v3086_v28, %v2998_v25 }
 0x21a   : > { %v2672_v43 = vadd.f32 %v2597_v11, %v2180_v21 }
 0x21b   : > { %v3581_v18 = vadd.f32 %v3550_v56, %v3549_v40  ;;  %v3163_v32 = vadd.f32 %v3087_v23, %v2671_v1 }
 0x21d   : > { %v3275_v19 = vpack.c.bf16 %v3163_v32, %v3163_v32 }
 0x21e   : > { %v2910_v37 = vpop.f32.mrf.mxu2  ;;  %v2999_v38 = vpop.f32.mrf.mxu3 }
 0x21f   : > { %v3382_v0 = vunpack.c.l.bf16 %v3275_v19  ;;  %v3000_v29 = vadd.f32 %v2999_v38, %v2910_v37  ;;  %v2599_v4 = vpop.f32.mrf.mxu1  ;;  %v3091_v55 = vpop.f32.mrf.mxu0  ;;  %v6053_v37 = vld [vmem:[#allocation46_spill] sm:$0xff] }
 0x220   : > { %v2600_v62 = vadd.f32 %v2599_v4, %v6052_v58 }
 0x221   : > { %v3510_v2 = vadd.f32 %v3509_v16, %v3382_v0  ;;  %v3551_v8 = vmul.f32 %v3382_v0, %v3382_v0  ;;  %v3089_v63 = vadd.f32 %v3088_v48, %v3000_v29 }
 0x222   : > { %v2673_v28 = vadd.f32 %v2600_v62, %v2181_v27  ;;  %2638 = vmatmul.bf16.gmra.mxu1 %v5473_v51  ;;  %3130 = vmatmul.bf16.gmra.mxu0 %v5505_v44  ;;  %v2182_v51 = vadd.f32 %v5741_v47, %v5464_v34 }
 0x223   : > { %v3582_v1 = vadd.f32 %v3581_v18, %v3551_v8  ;;  %v3164_v25 = vadd.f32 %v3089_v63, %v2672_v43  ;;  %2952 = vmatmul.bf16.gmra.mxu2 %v4836_v49  ;;  %3041 = vmatmul.bf16.gmra.mxu3 %v5469_v9  ;;  %v2183_v63 = vadd.f32 %v5741_v47, %v5485_v30 }
 0x225   : > { %v3276_v21 = vpack.c.bf16 %v3164_v25, %v3164_v25  ;;  %v4365_v11 = vpack.c.bf16 %v3164_v25, %v3163_v32  ;;  %v6054_v25 = vld [vmem:[#allocation47_spill] sm:$0xff] }
 0x226   : > { %v2913_v40 = vpop.f32.mrf.mxu2  ;;  %v3002_v56 = vpop.f32.mrf.mxu3 }
 0x227   : > { %4437 = vst [vmem:[%s4616_s15 + $0x8] sm:$0xff] %v4365_v11   ;;  %v3383_v23 = vunpack.c.l.bf16 %v3276_v21  ;;  %v3003_v16 = vadd.f32 %v3002_v56, %v2913_v40  ;;  %v2601_v19 = vpop.f32.mrf.mxu1  ;;  %v3093_v48 = vpop.f32.mrf.mxu0 }
 0x228   : > { %v2602_v38 = vadd.f32 %v2601_v19, %v6053_v37  ;;  %v6055_v37 = vld [vmem:[#allocation48_spill] sm:$0xff] }
 0x229   : > { %v3511_v18 = vadd.f32 %v3510_v2, %v3383_v23  ;;  %v3552_v43 = vmul.f32 %v3383_v23, %v3383_v23  ;;  %v3092_v0 = vadd.f32 %v3091_v55, %v3003_v16 }
 0x22a   : > { %v2674_v49 = vadd.f32 %v2602_v38, %v2182_v51  ;;  %v6056_v38 = vld [vmem:[#allocation49_spill] sm:$0xff] }
 0x22b   : > { %v3583_v29 = vadd.f32 %v3582_v1, %v3552_v43  ;;  %v3165_v9 = vadd.f32 %v3092_v0, %v2673_v28 }
 0x22d   : > { %v3277_v4 = vpack.c.bf16 %v3165_v9, %v3165_v9 }
 0x22e   : > { %v2915_v32 = vpop.f32.mrf.mxu2  ;;  %v3004_v22 = vpop.f32.mrf.mxu3 }
 0x22f   : > { %v3384_v27 = vunpack.c.l.bf16 %v3277_v4  ;;  %v3005_v58 = vadd.f32 %v3004_v22, %v2915_v32  ;;  %v2604_v62 = vpop.f32.mrf.mxu1  ;;  %v3096_v8 = vpop.f32.mrf.mxu0 }
 0x230   : > { %v2605_v34 = vadd.f32 %v2604_v62, %v6054_v25 }
 0x231   : > { %v3512_v21 = vadd.f32 %v3511_v18, %v3384_v27  ;;  %v3553_v2 = vmul.f32 %v3384_v27, %v3384_v27  ;;  %v3094_v11 = vadd.f32 %v3093_v48, %v3005_v58 }
 0x232   : > { %v2675_v55 = vadd.f32 %v2605_v34, %v2183_v63  ;;  %2643 = vmatmul.bf16.gmra.mxu1 %v5505_v44  ;;  %3135 = vmatmul.bf16.gmra.mxu0 %v5554_v59  ;;  %v2184_v44 = vadd.f32 %v5741_v47, %v6055_v37  ;;  %v6057_v63 = vld [vmem:[#allocation50_spill] sm:$0xff]  ;;  %v6058_v34 = vld [vmem:[#allocation51_spill] sm:$0xff] }
 0x233   : > { %v3584_v28 = vadd.f32 %v3583_v29, %v3553_v2  ;;  %v3166_v1 = vadd.f32 %v3094_v11, %v2674_v49  ;;  %2957 = vmatmul.bf16.gmra.mxu2 %v4928_v15  ;;  %3046 = vmatmul.bf16.gmra.mxu3 %v5497_v13  ;;  %v2185_v25 = vadd.f32 %v5741_v47, %v6057_v63  ;;  %v6059_v37 = vld [vmem:[#allocation7_spill] sm:$0xff] }
 0x235   : > { %v3278_v40 = vpack.c.bf16 %v3166_v1, %v3166_v1  ;;  %v4370_v56 = vpack.c.bf16 %v3166_v1, %v3165_v9 }
 0x236   : > { %v2918_v30 = vpop.f32.mrf.mxu2  ;;  %v3007_v23 = vpop.f32.mrf.mxu3 }
 0x237   : > { %4438 = vst [vmem:[%s4616_s15 + $0x10] sm:$0xff] %v4370_v56   ;;  %v3385_v16 = vunpack.c.l.bf16 %v3278_v40  ;;  %v3008_v19 = vadd.f32 %v3007_v23, %v2918_v30  ;;  %v2606_v51 = vpop.f32.mrf.mxu1  ;;  %v3098_v48 = vpop.f32.mrf.mxu0 }
 0x238   : > { %v2607_v18 = vadd.f32 %v2606_v51, %v6056_v38 }
 0x239   : > { %v3513_v43 = vadd.f32 %v3512_v21, %v3385_v16  ;;  %v3554_v0 = vmul.f32 %v3385_v16, %v3385_v16  ;;  %v3097_v49 = vadd.f32 %v3096_v8, %v3008_v19 }
 0x23a   : > { %v2676_v15 = vadd.f32 %v2607_v18, %v2184_v44  ;;  %v6060_v44 = vld [vmem:[#allocation52_spill] sm:$0xff] }
 0x23b   : > { %v3585_v29 = vadd.f32 %v3584_v28, %v3554_v0  ;;  %v3167_v13 = vadd.f32 %v3097_v49, %v2675_v55 }
 0x23d   : > { %v3279_v4 = vpack.c.bf16 %v3167_v13, %v3167_v13 }
 0x23e   : > { %v2920_v9 = vpop.f32.mrf.mxu2  ;;  %v3009_v32 = vpop.f32.mrf.mxu3 }
 0x23f   : > { %v3386_v22 = vunpack.c.l.bf16 %v3279_v4  ;;  %v3010_v27 = vadd.f32 %v3009_v32, %v2920_v9  ;;  %v2609_v58 = vpop.f32.mrf.mxu1  ;;  %v3101_v62 = vpop.f32.mrf.mxu0 }
 0x240   : > { %v2610_v2 = vadd.f32 %v2609_v58, %v6058_v34 }
 0x241   : > { %v3514_v11 = vadd.f32 %v3513_v43, %v3386_v22  ;;  %v3555_v21 = vmul.f32 %v3386_v22, %v3386_v22  ;;  %v3099_v1 = vadd.f32 %v3098_v48, %v3010_v27  ;;  %v2187_v27 = vadd.f32 %v5741_v47, %v5569_v45 }
 0x242   : > { %v2677_v8 = vadd.f32 %v2610_v2, %v2185_v25  ;;  %2648 = vmatmul.bf16.gmra.mxu1 %v5554_v59  ;;  %3140 = vmatmul.bf16.gmra.mxu0 %v5588_v31  ;;  %v2186_v59 = vadd.f32 %v5741_v47, %v6059_v37 }
 0x243   : > { %v3586_v55 = vadd.f32 %v3585_v29, %v3555_v21  ;;  %v3168_v28 = vadd.f32 %v3099_v1, %v2676_v15  ;;  %2962 = vmatmul.bf16.gmra.mxu2 %v5015_v12  ;;  %3051 = vmatmul.bf16.gmra.mxu3 %v5550_v54 }
 0x245   : > { %v3280_v40 = vpack.c.bf16 %v3168_v28, %v3168_v28  ;;  %v4375_v56 = vpack.c.bf16 %v3168_v28, %v3167_v13 }
 0x246   : > { %v2923_v30 = vpop.f32.mrf.mxu2  ;;  %v3012_v23 = vpop.f32.mrf.mxu3 }
 0x247   : > { %4439 = vst [vmem:[%s4616_s15 + $0x18] sm:$0xff] %v4375_v56   ;;  %v3387_v16 = vunpack.c.l.bf16 %v3280_v40  ;;  %v3013_v19 = vadd.f32 %v3012_v23, %v2923_v30  ;;  %v2611_v51 = vpop.f32.mrf.mxu1  ;;  %v3103_v48 = vpop.f32.mrf.mxu0 }
 0x248   : > { %v2612_v38 = vadd.f32 %v2611_v51, %v6060_v44  ;;  %v1690_v51 = vrot.slane %v5585_v26, 1 }
 0x249   : > { %v3515_v18 = vadd.f32 %v3514_v11, %v3387_v16  ;;  %v3556_v43 = vmul.f32 %v3387_v16, %v3387_v16  ;;  %v3102_v0 = vadd.f32 %v3101_v62, %v3013_v19 }
 0x24a   : > { %v2678_v12 = vadd.f32 %v2612_v38, %v2186_v59 }
 0x24b   : > { %v3587_v49 = vadd.f32 %v3586_v55, %v3556_v43  ;;  %v3169_v54 = vadd.f32 %v3102_v0, %v2677_v8 }
 0x24d   : > { %v3281_v15 = vpack.c.bf16 %v3169_v54, %v3169_v54 }
 0x24e   : > { %v2925_v29 = vpop.f32.mrf.mxu2  ;;  %v3014_v13 = vpop.f32.mrf.mxu3 }
 0x24f   : > { %v3388_v4 = vunpack.c.l.bf16 %v3281_v15  ;;  %v3015_v9 = vadd.f32 %v3014_v13, %v2925_v29  ;;  %v2614_v32 = vpop.f32.mrf.mxu1  ;;  %v3106_v22 = vpop.f32.mrf.mxu0 }
 0x250   : > { %v2615_v58 = vadd.f32 %v2614_v32, %v5571_v10 }
 0x251   : > { %v3516_v63 = vadd.f32 %v3515_v18, %v3388_v4  ;;  %v3557_v25 = vmul.f32 %v3388_v4, %v3388_v4  ;;  %v3104_v34 = vadd.f32 %v3103_v48, %v3015_v9  ;;  %v1691_v48 = vrot.slane %v5594_v5, 1 }
 0x252   : > { %v2679_v62 = vadd.f32 %v2615_v58, %v2187_v27  ;;  %2653 = vmatmul.bf16.gmra.mxu1 %v5588_v31  ;;  %3145 = vmatmul.bf16.gmra.mxu0 %v5615_v35  ;;  %v2188_v31 = vadd.f32 %v5741_v47, %v5581_v6 }
 0x253   : > { %v3588_v2 = vadd.f32 %v3587_v49, %v3557_v25  ;;  %v3170_v11 = vadd.f32 %v3104_v34, %v2678_v12  ;;  %2967 = vmatmul.bf16.gmra.mxu2 %v5058_v57  ;;  %3056 = vmatmul.bf16.gmra.mxu3 %v5579_v60  ;;  %v1692_v6 = vsel %vm1641_vm3, %v1690_v51, %v1691_v48 }
 0x255   : > { %v3282_v21 = vpack.c.bf16 %v3170_v11, %v3170_v11  ;;  %v4380_v1 = vpack.c.bf16 %v3170_v11, %v3169_v54 }
 0x256   : > { %v2928_v45 = vpop.f32.mrf.mxu2  ;;  %v3017_v8 = vpop.f32.mrf.mxu3 }
 0x257   : > { %4440 = vst [vmem:[%s4616_s15 + $0x20] sm:$0xff] %v4380_v1   ;;  %v3389_v10 = vunpack.c.l.bf16 %v3282_v21  ;;  %v3018_v55 = vadd.f32 %v3017_v8, %v2928_v45  ;;  %v2616_v28 = vpop.f32.mrf.mxu1  ;;  %v3108_v40 = vpop.f32.mrf.mxu0 }
 0x258   : > { %v2617_v56 = vadd.f32 %v2616_v28, %v5583_v39  ;;  %v2189_v39 = vadd.f32 %v5741_v47, %v5599_v3  ;;  %v2191_v28 = vadd.f32 %v5741_v47, %v5622_v61 }
 0x259   : > { %v3517_v30 = vadd.f32 %v3516_v63, %v3389_v10  ;;  %v3558_v23 = vmul.f32 %v3389_v10, %v3389_v10  ;;  %v3107_v16 = vadd.f32 %v3106_v22, %v3018_v55  ;;  %v2190_v63 = vadd.f32 %v5741_v47, %v5607_v36 }
 0x25a   : > { %v2680_v57 = vadd.f32 %v2617_v56, %v2188_v31 }
 0x25b   : > { %v3589_v19 = vadd.f32 %v3588_v2, %v3558_v23  ;;  %v3171_v60 = vadd.f32 %v3107_v16, %v2679_v62 }
 0x25d   : > { %v3283_v37 = vpack.c.bf16 %v3171_v60, %v3171_v60 }
 0x25e   : > { %v2930_v59 = vpop.f32.mrf.mxu2  ;;  %v3019_v44 = vpop.f32.mrf.mxu3 }
 0x25f   : > { %v3390_v38 = vunpack.c.l.bf16 %v3283_v37  ;;  %v3020_v18 = vadd.f32 %v3019_v44, %v2930_v59  ;;  %v2619_v43 = vpop.f32.mrf.mxu1  ;;  %v3111_v0 = vpop.f32.mrf.mxu0 }
 0x260   : > { %v2620_v12 = vadd.f32 %v2619_v43, %v5601_v41 }
 0x261   : > { %v3518_v49 = vadd.f32 %v3517_v30, %v3390_v38  ;;  %v3559_v54 = vmul.f32 %v3390_v38, %v3390_v38  ;;  %v3109_v15 = vadd.f32 %v3108_v40, %v3020_v18  ;;  %v6061_v30 = vld [vmem:[#allocation8_spill] sm:$0xff]  ;;  %v2192_v38 = vadd.f32 %v5741_v47, %v5627_v46 }
 0x262   : > { %v2681_v29 = vadd.f32 %v2620_v12, %v2189_v39  ;;  %2658 = vmatmul.bf16.gmra.mxu1 %v5615_v35  ;;  %3150 = vmatmul.bf16.gmra.mxu0 %v1692_v6  ;;  %v6062_v23 = vrot.slane %v6061_v30, 1 }
 0x263   : > { %v3590_v5 = vadd.f32 %v3589_v19, %v3559_v54  ;;  %v3172_v13 = vadd.f32 %v3109_v15, %v2680_v57  ;;  %2972 = vmatmul.bf16.gmra.mxu2 %v5585_v26  ;;  %3061 = vmatmul.bf16.gmra.mxu3 %v5612_v52  ;;  %v6063_v19 = vld [vmem:[#allocation14_spill] sm:$0xff] }
 0x265   : > { %v3284_v4 = vpack.c.bf16 %v3172_v13, %v3172_v13  ;;  %v4385_v9 = vpack.c.bf16 %v3172_v13, %v3171_v60 }
 0x266   : > { %v2933_v32 = vpop.f32.mrf.mxu2  ;;  %v3022_v3 = vpop.f32.mrf.mxu3 }
 0x267   : > { %4441 = vst [vmem:[%s4616_s15 + $0x28] sm:$0xff] %v4385_v9   ;;  %v3391_v22 = vunpack.c.l.bf16 %v3284_v4  ;;  %v3023_v41 = vadd.f32 %v3022_v3, %v2933_v32  ;;  %v2621_v27 = vpop.f32.mrf.mxu1  ;;  %v3113_v58 = vpop.f32.mrf.mxu0  ;;  %v2193_v32 = vadd.f32 %v5741_v47, %v5636_v50  ;;  %v2194_v50 = vadd.f32 %v5741_v47, %v5641_v17  ;;  %v6064_v17 = vld [vmem:[#allocation53_spill] sm:$0xff] }
 0x268   : > { %v2622_v35 = vadd.f32 %v2621_v27, %v5609_v42 }
 0x269   : > { %v3519_v25 = vadd.f32 %v3518_v49, %v3391_v22  ;;  %v3560_v34 = vmul.f32 %v3391_v22, %v3391_v22  ;;  %v3112_v62 = vadd.f32 %v3111_v0, %v3023_v41 }
 0x26a   : > { %v2682_v26 = vadd.f32 %v2622_v35, %v2190_v63 }
 0x26b   : > { %v3591_v2 = vadd.f32 %v3590_v5, %v3560_v34  ;;  %v3173_v52 = vadd.f32 %v3112_v62, %v2681_v29 }
 0x26d   : > { %v3285_v11 = vpack.c.bf16 %v3173_v52, %v3173_v52 }
 0x26e   : > { %v2935_v21 = vpop.f32.mrf.mxu2  ;;  %v3024_v1 = vpop.f32.mrf.mxu3 }
 0x26f   : > { %v3392_v45 = vunpack.c.l.bf16 %v3285_v11  ;;  %v3025_v8 = vadd.f32 %v3024_v1, %v2935_v21  ;;  %v2624_v10 = vpop.f32.mrf.mxu1  ;;  %v3116_v55 = vpop.f32.mrf.mxu0 }
 0x270   : > { %v2625_v36 = vadd.f32 %v2624_v10, %v5624_v33 }
 0x271   : > { %v3520_v42 = vadd.f32 %v3519_v25, %v3392_v45  ;;  %v3561_v40 = vmul.f32 %v3392_v45, %v3392_v45  ;;  %v3114_v31 = vadd.f32 %v3113_v58, %v3025_v8 }
 0x272   : > { %v2683_v56 = vadd.f32 %v2625_v36, %v2191_v28  ;;  %2663 = vmatmul.bf16.gmra.mxu1 %v1692_v6  ;;  %3155 = vmatmul.bf16.gmra.mxu0 %v6062_v23 }
 0x273   : > { %v3592_v16 = vadd.f32 %v3591_v2, %v3561_v40  ;;  %v3174_v57 = vadd.f32 %v3114_v31, %v2682_v26  ;;  %2977 = vmatmul.bf16.gmra.mxu2 %v6061_v30  ;;  %3066 = vmatmul.bf16.gmra.mxu3 %v6063_v19  ;;  %v2195_v30 = vadd.f32 %v5741_v47, %v5650_v20 }
 0x275   : > { %v3286_v60 = vpack.c.bf16 %v3174_v57, %v3174_v57  ;;  %v4390_v51 = vpack.c.bf16 %v3174_v57, %v3173_v52 }
 0x276   : > { %v2938_v61 = vpop.f32.mrf.mxu2  ;;  %v3027_v48 = vpop.f32.mrf.mxu3 }
 0x277   : > { %4442 = vst [vmem:[%s4616_s15 + $0x30] sm:$0xff] %v4390_v51   ;;  %v3393_v33 = vunpack.c.l.bf16 %v3286_v60  ;;  %v3028_v37 = vadd.f32 %v3027_v48, %v2938_v61  ;;  %v2626_v59 = vpop.f32.mrf.mxu1  ;;  %v3118_v44 = vpop.f32.mrf.mxu0 }
 0x278   : > { %v2627_v18 = vadd.f32 %v2626_v59, %v5629_v53 }
 0x279   : > { %v3521_v43 = vadd.f32 %v3520_v42, %v3393_v33  ;;  %v3562_v0 = vmul.f32 %v3393_v33, %v3393_v33  ;;  %v3117_v6 = vadd.f32 %v3116_v55, %v3028_v37 }
 0x27a   : > { %v2684_v39 = vadd.f32 %v2627_v18, %v2192_v38 }
 0x27b   : > { %v3593_v12 = vadd.f32 %v3592_v16, %v3562_v0  ;;  %v3175_v49 = vadd.f32 %v3117_v6, %v2683_v56  ;;  %v6066_v0 = vld [vmem:[#allocation54_spill] sm:$0xff] }
 0x27d   : > { %v3287_v54 = vpack.c.bf16 %v3175_v49, %v3175_v49 }
 0x27e   : > { %v2940_v15 = vpop.f32.mrf.mxu2  ;;  %v3029_v29 = vpop.f32.mrf.mxu3 }
 0x27f   : > { %v3394_v5 = vunpack.c.l.bf16 %v3287_v54  ;;  %v3030_v13 = vadd.f32 %v3029_v29, %v2940_v15  ;;  %v2629_v4 = vpop.f32.mrf.mxu1  ;;  %v3121_v9 = vpop.f32.mrf.mxu0 }
 0x280   : > { %v2630_v46 = vadd.f32 %v2629_v4, %v5638_v7 }
 0x281   : > { %v3522_v53 = vadd.f32 %v3521_v43, %v3394_v5  ;;  %v3563_v3 = vmul.f32 %v3394_v5, %v3394_v5  ;;  %v3119_v22 = vadd.f32 %v3118_v44, %v3030_v13  ;;  %v6065_v43 = vld [vmem:[#allocation23_spill] sm:$0xff] }
 0x282   : > { %v2685_v41 = vadd.f32 %v2630_v46, %v2193_v32  ;;  %v2196_v20 = vadd.f32 %v5741_v47, %v6065_v43 }
 0x283   : > { %v3594_v27 = vadd.f32 %v3593_v12, %v3563_v3  ;;  %v3176_v58 = vadd.f32 %v3119_v22, %v2684_v39  ;;  %v6067_v3 = vld [vmem:[#allocation17_spill] sm:$0xff] }
 0x284   : > { %v2197_v22 = vadd.f32 %v5741_v47, %v6067_v3 }
 0x285   : > { %v3288_v63 = vpack.c.bf16 %v3176_v58, %v3176_v58  ;;  %v4395_v35 = vpack.c.bf16 %v3176_v58, %v3175_v49 }
 0x286   : > { %v2943_v25 = vpop.f32.mrf.mxu2  ;;  %v3032_v34 = vpop.f32.mrf.mxu3 }
 0x287   : > { %4443 = vst [vmem:[%s4616_s15 + $0x38] sm:$0xff] %v4395_v35   ;;  %v3395_v62 = vunpack.c.l.bf16 %v3288_v63  ;;  %v3033_v26 = vadd.f32 %v3032_v34, %v2943_v25  ;;  %v2631_v2 = vpop.f32.mrf.mxu1  ;;  %v3123_v52 = vpop.f32.mrf.mxu0 }
 0x288   : > { %v2632_v7 = vadd.f32 %v2631_v2, %v5643_v14 }
 0x289   : > { %v3523_v11 = vadd.f32 %v3522_v53, %v3395_v62  ;;  %v3564_v21 = vmul.f32 %v3395_v62, %v3395_v62  ;;  %v3122_v1 = vadd.f32 %v3121_v9, %v3033_v26 }
 0x28a   : > { %v2686_v45 = vadd.f32 %v2632_v7, %v2194_v50 }
 0x28b   : > { %v3595_v8 = vadd.f32 %v3594_v27, %v3564_v21  ;;  %v3177_v10 = vadd.f32 %v3122_v1, %v2685_v41  ;;  %v6068_v41 = vld [vmem:[#allocation9_spill] sm:$0xff] }
 0x28d   : > { %v3289_v55 = vpack.c.bf16 %v3177_v10, %v3177_v10 }
 0x28e   : > { %v2945_v28 = vpop.f32.mrf.mxu2  ;;  %v3034_v36 = vpop.f32.mrf.mxu3 }
 0x28f   : > { %v3396_v42 = vunpack.c.l.bf16 %v3289_v55  ;;  %v3035_v40 = vadd.f32 %v3034_v36, %v2945_v28  ;;  %v2634_v31 = vpop.f32.mrf.mxu1  ;;  %v3126_v56 = vpop.f32.mrf.mxu0 }
 0x290   : > { %v2635_v23 = vadd.f32 %v2634_v31, %v6064_v17 }
 0x291   : > { %v3524_v14 = vadd.f32 %v3523_v11, %v3396_v42  ;;  %v3565_v16 = vmul.f32 %v3396_v42, %v3396_v42  ;;  %v3124_v57 = vadd.f32 %v3123_v52, %v3035_v40 }
 0x292   : > { %v2687_v19 = vadd.f32 %v2635_v23, %v2195_v30 }
 0x293   : > { %v3596_v60 = vadd.f32 %v3595_v8, %v3565_v16  ;;  %v3178_v51 = vadd.f32 %v3124_v57, %v2686_v45  ;;  %v6069_v45 = vld [vmem:[#allocation15_spill] sm:$0xff] }
 0x294   : > { %v2198_v8 = vadd.f32 %v5741_v47, %v6069_v45 }
 0x295   : > { %v3290_v61 = vpack.c.bf16 %v3178_v51, %v3178_v51  ;;  %v4400_v48 = vpack.c.bf16 %v3178_v51, %v3177_v10  ;;  %v6070_v10 = vld [vmem:[#allocation27_spill] sm:$0xff] }
 0x296   : > { %v2948_v33 = vpop.f32.mrf.mxu2  ;;  %v3037_v37 = vpop.f32.mrf.mxu3 }
 0x297   : > { %4444 = vst [vmem:[%s4616_s15 + $0x40] sm:$0xff] %v4400_v48   ;;  %v3397_v59 = vunpack.c.l.bf16 %v3290_v61  ;;  %v3038_v44 = vadd.f32 %v3037_v37, %v2948_v33  ;;  %v2636_v38 = vpop.f32.mrf.mxu1  ;;  %v3128_v18 = vpop.f32.mrf.mxu0  ;;  %v6072_v61 = vld [vmem:[#allocation21_spill] sm:$0xff] }
 0x298   : > { %v2637_v6 = vadd.f32 %v2636_v38, %v6066_v0 }
 0x299   : > { %v3525_v39 = vadd.f32 %v3524_v14, %v3397_v59  ;;  %v3566_v12 = vmul.f32 %v3397_v59, %v3397_v59  ;;  %v3127_v49 = vadd.f32 %v3126_v56, %v3038_v44 }
 0x29a   : > { %v2688_v54 = vadd.f32 %v2637_v6, %v2196_v20 }
 0x29b   : > { %v3597_v15 = vadd.f32 %v3596_v60, %v3566_v12  ;;  %v3179_v29 = vadd.f32 %v3127_v49, %v2687_v19  ;;  %v6071_v60 = vld [vmem:[#allocation29_spill] sm:$0xff] }
 0x29c   : > { %v2199_v51 = vadd.f32 %v5741_v47, %v6071_v60 }
 0x29d   : > { %v3291_v5 = vpack.c.bf16 %v3179_v29, %v3179_v29 }
 0x29e   : > { %v2950_v13 = vpop.f32.mrf.mxu2  ;;  %v3039_v4 = vpop.f32.mrf.mxu3 }
 0x29f   : > { %v3398_v9 = vunpack.c.l.bf16 %v3291_v5  ;;  %v3040_v32 = vadd.f32 %v3039_v4, %v2950_v13  ;;  %v2639_v46 = vpop.f32.mrf.mxu1  ;;  %v3131_v53 = vpop.f32.mrf.mxu0  ;;  %v6074_v5 = vld [vmem:[#allocation16_spill] sm:$0xff] }
 0x2a0   : > { %v2640_v27 = vadd.f32 %v2639_v46, %v6068_v41 }
 0x2a1   : > { %v3526_v58 = vadd.f32 %v3525_v39, %v3398_v9  ;;  %v3567_v63 = vmul.f32 %v3398_v9, %v3398_v9  ;;  %v3129_v35 = vadd.f32 %v3128_v18, %v3040_v32 }
 0x2a2   : > { %v2689_v25 = vadd.f32 %v2640_v27, %v2197_v22 }
 0x2a3   : > { %v3598_v34 = vadd.f32 %v3597_v15, %v3567_v63  ;;  %v3180_v62 = vadd.f32 %v3129_v35, %v2688_v54  ;;  %v6073_v15 = vld [vmem:[#allocation11_spill] sm:$0xff] }
 0x2a5   : > { %v3292_v26 = vpack.c.bf16 %v3180_v62, %v3180_v62  ;;  %v4405_v2 = vpack.c.bf16 %v3180_v62, %v3179_v29  ;;  %v2200_v29 = vadd.f32 %v5741_v47, %v6073_v15 }
 0x2a6   : > { %v2953_v52 = vpop.f32.mrf.mxu2  ;;  %v3042_v50 = vpop.f32.mrf.mxu3 }
 0x2a7   : > { %4445 = vst [vmem:[%s4616_s15 + $0x48] sm:$0xff] %v4405_v2   ;;  %v3399_v7 = vunpack.c.l.bf16 %v3292_v26  ;;  %v3043_v11 = vadd.f32 %v3042_v50, %v2953_v52  ;;  %v2641_v21 = vpop.f32.mrf.mxu1  ;;  %v3133_v1 = vpop.f32.mrf.mxu0  ;;  %v6076_v26 = vld [vmem:[#allocation35_spill] sm:$0xff] }
 0x2a8   : > { %v2642_v55 = vadd.f32 %v2641_v21, %v6070_v10 }
 0x2a9   : > { %v3527_v28 = vadd.f32 %v3526_v58, %v3399_v7  ;;  %v3568_v36 = vmul.f32 %v3399_v7, %v3399_v7  ;;  %v3132_v42 = vadd.f32 %v3131_v53, %v3043_v11 }
 0x2aa   : > { %v2690_v40 = vadd.f32 %v2642_v55, %v2198_v8 }
 0x2ab   : > { %v3599_v31 = vadd.f32 %v3598_v34, %v3568_v36  ;;  %v3181_v56 = vadd.f32 %v3132_v42, %v2689_v25  ;;  %v6075_v34 = vld [vmem:[#allocation33_spill] sm:$0xff] }
 0x2ac   : > { %v2201_v62 = vadd.f32 %v5741_v47, %v6075_v34 }
 0x2ad   : > { %v3293_v30 = vpack.c.bf16 %v3181_v56, %v3181_v56 }
 0x2ae   : > { %v2955_v17 = vpop.f32.mrf.mxu2  ;;  %v3044_v23 = vpop.f32.mrf.mxu3 }
 0x2af   : > { %v3400_v14 = vunpack.c.l.bf16 %v3293_v30  ;;  %v3045_v16 = vadd.f32 %v3044_v23, %v2955_v17  ;;  %v2644_v57 = vpop.f32.mrf.mxu1  ;;  %v3136_v19 = vpop.f32.mrf.mxu0  ;;  %v6078_v30 = vld [vmem:[#allocation12_spill] sm:$0xff] }
 0x2b0   : > { %v2645_v48 = vadd.f32 %v2644_v57, %v6072_v61 }
 0x2b1   : > { %v3528_v33 = vadd.f32 %v3527_v28, %v3400_v14  ;;  %v3569_v37 = vmul.f32 %v3400_v14, %v3400_v14  ;;  %v3134_v59 = vadd.f32 %v3133_v1, %v3045_v16 }
 0x2b2   : > { %v2691_v44 = vadd.f32 %v2645_v48, %v2199_v51 }
 0x2b3   : > { %v3600_v38 = vadd.f32 %v3599_v31, %v3569_v37  ;;  %v3182_v18 = vadd.f32 %v3134_v59, %v2690_v40  ;;  %v6077_v31 = vld [vmem:[#allocation26_spill] sm:$0xff] }
 0x2b5   : > { %v3294_v43 = vpack.c.bf16 %v3182_v18, %v3182_v18  ;;  %v4410_v20 = vpack.c.bf16 %v3182_v18, %v3181_v56  ;;  %v2202_v56 = vadd.f32 %v5741_v47, %v6077_v31 }
 0x2b6   : > { %v2958_v0 = vpop.f32.mrf.mxu2  ;;  %v3047_v6 = vpop.f32.mrf.mxu3 }
 0x2b7   : > { %4446 = vst [vmem:[%s4616_s15 + $0x50] sm:$0xff] %v4410_v20   ;;  %v3401_v39 = vunpack.c.l.bf16 %v3294_v43  ;;  %v3048_v12 = vadd.f32 %v3047_v6, %v2958_v0  ;;  %v2646_v49 = vpop.f32.mrf.mxu1  ;;  %v3138_v54 = vpop.f32.mrf.mxu0  ;;  %v6080_v43 = vld [vmem:[#allocation18_spill] sm:$0xff] }
 0x2b8   : > { %v2647_v13 = vadd.f32 %v2646_v49, %v6074_v5 }
 0x2b9   : > { %v3529_v4 = vadd.f32 %v3528_v33, %v3401_v39  ;;  %v3570_v9 = vmul.f32 %v3401_v39, %v3401_v39  ;;  %v3137_v32 = vadd.f32 %v3136_v19, %v3048_v12 }
 0x2ba   : > { %v2692_v46 = vadd.f32 %v2647_v13, %v2200_v29 }
 0x2bb   : > { %v3601_v53 = vadd.f32 %v3600_v38, %v3570_v9  ;;  %v3183_v3 = vadd.f32 %v3137_v32, %v2691_v44  ;;  %v6079_v38 = vld [vmem:[#allocation20_spill] sm:$0xff] }
 0x2bc   : > { %v2203_v18 = vadd.f32 %v5741_v47, %v6079_v38 }
 0x2bd   : > { %v3295_v22 = vpack.c.bf16 %v3183_v3, %v3183_v3 }
 0x2be   : > { %v2960_v41 = vpop.f32.mrf.mxu2  ;;  %v3049_v27 = vpop.f32.mrf.mxu3 }
 0x2bf   : > { %v3402_v58 = vunpack.c.l.bf16 %v3295_v22  ;;  %v3050_v63 = vadd.f32 %v3049_v27, %v2960_v41  ;;  %v2649_v35 = vpop.f32.mrf.mxu1  ;;  %v3141_v25 = vpop.f32.mrf.mxu0  ;;  %v6082_v22 = vld [vmem:[#allocation32_spill] sm:$0xff] }
 0x2c0   : > { %v2650_v2 = vadd.f32 %v2649_v35, %v6076_v26 }
 0x2c1   : > { %v3530_v52 = vadd.f32 %v3529_v4, %v3402_v58  ;;  %v3571_v50 = vmul.f32 %v3402_v58, %v3402_v58  ;;  %v3139_v7 = vadd.f32 %v3138_v54, %v3050_v63 }
 0x2c2   : > { %v2693_v11 = vadd.f32 %v2650_v2, %v2201_v62 }
 0x2c3   : > { %v3602_v21 = vadd.f32 %v3601_v53, %v3571_v50  ;;  %v3184_v1 = vadd.f32 %v3139_v7, %v2692_v46  ;;  %v6081_v53 = vld [vmem:[#allocation19_spill] sm:$0xff] }
 0x2c5   : > { %v3296_v45 = vpack.c.bf16 %v3184_v1, %v3184_v1  ;;  %v4415_v8 = vpack.c.bf16 %v3184_v1, %v3183_v3  ;;  %v2204_v3 = vadd.f32 %v5741_v47, %v6081_v53 }
 0x2c6   : > { %v2963_v10 = vpop.f32.mrf.mxu2  ;;  %v3052_v55 = vpop.f32.mrf.mxu3 }
 0x2c7   : > { %4447 = vst [vmem:[%s4616_s15 + $0x58] sm:$0xff] %v4415_v8   ;;  %v3403_v28 = vunpack.c.l.bf16 %v3296_v45  ;;  %v3053_v36 = vadd.f32 %v3052_v55, %v2963_v10  ;;  %v2651_v42 = vpop.f32.mrf.mxu1  ;;  %v3143_v40 = vpop.f32.mrf.mxu0 }
 0x2c8   : > { %v2652_v17 = vadd.f32 %v2651_v42, %v6078_v30 }
 0x2c9   : > { %v3531_v23 = vadd.f32 %v3530_v52, %v3403_v28  ;;  %v3572_v14 = vmul.f32 %v3403_v28, %v3403_v28  ;;  %v3142_v16 = vadd.f32 %v3141_v25, %v3053_v36 }
 0x2ca   : > { %v2694_v57 = vadd.f32 %v2652_v17, %v2202_v56 }
 0x2cb   : > { %v3603_v19 = vadd.f32 %v3602_v21, %v3572_v14  ;;  %v3185_v60 = vadd.f32 %v3142_v16, %v2693_v11  ;;  %v2205_v11 = vadd.f32 %v5741_v47, %v5720_v24  ;;  %v6083_v21 = vld [vmem:[#allocation13_spill] sm:$0xff] }
 0x2cc   : > { %v6084_v24 = vld [vmem:[#allocation25_spill] sm:$0xff] }
 0x2cd   : > { %v3297_v51 = vpack.c.bf16 %v3185_v60, %v3185_v60  ;;  %v2206_v16 = vadd.f32 %v5741_v47, %v6084_v24 }
 0x2ce   : > { %v2965_v61 = vpop.f32.mrf.mxu2  ;;  %v3054_v48 = vpop.f32.mrf.mxu3 }
 0x2cf   : > { %v3404_v33 = vunpack.c.l.bf16 %v3297_v51  ;;  %v3055_v37 = vadd.f32 %v3054_v48, %v2965_v61  ;;  %v2654_v59 = vpop.f32.mrf.mxu1  ;;  %v3146_v44 = vpop.f32.mrf.mxu0 }
 0x2d0   : > { %v2655_v20 = vadd.f32 %v2654_v59, %v6080_v43 }
 0x2d1   : > { %v3532_v0 = vadd.f32 %v3531_v23, %v3404_v33  ;;  %v3573_v6 = vmul.f32 %v3404_v33, %v3404_v33  ;;  %v3144_v39 = vadd.f32 %v3143_v40, %v3055_v37 }
 0x2d2   : > { %v2695_v12 = vadd.f32 %v2655_v20, %v2203_v18 }
 0x2d3   : > { %v3604_v49 = vadd.f32 %v3603_v19, %v3573_v6  ;;  %v3186_v54 = vadd.f32 %v3144_v39, %v2694_v57  ;;  %v6085_v57 = vld [vmem:[#allocation22_spill] sm:$0xff]  ;;  %v6086_v39 = vld [vmem:[#allocation24_spill] sm:$0xff] }
 0x2d5   : > { %v3298_v15 = vpack.c.bf16 %v3186_v54, %v3186_v54  ;;  %v4420_v29 = vpack.c.bf16 %v3186_v54, %v3185_v60  ;;  %v4535_v60 = vmov 0.0  }
 0x2d6   : > { %v2968_v5 = vpop.f32.mrf.mxu2  ;;  %v3057_v13 = vpop.f32.mrf.mxu3  ;;  %3340 = vst [vmem:[%s4602_s12] sm:$0x1] %v4535_v60 }
 0x2d7   : > { %4448 = vst [vmem:[%s4616_s15 + $0x60] sm:$0xff] %v4420_v29   ;;  %v3405_v4 = vunpack.c.l.bf16 %v3298_v15  ;;  %v3058_v9 = vadd.f32 %v3057_v13, %v2968_v5  ;;  %v2656_v32 = vpop.f32.mrf.mxu1  ;;  %v3148_v46 = vpop.f32.mrf.mxu0 }
 0x2d8   : > { %v2657_v41 = vadd.f32 %v2656_v32, %v6082_v22  ;;  %3341 = vst [vmem:[%s4621_s18] sm:$0x1] %v4535_v60 }
 0x2d9   : > { %v3533_v27 = vadd.f32 %v3532_v0, %v3405_v4  ;;  %v3574_v58 = vmul.f32 %v3405_v4, %v3405_v4  ;;  %v3147_v63 = vadd.f32 %v3146_v44, %v3058_v9 }
 0x2da   : > { %v2696_v35 = vadd.f32 %v2657_v41, %v2204_v3 }
 0x2db   : > { %v3605_v25 = vadd.f32 %v3604_v49, %v3574_v58  ;;  %v3187_v34 = vadd.f32 %v3147_v63, %v2695_v12  ;;  %v2207_v12 = vadd.f32 %v5741_v47, %v6086_v39  ;;  %v6087_v49 = vld [vmem:[#allocation37_spill] sm:$0xff]  ;;  %v4507_v47 = vld [vmem:[%s5915_s4] ss:$0 sm:$0xff]  ;;  %v6088_v63 = vld [vmem:[#allocation10_spill] sm:$0xff] }
 0x2dd   : > { %v3299_v62 = vpack.c.bf16 %v3187_v34, %v3187_v34 }
 0x2de   : > { %v2970_v26 = vpop.f32.mrf.mxu2  ;;  %v3059_v2 = vpop.f32.mrf.mxu3 }
 0x2df   : > { %v3406_v52 = vunpack.c.l.bf16 %v3299_v62  ;;  %v3060_v50 = vadd.f32 %v3059_v2, %v2970_v26  ;;  %v2659_v7 = vpop.f32.mrf.mxu1  ;;  %v3151_v55 = vpop.f32.mrf.mxu0 }
 0x2e0   : > { %v2660_v1 = vadd.f32 %v2659_v7, %v6083_v21 }
 0x2e1   : > { %v3534_v45 = vadd.f32 %v3533_v27, %v3406_v52  ;;  %v3575_v8 = vmul.f32 %v3406_v52, %v3406_v52  ;;  %v3149_v10 = vadd.f32 %v3148_v46, %v3060_v50 }
 0x2e2   : > { %v2697_v28 = vadd.f32 %v2660_v1, %v2205_v11 }
 0x2e3   : > { %v3606_v36 = vadd.f32 %v3605_v25, %v3575_v8  ;;  %v3188_v42 = vadd.f32 %v3149_v10, %v2696_v35  ;;  %v2208_v35 = vadd.f32 %v4507_v47, %v6088_v63  ;;  %v6089_v25 = vld [vmem:[#allocation31_spill] sm:$0xff] }
 0x2e5   : > { %v3300_v40 = vpack.c.bf16 %v3188_v42, %v3188_v42  ;;  %v4425_v31 = vpack.c.bf16 %v3188_v42, %v3187_v34 }
 0x2e6   : > { %v2973_v56 = vpop.f32.mrf.mxu2  ;;  %v3062_v30 = vpop.f32.mrf.mxu3 }
 0x2e7   : > { %4449 = vst [vmem:[%s4616_s15 + $0x68] sm:$0xff] %v4425_v31   ;;  %v3407_v17 = vunpack.c.l.bf16 %v3300_v40  ;;  %v3063_v23 = vadd.f32 %v3062_v30, %v2973_v56  ;;  %v2661_v14 = vpop.f32.mrf.mxu1  ;;  %v3153_v44 = vpop.f32.mrf.mxu0 }
 0x2e8   : > { %v2662_v19 = vadd.f32 %v2661_v14, %v6085_v57 }
 0x2e9   : > { %v3535_v51 = vadd.f32 %v3534_v45, %v3407_v17  ;;  %v3576_v61 = vmul.f32 %v3407_v17, %v3407_v17  ;;  %v3152_v48 = vadd.f32 %v3151_v55, %v3063_v23 }
 0x2ea   : > { %v2698_v33 = vadd.f32 %v2662_v19, %v2206_v16 }
 0x2eb   : > { %v3607_v37 = vadd.f32 %v3606_v36, %v3576_v61  ;;  %v3189_v59 = vadd.f32 %v3152_v48, %v2697_v28 }
 0x2ed   : > { %v3301_v38 = vpack.c.bf16 %v3189_v59, %v3189_v59 }
 0x2ee   : > { %v2975_v18 = vpop.f32.mrf.mxu2  ;;  %v3064_v43 = vpop.f32.mrf.mxu3 }
 0x2ef   : > { %v3408_v20 = vunpack.c.l.bf16 %v3301_v38  ;;  %v3065_v0 = vadd.f32 %v3064_v43, %v2975_v18  ;;  %v2664_v6 = vpop.f32.mrf.mxu1  ;;  %v3156_v53 = vpop.f32.mrf.mxu0  ;;  %v3548_v38 = vld [vmem:[%s4621_s18] sm:$0x1] }
 0x2f0   : > { %v2665_v54 = vadd.f32 %v2664_v6, %v6087_v49 }
 0x2f1   : > { %v3536_v15 = vadd.f32 %v3535_v51, %v3408_v20  ;;  %v3577_v29 = vmul.f32 %v3408_v20, %v3408_v20  ;;  %v3154_v5 = vadd.f32 %v3153_v44, %v3065_v0 }
 0x2f2   : > { %v2699_v13 = vadd.f32 %v2665_v54, %v2207_v12 }
 0x2f3   : > { %v3608_v4 = vadd.f32 %v3607_v37, %v3577_v29  ;;  %v3190_v9 = vadd.f32 %v3154_v5, %v2698_v33  ;;  %v3508_v37 = vld [vmem:[%s4602_s12] sm:$0x1] }
 0x2f5   : > { %v3302_v32 = vpack.c.bf16 %v3190_v9, %v3190_v9  ;;  %v4430_v46 = vpack.c.bf16 %v3190_v9, %v3189_v59 }
 0x2f6   : > { %v2978_v3 = vpop.f32.mrf.mxu2  ;;  %v3067_v22 = vpop.f32.mrf.mxu3 }
 0x2f7   : > { %4450 = vst [vmem:[%s4616_s15 + $0x70] sm:$0xff] %v4430_v46   ;;  %v3409_v41 = vunpack.c.l.bf16 %v3302_v32  ;;  %v3068_v27 = vadd.f32 %v3067_v22, %v2978_v3  ;;  %v2666_v58 = vpop.f32.mrf.mxu1  ;;  %v3158_v10 = vpop.f32.mrf.mxu0 }
 0x2f8   : > { %v2667_v34 = vadd.f32 %v2666_v58, %v6089_v25 }
 0x2f9   : > { %v3537_v62 = vadd.f32 %v3536_v15, %v3409_v41  ;;  %v3578_v26 = vmul.f32 %v3409_v41, %v3409_v41  ;;  %v3157_v2 = vadd.f32 %v3156_v53, %v3068_v27 }
 0x2fa   : > { %v2700_v52 = vadd.f32 %v2667_v34, %v2208_v35 }
 0x2fb   : > { %v3609_v50 = vadd.f32 %v3608_v4, %v3578_v26  ;;  %v3191_v7 = vadd.f32 %v3157_v2, %v2699_v13 }
 0x2fd   : > { %v3303_v11 = vpack.c.bf16 %v3191_v7, %v3191_v7 }
 0x2fe   : > { %v2980_v21 = vpop.f32.mrf.mxu2  ;;  %v3069_v1 = vpop.f32.mrf.mxu3 }
 0x2ff   : > { %v3410_v45 = vunpack.c.l.bf16 %v3303_v11  ;;  %v3070_v8 = vadd.f32 %v3069_v1, %v2980_v21 }
 0x301   : > { %v3538_v55 = vadd.f32 %v3537_v62, %v3410_v45  ;;  %v3579_v28 = vmul.f32 %v3410_v45, %v3410_v45  ;;  %v3159_v36 = vadd.f32 %v3158_v10, %v3070_v8 }
 0x303   : > { %v3610_v42 = vadd.f32 %v3609_v50, %v3579_v28  ;;  %v3192_v40 = vadd.f32 %v3159_v36, %v2700_v52 }
 0x305   : > { %v3304_v31 = vpack.c.bf16 %v3192_v40, %v3192_v40  ;;  %v4435_v56 = vpack.c.bf16 %v3192_v40, %v3191_v7 }
 0x307   : > { %4451 = vst [vmem:[%s4616_s15 + $0x78] sm:$0xff] %v4435_v56   ;;  %v3411_v30 = vunpack.c.l.bf16 %v3304_v31 }
 0x309   : > { %v3539_v17 = vadd.f32 %v3538_v55, %v3411_v30  ;;  %v3580_v23 = vmul.f32 %v3411_v30, %v3411_v30 }
 0x30b   : > { %v3540_v14 = vrot.slane %v3539_v17, 4  ;;  %v3611_v24 = vadd.f32 %v3610_v42, %v3580_v23 }
 0x30d   : > { %v3541_v16 = vadd.f32 %v3540_v14, %v3539_v17  ;;  %v3612_v57 = vrot.slane %v3611_v24, 4 }
 0x30f   : > { %v3542_v19 = vrot.slane %v3541_v16, 2  ;;  %v3613_v60 = vadd.f32 %v3612_v57, %v3611_v24 }
 0x311   : > { %v3543_v51 = vadd.f32 %v3542_v19, %v3541_v16  ;;  %v3614_v61 = vrot.slane %v3613_v60, 2 }
 0x313   : > { %v3544_v48 = vrot.slane %v3543_v51, 1  ;;  %v3615_v33 = vadd.f32 %v3614_v61, %v3613_v60 }
 0x315   : > { %v3545_v59 = vadd.f32 %v3544_v48, %v3543_v51  ;;  %v3616_v44 = vrot.slane %v3615_v33, 1 }
 0x317   : > { %v3546_v18 = vadd.f32 %v3545_v59, %v3508_v37  ;;  %v3617_v43 = vadd.f32 %v3616_v44, %v3615_v33 }
 0x319   : > { %3547 = vst [vmem:[%s4602_s12] sm:$0x1] %v3546_v18  ;;  %v3618_v20 = vadd.f32 %v3617_v43, %v3548_v38 }
 0x31b   : > { %3619 = vst [vmem:[%s4621_s18] sm:$0x1] %v3618_v20 }
 0x31c PF: > { %s18_s26 = sadd.s32 1, %s4532_s26   ;;  %s6090_s24 = smov %s4528_s25 }
 0x31d   : > { %p15_p5 = scmp.ge.s32.totalorder %s18_s26, 4   ;;  %s6091_s25 = smov %s6093_s27 }
 0x31f   :  { %17 = sbr.rel (!%p15_p5) target bundleno = 2 (0x2), region = 156 }
 0x324   :  { %3676 = vsyncmov [#allocation3] }
 0x327   :  { %s3677_s15 = vpop.sfrf %3676 }
 0x328   :  { %p4282_p6 = scmp.ne.s32.totalorder %s3677_s15, 0 }
 0x32a   :  { %3681 = shalt.err (%p4282_p6)  }
 0x32b   :  { %3683 = vsyncmov [#allocation3 + $0x1] }
 0x32e   :  { %s3684_s12 = vpop.sfrf %3683 }
 0x32f   :  { %p4283_p7 = scmp.ne.s32.totalorder %s3684_s12, 0 }
 0x331   :  { %3688 = shalt.err (%p4283_p7)  }

// kernel: res_conv_forward.5
= control target key start
LH: loop header
LB: loop body
LE: loop exit
PB: predicated region body
PF: predicated region fallthrough
CT: control target
= control target key end

     0   :  { %15 = vsyncpa [#allocation5], 0  ;;  %s6438_s0 = inlined_call_operand.vmem [shape: bf16[2,18,24,128], index: 0, kind: input, shape index: {}]   ;;  %s6439_s1 = inlined_call_operand.vmem [shape: f32[1,1,128], index: 1, kind: input, shape index: {}]   ;;  %s6440_s2 = inlined_call_operand.vmem [shape: f32[1,1,128], index: 2, kind: input, shape index: {}]   ;;  %s6441_s3 = inlined_call_operand.vmem [shape: bf16[3,384,128], index: 3, kind: input, shape index: {}]   ;;  %s6442_s4 = inlined_call_operand.vmem [shape: f32[1,1,128], index: 4, kind: input, shape index: {}]   ;;  %s6443_s5 = inlined_call_operand.vmem [shape: bf16[2,16,16,128], index: 5, kind: input, shape index: {}]   ;;  %s6444_s6 = inlined_call_operand.vmem [shape: bf16[128,128], index: 6, kind: input, shape index: {}]   ;;  %s6445_s7 = inlined_call_operand.vmem [shape: f32[2,16,16,128], index: 7, kind: output, shape index: {0}]   ;;  %s6446_s8 = inlined_call_operand.hbm [shape: f32[2,1,128], index: 8, kind: output, shape index: {1}]   ;;  %s6447_s9 = inlined_call_operand.hbm [shape: f32[2,1,128], index: 9, kind: output, shape index: {2}]  }
   0x1   :  { %17 = vsyncpa [#allocation5 + $0x1], 0 }
   0x2   :  { %18 = vsyncpa [#allocation7], 0 }
   0x3   :  { %20 = vsyncpa [#allocation7 + $0x1], 0  ;;  %s5152_s30 = smov 0   ;;  %s5154_s10 = smov 0  }
   0x4   :  { %s5156_s11 = smov 0   ;;  %s5158_s12 = smov 0  }
   0x5   :  { %s5160_s13 = smov 0   ;;  %s5162_s14 = smov 0  }
   0x6 LB: > { %6473 = sst [smem:[#allocation13_spill]] %s5094_s13  ;;  %s4140_s15 = sadd.s32 4294967295, %s5098_s14   ;;  %s5098_s14 = sphi %s5162_s14, %s26_s14   ;;  %s5094_s13 = sphi %s5160_s13, %s6562_s13   ;;  %s5090_s12 = sphi %s5158_s12, %s6561_s12   ;;  %s5086_s11 = sphi %s5156_s11, %s6565_s11   ;;  %s5082_s10 = sphi %s5154_s10, %s6564_s10   ;;  %s5078_s30 = sphi %s5152_s30, %s6563_s30  }
   0x7   : > { %s4141_s16 = sadd.s32 4294967294, %s5098_s14   ;;  %s38_s17 = sadd.s32 1, %s5094_s13 }
   0x8   : > { %s206_s18 = sadd.s32 1, %s5086_s11  ;;  %p40_p0 = scmp.ge.s32.totalorder %s38_s17, 2 }
   0x9   : > { %p216_p1 = scmp.ne.s32.totalorder %s5086_s11, %s5082_s10  ;;  %p217_p2 = scmp.eq.s32.totalorder %s4140_s15, 1 }
   0xa   : > { %p222_p3 = scmp.ne.s32.totalorder %s5082_s10, %s5078_s30  ;;  %s6567_s17 = smov (%p40_p0, %s38_s17), 0 }
   0xb   : > { %6474 = sst [smem:[#allocation14_spill]] %s6567_s17  ;;  %p5192_p4 = por %p217_p2, %p216_p1 }
   0xc   : > { %p223_p5 = scmp.eq.s32.totalorder %s4141_s16, 1  ;;  %s203_s20 = ssub.s32 %s5094_s13, %s6567_s17 }
   0xd   : > { %p4144_p6 = scmp.ge.s32.totalorder %s5098_s14, 1  ;;  %p204_p7 = scmp.eq.s32.totalorder %s203_s20, 0 }
   0xe   : > { %p5199_p8 = por %p223_p5, %p222_p3  ;;  %p296_p9 = scmp.lt.s32.totalorder %s5098_s14, 3 }
   0xf   : > { %s5205_s22 = scalar_select %p204_p7, %s5086_s11, %s206_s18  }
  0x10   : > { %p297_p10 = pnand %p4144_p6, %p296_p9 }
  0x11   : > { %6477 = sst [smem:[#allocation15_spill]] %s5205_s22 }
  0x12   : > { %300 = sbr.rel (%p297_p10) target bundleno = 893 (0x37d), region = 44 }
  0x17   : > { %s5208_s23 = sand.u32 1, %s5082_s10   ;;  %p349_p11 = scmp.lt.s32.totalorder %s5090_s12, 1 }
  0x18   : > { %s4691_s25 = smul.u32 216, %s5090_s12  ;;  %s5254_s13 = scalar_lea.vmem [#allocation4], %s5208_s23 }
  0x19   : > { %s350_s24 = scalar_select %p349_p11, %s5090_s12, 1 }
  0x1a   : > { %s5226_s22 = scalar_lea.vmem %s6438_s0, %s4691_s25  ;;  %s5257_s17 = scalar_lea.vmem [#allocation6], %s5208_s23 }
  0x1b   : > { %s4689_s26 = sshll.u32 %s350_s24, 7  ;;  %s4690_s27 = sshll.u32 %s350_s24, 8  ;;  %v405_v0 = vld [vmem:[%s5226_s22 + $0x8] sm:$0xff]  ;;  %v407_v1 = vld [vmem:[%s5226_s22 + $0x10] sm:$0xff]  ;;  %v409_v2 = vld [vmem:[%s5226_s22 + $0x18] sm:$0xff] }
  0x1c   : > { %s5216_s15 = scalar_lea.vmem %s6443_s5, %s4689_s26  ;;  %s5221_s20 = scalar_lea.vmem %s6445_s7, %s4690_s27  ;;  %406 = vst [vmem:[#allocation2 + $0x8] sm:$0xff] %v405_v0  ;;  %v411_v3 = vld [vmem:[%s5226_s22 + $0x20] sm:$0xff]  ;;  %v413_v4 = vld [vmem:[%s5226_s22 + $0x28] sm:$0xff]  ;;  %v415_v5 = vld [vmem:[%s5226_s22 + $0x30] sm:$0xff] }
  0x1d   : > { %408 = vst [vmem:[#allocation2 + $0x10] sm:$0xff] %v407_v1  ;;  %v417_v6 = vld [vmem:[%s5226_s22 + $0x38] sm:$0xff]  ;;  %v419_v7 = vld [vmem:[%s5226_s22 + $0x40] sm:$0xff]  ;;  %v421_v8 = vld [vmem:[%s5226_s22 + $0x48] sm:$0xff] }
  0x1e   : > { %410 = vst [vmem:[#allocation2 + $0x18] sm:$0xff] %v409_v2  ;;  %v423_v9 = vld [vmem:[%s5226_s22 + $0x50] sm:$0xff]  ;;  %v425_v10 = vld [vmem:[%s5226_s22 + $0x58] sm:$0xff]  ;;  %v427_v11 = vld [vmem:[%s5226_s22 + $0x60] sm:$0xff] }
  0x1f   : > { %412 = vst [vmem:[#allocation2 + $0x20] sm:$0xff] %v411_v3  ;;  %v429_v12 = vld [vmem:[%s5226_s22 + $0x68] sm:$0xff]  ;;  %v431_v13 = vld [vmem:[%s5226_s22 + $0x70] sm:$0xff]  ;;  %v433_v14 = vld [vmem:[%s5226_s22 + $0x78] sm:$0xff] }
  0x20   : > { %414 = vst [vmem:[#allocation2 + $0x28] sm:$0xff] %v413_v4  ;;  %v435_v15 = vld [vmem:[%s5226_s22 + $0x80] sm:$0xff]  ;;  %v437_v16 = vld [vmem:[%s5226_s22 + $0x88] sm:$0xff]  ;;  %v439_v17 = vld [vmem:[%s5226_s22 + $0x90] sm:$0xff] }
  0x21   : > { %416 = vst [vmem:[#allocation2 + $0x30] sm:$0xff] %v415_v5  ;;  %v441_v18 = vld [vmem:[%s5226_s22 + $0x98] sm:$0xff]  ;;  %v443_v19 = vld [vmem:[%s5226_s22 + $0xa0] sm:$0xff]  ;;  %v445_v20 = vld [vmem:[%s5226_s22 + $0xa8] sm:$0xff] }
  0x22   : > { %418 = vst [vmem:[#allocation2 + $0x38] sm:$0xff] %v417_v6  ;;  %v447_v21 = vld [vmem:[%s5226_s22 + $0xb0] sm:$0xff]  ;;  %v449_v22 = vld [vmem:[%s5226_s22 + $0xb8] sm:$0xff]  ;;  %v451_v23 = vld [vmem:[%s5226_s22 + $0xc0] sm:$0xff] }
  0x23   : > { %420 = vst [vmem:[#allocation2 + $0x40] sm:$0xff] %v419_v7  ;;  %v453_v24 = vld [vmem:[%s5226_s22 + $0xc8] sm:$0xff] }
  0x24   : > { %422 = vst [vmem:[#allocation2 + $0x48] sm:$0xff] %v421_v8 }
  0x25   : > { %424 = vst [vmem:[#allocation2 + $0x50] sm:$0xff] %v423_v9 }
  0x26   : > { %426 = vst [vmem:[#allocation2 + $0x58] sm:$0xff] %v425_v10 }
  0x27   : > { %428 = vst [vmem:[#allocation2 + $0x60] sm:$0xff] %v427_v11 }
  0x28   : > { %430 = vst [vmem:[#allocation2 + $0x68] sm:$0xff] %v429_v12 }
  0x29   : > { %432 = vst [vmem:[#allocation2 + $0x70] sm:$0xff] %v431_v13 }
  0x2a   : > { %434 = vst [vmem:[#allocation2 + $0x78] sm:$0xff] %v433_v14 }
  0x2b   : > { %436 = vst [vmem:[#allocation2 + $0x80] sm:$0xff] %v435_v15 }
  0x2c   : > { %438 = vst [vmem:[#allocation2 + $0x88] sm:$0xff] %v437_v16 }
  0x2d   : > { %440 = vst [vmem:[#allocation2 + $0x90] sm:$0xff] %v439_v17 }
  0x2e   : > { %442 = vst [vmem:[#allocation2 + $0x98] sm:$0xff] %v441_v18 }
  0x2f   : > { %444 = vst [vmem:[#allocation2 + $0xa0] sm:$0xff] %v443_v19 }
  0x30   : > { %446 = vst [vmem:[#allocation2 + $0xa8] sm:$0xff] %v445_v20 }
  0x31   : > { %448 = vst [vmem:[#allocation2 + $0xb0] sm:$0xff] %v447_v21 }
  0x32   : > { %450 = vst [vmem:[#allocation2 + $0xb8] sm:$0xff] %v449_v22 }
  0x33   : > { %452 = vst [vmem:[#allocation2 + $0xc0] sm:$0xff] %v451_v23 }
  0x34   : > { %454 = vst [vmem:[#allocation2 + $0xc8] sm:$0xff] %v453_v24 }
  0x35   : > { %462 = vsyncadd [#allocation3], 3456 }
  0x36   : > { %5066 = dma.done.wait [#allocation3], 3456 }
  0x37   : > { %5067 = vsyncadd [#allocation3], 4294963840  ;;  %v5100_v25 = vmov 0.0|0.0   ;;  %v855_v27 = vlaneseq  ;;  %v4699_v28 = vld [vmem:[%s6441_s3 + $0x38] sm:$0xff]  ;;  %v4698_v32 = vld [vmem:[%s6441_s3 + $0x30] sm:$0xff]  ;;  %vm1688_vm3 = vcmask 1046528   ;;  %s3943_s24 = scalar_lea.hbm %s6446_s8, %s5090_s12  ;;  %s3956_s26 = scalar_lea.hbm %s6447_s9, %s5090_s12 }
  0x38   : > { %v1327_v26 = vunpack.c.l.b16 %v5100_v25  ;;  %v4707_v29 = vld [vmem:[%s6441_s3 + $0x78] sm:$0xff]  ;;  %1957 = vmatpush.bf16.msra.mxu0 %v4699_v28  ;;  %4903 = vmatpush.bf16.msra.mxu2 %v4699_v28  ;;  %v4706_v33 = vld [vmem:[%s6441_s3 + $0x70] sm:$0xff]  ;;  %v4697_v34 = vld [vmem:[%s6441_s3 + $0x28] sm:$0xff]  ;;  %vm1453_vm2 = vsmask.f32 7424  ;;  %s3945_s27 = sshll.u32 %s5254_s13, 4  ;;  %s3946_s27 = int_to_ptr.vmem [resolvable:$true] %s3945_s27 }
  0x39   : > { %v5267_v31 = vshrl.u32 %v855_v27, 7  ;;  %2046 = vmatpush.bf16.msra.mxu1 %v4707_v29  ;;  %4911 = vmatpush.bf16.msra.mxu3 %v4707_v29  ;;  %v4890_v35 = vld [vmem:[#allocation2 + $0x60] sm:$0xff]   ;;  %v4705_v42 = vld [vmem:[%s6441_s3 + $0x68] sm:$0xff]  ;;  %v4880_v51 = vld [vmem:[#allocation2 + $0x10] sm:$0xff]   ;;  %s6377_s22 = sshll.u32 %s3943_s24, 4  ;;  %s3958_s28 = sshll.u32 %s5257_s17, 4  ;;  %s3948_s22 = int_to_ptr.hbm [resolvable:$true] %s6377_s22  ;;  %s6385_s28 = int_to_ptr.vmem [resolvable:$true] %s3958_s28 }
  0x3a   : > { %v5265_v30 = vpack.c.b16 %v1327_v26, %v1327_v26  ;;  %v4830_v38 = vunpack.c.l.bf16 %v4890_v35  ;;  %v4831_v39 = vunpack.c.h.bf16 %v4890_v35  ;;  %v5285_v40 = vld [vmem:[%s6439_s1] ss:$0 sm:$0xff]  ;;  %v4891_v44 = vld [vmem:[#allocation2 + $0x68] sm:$0xff]   ;;  %v5302_v53 = vld [vmem:[#allocation2 + $0x70] sm:$0xff]   ;;  %v4790_v58 = vunpack.c.l.bf16 %v4880_v51  ;;  %s6381_s29 = sshll.u32 %s3956_s26, 4  ;;  %s3927_s12 = scalar_lea.sflag [#allocation5], %s5208_s23  ;;  %s3961_s29 = int_to_ptr.hbm [resolvable:$true] %s6381_s29 }
  0x3b   : > { %6479 = vst [vmem:[#allocation17_spill] sm:$0xff] %v5267_v31  ;;  %v5280_v37 = vadd.s32 16, %v5267_v31  ;;  %v5290_v41 = vld [vmem:[%s6440_s2] ss:$0 sm:$0xff]  ;;  %vm913_vm0 = vcmp.ge.s32.totalorder %v5267_v31, 1  ;;  %v4834_v47 = vunpack.c.l.bf16 %v4891_v44  ;;  %v4835_v48 = vunpack.c.h.bf16 %v4891_v44  ;;  %v4695_v8 = vld [vmem:[%s6441_s3 + $0x18] sm:$0xff] }
  0x3c   : > { %6478 = vst [vmem:[#allocation16_spill] sm:$0xff] %v5265_v30  ;;  %v1457_v36 = vshll.u32 %v5265_v30, 16  ;;  %1958 = vmatpush.bf16.msra.mxu0 %v4698_v32  ;;  %4904 = vmatpush.bf16.msra.mxu2 %v4698_v32  ;;  %v1455_v43 = vshrl.u32 %v5265_v30, 16  ;;  %v695_v45 = vmul.f32 %v5285_v40, %v4830_v38  ;;  %v696_v46 = vmul.f32 %v5285_v40, %v4831_v39  ;;  %v562_v49 = vld [vmem:[#allocation2 + $0xc] sm:$0xf]  ;;  %v4696_v54 = vld [vmem:[%s6441_s3 + $0x20] sm:$0xff] }
  0x3d   : > { %6480 = vst [vmem:[#allocation18_spill] sm:$0xff] %v5280_v37  ;;  %2047 = vmatpush.bf16.msra.mxu1 %v4706_v33  ;;  %4912 = vmatpush.bf16.msra.mxu3 %v4706_v33  ;;  %vm1014_vm1 = vcmp.le.s32.totalorder %v5280_v37, 16  ;;  %v616_v52 = vunpack.c.l.bf16 %v562_v49  ;;  %v697_v57 = vmul.f32 %v5285_v40, %v4834_v47  ;;  %v4704_v59 = vld [vmem:[%s6441_s3 + $0x60] sm:$0xff]  ;;  %v698_v60 = vmul.f32 %v5285_v40, %v4835_v48  ;;  %v4703_v13 = vld [vmem:[%s6441_s3 + $0x58] sm:$0xff]  ;;  %v4694_v26 = vld [vmem:[%s6441_s3 + $0x10] sm:$0xff]  ;;  %s5000_s16 = sshra.s32 %s3948_s22, 4  ;;  %s5001_s16 = int_to_ptr.hbm [resolvable:$true] %s5000_s16 }
  0x3e   : > { %v5299_v50 = vrot.slane %v1457_v36, 1  ;;  %v753_v55 = vadd.f32 %v5290_v41, %v695_v45  ;;  %v754_v56 = vadd.f32 %v5290_v41, %v696_v46  ;;  %v4838_v62 = vunpack.c.l.bf16 %v5302_v53  ;;  %v4702_v33 = vld [vmem:[%s6441_s3 + $0x50] sm:$0xff]  ;;  %v4881_v46 = vld [vmem:[#allocation2 + $0x18] sm:$0xff]   ;;  %p5007_p1 = scmp.lt.s32.totalorder %s5001_s16, %s6446_s8 }
  0x3f   : > { %v674_v61 = vmul.f32 %v5285_v40, %v616_v52  ;;  %v4791_v63 = vunpack.c.h.bf16 %v4880_v51  ;;  %v755_v2 = vadd.f32 %v5290_v41, %v697_v57  ;;  %v675_v3 = vmul.f32 %v5285_v40, %v4790_v58  ;;  %v4693_v51 = vld [vmem:[%s6441_s3 + $0x8] sm:$0xff] }
  0x40   : > { %1959 = vmatpush.bf16.msra.mxu0 %v4697_v34  ;;  %4905 = vmatpush.bf16.msra.mxu2 %v4697_v34  ;;  %v807_v0 = vmax.f32 %v753_v55, 0.0  ;;  %v808_v1 = vmax.f32 %v754_v56, 0.0  ;;  %v756_v4 = vadd.f32 %v5290_v41, %v698_v60  ;;  %v699_v6 = vmul.f32 %v5285_v40, %v4838_v62 }
  0x41   : > { %2048 = vmatpush.bf16.msra.mxu1 %v4705_v42  ;;  %4913 = vmatpush.bf16.msra.mxu3 %v4705_v42  ;;  %v732_v5 = vadd.f32 %v5290_v41, %v674_v61  ;;  %v676_v7 = vmul.f32 %v5285_v40, %v4791_v63  ;;  %v809_v11 = vmax.f32 %v755_v2, 0.0  ;;  %v733_v12 = vadd.f32 %v5290_v41, %v675_v3  ;;  %v4692_v2 = vld [vmem:[%s6441_s3] sm:$0xff] }
  0x42   : > { %v1207_v9 = vsel %vm913_vm0, %v807_v0, 0.0  ;;  %v1262_v10 = vpack.c.bf16 %v808_v1, %v808_v1  ;;  %v757_v16 = vadd.f32 %v5290_v41, %v699_v6  ;;  %v810_v17 = vmax.f32 %v756_v4, 0.0  ;;  %v4893_v1 = vld [vmem:[#allocation2 + $0x78] sm:$0xff]   ;;  %v4700_v6 = vld [vmem:[%s6441_s3 + $0x40] sm:$0xff] }
  0x43   : > { %v1261_v14 = vpack.c.bf16 %v1207_v9, %v1207_v9  ;;  %v786_v15 = vmax.f32 %v732_v5, 0.0  ;;  %v1209_v19 = vsel %vm1014_vm1, %v809_v11, 0.0  ;;  %v787_v20 = vmax.f32 %v733_v12, 0.0  ;;  %v4715_v11 = vld [vmem:[%s6441_s3 + $0xb8] sm:$0xff] }
  0x44   : > { %1960 = vmatpush.bf16.msra.mxu0 %v4696_v54  ;;  %4906 = vmatpush.bf16.msra.mxu2 %v4696_v54  ;;  %v1344_v18 = vunpack.c.l.b16 %v1262_v10  ;;  %v734_v21 = vadd.f32 %v5290_v41, %v676_v7  ;;  %v1263_v23 = vpack.c.bf16 %v1209_v19, %v1209_v19  ;;  %v811_v25 = vmax.f32 %v757_v16, 0.0  ;;  %v4723_v12 = vld [vmem:[%s6441_s3 + $0xf8] sm:$0xff]  ;;  %v4882_v16 = vld [vmem:[#allocation2 + $0x20] sm:$0xff]  }
  0x45   : > { %2049 = vmatpush.bf16.msra.mxu1 %v4704_v59  ;;  %4914 = vmatpush.bf16.msra.mxu3 %v4704_v59  ;;  %v1343_v22 = vunpack.c.l.b16 %v1261_v14  ;;  %v1186_v24 = vsel %vm913_vm0, %v786_v15, 0.0  ;;  %v1241_v28 = vpack.c.bf16 %v787_v20, %v787_v20  ;;  %v1210_v29 = vsel %vm913_vm0, %v810_v17, 0.0 }
  0x46   : > { %v1240_v27 = vpack.c.bf16 %v1186_v24, %v1186_v24  ;;  %v788_v32 = vmax.f32 %v734_v21, 0.0  ;;  %v1425_v35 = vunpack.c.l.b16 %v1263_v23  ;;  %v1264_v36 = vpack.c.bf16 %v1210_v29, %v1210_v29 }
  0x47   : > { %v5345_v34 = vpack.c.b16 %v1344_v18, %v1343_v22  ;;  %v1265_v38 = vpack.c.bf16 %v811_v25, %v811_v25  ;;  %v1330_v42 = vunpack.c.l.b16 %v1241_v28  ;;  %v4839_v45 = vunpack.c.h.bf16 %v5302_v53  ;;  %v4731_v25 = vld [vmem:[%s6441_s3 + $0x138] sm:$0xff] }
  0x48   : > { %1961 = vmatpush.bf16.msra.mxu0 %v4695_v8  ;;  %4907 = vmatpush.bf16.msra.mxu2 %v4695_v8  ;;  %v1329_v39 = vunpack.c.l.b16 %v1240_v27  ;;  %v1188_v44 = vsel %vm1014_vm1, %v788_v32, 0.0  ;;  %v1460_v47 = vor.u32 %v5299_v50, %v1455_v43  ;;  %v5353_v48 = vpack.c.b16 %v1425_v35, %v1425_v35  ;;  %v4701_v43 = vld [vmem:[%s6441_s3 + $0x48] sm:$0xff] }
  0x49   : > { %2050 = vmatpush.bf16.msra.mxu1 %v4703_v13  ;;  %4915 = vmatpush.bf16.msra.mxu3 %v4703_v13  ;;  %6481 = vst [vmem:[#allocation19_spill] sm:$0xff] %v5345_v34  ;;  %v1553_v49 = vshll.u32 %v5345_v34, 16  ;;  %v1551_v52 = vshrl.u32 %v5345_v34, 16  ;;  %v1242_v53 = vpack.c.bf16 %v1188_v44, %v1188_v44  ;;  %v700_v55 = vmul.f32 %v5285_v40, %v4839_v45 }
  0x4a   : > { %v5360_v54 = vpack.c.b16 %v1330_v42, %v1329_v39  ;;  %v1558_v57 = vshll.u32 %v5353_v48, 16  ;;  %v4794_v58 = vunpack.c.l.bf16 %v4881_v46  ;;  %v4795_v59 = vunpack.c.h.bf16 %v4881_v46  ;;  %v4722_v39 = vld [vmem:[%s6441_s3 + $0xf0] sm:$0xff] }
  0x4b   : > { %v1555_v56 = vrot.slane %v1553_v49, 1  ;;  %v1345_v60 = vunpack.c.l.b16 %v1264_v36  ;;  %v1346_v61 = vunpack.c.l.b16 %v1265_v38  ;;  %v1418_v62 = vunpack.c.l.b16 %v1242_v53  ;;  %v4714_v38 = vld [vmem:[%s6441_s3 + $0xb0] sm:$0xff] }
  0x4c   : > { %1962 = vmatpush.bf16.msra.mxu0 %v4694_v26  ;;  %4908 = vmatpush.bf16.msra.mxu2 %v4694_v26  ;;  %v758_v63 = vadd.f32 %v5290_v41, %v700_v55  ;;  %v677_v0 = vmul.f32 %v5285_v40, %v4794_v58  ;;  %v1560_v4 = vrot.slane %v1558_v57, 1  ;;  %v1469_v5 = vshll.u32 %v5360_v54, 16  ;;  %v4739_v26 = vld [vmem:[%s6441_s3 + $0x178] sm:$0xff]  ;;  %v4738_v57 = vld [vmem:[%s6441_s3 + $0x170] sm:$0xff] }
  0x4d   : > { %2051 = vmatpush.bf16.msra.mxu1 %v4702_v33  ;;  %4916 = vmatpush.bf16.msra.mxu3 %v4702_v33  ;;  %v1556_v3 = vor.u32 %v1555_v56, %v1551_v52  ;;  %v5378_v7 = vsel %vm1453_vm2, %v1460_v47, %v5299_v50  ;;  %v678_v9 = vmul.f32 %v5285_v40, %v4795_v59  ;;  %v1467_v50 = vshrl.u32 %v5360_v54, 16  ;;  %v4894_v33 = vld [vmem:[#allocation2 + $0x80] sm:$0xff]   ;;  %v4730_v56 = vld [vmem:[%s6441_s3 + $0x130] sm:$0xff] }
  0x4e   : > { %6482 = vst [vmem:[#allocation20_spill] sm:$0xff] %v5378_v7  ;;  %v812_v8 = vmax.f32 %v758_v63, 0.0  ;;  %v735_v10 = vadd.f32 %v5290_v41, %v677_v0  ;;  %v5388_v13 = vpack.c.b16 %v1346_v61, %v1345_v60  ;;  %v5390_v14 = vpack.c.b16 %v1418_v62, %v1418_v62 }
  0x4f   : > { %v4842_v15 = vunpack.c.l.bf16 %v4893_v1  ;;  %v736_v18 = vadd.f32 %v5290_v41, %v678_v9  ;;  %v4843_v20 = vunpack.c.h.bf16 %v4893_v1  ;;  %v5397_v21 = vsel %vm1453_vm2, %v1556_v3, %v1560_v4  ;;  %v4713_v1 = vld [vmem:[%s6441_s3 + $0xa8] sm:$0xff] }
  0x50   : > { %1963 = vmatpush.bf16.msra.mxu0 %v4693_v51  ;;  %4909 = vmatpush.bf16.msra.mxu2 %v4693_v51  ;;  %6483 = vst [vmem:[#allocation21_spill] sm:$0xff] %v5388_v13  ;;  %v1212_v17 = vsel %vm1014_vm1, %v812_v8, 0.0  ;;  %v789_v19 = vmax.f32 %v735_v10, 0.0  ;;  %v1471_v22 = vrot.slane %v1469_v5, 1  ;;  %v4798_v32 = vunpack.c.l.bf16 %v4882_v16 }
  0x51   : > { %2052 = vmatpush.bf16.msra.mxu1 %v4701_v43  ;;  %4917 = vmatpush.bf16.msra.mxu3 %v4701_v43  ;;  %6484 = vst [vmem:[#allocation22_spill] sm:$0xff] %v5397_v21  ;;  %v1266_v23 = vpack.c.bf16 %v1212_v17, %v1212_v17  ;;  %v701_v24 = vmul.f32 %v5285_v40, %v4842_v15  ;;  %v790_v27 = vmax.f32 %v736_v18, 0.0  ;;  %v1565_v36 = vshll.u32 %v5388_v13, 16 }
  0x52   : > { %v1189_v28 = vsel %vm913_vm0, %v789_v19, 0.0  ;;  %v702_v29 = vmul.f32 %v5285_v40, %v4843_v20  ;;  %v4799_v47 = vunpack.c.h.bf16 %v4882_v16  ;;  %v679_v49 = vmul.f32 %v5285_v40, %v4798_v32  ;;  %v4729_v19 = vld [vmem:[%s6441_s3 + $0x128] sm:$0xff] }
  0x53   : > { %v1426_v35 = vunpack.c.l.b16 %v1266_v23  ;;  %v1243_v42 = vpack.c.bf16 %v1189_v28, %v1189_v28  ;;  %v759_v44 = vadd.f32 %v5290_v41, %v701_v24  ;;  %v1244_v45 = vpack.c.bf16 %v790_v27, %v790_v27  ;;  %v4737_v20 = vld [vmem:[%s6441_s3 + $0x168] sm:$0xff] }
  0x54   : > { %1964 = vmatpush.bf16.msra.mxu0 %v4692_v2  ;;  %4910 = vmatpush.bf16.msra.mxu2 %v4692_v2  ;;  %v760_v46 = vadd.f32 %v5290_v41, %v702_v29  ;;  %v1474_v51 = vshll.u32 %v5390_v14, 16  ;;  %v1563_v52 = vshrl.u32 %v5388_v13, 16  ;;  %v4846_v55 = vunpack.c.l.bf16 %v4894_v33  ;;  %v4721_v2 = vld [vmem:[%s6441_s3 + $0xe8] sm:$0xff] }
  0x55   : > { %2053 = vmatpush.bf16.msra.mxu1 %v4700_v6  ;;  %4918 = vmatpush.bf16.msra.mxu3 %v4700_v6  ;;  %v813_v53 = vmax.f32 %v759_v44, 0.0  ;;  %v5425_v43 = vpack.c.b16 %v1426_v35, %v1426_v35  ;;  %v680_v59 = vmul.f32 %v5285_v40, %v4799_v47  ;;  %v737_v60 = vadd.f32 %v5290_v41, %v679_v49  ;;  %v4895_v23 = vld [vmem:[#allocation2 + $0x88] sm:$0xff]  }
  0x56   : > { %v814_v58 = vmax.f32 %v760_v46, 0.0  ;;  %v1567_v61 = vrot.slane %v1565_v36, 1  ;;  %v4847_v63 = vunpack.c.h.bf16 %v4894_v33  ;;  %v703_v0 = vmul.f32 %v5285_v40, %v4846_v55 }
  0x57   : > { %1965 = vmatmul.bf16.vlgmr.msra.gmra.mxu0 %v5265_v30  ;;  %2005 = vmatmul.bf16.vlgmr.msra.gmra.mxu2 %v5345_v34  ;;  %v1213_v62 = vsel %vm913_vm0, %v813_v53, 0.0  ;;  %v1331_v3 = vunpack.c.l.b16 %v1243_v42  ;;  %v1332_v4 = vunpack.c.l.b16 %v1244_v45  ;;  %v738_v8 = vadd.f32 %v5290_v41, %v680_v59 }
  0x58   : > { %2135 = vmatpush.bf16.msrb.mxu2 %v4715_v11  ;;  %2054 = vmatmul.bf16.vlgmr.msra.gmra.mxu1 %v5378_v7  ;;  %v1267_v5 = vpack.c.bf16 %v1213_v62, %v1213_v62  ;;  %v1268_v6 = vpack.c.bf16 %v814_v58, %v814_v58  ;;  %v791_v9 = vmax.f32 %v737_v60, 0.0  ;;  %v704_v10 = vmul.f32 %v5285_v40, %v4847_v63 }
  0x59   : > { %2449 = vmatpush.bf16.msrb.mxu3 %v4723_v12  ;;  %2538 = vmatpush.bf16.msrb.mxu0 %v4731_v25  ;;  %v761_v11 = vadd.f32 %v5290_v41, %v703_v0  ;;  %v4883_v12 = vld [vmem:[#allocation2 + $0x28] sm:$0xff]   ;;  %v1472_v15 = vor.u32 %v1471_v22, %v1467_v50  ;;  %v1570_v16 = vshll.u32 %v5425_v43, 16  ;;  %v1476_v24 = vrot.slane %v1474_v51, 1 }
  0x5a   : > { %2094 = vmatmul.bf16.vlgmr.msra.gmra.mxu3 %v5397_v21  ;;  %2627 = vmatpush.bf16.msrb.mxu1 %v4739_v26  ;;  %v1347_v17 = vunpack.c.l.b16 %v1267_v5  ;;  %v1348_v18 = vunpack.c.l.b16 %v1268_v6  ;;  %v1191_v25 = vsel %vm1014_vm1, %v791_v9, 0.0  ;;  %v762_v50 = vadd.f32 %v5290_v41, %v704_v10  ;;  %v4896_v6 = vld [vmem:[#allocation2 + $0x90] sm:$0xff]   ;;  %v4712_v10 = vld [vmem:[%s6441_s3 + $0xa0] sm:$0xff] }
  0x5b   : > { %v815_v22 = vmax.f32 %v761_v11, 0.0  ;;  %v1568_v26 = vor.u32 %v1567_v61, %v1563_v52  ;;  %v5459_v27 = vpack.c.b16 %v1332_v4, %v1331_v3  ;;  %v1245_v28 = vpack.c.bf16 %v1191_v25, %v1191_v25  ;;  %v4884_v61 = vld [vmem:[#allocation2 + $0x30] sm:$0xff]   ;;  %v4720_v11 = vld [vmem:[%s6441_s3 + $0xe0] sm:$0xff] }
  0x5c   : > { %2136 = vmatpush.bf16.msrb.mxu2 %v4714_v38  ;;  %v4802_v29 = vunpack.c.l.bf16 %v4883_v12  ;;  %v792_v33 = vmax.f32 %v738_v8, 0.0  ;;  %v4850_v35 = vunpack.c.l.bf16 %v4895_v23  ;;  %v816_v36 = vmax.f32 %v762_v50, 0.0 }
  0x5d   : > { %2450 = vmatpush.bf16.msrb.mxu3 %v4722_v39  ;;  %2539 = vmatpush.bf16.msrb.mxu0 %v4730_v56  ;;  %v1215_v32 = vsel %vm1014_vm1, %v815_v22, 0.0  ;;  %v1572_v38 = vrot.slane %v1570_v16, 1  ;;  %v5463_v39 = vpack.c.b16 %v1348_v18, %v1347_v17  ;;  %v1419_v42 = vunpack.c.l.b16 %v1245_v28 }
  0x5e   : > { %2628 = vmatpush.bf16.msrb.mxu1 %v4738_v57  ;;  %v1269_v44 = vpack.c.bf16 %v1215_v32, %v1215_v32  ;;  %v681_v45 = vmul.f32 %v5285_v40, %v4802_v29  ;;  %v705_v46 = vmul.f32 %v5285_v40, %v4850_v35  ;;  %v1192_v49 = vsel %vm913_vm0, %v792_v33, 0.0 }
  0x5f   : > { %v1216_v51 = vsel %vm913_vm0, %v816_v36, 0.0  ;;  %v5472_v52 = vsel %vm1453_vm2, %v1472_v15, %v1476_v24  ;;  %v1481_v53 = vshll.u32 %v5459_v27, 16  ;;  %v5478_v57 = vsel %vm1453_vm2, %v1568_v26, %v1572_v38 }
  0x60   : > { %2137 = vmatpush.bf16.msrb.mxu2 %v4713_v1  ;;  %v1427_v47 = vunpack.c.l.b16 %v1269_v44  ;;  %v739_v55 = vadd.f32 %v5290_v41, %v681_v45  ;;  %v763_v56 = vadd.f32 %v5290_v41, %v705_v46  ;;  %6485 = vst [vmem:[#allocation23_spill] sm:$0xff] %v5478_v57  ;;  %v5480_v58 = vpack.c.b16 %v1419_v42, %v1419_v42 }
  0x61   : > { %2451 = vmatpush.bf16.msrb.mxu3 %v4721_v2  ;;  %2540 = vmatpush.bf16.msrb.mxu0 %v4729_v19  ;;  %v1577_v59 = vshll.u32 %v5463_v39, 16  ;;  %v4803_v60 = vunpack.c.h.bf16 %v4883_v12  ;;  %v1246_v63 = vpack.c.bf16 %v1192_v49, %v1192_v49  ;;  %v1270_v1 = vpack.c.bf16 %v1216_v51, %v1216_v51  ;;  %v4728_v12 = vld [vmem:[%s6441_s3 + $0x120] sm:$0xff] }
  0x62   : > { %2629 = vmatpush.bf16.msrb.mxu1 %v4737_v20  ;;  %v793_v62 = vmax.f32 %v739_v55, 0.0  ;;  %v817_v0 = vmax.f32 %v763_v56, 0.0  ;;  %v1479_v2 = vshrl.u32 %v5459_v27, 16  ;;  %v5486_v3 = vpack.c.b16 %v1427_v47, %v1427_v47 }
  0x63   : > { %v682_v4 = vmul.f32 %v5285_v40, %v4803_v60  ;;  %v4851_v5 = vunpack.c.h.bf16 %v4895_v23  ;;  %v4806_v15 = vunpack.c.l.bf16 %v4884_v61  ;;  %v4807_v16 = vunpack.c.h.bf16 %v4884_v61  ;;  %v4736_v23 = vld [vmem:[%s6441_s3 + $0x160] sm:$0xff] }
  0x64   : > { %v1247_v8 = vpack.c.bf16 %v793_v62, %v793_v62  ;;  %v1271_v9 = vpack.c.bf16 %v817_v0, %v817_v0  ;;  %v1483_v17 = vrot.slane %v1481_v53, 1  ;;  %v1575_v18 = vshrl.u32 %v5463_v39, 16  ;;  %2138 = vmatpush.bf16.msrb.mxu2 %v4712_v10 }
  0x65   : > { %v740_v19 = vadd.f32 %v5290_v41, %v682_v4  ;;  %v706_v20 = vmul.f32 %v5285_v40, %v4851_v5  ;;  %v1486_v24 = vshll.u32 %v5480_v58, 16  ;;  %v1579_v25 = vrot.slane %v1577_v59, 1  ;;  %2452 = vmatpush.bf16.msrb.mxu3 %v4720_v11  ;;  %2541 = vmatpush.bf16.msrb.mxu0 %v4728_v12 }
  0x66   : > { %v1333_v50 = vunpack.c.l.b16 %v1246_v63  ;;  %v1349_v22 = vunpack.c.l.b16 %v1270_v1  ;;  %2630 = vmatpush.bf16.msrb.mxu1 %v4736_v23  ;;  %v683_v29 = vmul.f32 %v5285_v40, %v4806_v15  ;;  %v4854_v32 = vunpack.c.l.bf16 %v4896_v6 }
  0x67   : > { %1970 = vmatmul.bf16.gmra.mxu0 %v5360_v54  ;;  %2010 = vmatmul.bf16.gmra.mxu2 %v5388_v13  ;;  %v794_v26 = vmax.f32 %v740_v19, 0.0  ;;  %v764_v28 = vadd.f32 %v5290_v41, %v706_v20  ;;  %v1582_v33 = vshll.u32 %v5486_v3, 16  ;;  %v1334_v35 = vunpack.c.l.b16 %v1247_v8 }
  0x68   : > { %2059 = vmatmul.bf16.gmra.mxu1 %v5472_v52  ;;  %v1350_v36 = vunpack.c.l.b16 %v1271_v9  ;;  %v684_v38 = vmul.f32 %v5285_v40, %v4807_v16  ;;  %v4855_v45 = vunpack.c.h.bf16 %v4896_v6  ;;  %v707_v46 = vmul.f32 %v5285_v40, %v4854_v32  ;;  %v4897_v9 = vld [vmem:[#allocation2 + $0x98] sm:$0xff]  }
  0x69   : > { %v1194_v42 = vsel %vm1014_vm1, %v794_v26, 0.0  ;;  %v818_v44 = vmax.f32 %v764_v28, 0.0  ;;  %v1484_v49 = vor.u32 %v1483_v17, %v1479_v2  ;;  %v1488_v51 = vrot.slane %v1486_v24, 1  ;;  %v4885_v2 = vld [vmem:[#allocation2 + $0x38] sm:$0xff]  }
  0x6a   : > { %2099 = vmatmul.bf16.gmra.mxu3 %v5478_v57  ;;  %v1248_v47 = vpack.c.bf16 %v1194_v42, %v1194_v42  ;;  %v741_v55 = vadd.f32 %v5290_v41, %v683_v29  ;;  %v1580_v56 = vor.u32 %v1579_v25, %v1575_v18  ;;  %v5517_v59 = vpack.c.b16 %v1334_v35, %v1333_v50  ;;  %v4886_v29 = vld [vmem:[#allocation2 + $0x40] sm:$0xff]   ;;  %v4727_v42 = vld [vmem:[%s6441_s3 + $0x118] sm:$0xff] }
  0x6b   : > { %v1218_v53 = vsel %vm1014_vm1, %v818_v44, 0.0  ;;  %v708_v61 = vmul.f32 %v5285_v40, %v4855_v45  ;;  %v1584_v62 = vrot.slane %v1582_v33, 1  ;;  %v5520_v63 = vpack.c.b16 %v1350_v36, %v1349_v22  ;;  %v4711_v36 = vld [vmem:[%s6441_s3 + $0x98] sm:$0xff]  ;;  %2542 = vmatpush.bf16.msrb.mxu0 %v4727_v42 }
  0x6c   : > { %v1272_v60 = vpack.c.bf16 %v1218_v53, %v1218_v53  ;;  %v742_v0 = vadd.f32 %v5290_v41, %v684_v38  ;;  %v765_v1 = vadd.f32 %v5290_v41, %v707_v46  ;;  %v1420_v4 = vunpack.c.l.b16 %v1248_v47  ;;  %v4719_v38 = vld [vmem:[%s6441_s3 + $0xd8] sm:$0xff]  ;;  %2139 = vmatpush.bf16.msrb.mxu2 %v4711_v36 }
  0x6d   : > { %v5525_v5 = vsel %vm1453_vm2, %v1484_v49, %v1488_v51  ;;  %v795_v8 = vmax.f32 %v741_v55, 0.0  ;;  %v1493_v10 = vshll.u32 %v5517_v59, 16  ;;  %v766_v11 = vadd.f32 %v5290_v41, %v708_v61  ;;  %v4735_v49 = vld [vmem:[%s6441_s3 + $0x158] sm:$0xff]  ;;  %v4898_v51 = vld [vmem:[#allocation2 + $0xa0] sm:$0xff]   ;;  %2453 = vmatpush.bf16.msrb.mxu3 %v4719_v38 }
  0x6e   : > { %v1428_v6 = vunpack.c.l.b16 %v1272_v60  ;;  %v819_v12 = vmax.f32 %v765_v1, 0.0  ;;  %v4810_v15 = vunpack.c.l.bf16 %v4885_v2  ;;  %v5530_v16 = vsel %vm1453_vm2, %v1580_v56, %v1584_v62  ;;  %2631 = vmatpush.bf16.msrb.mxu1 %v4735_v49 }
  0x6f   : > { %6486 = vst [vmem:[#allocation24_spill] sm:$0xff] %v5530_v16  ;;  %v1589_v17 = vshll.u32 %v5520_v63, 16  ;;  %v796_v18 = vmax.f32 %v742_v0, 0.0  ;;  %v4811_v19 = vunpack.c.h.bf16 %v4885_v2  ;;  %v5533_v20 = vpack.c.b16 %v1420_v4, %v1420_v4 }
  0x70   : > { %v1491_v23 = vshrl.u32 %v5517_v59, 16  ;;  %v1587_v24 = vshrl.u32 %v5520_v63, 16  ;;  %v4858_v25 = vunpack.c.l.bf16 %v4897_v9  ;;  %v5539_v50 = vpack.c.b16 %v1428_v6, %v1428_v6 }
  0x71   : > { %v1195_v22 = vsel %vm913_vm0, %v795_v8, 0.0  ;;  %v685_v26 = vmul.f32 %v5285_v40, %v4810_v15  ;;  %v4859_v28 = vunpack.c.h.bf16 %v4897_v9  ;;  %v1495_v32 = vrot.slane %v1493_v10, 1 }
  0x72   : > { %v820_v33 = vmax.f32 %v766_v11, 0.0  ;;  %v1219_v35 = vsel %vm913_vm0, %v819_v12, 0.0  ;;  %v1591_v44 = vrot.slane %v1589_v17, 1  ;;  %v1250_v45 = vpack.c.bf16 %v796_v18, %v796_v18 }
  0x73   : > { %v686_v46 = vmul.f32 %v5285_v40, %v4811_v19  ;;  %v743_v47 = vadd.f32 %v5290_v41, %v685_v26  ;;  %v1498_v53 = vshll.u32 %v5533_v20, 16  ;;  %v1249_v55 = vpack.c.bf16 %v1195_v22, %v1195_v22 }
  0x74   : > { %v709_v56 = vmul.f32 %v5285_v40, %v4858_v25  ;;  %v4814_v60 = vunpack.c.l.bf16 %v4886_v29  ;;  %v1594_v61 = vshll.u32 %v5539_v50, 16  ;;  %v1273_v62 = vpack.c.bf16 %v1219_v35, %v1219_v35 }
  0x75   : > { %v797_v0 = vmax.f32 %v743_v47, 0.0  ;;  %v710_v1 = vmul.f32 %v5285_v40, %v4859_v28  ;;  %v1496_v2 = vor.u32 %v1495_v32, %v1491_v23  ;;  %v1274_v4 = vpack.c.bf16 %v820_v33, %v820_v33 }
  0x76   : > { %v767_v6 = vadd.f32 %v5290_v41, %v709_v56  ;;  %v4862_v8 = vunpack.c.l.bf16 %v4898_v51  ;;  %v1592_v9 = vor.u32 %v1591_v44, %v1587_v24  ;;  %v744_v10 = vadd.f32 %v5290_v41, %v686_v46 }
  0x77   : > { %1975 = vmatmul.bf16.gmra.mxu0 %v5459_v27  ;;  %2015 = vmatmul.bf16.gmra.mxu2 %v5463_v39  ;;  %v1197_v11 = vsel %vm1014_vm1, %v797_v0, 0.0  ;;  %v687_v12 = vmul.f32 %v5285_v40, %v4814_v60  ;;  %v1500_v15 = vrot.slane %v1498_v53, 1  ;;  %v1335_v17 = vunpack.c.l.b16 %v1249_v55  ;;  %v4887_v60 = vld [vmem:[#allocation2 + $0x48] sm:$0xff]  }
  0x78   : > { %2064 = vmatmul.bf16.gmra.mxu1 %v5525_v5  ;;  %v1336_v18 = vunpack.c.l.b16 %v1250_v45  ;;  %v821_v19 = vmax.f32 %v767_v6, 0.0  ;;  %v1596_v25 = vrot.slane %v1594_v61, 1  ;;  %v1351_v22 = vunpack.c.l.b16 %v1273_v62 }
  0x79   : > { %v768_v23 = vadd.f32 %v5290_v41, %v710_v1  ;;  %v711_v26 = vmul.f32 %v5285_v40, %v4862_v8  ;;  %v1352_v28 = vunpack.c.l.b16 %v1274_v4  ;;  %v1251_v32 = vpack.c.bf16 %v1197_v11, %v1197_v11 }
  0x7a   : > { %2104 = vmatmul.bf16.gmra.mxu3 %v5530_v16  ;;  %v1221_v24 = vsel %vm1014_vm1, %v821_v19, 0.0  ;;  %v4815_v33 = vunpack.c.h.bf16 %v4886_v29  ;;  %v745_v36 = vadd.f32 %v5290_v41, %v687_v12  ;;  %v798_v38 = vmax.f32 %v744_v10, 0.0  ;;  %v4899_v10 = vld [vmem:[#allocation2 + $0xa8] sm:$0xff]   ;;  %v4726_v19 = vld [vmem:[%s6441_s3 + $0x110] sm:$0xff] }
  0x7b   : > { %v1275_v35 = vpack.c.bf16 %v1221_v24, %v1221_v24  ;;  %v5576_v42 = vpack.c.b16 %v1336_v18, %v1335_v17  ;;  %v769_v44 = vadd.f32 %v5290_v41, %v711_v26  ;;  %v5581_v46 = vsel %vm1453_vm2, %v1496_v2, %v1500_v15  ;;  %v4710_v17 = vld [vmem:[%s6441_s3 + $0x90] sm:$0xff]  ;;  %2543 = vmatpush.bf16.msrb.mxu0 %v4726_v19 }
  0x7c   : > { %v688_v45 = vmul.f32 %v5285_v40, %v4815_v33  ;;  %v822_v47 = vmax.f32 %v768_v23, 0.0  ;;  %v4863_v49 = vunpack.c.h.bf16 %v4898_v51  ;;  %v5584_v53 = vsel %vm1453_vm2, %v1592_v9, %v1596_v25  ;;  %v4718_v18 = vld [vmem:[%s6441_s3 + $0xd0] sm:$0xff]  ;;  %2140 = vmatpush.bf16.msrb.mxu2 %v4710_v17 }
  0x7d   : > { %6487 = vst [vmem:[#allocation25_spill] sm:$0xff] %v5576_v42  ;;  %v5586_v55 = vpack.c.b16 %v1352_v28, %v1351_v22  ;;  %v1421_v29 = vunpack.c.l.b16 %v1251_v32  ;;  %v1429_v61 = vunpack.c.l.b16 %v1275_v35  ;;  %v799_v62 = vmax.f32 %v745_v36, 0.0  ;;  %v4734_v28 = vld [vmem:[%s6441_s3 + $0x150] sm:$0xff]  ;;  %2454 = vmatpush.bf16.msrb.mxu3 %v4718_v18 }
  0x7e   : > { %v746_v56 = vadd.f32 %v5290_v41, %v688_v45  ;;  %v1198_v0 = vsel %vm913_vm0, %v798_v38, 0.0  ;;  %v712_v1 = vmul.f32 %v5285_v40, %v4863_v49  ;;  %v1505_v2 = vshll.u32 %v5576_v42, 16  ;;  %2632 = vmatpush.bf16.msrb.mxu1 %v4734_v28 }
  0x7f   : > { %v823_v4 = vmax.f32 %v769_v44, 0.0  ;;  %v1222_v51 = vsel %vm913_vm0, %v822_v47, 0.0  ;;  %v4818_v9 = vunpack.c.l.bf16 %v4887_v60  ;;  %v5600_v11 = vpack.c.b16 %v1421_v29, %v1421_v29  ;;  %v5622_v47 = vld [vmem:[#allocation2 + $0x50] sm:$0xff]  }
  0x80   : > { %v800_v6 = vmax.f32 %v746_v56, 0.0  ;;  %v770_v8 = vadd.f32 %v5290_v41, %v712_v1  ;;  %v1601_v12 = vshll.u32 %v5586_v55, 16  ;;  %v1252_v15 = vpack.c.bf16 %v1198_v0, %v1198_v0 }
  0x81   : > { %v1503_v25 = vshrl.u32 %v5576_v42, 16  ;;  %v5613_v22 = vpack.c.b16 %v1429_v61, %v1429_v61  ;;  %v1253_v23 = vpack.c.bf16 %v799_v62, %v799_v62  ;;  %v1507_v32 = vrot.slane %v1505_v2, 1 }
  0x82   : > { %v824_v26 = vmax.f32 %v770_v8, 0.0  ;;  %v1276_v24 = vpack.c.bf16 %v1222_v51, %v1222_v51  ;;  %v1277_v33 = vpack.c.bf16 %v823_v4, %v823_v4  ;;  %v4866_v35 = vunpack.c.l.bf16 %v4899_v10 }
  0x83   : > { %6488 = vst [vmem:[#allocation26_spill] sm:$0xff] %v5613_v22  ;;  %v1599_v36 = vshrl.u32 %v5586_v55, 16  ;;  %v1200_v38 = vsel %vm1014_vm1, %v800_v6, 0.0  ;;  %v4819_v44 = vunpack.c.h.bf16 %v4887_v60  ;;  %v689_v45 = vmul.f32 %v5285_v40, %v4818_v9 }
  0x84   : > { %v1510_v49 = vshll.u32 %v5600_v11, 16  ;;  %v1603_v29 = vrot.slane %v1601_v12, 1  ;;  %v1337_v56 = vunpack.c.l.b16 %v1252_v15  ;;  %v1224_v61 = vsel %vm1014_vm1, %v824_v26, 0.0 }
  0x85   : > { %v1606_v62 = vshll.u32 %v5613_v22, 16  ;;  %v1338_v0 = vunpack.c.l.b16 %v1253_v23  ;;  %v4867_v1 = vunpack.c.h.bf16 %v4899_v10  ;;  %v713_v2 = vmul.f32 %v5285_v40, %v4866_v35  ;;  %v4900_v35 = vld [vmem:[#allocation2 + $0xb0] sm:$0xff]  }
  0x86   : > { %v1353_v4 = vunpack.c.l.b16 %v1276_v24  ;;  %v1354_v51 = vunpack.c.l.b16 %v1277_v33  ;;  %v1254_v60 = vpack.c.bf16 %v1200_v38, %v1200_v38  ;;  %v4822_v6 = vunpack.c.l.bf16 %v5622_v47 }
  0x87   : > { %1980 = vmatmul.bf16.gmra.mxu0 %v5517_v59  ;;  %2020 = vmatmul.bf16.gmra.mxu2 %v5520_v63  ;;  %v1278_v8 = vpack.c.bf16 %v1224_v61, %v1224_v61  ;;  %v690_v9 = vmul.f32 %v5285_v40, %v4819_v44  ;;  %v747_v12 = vadd.f32 %v5290_v41, %v689_v45  ;;  %v1512_v17 = vrot.slane %v1510_v49, 1 }
  0x88   : > { %2069 = vmatmul.bf16.gmra.mxu1 %v5581_v46  ;;  %v1508_v15 = vor.u32 %v1507_v32, %v1503_v25  ;;  %v714_v18 = vmul.f32 %v5285_v40, %v4867_v1  ;;  %v771_v19 = vadd.f32 %v5290_v41, %v713_v2  ;;  %v1604_v23 = vor.u32 %v1603_v29, %v1599_v36 }
  0x89   : > { %v1608_v10 = vrot.slane %v1606_v62, 1  ;;  %v5634_v26 = vpack.c.b16 %v1338_v0, %v1337_v56  ;;  %v691_v28 = vmul.f32 %v5285_v40, %v4822_v6  ;;  %v5637_v24 = vpack.c.b16 %v1354_v51, %v1353_v4 }
  0x8a   : > { %2109 = vmatmul.bf16.gmra.mxu3 %v5584_v53  ;;  %v1422_v33 = vunpack.c.l.b16 %v1254_v60  ;;  %v1430_v38 = vunpack.c.l.b16 %v1278_v8  ;;  %v748_v44 = vadd.f32 %v5290_v41, %v690_v9  ;;  %v801_v45 = vmax.f32 %v747_v12, 0.0  ;;  %v4709_v12 = vld [vmem:[%s6441_s3 + $0x88] sm:$0xff] }
  0x8b   : > { %v5641_v25 = vsel %vm1453_vm2, %v1508_v15, %v1512_v17  ;;  %v772_v32 = vadd.f32 %v5290_v41, %v714_v18  ;;  %v825_v49 = vmax.f32 %v771_v19, 0.0  ;;  %v5645_v36 = vsel %vm1453_vm2, %v1604_v23, %v1608_v10  ;;  %v4717_v15 = vld [vmem:[%s6441_s3 + $0xc8] sm:$0xff]  ;;  %2141 = vmatpush.bf16.msrb.mxu2 %v4709_v12 }
  0x8c   : > { %6489 = vst [vmem:[#allocation27_spill] sm:$0xff] %v5641_v25  ;;  %v1517_v29 = vshll.u32 %v5634_v26, 16  ;;  %v749_v56 = vadd.f32 %v5290_v41, %v691_v28  ;;  %v4870_v61 = vunpack.c.l.bf16 %v4900_v35  ;;  %v5649_v62 = vpack.c.b16 %v1422_v33, %v1422_v33  ;;  %v4725_v17 = vld [vmem:[%s6441_s3 + $0x108] sm:$0xff]  ;;  %v4889_v28 = vld [vmem:[#allocation2 + $0x58] sm:$0xff]   ;;  %2455 = vmatpush.bf16.msrb.mxu3 %v4717_v15 }
  0x8d   : > { %6490 = vst [vmem:[#allocation28_spill] sm:$0xff] %v5645_v36  ;;  %v1613_v0 = vshll.u32 %v5637_v24, 16  ;;  %v5654_v1 = vpack.c.b16 %v1430_v38, %v1430_v38  ;;  %v802_v2 = vmax.f32 %v748_v44, 0.0  ;;  %v1201_v4 = vsel %vm913_vm0, %v801_v45, 0.0  ;;  %2544 = vmatpush.bf16.msrb.mxu0 %v4725_v17 }
  0x8e   : > { %v715_v51 = vmul.f32 %v5285_v40, %v4870_v61  ;;  %v1515_v60 = vshrl.u32 %v5634_v26, 16  ;;  %v826_v6 = vmax.f32 %v772_v32, 0.0  ;;  %v1225_v8 = vsel %vm913_vm0, %v825_v49, 0.0  ;;  %v4901_v32 = vld [vmem:[#allocation2 + $0xb8] sm:$0xff]  }
  0x8f   : > { %6491 = vst [vmem:[#allocation29_spill] sm:$0xff] %v5654_v1  ;;  %v4823_v9 = vunpack.c.h.bf16 %v5622_v47  ;;  %v1519_v18 = vrot.slane %v1517_v29, 1  ;;  %v803_v19 = vmax.f32 %v749_v56, 0.0  ;;  %v4871_v23 = vunpack.c.h.bf16 %v4900_v35  ;;  %v4733_v47 = vld [vmem:[%s6441_s3 + $0x148] sm:$0xff] }
  0x90   : > { %v773_v10 = vadd.f32 %v5290_v41, %v715_v51  ;;  %v1522_v33 = vshll.u32 %v5649_v62, 16  ;;  %v1611_v38 = vshrl.u32 %v5637_v24, 16  ;;  %v1615_v44 = vrot.slane %v1613_v0, 1  ;;  %2633 = vmatpush.bf16.msrb.mxu1 %v4733_v47 }
  0x91   : > { %v1255_v45 = vpack.c.bf16 %v1201_v4, %v1201_v4  ;;  %v1618_v49 = vshll.u32 %v5654_v1, 16  ;;  %v1256_v29 = vpack.c.bf16 %v802_v2, %v802_v2  ;;  %v1279_v35 = vpack.c.bf16 %v1225_v8, %v1225_v8 }
  0x92   : > { %v827_v56 = vmax.f32 %v773_v10, 0.0  ;;  %v1280_v61 = vpack.c.bf16 %v826_v6, %v826_v6  ;;  %v692_v51 = vmul.f32 %v5285_v40, %v4823_v9  ;;  %v4826_v7 = vunpack.c.l.bf16 %v4889_v28 }
  0x93   : > { %v1203_v22 = vsel %vm1014_vm1, %v803_v19, 0.0  ;;  %v716_v0 = vmul.f32 %v5285_v40, %v4871_v23  ;;  %v4874_v4 = vunpack.c.l.bf16 %v4901_v32  ;;  %v1524_v12 = vrot.slane %v1522_v33, 1 }
  0x94   : > { %v1616_v15 = vor.u32 %v1615_v44, %v1611_v38  ;;  %v1227_v2 = vsel %vm1014_vm1, %v827_v56, 0.0  ;;  %v4827_v8 = vunpack.c.h.bf16 %v4889_v28  ;;  %v1620_v10 = vrot.slane %v1618_v49, 1  ;;  %v5700_v49 = vld [vmem:[%s6439_s1] ss:$0 sm:$0xff] }
  0x95   : > { %v1339_v17 = vunpack.c.l.b16 %v1255_v45  ;;  %v1340_v47 = vunpack.c.l.b16 %v1256_v29  ;;  %v1355_v6 = vunpack.c.l.b16 %v1279_v35  ;;  %v1356_v1 = vunpack.c.l.b16 %v1280_v61 }
  0x96   : > { %v750_v9 = vadd.f32 %v5290_v41, %v692_v51  ;;  %v774_v19 = vadd.f32 %v5290_v41, %v716_v0  ;;  %v1281_v23 = vpack.c.bf16 %v1227_v2, %v1227_v2  ;;  %v717_v33 = vmul.f32 %v5285_v40, %v4874_v4 }
  0x97   : > { %1985 = vmatmul.bf16.gmra.mxu0 %v5576_v42  ;;  %2025 = vmatmul.bf16.gmra.mxu2 %v5586_v55  ;;  %v4875_v38 = vunpack.c.h.bf16 %v4901_v32  ;;  %v694_v44 = vmul.f32 %v5285_v40, %v4827_v8  ;;  %v5695_v45 = vpack.c.b16 %v1340_v47, %v1339_v17  ;;  %v5708_v32 = vld [vmem:[%s6440_s2] ss:$0 sm:$0xff]  ;;  %v5712_v29 = vsel %vm1453_vm2, %v1616_v15, %v1620_v10 }
  0x98   : > { %2074 = vmatmul.bf16.gmra.mxu1 %v5641_v25  ;;  %v1431_v35 = vunpack.c.l.b16 %v1281_v23  ;;  %v775_v56 = vadd.f32 %v5708_v32, %v717_v33  ;;  %v828_v61 = vmax.f32 %v774_v19, 0.0  ;;  %v4708_v8 = vld [vmem:[%s6441_s3 + $0x80] sm:$0xff] }
  0x99   : > { %6493 = vst [vmem:[#allocation31_spill] sm:$0xff] %v5695_v45  ;;  %v752_v51 = vadd.f32 %v5708_v32, %v694_v44  ;;  %v1529_v0 = vshll.u32 %v5695_v45, 16  ;;  %v4716_v10 = vld [vmem:[%s6441_s3 + $0xc0] sm:$0xff]  ;;  %2142 = vmatpush.bf16.msrb.mxu2 %v4708_v8  ;;  %v1527_v23 = vshrl.u32 %v5695_v45, 16 }
  0x9a   : > { %2114 = vmatmul.bf16.gmra.mxu3 %v5645_v36  ;;  %v1520_v36 = vor.u32 %v1519_v18, %v1515_v60  ;;  %v1257_v60 = vpack.c.bf16 %v1203_v22, %v1203_v22  ;;  %v693_v18 = vmul.f32 %v5285_v40, %v4826_v7  ;;  %v718_v7 = vmul.f32 %v5700_v49, %v4875_v38  ;;  %v4724_v17 = vld [vmem:[%s6441_s3 + $0x100] sm:$0xff] }
  0x9b   : > { %v5703_v22 = vpack.c.b16 %v1356_v1, %v1355_v6  ;;  %v5736_v47 = vpack.c.b16 %v1431_v35, %v1431_v35  ;;  %v829_v6 = vmax.f32 %v775_v56, 0.0  ;;  %2456 = vmatpush.bf16.msrb.mxu3 %v4716_v10  ;;  %v1531_v33 = vrot.slane %v1529_v0, 1  ;;  %2545 = vmatpush.bf16.msrb.mxu0 %v4724_v17 }
  0x9c   : > { %v5693_v28 = vsel %vm1453_vm2, %v1520_v36, %v1524_v12  ;;  %v1423_v41 = vunpack.c.l.b16 %v1257_v60  ;;  %v751_v40 = vadd.f32 %v5708_v32, %v693_v18  ;;  %v804_v36 = vmax.f32 %v750_v9, 0.0  ;;  %v4732_v60 = vld [vmem:[%s6441_s3 + $0x140] sm:$0xff] }
  0x9d   : > { %6492 = vst [vmem:[#allocation30_spill] sm:$0xff] %v5693_v28  ;;  %v776_v1 = vadd.f32 %v5708_v32, %v718_v7  ;;  %v1625_v12 = vshll.u32 %v5703_v22, 16  ;;  %v1228_v9 = vsel %vm913_vm0, %v828_v61, 0.0  ;;  %v806_v18 = vmax.f32 %v752_v51, 0.0  ;;  %2634 = vmatpush.bf16.msrb.mxu1 %v4732_v60 }
  0x9e   : > { %v5722_v4 = vpack.c.b16 %v1423_v41, %v1423_v41  ;;  %v805_v15 = vmax.f32 %v751_v40, 0.0  ;;  %v1204_v2 = vsel %vm913_vm0, %v804_v36, 0.0  ;;  %v1623_v38 = vshrl.u32 %v5703_v22, 16 }
  0x9f   : > { %v830_v19 = vmax.f32 %v776_v1, 0.0  ;;  %v1258_v44 = vpack.c.bf16 %v1204_v2, %v1204_v2  ;;  %v1627_v41 = vrot.slane %v1625_v12, 1  ;;  %v1282_v36 = vpack.c.bf16 %v1228_v9, %v1228_v9 }
  0xa0   : > { %v1534_v7 = vshll.u32 %v5722_v4, 16  ;;  %v1259_v40 = vpack.c.bf16 %v805_v15, %v805_v15  ;;  %v1630_v35 = vshll.u32 %v5736_v47, 16  ;;  %v1283_v56 = vpack.c.bf16 %v829_v6, %v829_v6 }
  0xa1   : > { %v1206_v61 = vsel %vm1014_vm1, %v806_v18, 0.0  ;;  %v1230_v51 = vsel %vm1014_vm1, %v830_v19, 0.0  ;;  %v1532_v1 = vor.u32 %v1531_v33, %v1527_v23  ;;  %v1341_v0 = vunpack.c.l.b16 %v1258_v44 }
  0xa2   : > { %v1536_v8 = vrot.slane %v1534_v7, 1  ;;  %v1628_v2 = vor.u32 %v1627_v41, %v1623_v38  ;;  %v1342_v10 = vunpack.c.l.b16 %v1259_v40  ;;  %v1357_v17 = vunpack.c.l.b16 %v1282_v36  ;;  %v4747_v38 = vld [vmem:[%s6441_s3 + $0x1b8] sm:$0xff] }
  0xa3   : > { %v1632_v60 = vrot.slane %v1630_v35, 1  ;;  %v1358_v31 = vunpack.c.l.b16 %v1283_v56  ;;  %v1260_v12 = vpack.c.bf16 %v1206_v61, %v1206_v61  ;;  %v1284_v15 = vpack.c.bf16 %v1230_v51, %v1230_v51  ;;  %2941 = vmatpush.bf16.msra.mxu2 %v4747_v38 }
  0xa4   : > { %v5752_v9 = vsel %vm1453_vm2, %v1532_v1, %v1536_v8  ;;  %v5754_v6 = vpack.c.b16 %v1342_v10, %v1341_v0  ;;  %v4763_v1 = vld [vmem:[%s6441_s3 + $0x238] sm:$0xff] }
  0xa5   : > { %6494 = vst [vmem:[#allocation32_spill] sm:$0xff] %v5752_v9  ;;  %v5757_v18 = vsel %vm1453_vm2, %v1628_v2, %v1632_v60  ;;  %v5759_v37 = vpack.c.b16 %v1358_v31, %v1357_v17  ;;  %v1424_v19 = vunpack.c.l.b16 %v1260_v12  ;;  %v1432_v23 = vunpack.c.l.b16 %v1284_v15  ;;  %v4755_v31 = vld [vmem:[%s6441_s3 + $0x1f8] sm:$0xff]  ;;  %3119 = vmatpush.bf16.msra.mxu0 %v4763_v1 }
  0xa6   : > { %v1541_v33 = vshll.u32 %v5754_v6, 16  ;;  %3030 = vmatpush.bf16.msra.mxu3 %v4755_v31  ;;  %v1539_v40 = vshrl.u32 %v5754_v6, 16  ;;  %v4787_v17 = vld [vmem:[%s6444_s6 + $0x38] sm:$0xff]  ;;  %v1692_v15 = vrot.slane %v5360_v54, 1  ;;  %v1695_v1 = vrot.slane %v5459_v27, 1 }
  0xa7   : > { %1990 = vmatmul.bf16.gmra.mxu0 %v5634_v26  ;;  %2030 = vmatmul.bf16.gmra.mxu2 %v5637_v24  ;;  %v5772_v44 = vpack.c.b16 %v1424_v19, %v1424_v19  ;;  %v5774_v7 = vpack.c.b16 %v1432_v23, %v1432_v23  ;;  %v1637_v41 = vshll.u32 %v5759_v37, 16  ;;  %v1635_v56 = vshrl.u32 %v5759_v37, 16 }
  0xa8   : > { %2079 = vmatmul.bf16.gmra.mxu1 %v5693_v28  ;;  %v1543_v36 = vrot.slane %v1541_v33, 1  ;;  %v1693_v19 = vrot.slane %v5390_v14, 1  ;;  %v6457_v23 = vrot.slane %v5265_v30, 1  ;;  %v4746_v14 = vld [vmem:[%s6441_s3 + $0x1b0] sm:$0xff] }
  0xa9   : > { %v1546_v35 = vshll.u32 %v5772_v44, 16  ;;  %v1639_v61 = vrot.slane %v1637_v41, 1  ;;  %v1642_v51 = vshll.u32 %v5774_v7, 16  ;;  %3432 = vmatpush.bf16.msra.mxu1 %v4787_v17  ;;  %2942 = vmatpush.bf16.msra.mxu2 %v4746_v14 }
  0xaa   : > { %2119 = vmatmul.bf16.gmra.mxu3 %v5712_v29  ;;  %v1544_v0 = vor.u32 %v1543_v36, %v1539_v40  ;;  %v1694_v31 = vsel %vm1688_vm3, %v1692_v15, %v1693_v19  ;;  %v4754_v40 = vld [vmem:[%s6441_s3 + $0x1f0] sm:$0xff] }
  0xab   : > { %v1548_v8 = vrot.slane %v1546_v35, 1  ;;  %v1640_v2 = vor.u32 %v1639_v61, %v1635_v56  ;;  %v1644_v10 = vrot.slane %v1642_v51, 1  ;;  %3031 = vmatpush.bf16.msra.mxu3 %v4754_v40  ;;  %v4786_v15 = vld [vmem:[%s6444_s6 + $0x30] sm:$0xff] }
  0xad   : > { %v5788_v60 = vsel %vm1453_vm2, %v1544_v0, %v1548_v8  ;;  %v5791_v12 = vsel %vm1453_vm2, %v1640_v2, %v1644_v10  ;;  %v1696_v0 = vrot.slane %v5480_v58, 1  ;;  %3433 = vmatpush.bf16.msra.mxu1 %v4786_v15 }
  0xae   : > { %6495 = vst [vmem:[#allocation33_spill] sm:$0xff] %v5788_v60 }
  0xb7   : > { %1995 = vmatmul.bf16.gmra.mxu0 %v5695_v45  ;;  %2035 = vmatmul.bf16.gmra.mxu2 %v5703_v22 }
  0xb8   : > { %2084 = vmatmul.bf16.gmra.mxu1 %v5752_v9 }
  0xba   : > { %2124 = vmatmul.bf16.gmra.mxu3 %v5757_v18 }
  0xc7   : > { %2000 = vmatmul.bf16.gmra.mxu0 %v5754_v6  ;;  %2040 = vmatmul.bf16.gmra.mxu2 %v5759_v37 }
  0xc8   : > { %2089 = vmatmul.bf16.gmra.mxu1 %v5788_v60 }
  0xca   : > { %2129 = vmatmul.bf16.gmra.mxu3 %v5791_v12 }
  0xd4   : > { %v1966_v33 = vpop.f32.mrf.mxu0 }
  0xd5   : > { %v2055_v38 = vpop.f32.mrf.mxu1 }
  0xd6   : > { %v5801_v41 = vadd.f32 %v2055_v38, %v1966_v33  ;;  %v5828_v33 = vsel %vm1688_vm3, %v1695_v1, %v1696_v0 }
  0xd7   : > { %2143 = vmatmul.bf16.vlgmr.msrb.gmra.mxu2 %v6457_v23  ;;  %2546 = vmatmul.bf16.vlgmr.msrb.gmra.mxu0 %v5472_v52 }
  0xd8   : > { %2635 = vmatmul.bf16.vlgmr.msrb.gmra.mxu1 %v1694_v31 }
  0xda   : > { %2457 = vmatmul.bf16.vlgmr.msrb.gmra.mxu3 %v5360_v54  ;;  %v2006_v36 = vpop.f32.mrf.mxu2  ;;  %v4762_v54 = vld [vmem:[%s6441_s3 + $0x230] sm:$0xff] }
  0xdb   : > { %3120 = vmatpush.bf16.msra.mxu0 %v4762_v54  ;;  %v1699_v54 = vrot.slane %v5533_v20, 1  ;;  %v4745_v20 = vld [vmem:[%s6441_s3 + $0x1a8] sm:$0xff] }
  0xdc   : > { %v1968_v61 = vpop.f32.mrf.mxu0  ;;  %2943 = vmatpush.bf16.msra.mxu2 %v4745_v20 }
  0xdd   : > { %v2095_v35 = vpop.f32.mrf.mxu3  ;;  %v2057_v51 = vpop.f32.mrf.mxu1 }
  0xde   : > { %v5813_v56 = vadd.f32 %v2095_v35, %v2006_v36  ;;  %v5815_v52 = vadd.f32 %v2057_v51, %v1968_v61  ;;  %v1698_v51 = vrot.slane %v5517_v59, 1 }
  0xe2   : > { %v2008_v8 = vpop.f32.mrf.mxu2 }
  0xe4   : > { %v1971_v17 = vpop.f32.mrf.mxu0 }
  0xe5   : > { %v2097_v2 = vpop.f32.mrf.mxu3  ;;  %v2060_v19 = vpop.f32.mrf.mxu1 }
  0xe6   : > { %v5822_v10 = vadd.f32 %v2097_v2, %v2008_v8  ;;  %v5830_v38 = vadd.f32 %v2060_v19, %v1971_v17  ;;  %v5844_v17 = vsel %vm1688_vm3, %v1698_v51, %v1699_v54  ;;  %v4753_v19 = vld [vmem:[%s6441_s3 + $0x1e8] sm:$0xff] }
  0xe7   : > { %2148 = vmatmul.bf16.gmra.mxu2 %v1694_v31  ;;  %2551 = vmatmul.bf16.gmra.mxu0 %v5525_v5 }
  0xe8   : > { %2640 = vmatmul.bf16.gmra.mxu1 %v5828_v33  ;;  %3032 = vmatpush.bf16.msra.mxu3 %v4753_v19 }
  0xea   : > { %2462 = vmatmul.bf16.gmra.mxu3 %v5459_v27  ;;  %v2011_v58 = vpop.f32.mrf.mxu2 }
  0xec   : > { %v1973_v36 = vpop.f32.mrf.mxu0 }
  0xed   : > { %v2100_v14 = vpop.f32.mrf.mxu3  ;;  %v2062_v35 = vpop.f32.mrf.mxu1 }
  0xee   : > { %v5835_v40 = vadd.f32 %v2100_v14, %v2011_v58  ;;  %v5837_v61 = vadd.f32 %v2062_v35, %v1973_v36 }
  0xf2   : > { %v2013_v1 = vpop.f32.mrf.mxu2 }
  0xf4   : > { %v1976_v8 = vpop.f32.mrf.mxu0 }
  0xf5   : > { %v2102_v31 = vpop.f32.mrf.mxu3  ;;  %v2065_v2 = vpop.f32.mrf.mxu1 }
  0xf6   : > { %v5841_v0 = vadd.f32 %v2102_v31, %v2013_v1  ;;  %v5846_v15 = vadd.f32 %v2065_v2, %v1976_v8  ;;  %v4761_v1 = vld [vmem:[%s6441_s3 + $0x228] sm:$0xff]  ;;  %v1701_v31 = vrot.slane %v5576_v42, 1  ;;  %v1702_v8 = vrot.slane %v5600_v11, 1 }
  0xf7   : > { %2153 = vmatmul.bf16.gmra.mxu2 %v5828_v33  ;;  %2556 = vmatmul.bf16.gmra.mxu0 %v5581_v46 }
  0xf8   : > { %6496 = vst [vmem:[#allocation34_spill] sm:$0xff] %v5841_v0  ;;  %2645 = vmatmul.bf16.gmra.mxu1 %v5844_v17  ;;  %3121 = vmatpush.bf16.msra.mxu0 %v4761_v1 }
  0xfa   : > { %2467 = vmatmul.bf16.gmra.mxu3 %v5517_v59  ;;  %v2016_v58 = vpop.f32.mrf.mxu2 }
  0xfc   : > { %v1978_v35 = vpop.f32.mrf.mxu0 }
  0xfd   : > { %v2105_v14 = vpop.f32.mrf.mxu3  ;;  %v2067_v51 = vpop.f32.mrf.mxu1 }
  0xfe   : > { %v5858_v36 = vadd.f32 %v2105_v14, %v2016_v58  ;;  %v5860_v54 = vadd.f32 %v2067_v51, %v1978_v35  ;;  %v4785_v58 = vld [vmem:[%s6444_s6 + $0x28] sm:$0xff]  ;;  %v5873_v35 = vsel %vm1688_vm3, %v1701_v31, %v1702_v8  ;;  %v1704_v31 = vrot.slane %v5634_v26, 1 }
  0xff   : > { %3434 = vmatpush.bf16.msra.mxu1 %v4785_v58  ;;  %v1705_v8 = vrot.slane %v5649_v62, 1  ;;  %v4752_v62 = vld [vmem:[%s6441_s3 + $0x1e0] sm:$0xff] }
 0x100   : > { %6497 = vst [vmem:[#allocation35_spill] sm:$0xff] %v5858_v36  ;;  %3033 = vmatpush.bf16.msra.mxu3 %v4752_v62 }
 0x102   : > { %v2018_v2 = vpop.f32.mrf.mxu2 }
 0x104   : > { %v1981_v19 = vpop.f32.mrf.mxu0 }
 0x105   : > { %v2107_v23 = vpop.f32.mrf.mxu3  ;;  %v2070_v14 = vpop.f32.mrf.mxu1 }
 0x106   : > { %v5867_v20 = vadd.f32 %v2107_v23, %v2018_v2  ;;  %v5875_v51 = vadd.f32 %v2070_v14, %v1981_v19 }
 0x107   : > { %2158 = vmatmul.bf16.gmra.mxu2 %v5844_v17  ;;  %2561 = vmatmul.bf16.gmra.mxu0 %v5641_v25 }
 0x108   : > { %6498 = vst [vmem:[#allocation36_spill] sm:$0xff] %v5867_v20  ;;  %2650 = vmatmul.bf16.gmra.mxu1 %v5873_v35 }
 0x10a   : > { %2472 = vmatmul.bf16.gmra.mxu3 %v5576_v42  ;;  %v2021_v11 = vpop.f32.mrf.mxu2  ;;  %v5890_v42 = vsel %vm1688_vm3, %v1704_v31, %v1705_v8  ;;  %v4760_v8 = vld [vmem:[%s6441_s3 + $0x220] sm:$0xff] }
 0x10b   : > { %6501 = vst [vmem:[#allocation39_spill] sm:$0xff] %v5890_v42  ;;  %3122 = vmatpush.bf16.msra.mxu0 %v4760_v8 }
 0x10c   : > { %v1983_v2 = vpop.f32.mrf.mxu0 }
 0x10d   : > { %v2110_v23 = vpop.f32.mrf.mxu3  ;;  %v2072_v30 = vpop.f32.mrf.mxu1 }
 0x10e   : > { %v5881_v1 = vadd.f32 %v2110_v23, %v2021_v11  ;;  %v5883_v20 = vadd.f32 %v2072_v30, %v1983_v2  ;;  %v4744_v30 = vld [vmem:[%s6441_s3 + $0x1a0] sm:$0xff] }
 0x10f   : > { %2944 = vmatpush.bf16.msra.mxu2 %v4744_v30 }
 0x110   : > { %6499 = vst [vmem:[#allocation37_spill] sm:$0xff] %v5881_v1 }
 0x112   : > { %v2023_v19 = vpop.f32.mrf.mxu2 }
 0x114   : > { %v1986_v36 = vpop.f32.mrf.mxu0 }
 0x115   : > { %v2112_v58 = vpop.f32.mrf.mxu3  ;;  %v2075_v25 = vpop.f32.mrf.mxu1 }
 0x116   : > { %v5887_v14 = vadd.f32 %v2112_v58, %v2023_v19  ;;  %v5892_v0 = vadd.f32 %v2075_v25, %v1986_v36  ;;  %v1707_v19 = vrot.slane %v5695_v45, 1  ;;  %v1708_v58 = vrot.slane %v5722_v4, 1 }
 0x117   : > { %2163 = vmatmul.bf16.gmra.mxu2 %v5873_v35  ;;  %2566 = vmatmul.bf16.gmra.mxu0 %v5693_v28 }
 0x118   : > { %6500 = vst [vmem:[#allocation38_spill] sm:$0xff] %v5887_v14  ;;  %2655 = vmatmul.bf16.gmra.mxu1 %v5890_v42 }
 0x11a   : > { %2477 = vmatmul.bf16.gmra.mxu3 %v5634_v26  ;;  %v2026_v11 = vpop.f32.mrf.mxu2 }
 0x11c   : > { %v1988_v23 = vpop.f32.mrf.mxu0 }
 0x11d   : > { %v2115_v25 = vpop.f32.mrf.mxu3  ;;  %v2077_v2 = vpop.f32.mrf.mxu1 }
 0x11e   : > { %v5904_v36 = vadd.f32 %v2115_v25, %v2026_v11  ;;  %v5906_v31 = vadd.f32 %v2077_v2, %v1988_v23  ;;  %v4784_v11 = vld [vmem:[%s6444_s6 + $0x20] sm:$0xff]  ;;  %v5919_v23 = vsel %vm1688_vm3, %v1707_v19, %v1708_v58  ;;  %v1710_v19 = vrot.slane %v5754_v6, 1 }
 0x11f   : > { %3435 = vmatpush.bf16.msra.mxu1 %v4784_v11  ;;  %v1711_v58 = vrot.slane %v5772_v44, 1  ;;  %v4743_v44 = vld [vmem:[%s6441_s3 + $0x198] sm:$0xff] }
 0x120   : > { %6502 = vst [vmem:[#allocation40_spill] sm:$0xff] %v5904_v36  ;;  %2945 = vmatpush.bf16.msra.mxu2 %v4743_v44 }
 0x121   : > { %v5936_v28 = vsel %vm1688_vm3, %v1710_v19, %v1711_v58  ;;  %v4759_v58 = vld [vmem:[%s6441_s3 + $0x218] sm:$0xff] }
 0x122   : > { %v2028_v14 = vpop.f32.mrf.mxu2  ;;  %6506 = vst [vmem:[#allocation44_spill] sm:$0xff] %v5936_v28  ;;  %3123 = vmatpush.bf16.msra.mxu0 %v4759_v58 }
 0x124   : > { %v1991_v62 = vpop.f32.mrf.mxu0 }
 0x125   : > { %v2117_v1 = vpop.f32.mrf.mxu3  ;;  %v2080_v25 = vpop.f32.mrf.mxu1 }
 0x126   : > { %v5913_v30 = vadd.f32 %v2117_v1, %v2028_v14  ;;  %v5921_v2 = vadd.f32 %v2080_v25, %v1991_v62 }
 0x127   : > { %2168 = vmatmul.bf16.gmra.mxu2 %v5890_v42  ;;  %2571 = vmatmul.bf16.gmra.mxu0 %v5752_v9 }
 0x128   : > { %6503 = vst [vmem:[#allocation41_spill] sm:$0xff] %v5913_v30  ;;  %2660 = vmatmul.bf16.gmra.mxu1 %v5919_v23 }
 0x12a   : > { %2482 = vmatmul.bf16.gmra.mxu3 %v5695_v45  ;;  %v2031_v4 = vpop.f32.mrf.mxu2 }
 0x12c   : > { %v1993_v8 = vpop.f32.mrf.mxu0 }
 0x12d   : > { %v2120_v1 = vpop.f32.mrf.mxu3  ;;  %v2082_v30 = vpop.f32.mrf.mxu1 }
 0x12e   : > { %v5927_v14 = vadd.f32 %v2120_v1, %v2031_v4  ;;  %v5929_v36 = vadd.f32 %v2082_v30, %v1993_v8  ;;  %v4751_v30 = vld [vmem:[%s6441_s3 + $0x1d8] sm:$0xff] }
 0x12f   : > { %3034 = vmatpush.bf16.msra.mxu3 %v4751_v30 }
 0x130   : > { %6504 = vst [vmem:[#allocation42_spill] sm:$0xff] %v5927_v14 }
 0x132   : > { %v2033_v62 = vpop.f32.mrf.mxu2 }
 0x134   : > { %v1996_v9 = vpop.f32.mrf.mxu0 }
 0x135   : > { %v2122_v11 = vpop.f32.mrf.mxu3  ;;  %v2085_v45 = vpop.f32.mrf.mxu1 }
 0x136   : > { %v5933_v25 = vadd.f32 %v2122_v11, %v2033_v62  ;;  %v5938_v42 = vadd.f32 %v2085_v45, %v1996_v9  ;;  %v1713_v62 = vrot.slane %v5345_v34, 1  ;;  %v1714_v11 = vrot.slane %v5353_v48, 1  ;;  %v4783_v48 = vld [vmem:[%s6444_s6 + $0x18] sm:$0xff] }
 0x137   : > { %2173 = vmatmul.bf16.gmra.mxu2 %v5919_v23  ;;  %2576 = vmatmul.bf16.gmra.mxu0 %v5788_v60 }
 0x138   : > { %6505 = vst [vmem:[#allocation43_spill] sm:$0xff] %v5933_v25  ;;  %2665 = vmatmul.bf16.gmra.mxu1 %v5936_v28 }
 0x139   : > { %3436 = vmatpush.bf16.msra.mxu1 %v4783_v48 }
 0x13a   : > { %2487 = vmatmul.bf16.gmra.mxu3 %v5754_v6  ;;  %v2036_v4 = vpop.f32.mrf.mxu2 }
 0x13c   : > { %v1998_v1 = vpop.f32.mrf.mxu0 }
 0x13d   : > { %v2125_v45 = vpop.f32.mrf.mxu3  ;;  %v2087_v8 = vpop.f32.mrf.mxu1 }
 0x13e   : > { %v5950_v9 = vadd.f32 %v2125_v45, %v2036_v4  ;;  %v5952_v19 = vadd.f32 %v2087_v8, %v1998_v1  ;;  %v5962_v45 = vsel %vm1688_vm3, %v1713_v62, %v1714_v11 }
 0x140   : > { %6507 = vst [vmem:[#allocation45_spill] sm:$0xff] %v5950_v9 }
 0x142   : > { %v2038_v25 = vpop.f32.mrf.mxu2 }
 0x144   : > { %v2001_v30 = vpop.f32.mrf.mxu0 }
 0x145   : > { %v2127_v14 = vpop.f32.mrf.mxu3  ;;  %v2090_v4 = vpop.f32.mrf.mxu1 }
 0x146   : > { %v5959_v44 = vadd.f32 %v2127_v14, %v2038_v25  ;;  %v5964_v1 = vadd.f32 %v2090_v4, %v2001_v30  ;;  %v1716_v30 = vrot.slane %v5388_v13, 1  ;;  %v1717_v4 = vrot.slane %v5425_v43, 1  ;;  %v4742_v43 = vld [vmem:[%s6441_s3 + $0x190] sm:$0xff] }
 0x147   : > { %2178 = vmatmul.bf16.gmra.mxu2 %v5936_v28  ;;  %2581 = vmatmul.bf16.gmra.mxu0 %v5397_v21 }
 0x148   : > { %6508 = vst [vmem:[#allocation46_spill] sm:$0xff] %v5959_v44  ;;  %2670 = vmatmul.bf16.gmra.mxu1 %v5962_v45  ;;  %v5982_v28 = vsel %vm1688_vm3, %v1716_v30, %v1717_v4  ;;  %2946 = vmatpush.bf16.msra.mxu2 %v4742_v43  ;;  %v1720_v43 = vrot.slane %v5486_v3, 1 }
 0x14a   : > { %2492 = vmatmul.bf16.gmra.mxu3 %v5345_v34  ;;  %v2041_v14 = vpop.f32.mrf.mxu2 }
 0x14c   : > { %v2003_v58 = vpop.f32.mrf.mxu0 }
 0x14d   : > { %v2130_v25 = vpop.f32.mrf.mxu3  ;;  %v2092_v62 = vpop.f32.mrf.mxu1 }
 0x14e   : > { %v5973_v8 = vadd.f32 %v2130_v25, %v2041_v14  ;;  %v5975_v11 = vadd.f32 %v2092_v62, %v2003_v58 }
 0x150   : > { %6509 = vst [vmem:[#allocation47_spill] sm:$0xff] %v5973_v8 }
 0x152   : > { %v2043_v44 = vpop.f32.mrf.mxu2 }
 0x154   : > { %v2547_v34 = vpop.f32.mrf.mxu0 }
 0x155   : > { %v2132_v9 = vpop.f32.mrf.mxu3  ;;  %v2636_v60 = vpop.f32.mrf.mxu1 }
 0x156   : > { %v5979_v21 = vadd.f32 %v2132_v9, %v2043_v44  ;;  %v4750_v9 = vld [vmem:[%s6441_s3 + $0x1d0] sm:$0xff]  ;;  %v5997_v44 = vld [vmem:[%s6442_s4] ss:$0 sm:$0xff] }
 0x157   : > { %2183 = vmatmul.bf16.gmra.mxu2 %v5962_v45  ;;  %2586 = vmatmul.bf16.gmra.mxu0 %v5478_v57  ;;  %v4758_v57 = vld [vmem:[%s6441_s3 + $0x210] sm:$0xff] }
 0x158   : > { %6510 = vst [vmem:[#allocation48_spill] sm:$0xff] %v5979_v21  ;;  %2675 = vmatmul.bf16.gmra.mxu1 %v5982_v28  ;;  %3035 = vmatpush.bf16.msra.mxu3 %v4750_v9 }
 0x159   : > { %3124 = vmatpush.bf16.msra.mxu0 %v4758_v57  ;;  %v4782_v57 = vld [vmem:[%s6444_s6 + $0x10] sm:$0xff] }
 0x15a   : > { %2497 = vmatmul.bf16.gmra.mxu3 %v5388_v13  ;;  %v2144_v48 = vpop.f32.mrf.mxu2  ;;  %v1719_v13 = vrot.slane %v5463_v39, 1  ;;  %3437 = vmatpush.bf16.msra.mxu1 %v4782_v57 }
 0x15b   : > { %v2145_v14 = vadd.f32 %v2144_v48, %v5801_v41 }
 0x15c   : > { %v2549_v62 = vpop.f32.mrf.mxu0 }
 0x15d   : > { %v2458_v25 = vpop.f32.mrf.mxu3  ;;  %v2224_v30 = vadd.f32 %v5997_v44, %v2145_v14  ;;  %v2638_v4 = vpop.f32.mrf.mxu1 }
 0x15e   : > { %v2548_v58 = vadd.f32 %v2547_v34, %v2458_v25 }
 0x160   : > { %v2637_v21 = vadd.f32 %v2636_v60, %v2548_v58 }
 0x162   : > { %v6001_v8 = vadd.f32 %v2637_v21, %v2224_v30  ;;  %v2146_v9 = vpop.f32.mrf.mxu2  ;;  %v6011_v21 = vsel %vm1688_vm3, %v1719_v13, %v1720_v43 }
 0x163   : > { %v2147_v41 = vadd.f32 %v2146_v9, %v5815_v52 }
 0x164   : > { %6511 = vst [vmem:[#allocation49_spill] sm:$0xff] %v6001_v8  ;;  %v2552_v25 = vpop.f32.mrf.mxu0 }
 0x165   : > { %v2460_v34 = vpop.f32.mrf.mxu3  ;;  %v2225_v14 = vadd.f32 %v5997_v44, %v2147_v41  ;;  %v2641_v60 = vpop.f32.mrf.mxu1 }
 0x166   : > { %v2550_v48 = vadd.f32 %v2549_v62, %v2460_v34 }
 0x167   : > { %2188 = vmatmul.bf16.gmra.mxu2 %v5982_v28  ;;  %2591 = vmatmul.bf16.gmra.mxu0 %v5530_v16 }
 0x168   : > { %v2639_v58 = vadd.f32 %v2638_v4, %v2550_v48  ;;  %2680 = vmatmul.bf16.gmra.mxu1 %v6011_v21  ;;  %v1722_v48 = vrot.slane %v5520_v63, 1 }
 0x16a   : > { %v6015_v30 = vadd.f32 %v2639_v58, %v2225_v14  ;;  %2502 = vmatmul.bf16.gmra.mxu3 %v5463_v39  ;;  %v2149_v3 = vpop.f32.mrf.mxu2  ;;  %v1723_v14 = vrot.slane %v5539_v50, 1  ;;  %v4741_v50 = vld [vmem:[%s6441_s3 + $0x188] sm:$0xff] }
 0x16b   : > { %v2150_v13 = vadd.f32 %v2149_v3, %v5830_v38  ;;  %2947 = vmatpush.bf16.msra.mxu2 %v4741_v50 }
 0x16c   : > { %6512 = vst [vmem:[#allocation50_spill] sm:$0xff] %v6015_v30  ;;  %v2554_v4 = vpop.f32.mrf.mxu0  ;;  %v6031_v3 = vsel %vm1688_vm3, %v1722_v48, %v1723_v14  ;;  %v4757_v14 = vld [vmem:[%s6441_s3 + $0x208] sm:$0xff] }
 0x16d   : > { %v2463_v52 = vpop.f32.mrf.mxu3  ;;  %v2226_v43 = vadd.f32 %v5997_v44, %v2150_v13  ;;  %v2643_v9 = vpop.f32.mrf.mxu1  ;;  %3125 = vmatpush.bf16.msra.mxu0 %v4757_v14 }
 0x16e   : > { %v2553_v62 = vadd.f32 %v2552_v25, %v2463_v52 }
 0x170   : > { %v2642_v41 = vadd.f32 %v2641_v60, %v2553_v62 }
 0x172   : > { %v6024_v34 = vadd.f32 %v2642_v41, %v2226_v43  ;;  %v2151_v58 = vpop.f32.mrf.mxu2 }
 0x173   : > { %v2152_v30 = vadd.f32 %v2151_v58, %v5837_v61  ;;  %v4749_v61 = vld [vmem:[%s6441_s3 + $0x1c8] sm:$0xff]  ;;  %v1725_v58 = vrot.slane %v5586_v55, 1 }
 0x174   : > { %v2557_v16 = vpop.f32.mrf.mxu0  ;;  %3036 = vmatpush.bf16.msra.mxu3 %v4749_v61 }
 0x175   : > { %v2465_v8 = vpop.f32.mrf.mxu3  ;;  %v2227_v38 = vadd.f32 %v5997_v44, %v2152_v30  ;;  %v2646_v25 = vpop.f32.mrf.mxu1 }
 0x176   : > { %v2555_v57 = vadd.f32 %v2554_v4, %v2465_v8 }
 0x177   : > { %2193 = vmatmul.bf16.gmra.mxu2 %v6011_v21  ;;  %2596 = vmatmul.bf16.gmra.mxu0 %v5584_v53 }
 0x178   : > { %v2644_v13 = vadd.f32 %v2643_v9, %v2555_v57  ;;  %2685 = vmatmul.bf16.gmra.mxu1 %v6031_v3  ;;  %v6514_v57 = vld [vmem:[#allocation26_spill] sm:$0xff] }
 0x17a   : > { %v6035_v60 = vadd.f32 %v2644_v13, %v2227_v38  ;;  %2507 = vmatmul.bf16.gmra.mxu3 %v5520_v63  ;;  %v2154_v8 = vpop.f32.mrf.mxu2  ;;  %v1726_v38 = vrot.slane %v6514_v57, 1 }
 0x17b   : > { %v2155_v30 = vadd.f32 %v2154_v8, %v5846_v15 }
 0x17c   : > { %v2559_v4 = vpop.f32.mrf.mxu0 }
 0x17d   : > { %v2468_v52 = vpop.f32.mrf.mxu3  ;;  %v2228_v43 = vadd.f32 %v5997_v44, %v2155_v30  ;;  %v2648_v9 = vpop.f32.mrf.mxu1  ;;  %v6057_v30 = vsel %vm1688_vm3, %v1725_v58, %v1726_v38 }
 0x17e   : > { %v2558_v62 = vadd.f32 %v2557_v16, %v2468_v52 }
 0x180   : > { %v2647_v41 = vadd.f32 %v2646_v25, %v2558_v62  ;;  %v6515_v62 = vld [vmem:[#allocation28_spill] sm:$0xff] }
 0x182   : > { %v6047_v48 = vadd.f32 %v2647_v41, %v2228_v43  ;;  %v2156_v13 = vpop.f32.mrf.mxu2 }
 0x183   : > { %v2157_v15 = vadd.f32 %v2156_v13, %v5860_v54  ;;  %v4781_v54 = vld [vmem:[%s6444_s6 + $0x8] sm:$0xff] }
 0x184   : > { %6513 = vst [vmem:[#allocation51_spill] sm:$0xff] %v6047_v48  ;;  %v2562_v61 = vpop.f32.mrf.mxu0  ;;  %3438 = vmatpush.bf16.msra.mxu1 %v4781_v54 }
 0x185   : > { %v2470_v16 = vpop.f32.mrf.mxu3  ;;  %v2229_v8 = vadd.f32 %v5997_v44, %v2157_v15  ;;  %v2651_v25 = vpop.f32.mrf.mxu1 }
 0x186   : > { %v2560_v50 = vadd.f32 %v2559_v4, %v2470_v16  ;;  %v1728_v16 = vrot.slane %v5637_v24, 1 }
 0x187   : > { %2198 = vmatmul.bf16.gmra.mxu2 %v6031_v3  ;;  %2601 = vmatmul.bf16.gmra.mxu0 %v6515_v62 }
 0x188   : > { %v2649_v52 = vadd.f32 %v2648_v9, %v2560_v50  ;;  %2690 = vmatmul.bf16.gmra.mxu1 %v6057_v30  ;;  %v6517_v50 = vld [vmem:[#allocation29_spill] sm:$0xff] }
 0x18a   : > { %v6061_v43 = vadd.f32 %v2649_v52, %v2229_v8  ;;  %2512 = vmatmul.bf16.gmra.mxu3 %v5586_v55  ;;  %v2159_v4 = vpop.f32.mrf.mxu2  ;;  %v1729_v8 = vrot.slane %v6517_v50, 1 }
 0x18b   : > { %v2160_v41 = vadd.f32 %v2159_v4, %v5875_v51 }
 0x18c   : > { %6516 = vst [vmem:[#allocation26_spill] sm:$0xff] %v6061_v43  ;;  %v2564_v58 = vpop.f32.mrf.mxu0  ;;  %v6077_v4 = vsel %vm1688_vm3, %v1728_v16, %v1729_v8 }
 0x18d   : > { %v2473_v14 = vpop.f32.mrf.mxu3  ;;  %v2230_v57 = vadd.f32 %v5997_v44, %v2160_v41  ;;  %v2653_v38 = vpop.f32.mrf.mxu1 }
 0x18e   : > { %v2563_v9 = vadd.f32 %v2562_v61, %v2473_v14 }
 0x190   : > { %v2652_v13 = vadd.f32 %v2651_v25, %v2563_v9  ;;  %v4902_v25 = vld [vmem:[#allocation2 + $0xc0] sm:$0xff]  }
 0x191   : > { %v4879_v50 = vunpack.c.h.bf16 %v4902_v25 }
 0x192   : > { %v6070_v15 = vadd.f32 %v2652_v13, %v2230_v57  ;;  %v2161_v52 = vpop.f32.mrf.mxu2 }
 0x193   : > { %v2162_v43 = vadd.f32 %v2161_v52, %v5883_v20  ;;  %v4740_v20 = vld [vmem:[%s6441_s3 + $0x180] sm:$0xff] }
 0x194   : > { %v2567_v62 = vpop.f32.mrf.mxu0  ;;  %2948 = vmatpush.bf16.msra.mxu2 %v4740_v20  ;;  %v4756_v20 = vld [vmem:[%s6441_s3 + $0x200] sm:$0xff] }
 0x195   : > { %v2475_v48 = vpop.f32.mrf.mxu3  ;;  %v2231_v51 = vadd.f32 %v5997_v44, %v2162_v43  ;;  %v2656_v61 = vpop.f32.mrf.mxu1  ;;  %v4878_v43 = vunpack.c.l.bf16 %v4902_v25  ;;  %3126 = vmatpush.bf16.msra.mxu0 %v4756_v20 }
 0x196   : > { %v2565_v54 = vadd.f32 %v2564_v58, %v2475_v48  ;;  %v4748_v48 = vld [vmem:[%s6441_s3 + $0x1c0] sm:$0xff]  ;;  %v609_v58 = vld [vmem:[#allocation2 + $0xc8] sm:$0xf] }
 0x197   : > { %2203 = vmatmul.bf16.gmra.mxu2 %v6057_v30  ;;  %2606 = vmatmul.bf16.gmra.mxu0 %v5712_v29 }
 0x198   : > { %v2654_v41 = vadd.f32 %v2653_v38, %v2565_v54  ;;  %2695 = vmatmul.bf16.gmra.mxu1 %v6077_v4  ;;  %3037 = vmatpush.bf16.msra.mxu3 %v4748_v48  ;;  %v719_v54 = vmul.f32 %v5700_v49, %v4878_v43  ;;  %v720_v48 = vmul.f32 %v5700_v49, %v4879_v50 }
 0x19a   : > { %v6081_v14 = vadd.f32 %v2654_v41, %v2231_v51  ;;  %2517 = vmatmul.bf16.gmra.mxu3 %v5637_v24  ;;  %v2164_v9 = vpop.f32.mrf.mxu2  ;;  %v663_v51 = vunpack.c.l.bf16 %v609_v58  ;;  %v777_v25 = vadd.f32 %v5708_v32, %v719_v54 }
 0x19b   : > { %v2165_v57 = vadd.f32 %v2164_v9, %v5892_v0  ;;  %v1731_v0 = vrot.slane %v5703_v22, 1 }
 0x19c   : > { %6518 = vst [vmem:[#allocation29_spill] sm:$0xff] %v6081_v14  ;;  %v2569_v16 = vpop.f32.mrf.mxu0  ;;  %v721_v9 = vmul.f32 %v5700_v49, %v663_v51 }
 0x19d   : > { %v2478_v38 = vpop.f32.mrf.mxu3  ;;  %v2232_v8 = vadd.f32 %v5997_v44, %v2165_v57  ;;  %v2658_v52 = vpop.f32.mrf.mxu1 }
 0x19e   : > { %v2568_v13 = vadd.f32 %v2567_v62, %v2478_v38  ;;  %v1732_v62 = vrot.slane %v5736_v47, 1  ;;  %v831_v47 = vmax.f32 %v777_v25, 0.0  ;;  %v779_v54 = vadd.f32 %v5708_v32, %v721_v9 }
 0x1a0   : > { %v2657_v41 = vadd.f32 %v2656_v61, %v2568_v13  ;;  %v778_v13 = vadd.f32 %v5708_v32, %v720_v48  ;;  %v1231_v20 = vsel %vm913_vm0, %v831_v47, 0.0  ;;  %v833_v32 = vmax.f32 %v779_v54, 0.0 }
 0x1a1   : > { %v1285_v25 = vpack.c.bf16 %v1231_v20, %v1231_v20 }
 0x1a2   : > { %v6094_v14 = vadd.f32 %v2657_v41, %v2232_v8  ;;  %v2166_v57 = vpop.f32.mrf.mxu2  ;;  %v6108_v41 = vsel %vm1688_vm3, %v1731_v0, %v1732_v62 }
 0x1a3   : > { %v2167_v61 = vadd.f32 %v2166_v57, %v5906_v31  ;;  %v4780_v31 = vld [vmem:[%s6444_s6] sm:$0xff]  ;;  %v1359_v47 = vunpack.c.l.b16 %v1285_v25 }
 0x1a4   : > { %6519 = vst [vmem:[#allocation52_spill] sm:$0xff] %v6094_v14  ;;  %v2572_v38 = vpop.f32.mrf.mxu0  ;;  %3439 = vmatpush.bf16.msra.mxu1 %v4780_v31  ;;  %v1734_v31 = vrot.slane %v5759_v37, 1 }
 0x1a5   : > { %v2480_v43 = vpop.f32.mrf.mxu3  ;;  %v2233_v8 = vadd.f32 %v5997_v44, %v2167_v61  ;;  %v2661_v50 = vpop.f32.mrf.mxu1 }
 0x1a6   : > { %v2570_v58 = vadd.f32 %v2569_v16, %v2480_v43  ;;  %v832_v16 = vmax.f32 %v778_v13, 0.0 }
 0x1a7   : > { %2208 = vmatmul.bf16.gmra.mxu2 %v6077_v4  ;;  %2611 = vmatmul.bf16.gmra.mxu0 %v5757_v18 }
 0x1a8   : > { %v2659_v14 = vadd.f32 %v2658_v52, %v2570_v58  ;;  %2700 = vmatmul.bf16.gmra.mxu1 %v6108_v41  ;;  %v1286_v9 = vpack.c.bf16 %v832_v16, %v832_v16  ;;  %v1233_v58 = vsel %vm1014_vm1, %v833_v32, 0.0 }
 0x1a9   : > { %v1287_v51 = vpack.c.bf16 %v1233_v58, %v1233_v58 }
 0x1aa   : > { %v6113_v49 = vadd.f32 %v2659_v14, %v2233_v8  ;;  %2522 = vmatmul.bf16.gmra.mxu3 %v5703_v22  ;;  %v2169_v52 = vpop.f32.mrf.mxu2  ;;  %v1360_v54 = vunpack.c.l.b16 %v1286_v9 }
 0x1ab   : > { %v2170_v48 = vadd.f32 %v2169_v52, %v5921_v2  ;;  %v1735_v2 = vrot.slane %v5774_v7, 1  ;;  %v1433_v43 = vunpack.c.l.b16 %v1287_v51 }
 0x1ac   : > { %v2574_v62 = vpop.f32.mrf.mxu0 }
 0x1ad   : > { %v2483_v0 = vpop.f32.mrf.mxu3  ;;  %v2234_v57 = vadd.f32 %v5997_v44, %v2170_v48  ;;  %v2663_v61 = vpop.f32.mrf.mxu1 }
 0x1ae   : > { %v2573_v14 = vadd.f32 %v2572_v38, %v2483_v0  ;;  %v6131_v0 = vpack.c.b16 %v1360_v54, %v1359_v47 }
 0x1b0   : > { %v2662_v13 = vadd.f32 %v2661_v50, %v2573_v14  ;;  %v6135_v14 = vsel %vm1688_vm3, %v1734_v31, %v1735_v2 }
 0x1b2   : > { %v6126_v8 = vadd.f32 %v2662_v13, %v2234_v57  ;;  %v2171_v38 = vpop.f32.mrf.mxu2 }
 0x1b3   : > { %v2172_v20 = vadd.f32 %v2171_v38, %v5929_v36  ;;  %v1451_v36 = vpack.c.b16 %v1433_v43, %v1433_v43  ;;  %v1737_v43 = vrot.slane %v6131_v0, 1 }
 0x1b4   : > { %v2577_v48 = vpop.f32.mrf.mxu0 }
 0x1b5   : > { %v2485_v16 = vpop.f32.mrf.mxu3  ;;  %v2235_v50 = vadd.f32 %v5997_v44, %v2172_v20  ;;  %v2666_v32 = vpop.f32.mrf.mxu1  ;;  %v1654_v51 = vshll.u32 %v1451_v36, 16 }
 0x1b6   : > { %v2575_v52 = vadd.f32 %v2574_v62, %v2485_v16  ;;  %v1649_v62 = vshll.u32 %v6131_v0, 16 }
 0x1b7   : > { %2213 = vmatmul.bf16.gmra.mxu2 %v6108_v41  ;;  %2616 = vmatmul.bf16.gmra.mxu0 %v5791_v12 }
 0x1b8   : > { %v2664_v25 = vadd.f32 %v2663_v61, %v2575_v52  ;;  %2705 = vmatmul.bf16.gmra.mxu1 %v6135_v14  ;;  %v1647_v61 = vshrl.u32 %v6131_v0, 16  ;;  %v1651_v54 = vrot.slane %v1649_v62, 1  ;;  %v1656_v52 = vrot.slane %v1654_v51, 1 }
 0x1ba   : > { %v6139_v7 = vadd.f32 %v2664_v25, %v2235_v50  ;;  %2527 = vmatmul.bf16.gmra.mxu3 %v5759_v37  ;;  %v2174_v9 = vpop.f32.mrf.mxu2  ;;  %v1652_v16 = vor.u32 %v1651_v54, %v1647_v61  ;;  %v1738_v50 = vrot.slane %v1451_v36, 1 }
 0x1bb   : > { %v2175_v57 = vadd.f32 %v2174_v9, %v5938_v42 }
 0x1bc   : > { %6522 = vst [vmem:[#allocation17_spill] sm:$0xff] %v6139_v7  ;;  %v2579_v47 = vpop.f32.mrf.mxu0  ;;  %v6152_v62 = vsel %vm1453_vm2, %v1652_v16, %v1656_v52 }
 0x1bd   : > { %v2488_v58 = vpop.f32.mrf.mxu3  ;;  %v2236_v31 = vadd.f32 %v5997_v44, %v2175_v57  ;;  %v2668_v2 = vpop.f32.mrf.mxu1 }
 0x1be   : > { %v2578_v13 = vadd.f32 %v2577_v48, %v2488_v58 }
 0x1c0   : > { %v2667_v38 = vadd.f32 %v2666_v32, %v2578_v13  ;;  %v6156_v32 = vsel %vm1688_vm3, %v1737_v43, %v1738_v50 }
 0x1c2   : > { %v6147_v20 = vadd.f32 %v2667_v38, %v2236_v31  ;;  %v2176_v25 = vpop.f32.mrf.mxu2 }
 0x1c3   : > { %v2177_v42 = vadd.f32 %v2176_v25, %v5952_v19 }
 0x1c4   : > { %v2582_v58 = vpop.f32.mrf.mxu0 }
 0x1c5   : > { %v2490_v48 = vpop.f32.mrf.mxu3  ;;  %v2237_v57 = vadd.f32 %v5997_v44, %v2177_v42  ;;  %v2671_v7 = vpop.f32.mrf.mxu1 }
 0x1c6   : > { %v2580_v9 = vadd.f32 %v2579_v47, %v2490_v48  ;;  %v4764_v48 = vld [vmem:[%s5216_s15] sm:$0xff] }
 0x1c7   : > { %2218 = vmatmul.bf16.gmra.mxu2 %v6135_v14  ;;  %2621 = vmatmul.bf16.gmra.mxu0 %v6152_v62 }
 0x1c8   : > { %v2669_v13 = vadd.f32 %v2668_v2, %v2580_v9  ;;  %2710 = vmatmul.bf16.gmra.mxu1 %v6156_v32 }
 0x1ca   : > { %v6160_v36 = vadd.f32 %v2669_v13, %v2237_v57  ;;  %2532 = vmatmul.bf16.gmra.mxu3 %v6131_v0  ;;  %v2179_v19 = vpop.f32.mrf.mxu2 }
 0x1cb   : > { %v2180_v47 = vadd.f32 %v2179_v19, %v5964_v1 }
 0x1cc   : > { %v2584_v51 = vpop.f32.mrf.mxu0 }
 0x1cd   : > { %v2493_v61 = vpop.f32.mrf.mxu3  ;;  %v2238_v31 = vadd.f32 %v5997_v44, %v2180_v47  ;;  %v2673_v2 = vpop.f32.mrf.mxu1 }
 0x1ce   : > { %v2583_v54 = vadd.f32 %v2582_v58, %v2493_v61 }
 0x1d0   : > { %v2672_v38 = vadd.f32 %v2671_v7, %v2583_v54 }
 0x1d2   : > { %v6166_v16 = vadd.f32 %v2672_v38, %v2238_v31  ;;  %v2181_v52 = vpop.f32.mrf.mxu2 }
 0x1d3   : > { %v2182_v43 = vadd.f32 %v2181_v52, %v5975_v11  ;;  %v4765_v52 = vld [vmem:[%s5216_s15 + $0x8] sm:$0xff] }
 0x1d4   : > { %v2587_v42 = vpop.f32.mrf.mxu0 }
 0x1d5   : > { %v2495_v50 = vpop.f32.mrf.mxu3  ;;  %v2239_v9 = vadd.f32 %v5997_v44, %v2182_v43  ;;  %v2676_v57 = vpop.f32.mrf.mxu1 }
 0x1d6   : > { %v2585_v25 = vadd.f32 %v2584_v51, %v2495_v50 }
 0x1d7   : > { %2949 = vmatmul.bf16.vlgmr.msra.gmra.mxu2 %v5459_v27  ;;  %3127 = vmatmul.bf16.vlgmr.msra.gmra.mxu0 %v5828_v33 }
 0x1d8   : > { %v2674_v1 = vadd.f32 %v2673_v2, %v2585_v25  ;;  %3440 = vmatmul.bf16.vlgmr.msra.gmra.mxu1 %v4764_v48 }
 0x1da   : > { %v6173_v58 = vadd.f32 %v2674_v1, %v2239_v9  ;;  %3038 = vmatmul.bf16.vlgmr.msra.gmra.mxu3 %v5525_v5  ;;  %v2184_v7 = vpop.f32.mrf.mxu2 }
 0x1db   : > { %v2185_v11 = vadd.f32 %v2184_v7, %v5813_v56 }
 0x1dc   : > { %v2589_v47 = vpop.f32.mrf.mxu0 }
 0x1dd   : > { %v2498_v13 = vpop.f32.mrf.mxu3  ;;  %v2240_v61 = vadd.f32 %v5997_v44, %v2185_v11  ;;  %v2678_v54 = vpop.f32.mrf.mxu1 }
 0x1de   : > { %v2588_v19 = vadd.f32 %v2587_v42, %v2498_v13 }
 0x1e0   : > { %v2677_v51 = vadd.f32 %v2676_v57, %v2588_v19 }
 0x1e2   : > { %v6178_v31 = vadd.f32 %v2677_v51, %v2240_v61  ;;  %v2186_v27 = vpop.f32.mrf.mxu2 }
 0x1e3   : > { %v2187_v33 = vadd.f32 %v2186_v27, %v5822_v10 }
 0x1e4   : > { %v2592_v5 = vpop.f32.mrf.mxu0 }
 0x1e5   : > { %v2500_v2 = vpop.f32.mrf.mxu3  ;;  %v2241_v43 = vadd.f32 %v5997_v44, %v2187_v33  ;;  %v2681_v50 = vpop.f32.mrf.mxu1  ;;  %v6524_v33 = vld [vmem:[#allocation25_spill] sm:$0xff] }
 0x1e6   : > { %v2590_v38 = vadd.f32 %v2589_v47, %v2500_v2 }
 0x1e7   : > { %2954 = vmatmul.bf16.gmra.mxu2 %v5517_v59  ;;  %3132 = vmatmul.bf16.gmra.mxu0 %v5844_v17  ;;  %v6523_v17 = vld [vmem:[#allocation34_spill] sm:$0xff] }
 0x1e8   : > { %v2679_v56 = vadd.f32 %v2678_v54, %v2590_v38  ;;  %3445 = vmatmul.bf16.gmra.mxu1 %v4765_v52  ;;  %v4766_v54 = vld [vmem:[%s5216_s15 + $0x10] sm:$0xff] }
 0x1e9   : > { %v6525_v38 = vld [vmem:[#allocation27_spill] sm:$0xff] }
 0x1ea   : > { %v6185_v25 = vadd.f32 %v2679_v56, %v2241_v43  ;;  %3043 = vmatmul.bf16.gmra.mxu3 %v5581_v46  ;;  %v2189_v42 = vpop.f32.mrf.mxu2  ;;  %v6526_v52 = vld [vmem:[#allocation35_spill] sm:$0xff] }
 0x1eb   : > { %v2190_v10 = vadd.f32 %v2189_v42, %v5835_v40 }
 0x1ec   : > { %v2594_v57 = vpop.f32.mrf.mxu0 }
 0x1ed   : > { %v2503_v48 = vpop.f32.mrf.mxu3  ;;  %v2242_v1 = vadd.f32 %v5997_v44, %v2190_v10  ;;  %v2683_v7 = vpop.f32.mrf.mxu1 }
 0x1ee   : > { %v2593_v9 = vadd.f32 %v2592_v5, %v2503_v48 }
 0x1f0   : > { %v2682_v11 = vadd.f32 %v2681_v50, %v2593_v9 }
 0x1f2   : > { %v6190_v13 = vadd.f32 %v2682_v11, %v2242_v1  ;;  %v2191_v59 = vpop.f32.mrf.mxu2 }
 0x1f3   : > { %v2192_v19 = vadd.f32 %v2191_v59, %v6523_v17 }
 0x1f4   : > { %v2597_v46 = vpop.f32.mrf.mxu0 }
 0x1f5   : > { %v2505_v47 = vpop.f32.mrf.mxu3  ;;  %v2243_v51 = vadd.f32 %v5997_v44, %v2192_v19  ;;  %v2686_v27 = vpop.f32.mrf.mxu1  ;;  %v4767_v19 = vld [vmem:[%s5216_s15 + $0x18] sm:$0xff] }
 0x1f6   : > { %v2595_v61 = vadd.f32 %v2594_v57, %v2505_v47 }
 0x1f7   : > { %2959 = vmatmul.bf16.gmra.mxu2 %v6524_v33  ;;  %3137 = vmatmul.bf16.gmra.mxu0 %v5873_v35  ;;  %v6527_v35 = vld [vmem:[#allocation36_spill] sm:$0xff]  ;;  %v6530_v33 = vld [vmem:[#allocation37_spill] sm:$0xff] }
 0x1f8   : > { %v2684_v40 = vadd.f32 %v2683_v7, %v2595_v61  ;;  %3450 = vmatmul.bf16.gmra.mxu1 %v4766_v54 }
 0x1fa   : > { %v6197_v2 = vadd.f32 %v2684_v40, %v2243_v51  ;;  %3048 = vmatmul.bf16.gmra.mxu3 %v6525_v38  ;;  %v2194_v5 = vpop.f32.mrf.mxu2 }
 0x1fb   : > { %v2195_v43 = vadd.f32 %v2194_v5, %v6526_v52 }
 0x1fc   : > { %v2599_v42 = vpop.f32.mrf.mxu0 }
 0x1fd   : > { %v2508_v50 = vpop.f32.mrf.mxu3  ;;  %v2244_v10 = vadd.f32 %v5997_v44, %v2195_v43  ;;  %v2688_v48 = vpop.f32.mrf.mxu1 }
 0x1fe   : > { %v2598_v56 = vadd.f32 %v2597_v46, %v2508_v50  ;;  %v6528_v46 = vld [vmem:[#allocation39_spill] sm:$0xff] }
 0x200   : > { %v2687_v9 = vadd.f32 %v2686_v27, %v2598_v56  ;;  %v6529_v27 = vld [vmem:[#allocation30_spill] sm:$0xff] }
 0x202   : > { %v6202_v57 = vadd.f32 %v2687_v9, %v2244_v10  ;;  %v2196_v1 = vpop.f32.mrf.mxu2 }
 0x203   : > { %v2197_v7 = vadd.f32 %v2196_v1, %v6527_v35 }
 0x204   : > { %v2602_v17 = vpop.f32.mrf.mxu0 }
 0x205   : > { %v2510_v11 = vpop.f32.mrf.mxu3  ;;  %v2245_v47 = vadd.f32 %v5997_v44, %v2197_v7  ;;  %v2691_v61 = vpop.f32.mrf.mxu1 }
 0x206   : > { %v2600_v59 = vadd.f32 %v2599_v42, %v2510_v11  ;;  %v4768_v11 = vld [vmem:[%s5216_s15 + $0x20] sm:$0xff] }
 0x207   : > { %2964 = vmatmul.bf16.gmra.mxu2 %v5634_v26  ;;  %3142 = vmatmul.bf16.gmra.mxu0 %v6528_v46 }
 0x208   : > { %v2689_v54 = vadd.f32 %v2688_v48, %v2600_v59  ;;  %3455 = vmatmul.bf16.gmra.mxu1 %v4767_v19  ;;  %v6531_v48 = vld [vmem:[#allocation38_spill] sm:$0xff] }
 0x20a   : > { %v6209_v51 = vadd.f32 %v2689_v54, %v2245_v47  ;;  %3053 = vmatmul.bf16.gmra.mxu3 %v6529_v27  ;;  %v2199_v40 = vpop.f32.mrf.mxu2  ;;  %v6532_v54 = vld [vmem:[#allocation31_spill] sm:$0xff]  ;;  %v6534_v27 = vld [vmem:[#allocation40_spill] sm:$0xff] }
 0x20b   : > { %v2200_v38 = vadd.f32 %v2199_v40, %v6530_v33 }
 0x20c   : > { %v2604_v43 = vpop.f32.mrf.mxu0 }
 0x20d   : > { %v2513_v5 = vpop.f32.mrf.mxu3  ;;  %v2246_v50 = vadd.f32 %v5997_v44, %v2200_v38  ;;  %v2693_v56 = vpop.f32.mrf.mxu1 }
 0x20e   : > { %v2603_v52 = vadd.f32 %v2602_v17, %v2513_v5 }
 0x210   : > { %v2692_v42 = vadd.f32 %v2691_v61, %v2603_v52  ;;  %v6533_v61 = vld [vmem:[#allocation32_spill] sm:$0xff] }
 0x212   : > { %v6214_v10 = vadd.f32 %v2692_v42, %v2246_v50  ;;  %v2201_v26 = vpop.f32.mrf.mxu2 }
 0x213   : > { %v2202_v9 = vadd.f32 %v2201_v26, %v6531_v48 }
 0x214   : > { %v2607_v7 = vpop.f32.mrf.mxu0 }
 0x215   : > { %v2515_v1 = vpop.f32.mrf.mxu3  ;;  %v2247_v59 = vadd.f32 %v5997_v44, %v2202_v9  ;;  %v2696_v19 = vpop.f32.mrf.mxu1 }
 0x216   : > { %v2605_v35 = vadd.f32 %v2604_v43, %v2515_v1 }
 0x217   : > { %2969 = vmatmul.bf16.gmra.mxu2 %v6532_v54  ;;  %3147 = vmatmul.bf16.gmra.mxu0 %v5919_v23  ;;  %v6535_v23 = vld [vmem:[#allocation41_spill] sm:$0xff] }
 0x218   : > { %v2694_v47 = vadd.f32 %v2693_v56, %v2605_v35  ;;  %3460 = vmatmul.bf16.gmra.mxu1 %v4768_v11  ;;  %v4769_v35 = vld [vmem:[%s5216_s15 + $0x28] sm:$0xff] }
 0x21a   : > { %v6221_v17 = vadd.f32 %v2694_v47, %v2247_v59  ;;  %3058 = vmatmul.bf16.gmra.mxu3 %v6533_v61  ;;  %v2204_v46 = vpop.f32.mrf.mxu2 }
 0x21b   : > { %v2205_v40 = vadd.f32 %v2204_v46, %v6534_v27  ;;  %v6538_v46 = vld [vmem:[#allocation42_spill] sm:$0xff] }
 0x21c   : > { %v2609_v5 = vpop.f32.mrf.mxu0 }
 0x21d   : > { %v2518_v33 = vpop.f32.mrf.mxu3  ;;  %v2248_v52 = vadd.f32 %v5997_v44, %v2205_v40  ;;  %v2698_v43 = vpop.f32.mrf.mxu1 }
 0x21e   : > { %v2608_v38 = vadd.f32 %v2607_v7, %v2518_v33  ;;  %v6536_v7 = vld [vmem:[#allocation44_spill] sm:$0xff] }
 0x220   : > { %v2697_v50 = vadd.f32 %v2696_v19, %v2608_v38  ;;  %v6537_v19 = vld [vmem:[#allocation33_spill] sm:$0xff] }
 0x222   : > { %v6226_v56 = vadd.f32 %v2697_v50, %v2248_v52  ;;  %v2206_v42 = vpop.f32.mrf.mxu2 }
 0x223   : > { %v2207_v26 = vadd.f32 %v2206_v42, %v6535_v23  ;;  %v6539_v42 = vld [vmem:[#allocation43_spill] sm:$0xff] }
 0x224   : > { %v2612_v1 = vpop.f32.mrf.mxu0 }
 0x225   : > { %v2520_v48 = vpop.f32.mrf.mxu3  ;;  %v2249_v11 = vadd.f32 %v5997_v44, %v2207_v26  ;;  %v2701_v59 = vpop.f32.mrf.mxu1 }
 0x226   : > { %v2610_v9 = vadd.f32 %v2609_v5, %v2520_v48 }
 0x227   : > { %2974 = vmatmul.bf16.gmra.mxu2 %v5754_v6  ;;  %3152 = vmatmul.bf16.gmra.mxu0 %v6536_v7 }
 0x228   : > { %v2699_v47 = vadd.f32 %v2698_v43, %v2610_v9  ;;  %3465 = vmatmul.bf16.gmra.mxu1 %v4769_v35 }
 0x22a   : > { %v6233_v54 = vadd.f32 %v2699_v47, %v2249_v11  ;;  %3063 = vmatmul.bf16.gmra.mxu3 %v6537_v19  ;;  %v2209_v61 = vpop.f32.mrf.mxu2  ;;  %v4770_v11 = vld [vmem:[%s5216_s15 + $0x30] sm:$0xff] }
 0x22b   : > { %v2210_v27 = vadd.f32 %v2209_v61, %v6538_v46  ;;  %v6540_v19 = vld [vmem:[#allocation19_spill] sm:$0xff]  ;;  %v6542_v46 = vld [vmem:[#allocation45_spill] sm:$0xff] }
 0x22c   : > { %v2614_v38 = vpop.f32.mrf.mxu0 }
 0x22d   : > { %v2523_v40 = vpop.f32.mrf.mxu3  ;;  %v2250_v5 = vadd.f32 %v5997_v44, %v2210_v27  ;;  %v2703_v52 = vpop.f32.mrf.mxu1 }
 0x22e   : > { %v2613_v33 = vadd.f32 %v2612_v1, %v2523_v40 }
 0x230   : > { %v2702_v43 = vadd.f32 %v2701_v59, %v2613_v33  ;;  %v6541_v59 = vld [vmem:[#allocation22_spill] sm:$0xff] }
 0x232   : > { %v6238_v50 = vadd.f32 %v2702_v43, %v2250_v5  ;;  %v2211_v6 = vpop.f32.mrf.mxu2 }
 0x233   : > { %v2212_v23 = vadd.f32 %v2211_v6, %v6539_v42 }
 0x234   : > { %v2617_v9 = vpop.f32.mrf.mxu0 }
 0x235   : > { %v2525_v26 = vpop.f32.mrf.mxu3  ;;  %v2251_v35 = vadd.f32 %v5997_v44, %v2212_v23  ;;  %v2706_v47 = vpop.f32.mrf.mxu1 }
 0x236   : > { %v2615_v48 = vadd.f32 %v2614_v38, %v2525_v26 }
 0x237   : > { %2979 = vmatmul.bf16.gmra.mxu2 %v6540_v19  ;;  %3157 = vmatmul.bf16.gmra.mxu0 %v5962_v45  ;;  %v6543_v45 = vld [vmem:[#allocation46_spill] sm:$0xff] }
 0x238   : > { %v2704_v7 = vadd.f32 %v2703_v52, %v2615_v48  ;;  %3470 = vmatmul.bf16.gmra.mxu1 %v4770_v11 }
 0x23a   : > { %v6245_v1 = vadd.f32 %v2704_v7, %v2251_v35  ;;  %3068 = vmatmul.bf16.gmra.mxu3 %v6541_v59  ;;  %v2214_v61 = vpop.f32.mrf.mxu2  ;;  %v4771_v7 = vld [vmem:[%s5216_s15 + $0x38] sm:$0xff] }
 0x23b   : > { %v2215_v27 = vadd.f32 %v2214_v61, %v6542_v46  ;;  %v6544_v61 = vld [vmem:[#allocation21_spill] sm:$0xff] }
 0x23c   : > { %v2619_v38 = vpop.f32.mrf.mxu0 }
 0x23d   : > { %v2528_v40 = vpop.f32.mrf.mxu3  ;;  %v2252_v5 = vadd.f32 %v5997_v44, %v2215_v27  ;;  %v2708_v43 = vpop.f32.mrf.mxu1  ;;  %v6546_v27 = vld [vmem:[#allocation47_spill] sm:$0xff] }
 0x23e   : > { %v2618_v33 = vadd.f32 %v2617_v9, %v2528_v40 }
 0x240   : > { %v2707_v52 = vadd.f32 %v2706_v47, %v2618_v33  ;;  %v6545_v47 = vld [vmem:[#allocation23_spill] sm:$0xff] }
 0x242   : > { %v6250_v6 = vadd.f32 %v2707_v52, %v2252_v5  ;;  %v2216_v42 = vpop.f32.mrf.mxu2 }
 0x243   : > { %v2217_v23 = vadd.f32 %v2216_v42, %v6543_v45 }
 0x244   : > { %v2622_v35 = vpop.f32.mrf.mxu0 }
 0x245   : > { %v2530_v26 = vpop.f32.mrf.mxu3  ;;  %v2253_v11 = vadd.f32 %v5997_v44, %v2217_v23  ;;  %v2711_v19 = vpop.f32.mrf.mxu1 }
 0x246   : > { %v2620_v48 = vadd.f32 %v2619_v38, %v2530_v26 }
 0x247   : > { %2984 = vmatmul.bf16.gmra.mxu2 %v6544_v61  ;;  %3162 = vmatmul.bf16.gmra.mxu0 %v5982_v28  ;;  %v6547_v28 = vld [vmem:[#allocation48_spill] sm:$0xff]  ;;  %v4772_v61 = vld [vmem:[%s5216_s15 + $0x40] sm:$0xff] }
 0x248   : > { %v2709_v59 = vadd.f32 %v2708_v43, %v2620_v48  ;;  %3475 = vmatmul.bf16.gmra.mxu1 %v4771_v7 }
 0x24a   : > { %v6257_v9 = vadd.f32 %v2709_v59, %v2253_v11  ;;  %3073 = vmatmul.bf16.gmra.mxu3 %v6545_v47  ;;  %v2219_v46 = vpop.f32.mrf.mxu2 }
 0x24b   : > { %v2220_v40 = vadd.f32 %v2219_v46, %v6546_v27 }
 0x24c   : > { %v2624_v5 = vpop.f32.mrf.mxu0 }
 0x24d   : > { %v2533_v33 = vpop.f32.mrf.mxu3  ;;  %v2254_v52 = vadd.f32 %v5997_v44, %v2220_v40  ;;  %v2713_v42 = vpop.f32.mrf.mxu1 }
 0x24e   : > { %v2623_v38 = vadd.f32 %v2622_v35, %v2533_v33 }
 0x250   : > { %v2712_v43 = vadd.f32 %v2711_v19, %v2623_v38  ;;  %v6548_v19 = vld [vmem:[#allocation24_spill] sm:$0xff] }
 0x252   : > { %v6262_v45 = vadd.f32 %v2712_v43, %v2254_v52  ;;  %v2221_v23 = vpop.f32.mrf.mxu2 }
 0x253   : > { %v2222_v26 = vadd.f32 %v2221_v23, %v6547_v28 }
 0x254   : > { %v3128_v59 = vpop.f32.mrf.mxu0 }
 0x255   : > { %v2535_v48 = vpop.f32.mrf.mxu3  ;;  %v2255_v7 = vadd.f32 %v5997_v44, %v2222_v26  ;;  %v3441_v47 = vpop.f32.mrf.mxu1  ;;  %v6549_v44 = vld [vmem:[#allocation49_spill] sm:$0xff]  ;;  %v4773_v26 = vld [vmem:[%s5216_s15 + $0x48] sm:$0xff] }
 0x256   : > { %v2625_v11 = vadd.f32 %v2624_v5, %v2535_v48 }
 0x257   : > { %2989 = vmatmul.bf16.gmra.mxu2 %v5463_v39  ;;  %3167 = vmatmul.bf16.gmra.mxu0 %v6011_v21 }
 0x258   : > { %v2714_v46 = vadd.f32 %v2713_v42, %v2625_v11  ;;  %3480 = vmatmul.bf16.gmra.mxu1 %v4772_v61  ;;  %v6550_v61 = vld [vmem:[#allocation50_spill] sm:$0xff] }
 0x25a   : > { %v6269_v35 = vadd.f32 %v2714_v46, %v2255_v7  ;;  %3078 = vmatmul.bf16.gmra.mxu3 %v6548_v19  ;;  %v2950_v27 = vpop.f32.mrf.mxu2 }
 0x25c   : > { %v3130_v38 = vpop.f32.mrf.mxu0 }
 0x25d   : > { %v3039_v40 = vpop.f32.mrf.mxu3  ;;  %v3443_v5 = vpop.f32.mrf.mxu1 }
 0x25e   : > { %v3040_v33 = vadd.f32 %v3039_v40, %v2950_v27 }
 0x260   : > { %v3129_v52 = vadd.f32 %v3128_v59, %v3040_v33 }
 0x262   : > { %v3208_v43 = vadd.f32 %v3129_v52, %v6549_v44  ;;  %v2952_v23 = vpop.f32.mrf.mxu2 }
 0x264   : > { %v3521_v42 = vadd.f32 %v3441_v47, %v3208_v43  ;;  %v3133_v21 = vpop.f32.mrf.mxu0 }
 0x265   : > { %v3041_v28 = vpop.f32.mrf.mxu3  ;;  %v3446_v48 = vpop.f32.mrf.mxu1 }
 0x266   : > { %3633 = vst [vmem:[%s5221_s20] sm:$0xff] %v3521_v42  ;;  %v3042_v39 = vadd.f32 %v3041_v28, %v2952_v23  ;;  %v3845_v19 = vmul.f32 %v3521_v42, %v3521_v42 }
 0x267   : > { %2994 = vmatmul.bf16.gmra.mxu2 %v5520_v63  ;;  %3172 = vmatmul.bf16.gmra.mxu0 %v6031_v3 }
 0x268   : > { %v3131_v11 = vadd.f32 %v3130_v38, %v3042_v39  ;;  %3485 = vmatmul.bf16.gmra.mxu1 %v4773_v26 }
 0x26a   : > { %v3209_v7 = vadd.f32 %v3131_v11, %v6550_v61  ;;  %3083 = vmatmul.bf16.gmra.mxu3 %v5584_v53  ;;  %v2955_v47 = vpop.f32.mrf.mxu2  ;;  %v4774_v11 = vld [vmem:[%s5216_s15 + $0x50] sm:$0xff] }
 0x26c   : > { %v3522_v59 = vadd.f32 %v3443_v5, %v3209_v7  ;;  %v3135_v38 = vpop.f32.mrf.mxu0 }
 0x26d   : > { %v3044_v46 = vpop.f32.mrf.mxu3  ;;  %v3448_v52 = vpop.f32.mrf.mxu1 }
 0x26e   : > { %3634 = vst [vmem:[%s5221_s20 + $0x8] sm:$0xff] %v3522_v59  ;;  %v3805_v27 = vadd.f32 %v3522_v59, %v3521_v42  ;;  %v3846_v40 = vmul.f32 %v3522_v59, %v3522_v59  ;;  %v3045_v33 = vadd.f32 %v3044_v46, %v2955_v47 }
 0x270   : > { %v3877_v63 = vadd.f32 %v3846_v40, %v3845_v19  ;;  %v3134_v44 = vadd.f32 %v3133_v21, %v3045_v33 }
 0x272   : > { %v3210_v3 = vadd.f32 %v3134_v44, %v6024_v34  ;;  %v2957_v23 = vpop.f32.mrf.mxu2  ;;  %v6551_v34 = vld [vmem:[#allocation28_spill] sm:$0xff] }
 0x274   : > { %v3523_v43 = vadd.f32 %v3446_v48, %v3210_v3  ;;  %v3138_v26 = vpop.f32.mrf.mxu0 }
 0x275   : > { %v3046_v53 = vpop.f32.mrf.mxu3  ;;  %v3451_v42 = vpop.f32.mrf.mxu1 }
 0x276   : > { %3635 = vst [vmem:[%s5221_s20 + $0x10] sm:$0xff] %v3523_v43  ;;  %v3806_v5 = vadd.f32 %v3805_v27, %v3523_v43  ;;  %v3847_v28 = vmul.f32 %v3523_v43, %v3523_v43  ;;  %v3047_v39 = vadd.f32 %v3046_v53, %v2957_v23 }
 0x277   : > { %2999 = vmatmul.bf16.gmra.mxu2 %v5586_v55  ;;  %3177 = vmatmul.bf16.gmra.mxu0 %v6057_v30 }
 0x278   : > { %v3878_v61 = vadd.f32 %v3877_v63, %v3847_v28  ;;  %v3136_v7 = vadd.f32 %v3135_v38, %v3047_v39  ;;  %3490 = vmatmul.bf16.gmra.mxu1 %v4774_v11  ;;  %v6552_v63 = vld [vmem:[#allocation51_spill] sm:$0xff]  ;;  %v4775_v28 = vld [vmem:[%s5216_s15 + $0x58] sm:$0xff] }
 0x27a   : > { %v3211_v21 = vadd.f32 %v3136_v7, %v6035_v60  ;;  %3088 = vmatmul.bf16.gmra.mxu3 %v6551_v34  ;;  %v2960_v59 = vpop.f32.mrf.mxu2 }
 0x27c   : > { %v3524_v48 = vadd.f32 %v3448_v52, %v3211_v21  ;;  %v3140_v40 = vpop.f32.mrf.mxu0 }
 0x27d   : > { %v3049_v47 = vpop.f32.mrf.mxu3  ;;  %v3453_v33 = vpop.f32.mrf.mxu1 }
 0x27e   : > { %3636 = vst [vmem:[%s5221_s20 + $0x18] sm:$0xff] %v3524_v48  ;;  %v3807_v46 = vadd.f32 %v3806_v5, %v3524_v48  ;;  %v3848_v19 = vmul.f32 %v3524_v48, %v3524_v48  ;;  %v3050_v27 = vadd.f32 %v3049_v47, %v2960_v59 }
 0x280   : > { %v3879_v38 = vadd.f32 %v3878_v61, %v3848_v19  ;;  %v3139_v55 = vadd.f32 %v3138_v26, %v3050_v27  ;;  %v6553_v26 = vld [vmem:[#allocation26_spill] sm:$0xff] }
 0x282   : > { %v3212_v30 = vadd.f32 %v3139_v55, %v6552_v63  ;;  %v2962_v60 = vpop.f32.mrf.mxu2 }
 0x284   : > { %v3525_v44 = vadd.f32 %v3451_v42, %v3212_v30  ;;  %v3143_v53 = vpop.f32.mrf.mxu0  ;;  %v4776_v30 = vld [vmem:[%s5216_s15 + $0x60] sm:$0xff] }
 0x285   : > { %v3051_v3 = vpop.f32.mrf.mxu3  ;;  %v3456_v5 = vpop.f32.mrf.mxu1 }
 0x286   : > { %3637 = vst [vmem:[%s5221_s20 + $0x20] sm:$0xff] %v3525_v44  ;;  %v3808_v43 = vadd.f32 %v3807_v46, %v3525_v44  ;;  %v3849_v52 = vmul.f32 %v3525_v44, %v3525_v44  ;;  %v3052_v23 = vadd.f32 %v3051_v3, %v2962_v60 }
 0x287   : > { %3004 = vmatmul.bf16.gmra.mxu2 %v5637_v24  ;;  %3182 = vmatmul.bf16.gmra.mxu0 %v6077_v4 }
 0x288   : > { %v3880_v39 = vadd.f32 %v3879_v38, %v3849_v52  ;;  %v3141_v11 = vadd.f32 %v3140_v40, %v3052_v23  ;;  %3495 = vmatmul.bf16.gmra.mxu1 %v4775_v28 }
 0x28a   : > { %v3213_v61 = vadd.f32 %v3141_v11, %v6553_v26  ;;  %3093 = vmatmul.bf16.gmra.mxu3 %v5712_v29  ;;  %v2965_v7 = vpop.f32.mrf.mxu2 }
 0x28c   : > { %v3526_v42 = vadd.f32 %v3453_v33, %v3213_v61  ;;  %v3145_v47 = vpop.f32.mrf.mxu0 }
 0x28d   : > { %v3054_v21 = vpop.f32.mrf.mxu3  ;;  %v3458_v46 = vpop.f32.mrf.mxu1 }
 0x28e   : > { %3638 = vst [vmem:[%s5221_s20 + $0x28] sm:$0xff] %v3526_v42  ;;  %v3809_v34 = vadd.f32 %v3808_v43, %v3526_v42  ;;  %v3850_v48 = vmul.f32 %v3526_v42, %v3526_v42  ;;  %v3055_v59 = vadd.f32 %v3054_v21, %v2965_v7  ;;  %v6554_v43 = vld [vmem:[#allocation29_spill] sm:$0xff]  ;;  %v6555_v42 = vld [vmem:[#allocation52_spill] sm:$0xff] }
 0x290   : > { %v3881_v19 = vadd.f32 %v3880_v39, %v3850_v48  ;;  %v3144_v24 = vadd.f32 %v3143_v53, %v3055_v59 }
 0x292   : > { %v3214_v4 = vadd.f32 %v3144_v24, %v6070_v15  ;;  %v2967_v40 = vpop.f32.mrf.mxu2 }
 0x294   : > { %v3527_v27 = vadd.f32 %v3456_v5, %v3214_v4  ;;  %v3148_v63 = vpop.f32.mrf.mxu0 }
 0x295   : > { %v3056_v38 = vpop.f32.mrf.mxu3  ;;  %v3461_v44 = vpop.f32.mrf.mxu1 }
 0x296   : > { %3639 = vst [vmem:[%s5221_s20 + $0x30] sm:$0xff] %v3527_v27  ;;  %v3810_v29 = vadd.f32 %v3809_v34, %v3527_v27  ;;  %v3851_v33 = vmul.f32 %v3527_v27, %v3527_v27  ;;  %v3057_v55 = vadd.f32 %v3056_v38, %v2967_v40 }
 0x297   : > { %3009 = vmatmul.bf16.gmra.mxu2 %v5703_v22  ;;  %3187 = vmatmul.bf16.gmra.mxu0 %v6108_v41 }
 0x298   : > { %v3882_v60 = vadd.f32 %v3881_v19, %v3851_v33  ;;  %v3146_v3 = vadd.f32 %v3145_v47, %v3057_v55  ;;  %3500 = vmatmul.bf16.gmra.mxu1 %v4776_v30 }
 0x29a   : > { %v3215_v52 = vadd.f32 %v3146_v3, %v6554_v43  ;;  %3098 = vmatmul.bf16.gmra.mxu3 %v5757_v18  ;;  %v2970_v23 = vpop.f32.mrf.mxu2 }
 0x29c   : > { %v3528_v15 = vadd.f32 %v3458_v46, %v3215_v52  ;;  %v3150_v11 = vpop.f32.mrf.mxu0  ;;  %v4777_v46 = vld [vmem:[%s5216_s15 + $0x68] sm:$0xff] }
 0x29d   : > { %v3059_v53 = vpop.f32.mrf.mxu3  ;;  %v3463_v26 = vpop.f32.mrf.mxu1 }
 0x29e   : > { %3640 = vst [vmem:[%s5221_s20 + $0x38] sm:$0xff] %v3528_v15  ;;  %v3811_v28 = vadd.f32 %v3810_v29, %v3528_v15  ;;  %v3852_v5 = vmul.f32 %v3528_v15, %v3528_v15  ;;  %v3060_v39 = vadd.f32 %v3059_v53, %v2970_v23  ;;  %v4778_v53 = vld [vmem:[%s5216_s15 + $0x70] sm:$0xff] }
 0x2a0   : > { %v3883_v61 = vadd.f32 %v3882_v60, %v3852_v5  ;;  %v3149_v22 = vadd.f32 %v3148_v63, %v3060_v39 }
 0x2a2   : > { %v3216_v41 = vadd.f32 %v3149_v22, %v6555_v42  ;;  %v2972_v21 = vpop.f32.mrf.mxu2 }
 0x2a4   : > { %v3529_v7 = vadd.f32 %v3461_v44, %v3216_v41  ;;  %v3153_v47 = vpop.f32.mrf.mxu0 }
 0x2a5   : > { %v3061_v34 = vpop.f32.mrf.mxu3  ;;  %v3466_v19 = vpop.f32.mrf.mxu1 }
 0x2a6   : > { %3641 = vst [vmem:[%s5221_s20 + $0x40] sm:$0xff] %v3529_v7  ;;  %v3812_v18 = vadd.f32 %v3811_v28, %v3529_v7  ;;  %v3853_v48 = vmul.f32 %v3529_v7, %v3529_v7  ;;  %v3062_v59 = vadd.f32 %v3061_v34, %v2972_v21 }
 0x2a7   : > { %3014 = vmatmul.bf16.gmra.mxu2 %v5759_v37  ;;  %3192 = vmatmul.bf16.gmra.mxu0 %v6135_v14 }
 0x2a8   : > { %v3884_v24 = vadd.f32 %v3883_v61, %v3853_v48  ;;  %v3151_v4 = vadd.f32 %v3150_v11, %v3062_v59  ;;  %3505 = vmatmul.bf16.gmra.mxu1 %v4777_v46  ;;  %v6556_v11 = vld [vmem:[#allocation17_spill] sm:$0xff] }
 0x2aa   : > { %v3217_v27 = vadd.f32 %v3151_v4, %v6113_v49  ;;  %3103 = vmatmul.bf16.gmra.mxu3 %v5791_v12  ;;  %v2975_v38 = vpop.f32.mrf.mxu2  ;;  %v4779_v4 = vld [vmem:[%s5216_s15 + $0x78] sm:$0xff]  ;;  %s5002_s15 = scalar_lea.hbm %s5001_s16, 1 }
 0x2ab   : > { %p5003_p12 = scmp.ne.s32.totalorder %s5001_s16, %s5002_s15 }
 0x2ac   : > { %v3530_v40 = vadd.f32 %v3463_v26, %v3217_v27  ;;  %v3155_v30 = vpop.f32.mrf.mxu0 }
 0x2ad   : > { %v3064_v29 = vpop.f32.mrf.mxu3  ;;  %v3468_v44 = vpop.f32.mrf.mxu1  ;;  %p5004_p13 = pnand %p5003_p12, %p5192_p4 }
 0x2ae   : > { %3642 = vst [vmem:[%s5221_s20 + $0x48] sm:$0xff] %v3530_v40  ;;  %v3813_v33 = vadd.f32 %v3812_v18, %v3530_v40  ;;  %v3854_v55 = vmul.f32 %v3530_v40, %v3530_v40  ;;  %v3065_v63 = vadd.f32 %v3064_v29, %v2975_v38  ;;  %v6557_v29 = vld [vmem:[#allocation16_spill] sm:$0xff] }
 0x2af   : > { %p5005_p0 = pneg %p5004_p13 }
 0x2b0   : > { %v3885_v60 = vadd.f32 %v3884_v24, %v3854_v55  ;;  %v3154_v37 = vadd.f32 %v3153_v47, %v3065_v63  ;;  %v6559_v55 = vld [vmem:[#allocation20_spill] sm:$0xff] }
 0x2b2   : > { %v3218_v14 = vadd.f32 %v3154_v37, %v6126_v8  ;;  %v2977_v49 = vpop.f32.mrf.mxu2 }
 0x2b4   : > { %v3531_v3 = vadd.f32 %v3466_v19, %v3218_v14  ;;  %v3158_v23 = vpop.f32.mrf.mxu0 }
 0x2b5   : > { %v3066_v43 = vpop.f32.mrf.mxu3  ;;  %v3471_v28 = vpop.f32.mrf.mxu1 }
 0x2b6   : > { %3643 = vst [vmem:[%s5221_s20 + $0x50] sm:$0xff] %v3531_v3  ;;  %v3814_v12 = vadd.f32 %v3813_v33, %v3531_v3  ;;  %v3855_v52 = vmul.f32 %v3531_v3, %v3531_v3  ;;  %v3067_v15 = vadd.f32 %v3066_v43, %v2977_v49  ;;  %v6558_v33 = vrot.slane %v6557_v29, 1 }
 0x2b7   : > { %3019 = vmatmul.bf16.gmra.mxu2 %v6131_v0  ;;  %3197 = vmatmul.bf16.gmra.mxu0 %v6156_v32 }
 0x2b8   : > { %v3886_v5 = vadd.f32 %v3885_v60, %v3855_v52  ;;  %v3156_v39 = vadd.f32 %v3155_v30, %v3067_v15  ;;  %3510 = vmatmul.bf16.gmra.mxu1 %v4778_v53 }
 0x2ba   : > { %v3219_v26 = vadd.f32 %v3156_v39, %v6556_v11  ;;  %3108 = vmatmul.bf16.gmra.mxu3 %v6152_v62  ;;  %v2980_v61 = vpop.f32.mrf.mxu2 }
 0x2bc   : > { %v3532_v8 = vadd.f32 %v3468_v44, %v3219_v26  ;;  %v3160_v21 = vpop.f32.mrf.mxu0 }
 0x2bd   : > { %v3069_v22 = vpop.f32.mrf.mxu3  ;;  %v3473_v34 = vpop.f32.mrf.mxu1 }
 0x2be   : > { %3644 = vst [vmem:[%s5221_s20 + $0x58] sm:$0xff] %v3532_v8  ;;  %v3815_v42 = vadd.f32 %v3814_v12, %v3532_v8  ;;  %v3856_v41 = vmul.f32 %v3532_v8, %v3532_v8  ;;  %v3070_v7 = vadd.f32 %v3069_v22, %v2980_v61 }
 0x2c0   : > { %v3887_v18 = vadd.f32 %v3886_v5, %v3856_v41  ;;  %v3159_v0 = vadd.f32 %v3158_v23, %v3070_v7 }
 0x2c2   : > { %v3220_v32 = vadd.f32 %v3159_v0, %v6147_v20  ;;  %v2982_v59 = vpop.f32.mrf.mxu2 }
 0x2c4   : > { %v3533_v48 = vadd.f32 %v3471_v28, %v3220_v32  ;;  %v3163_v24 = vpop.f32.mrf.mxu0 }
 0x2c5   : > { %v3071_v47 = vpop.f32.mrf.mxu3  ;;  %v3476_v27 = vpop.f32.mrf.mxu1 }
 0x2c6   : > { %3645 = vst [vmem:[%s5221_s20 + $0x60] sm:$0xff] %v3533_v48  ;;  %v3816_v62 = vadd.f32 %v3815_v42, %v3533_v48  ;;  %v3857_v46 = vmul.f32 %v3533_v48, %v3533_v48  ;;  %v3072_v19 = vadd.f32 %v3071_v47, %v2982_v59 }
 0x2c7   : > { %3024 = vmatmul.bf16.gmra.mxu2 %v6557_v29  ;;  %3202 = vmatmul.bf16.gmra.mxu0 %v6558_v33 }
 0x2c8   : > { %v3888_v40 = vadd.f32 %v3887_v18, %v3857_v46  ;;  %v3161_v38 = vadd.f32 %v3160_v21, %v3072_v19  ;;  %3515 = vmatmul.bf16.gmra.mxu1 %v4779_v4 }
 0x2ca   : > { %v3221_v20 = vadd.f32 %v3161_v38, %v6160_v36  ;;  %3113 = vmatmul.bf16.gmra.mxu3 %v6559_v55  ;;  %v2985_v30 = vpop.f32.mrf.mxu2 }
 0x2cc   : > { %v3534_v63 = vadd.f32 %v3473_v34, %v3221_v20  ;;  %v3165_v3 = vpop.f32.mrf.mxu0 }
 0x2cd   : > { %v3074_v44 = vpop.f32.mrf.mxu3  ;;  %v3478_v49 = vpop.f32.mrf.mxu1 }
 0x2ce   : > { %3646 = vst [vmem:[%s5221_s20 + $0x68] sm:$0xff] %v3534_v63  ;;  %v3817_v60 = vadd.f32 %v3816_v62, %v3534_v63  ;;  %v3858_v37 = vmul.f32 %v3534_v63, %v3534_v63  ;;  %v3075_v14 = vadd.f32 %v3074_v44, %v2985_v30 }
 0x2d0   : > { %v3889_v43 = vadd.f32 %v3888_v40, %v3858_v37  ;;  %v3164_v12 = vadd.f32 %v3163_v24, %v3075_v14 }
 0x2d2   : > { %v3222_v52 = vadd.f32 %v3164_v12, %v6166_v16  ;;  %v2987_v36 = vpop.f32.mrf.mxu2 }
 0x2d4   : > { %v3535_v15 = vadd.f32 %v3476_v27, %v3222_v52  ;;  %v3168_v39 = vpop.f32.mrf.mxu0 }
 0x2d5   : > { %v3076_v23 = vpop.f32.mrf.mxu3  ;;  %v3481_v11 = vpop.f32.mrf.mxu1 }
 0x2d6   : > { %3647 = vst [vmem:[%s5221_s20 + $0x70] sm:$0xff] %v3535_v15  ;;  %v3818_v53 = vadd.f32 %v3817_v60, %v3535_v15  ;;  %v3859_v28 = vmul.f32 %v3535_v15, %v3535_v15  ;;  %v3077_v5 = vadd.f32 %v3076_v23, %v2987_v36 }
 0x2d8   : > { %v3890_v26 = vadd.f32 %v3889_v43, %v3859_v28  ;;  %v3166_v8 = vadd.f32 %v3165_v3, %v3077_v5 }
 0x2da   : > { %v3223_v61 = vadd.f32 %v3166_v8, %v6173_v58  ;;  %v2990_v42 = vpop.f32.mrf.mxu2 }
 0x2dc   : > { %v3536_v22 = vadd.f32 %v3478_v49, %v3223_v61  ;;  %v3170_v34 = vpop.f32.mrf.mxu0 }
 0x2dd   : > { %v3079_v41 = vpop.f32.mrf.mxu3  ;;  %v3483_v18 = vpop.f32.mrf.mxu1 }
 0x2de   : > { %3648 = vst [vmem:[%s5221_s20 + $0x78] sm:$0xff] %v3536_v22  ;;  %v3819_v16 = vadd.f32 %v3818_v53, %v3536_v22  ;;  %v3860_v7 = vmul.f32 %v3536_v22, %v3536_v22  ;;  %v3080_v21 = vadd.f32 %v3079_v41, %v2990_v42 }
 0x2e0   : > { %v3891_v0 = vadd.f32 %v3890_v26, %v3860_v7  ;;  %v3169_v32 = vadd.f32 %v3168_v39, %v3080_v21 }
 0x2e2   : > { %v3224_v48 = vadd.f32 %v3169_v32, %v6178_v31  ;;  %v2992_v47 = vpop.f32.mrf.mxu2 }
 0x2e4   : > { %v3537_v59 = vadd.f32 %v3481_v11, %v3224_v48  ;;  %v3173_v24 = vpop.f32.mrf.mxu0 }
 0x2e5   : > { %v3081_v62 = vpop.f32.mrf.mxu3  ;;  %v3486_v4 = vpop.f32.mrf.mxu1 }
 0x2e6   : > { %3649 = vst [vmem:[%s5221_s20 + $0x80] sm:$0xff] %v3537_v59  ;;  %v3820_v58 = vadd.f32 %v3819_v16, %v3537_v59  ;;  %v3861_v46 = vmul.f32 %v3537_v59, %v3537_v59  ;;  %v3082_v19 = vadd.f32 %v3081_v62, %v2992_v47 }
 0x2e8   : > { %v3892_v27 = vadd.f32 %v3891_v0, %v3861_v46  ;;  %v3171_v40 = vadd.f32 %v3170_v34, %v3082_v19 }
 0x2ea   : > { %v3225_v38 = vadd.f32 %v3171_v40, %v6185_v25  ;;  %v2995_v33 = vpop.f32.mrf.mxu2 }
 0x2ec   : > { %v3538_v29 = vadd.f32 %v3483_v18, %v3225_v38  ;;  %v3175_v30 = vpop.f32.mrf.mxu0 }
 0x2ed   : > { %v3084_v20 = vpop.f32.mrf.mxu3  ;;  %v3488_v44 = vpop.f32.mrf.mxu1 }
 0x2ee   : > { %3650 = vst [vmem:[%s5221_s20 + $0x88] sm:$0xff] %v3538_v29  ;;  %v3821_v31 = vadd.f32 %v3820_v58, %v3538_v29  ;;  %v3862_v55 = vmul.f32 %v3538_v29, %v3538_v29  ;;  %v3085_v63 = vadd.f32 %v3084_v20, %v2995_v33 }
 0x2f0   : > { %v3893_v60 = vadd.f32 %v3892_v27, %v3862_v55  ;;  %v3174_v37 = vadd.f32 %v3173_v24, %v3085_v63 }
 0x2f2   : > { %v3226_v14 = vadd.f32 %v3174_v37, %v6190_v13  ;;  %v2997_v49 = vpop.f32.mrf.mxu2 }
 0x2f4   : > { %v3539_v3 = vadd.f32 %v3486_v4, %v3226_v14  ;;  %v3178_v15 = vpop.f32.mrf.mxu0 }
 0x2f5   : > { %v3086_v43 = vpop.f32.mrf.mxu3  ;;  %v3491_v36 = vpop.f32.mrf.mxu1 }
 0x2f6   : > { %3651 = vst [vmem:[%s5221_s20 + $0x90] sm:$0xff] %v3539_v3  ;;  %v3822_v25 = vadd.f32 %v3821_v31, %v3539_v3  ;;  %v3863_v12 = vmul.f32 %v3539_v3, %v3539_v3  ;;  %v3087_v52 = vadd.f32 %v3086_v43, %v2997_v49 }
 0x2f8   : > { %v3894_v23 = vadd.f32 %v3893_v60, %v3863_v12  ;;  %v3176_v53 = vadd.f32 %v3175_v30, %v3087_v52 }
 0x2fa   : > { %v3227_v28 = vadd.f32 %v3176_v53, %v6197_v2  ;;  %v3000_v39 = vpop.f32.mrf.mxu2 }
 0x2fc   : > { %v3540_v5 = vadd.f32 %v3488_v44, %v3227_v28  ;;  %v3180_v61 = vpop.f32.mrf.mxu0 }
 0x2fd   : > { %v3089_v11 = vpop.f32.mrf.mxu3  ;;  %v3493_v22 = vpop.f32.mrf.mxu1 }
 0x2fe   : > { %3652 = vst [vmem:[%s5221_s20 + $0x98] sm:$0xff] %v3540_v5  ;;  %v3823_v13 = vadd.f32 %v3822_v25, %v3540_v5  ;;  %v3864_v26 = vmul.f32 %v3540_v5, %v3540_v5  ;;  %v3090_v8 = vadd.f32 %v3089_v11, %v3000_v39 }
 0x300   : > { %v3895_v42 = vadd.f32 %v3894_v23, %v3864_v26  ;;  %v3179_v41 = vadd.f32 %v3178_v15, %v3090_v8 }
 0x302   : > { %v3228_v16 = vadd.f32 %v3179_v41, %v6202_v57  ;;  %v3002_v21 = vpop.f32.mrf.mxu2 }
 0x304   : > { %v3541_v7 = vadd.f32 %v3491_v36, %v3228_v16  ;;  %v3183_v32 = vpop.f32.mrf.mxu0 }
 0x305   : > { %v3091_v34 = vpop.f32.mrf.mxu3  ;;  %v3496_v48 = vpop.f32.mrf.mxu1 }
 0x306   : > { %3653 = vst [vmem:[%s5221_s20 + $0xa0] sm:$0xff] %v3541_v7  ;;  %v3824_v2 = vadd.f32 %v3823_v13, %v3541_v7  ;;  %v3865_v18 = vmul.f32 %v3541_v7, %v3541_v7  ;;  %v3092_v0 = vadd.f32 %v3091_v34, %v3002_v21 }
 0x308   : > { %v3896_v59 = vadd.f32 %v3895_v42, %v3865_v18  ;;  %v3181_v47 = vadd.f32 %v3180_v61, %v3092_v0 }
 0x30a   : > { %v3229_v62 = vadd.f32 %v3181_v47, %v6209_v51  ;;  %v3005_v46 = vpop.f32.mrf.mxu2 }
 0x30c   : > { %v3542_v58 = vadd.f32 %v3493_v22, %v3229_v62  ;;  %v3185_v27 = vpop.f32.mrf.mxu0 }
 0x30d   : > { %v3094_v19 = vpop.f32.mrf.mxu3  ;;  %v3498_v40 = vpop.f32.mrf.mxu1 }
 0x30e   : > { %3654 = vst [vmem:[%s5221_s20 + $0xa8] sm:$0xff] %v3542_v58  ;;  %v3825_v57 = vadd.f32 %v3824_v2, %v3542_v58  ;;  %v3866_v24 = vmul.f32 %v3542_v58, %v3542_v58  ;;  %v3095_v4 = vadd.f32 %v3094_v19, %v3005_v46 }
 0x310   : > { %v3897_v38 = vadd.f32 %v3896_v59, %v3866_v24  ;;  %v3184_v29 = vadd.f32 %v3183_v32, %v3095_v4 }
 0x312   : > { %v3230_v33 = vadd.f32 %v3184_v29, %v6214_v10  ;;  %v3007_v31 = vpop.f32.mrf.mxu2 }
 0x314   : > { %v3543_v20 = vadd.f32 %v3496_v48, %v3230_v33  ;;  %v3188_v44 = vpop.f32.mrf.mxu0 }
 0x315   : > { %v3096_v55 = vpop.f32.mrf.mxu3  ;;  %v3501_v60 = vpop.f32.mrf.mxu1 }
 0x316   : > { %3655 = vst [vmem:[%s5221_s20 + $0xb0] sm:$0xff] %v3543_v20  ;;  %v3826_v51 = vadd.f32 %v3825_v57, %v3543_v20  ;;  %v3867_v63 = vmul.f32 %v3543_v20, %v3543_v20  ;;  %v3097_v30 = vadd.f32 %v3096_v55, %v3007_v31 }
 0x318   : > { %v3898_v37 = vadd.f32 %v3897_v38, %v3867_v63  ;;  %v3186_v14 = vadd.f32 %v3185_v27, %v3097_v30 }
 0x31a   : > { %v3231_v3 = vadd.f32 %v3186_v14, %v6221_v17  ;;  %v3010_v43 = vpop.f32.mrf.mxu2 }
 0x31c   : > { %v3544_v49 = vadd.f32 %v3498_v40, %v3231_v3  ;;  %v3190_v15 = vpop.f32.mrf.mxu0 }
 0x31d   : > { %v3099_v25 = vpop.f32.mrf.mxu3  ;;  %v3503_v36 = vpop.f32.mrf.mxu1 }
 0x31e   : > { %3656 = vst [vmem:[%s5221_s20 + $0xb8] sm:$0xff] %v3544_v49  ;;  %v3827_v10 = vadd.f32 %v3826_v51, %v3544_v49  ;;  %v3868_v12 = vmul.f32 %v3544_v49, %v3544_v49  ;;  %v3100_v52 = vadd.f32 %v3099_v25, %v3010_v43 }
 0x320   : > { %v3899_v23 = vadd.f32 %v3898_v37, %v3868_v12  ;;  %v3189_v53 = vadd.f32 %v3188_v44, %v3100_v52  ;;  %v5101_v37 = vmov 0.0  }
 0x321   : > { %3668 = vst [vmem:[%s5254_s13] sm:$0x1] %v5101_v37 }
 0x322   : > { %v3232_v28 = vadd.f32 %v3189_v53, %v6226_v56  ;;  %v3012_v39 = vpop.f32.mrf.mxu2  ;;  %3669 = vst [vmem:[%s5257_s17] sm:$0x1] %v5101_v37 }
 0x324   : > { %v3545_v5 = vadd.f32 %v3501_v60, %v3232_v28  ;;  %v3193_v8 = vpop.f32.mrf.mxu0 }
 0x325   : > { %v3101_v11 = vpop.f32.mrf.mxu3  ;;  %v3506_v42 = vpop.f32.mrf.mxu1 }
 0x326   : > { %3657 = vst [vmem:[%s5221_s20 + $0xc0] sm:$0xff] %v3545_v5  ;;  %v3828_v17 = vadd.f32 %v3827_v10, %v3545_v5  ;;  %v3869_v13 = vmul.f32 %v3545_v5, %v3545_v5  ;;  %v3102_v26 = vadd.f32 %v3101_v11, %v3012_v39 }
 0x328   : > { %v3900_v61 = vadd.f32 %v3899_v23, %v3869_v13  ;;  %v3191_v22 = vadd.f32 %v3190_v15, %v3102_v26 }
 0x32a   : > { %v3233_v41 = vadd.f32 %v3191_v22, %v6233_v54  ;;  %v3015_v7 = vpop.f32.mrf.mxu2 }
 0x32c   : > { %v3546_v16 = vadd.f32 %v3503_v36, %v3233_v41  ;;  %v3195_v18 = vpop.f32.mrf.mxu0 }
 0x32d   : > { %v3104_v21 = vpop.f32.mrf.mxu3  ;;  %v3508_v59 = vpop.f32.mrf.mxu1 }
 0x32e   : > { %3658 = vst [vmem:[%s5221_s20 + $0xc8] sm:$0xff] %v3546_v16  ;;  %v3829_v56 = vadd.f32 %v3828_v17, %v3546_v16  ;;  %v3870_v34 = vmul.f32 %v3546_v16, %v3546_v16  ;;  %v3105_v2 = vadd.f32 %v3104_v21, %v3015_v7 }
 0x330   : > { %v3901_v0 = vadd.f32 %v3900_v61, %v3870_v34  ;;  %v3194_v32 = vadd.f32 %v3193_v8, %v3105_v2 }
 0x332   : > { %v3234_v48 = vadd.f32 %v3194_v32, %v6238_v50  ;;  %v3017_v62 = vpop.f32.mrf.mxu2 }
 0x334   : > { %v3547_v47 = vadd.f32 %v3506_v42, %v3234_v48  ;;  %v3198_v4 = vpop.f32.mrf.mxu0 }
 0x335   : > { %v3106_v58 = vpop.f32.mrf.mxu3  ;;  %v3511_v29 = vpop.f32.mrf.mxu1 }
 0x336   : > { %3659 = vst [vmem:[%s5221_s20 + $0xd0] sm:$0xff] %v3547_v47  ;;  %v3830_v54 = vadd.f32 %v3829_v56, %v3547_v47  ;;  %v3871_v46 = vmul.f32 %v3547_v47, %v3547_v47  ;;  %v3107_v19 = vadd.f32 %v3106_v58, %v3017_v62 }
 0x338   : > { %v3902_v57 = vadd.f32 %v3901_v0, %v3871_v46  ;;  %v3196_v24 = vadd.f32 %v3195_v18, %v3107_v19 }
 0x33a   : > { %v3235_v27 = vadd.f32 %v3196_v24, %v6245_v1  ;;  %v3020_v38 = vpop.f32.mrf.mxu2 }
 0x33c   : > { %v3548_v40 = vadd.f32 %v3508_v59, %v3235_v27  ;;  %v3200_v30 = vpop.f32.mrf.mxu0 }
 0x33d   : > { %v3109_v50 = vpop.f32.mrf.mxu3  ;;  %v3513_v43 = vpop.f32.mrf.mxu1 }
 0x33e   : > { %3660 = vst [vmem:[%s5221_s20 + $0xd8] sm:$0xff] %v3548_v40  ;;  %v3831_v33 = vadd.f32 %v3830_v54, %v3548_v40  ;;  %v3872_v20 = vmul.f32 %v3548_v40, %v3548_v40  ;;  %v3110_v31 = vadd.f32 %v3109_v50, %v3020_v38  ;;  %v3804_v54 = vld [vmem:[%s5254_s13] sm:$0x1] }
 0x340   : > { %v3903_v55 = vadd.f32 %v3902_v57, %v3872_v20  ;;  %v3199_v51 = vadd.f32 %v3198_v4, %v3110_v31  ;;  %v3844_v57 = vld [vmem:[%s5257_s17] sm:$0x1] }
 0x342   : > { %v3236_v63 = vadd.f32 %v3199_v51, %v6250_v6  ;;  %v3022_v60 = vpop.f32.mrf.mxu2 }
 0x344   : > { %v3549_v44 = vadd.f32 %v3511_v29, %v3236_v63  ;;  %v3203_v15 = vpop.f32.mrf.mxu0 }
 0x345   : > { %v3111_v1 = vpop.f32.mrf.mxu3  ;;  %v3516_v11 = vpop.f32.mrf.mxu1 }
 0x346   : > { %3661 = vst [vmem:[%s5221_s20 + $0xe0] sm:$0xff] %v3549_v44  ;;  %v3832_v14 = vadd.f32 %v3831_v33, %v3549_v44  ;;  %v3873_v3 = vmul.f32 %v3549_v44, %v3549_v44  ;;  %v3112_v49 = vadd.f32 %v3111_v1, %v3022_v60 }
 0x348   : > { %v3904_v25 = vadd.f32 %v3903_v55, %v3873_v3  ;;  %v3201_v10 = vadd.f32 %v3200_v30, %v3112_v49 }
 0x34a   : > { %v3237_v12 = vadd.f32 %v3201_v10, %v6257_v9  ;;  %v3025_v6 = vpop.f32.mrf.mxu2 }
 0x34c   : > { %v3550_v52 = vadd.f32 %v3513_v43, %v3237_v12  ;;  %v3205_v42 = vpop.f32.mrf.mxu0 }
 0x34d   : > { %v3114_v36 = vpop.f32.mrf.mxu3  ;;  %v3518_v21 = vpop.f32.mrf.mxu1 }
 0x34e   : > { %3662 = vst [vmem:[%s5221_s20 + $0xe8] sm:$0xff] %v3550_v52  ;;  %v3833_v23 = vadd.f32 %v3832_v14, %v3550_v52  ;;  %v3874_v53 = vmul.f32 %v3550_v52, %v3550_v52  ;;  %v3115_v28 = vadd.f32 %v3114_v36, %v3025_v6 }
 0x350   : > { %v3905_v5 = vadd.f32 %v3904_v25, %v3874_v53  ;;  %v3204_v39 = vadd.f32 %v3203_v15, %v3115_v28 }
 0x352   : > { %v3238_v17 = vadd.f32 %v3204_v39, %v6262_v45  ;;  %v3027_v26 = vpop.f32.mrf.mxu2 }
 0x354   : > { %v3551_v13 = vadd.f32 %v3516_v11, %v3238_v17 }
 0x355   : > { %v3116_v8 = vpop.f32.mrf.mxu3 }
 0x356   : > { %3663 = vst [vmem:[%s5221_s20 + $0xf0] sm:$0xff] %v3551_v13  ;;  %v3834_v9 = vadd.f32 %v3833_v23, %v3551_v13  ;;  %v3875_v61 = vmul.f32 %v3551_v13, %v3551_v13  ;;  %v3117_v22 = vadd.f32 %v3116_v8, %v3027_v26 }
 0x358   : > { %v3906_v41 = vadd.f32 %v3905_v5, %v3875_v61  ;;  %v3206_v16 = vadd.f32 %v3205_v42, %v3117_v22 }
 0x35a   : > { %v3239_v7 = vadd.f32 %v3206_v16, %v6269_v35 }
 0x35c   : > { %v3552_v56 = vadd.f32 %v3518_v21, %v3239_v7 }
 0x35e   : > { %3664 = vst [vmem:[%s5221_s20 + $0xf8] sm:$0xff] %v3552_v56  ;;  %v3835_v45 = vadd.f32 %v3834_v9, %v3552_v56  ;;  %v3876_v34 = vmul.f32 %v3552_v56, %v3552_v56  ;;  %s5006_s20 = scalar_lea.hbm %s6446_s8, 2 }
 0x35f   : > { %p5008_p2 = scmp.lt.s32.totalorder %s5006_s20, %s5002_s15 }
 0x360   : > { %v3836_v2 = vrot.slane %v3835_v45, 4  ;;  %v3907_v18 = vadd.f32 %v3906_v41, %v3876_v34 }
 0x361   : > { %p5009_p3 = por %p5008_p2, %p5007_p1 }
 0x362   : > { %v3837_v0 = vadd.f32 %v3836_v2, %v3835_v45  ;;  %v3908_v32 = vrot.slane %v3907_v18, 4 }
 0x363   : > { %p5010_p5 = pnand %p5009_p3, %p5005_p0 }
 0x364   : > { %v3838_v48 = vrot.slane %v3837_v0, 2  ;;  %v3909_v59 = vadd.f32 %v3908_v32, %v3907_v18 }
 0x366   : > { %v3839_v47 = vadd.f32 %v3838_v48, %v3837_v0  ;;  %v3910_v35 = vrot.slane %v3909_v59, 2 }
 0x368   : > { %v3840_v62 = vrot.slane %v3839_v47, 1  ;;  %v3911_v58 = vadd.f32 %v3910_v35, %v3909_v59 }
 0x36a   : > { %v3841_v46 = vadd.f32 %v3840_v62, %v3839_v47  ;;  %v3912_v19 = vrot.slane %v3911_v58, 1 }
 0x36c   : > { %v3842_v24 = vadd.f32 %v3841_v46, %v3804_v54  ;;  %v3913_v4 = vadd.f32 %v3912_v19, %v3911_v58 }
 0x36e   : > { %3843 = vst [vmem:[%s5254_s13] sm:$0x1] %v3842_v24  ;;  %v3914_v27 = vadd.f32 %v3913_v4, %v3844_v57 }
 0x36f   : > { %5013 = shalt.err (!%p5010_p5)
}
 0x370   : > { %4919 = dma.vmem_to_hbm [thread:$0]  (%p5192_p4), %s3946_s27, 16, %s3948_s22, %s3927_s12   ;;  %3915 = vst [vmem:[%s5257_s17] sm:$0x1] %v3914_v27 }
 0x371   : > { %s3931_s13 = scalar_lea.sflag [#allocation7], %s5208_s23  ;;  %s5028_s18 = sshra.s32 %s3961_s29, 4  ;;  %s5029_s18 = int_to_ptr.hbm [resolvable:$true] %s5028_s18 }
 0x372   : > { %s5030_s24 = scalar_lea.hbm %s5029_s18, 1  ;;  %s5034_s20 = scalar_lea.hbm %s6447_s9, 2 }
 0x373   : > { %p5031_p6 = scmp.ne.s32.totalorder %s5029_s18, %s5030_s24  ;;  %p5035_p10 = scmp.lt.s32.totalorder %s5029_s18, %s6447_s9 }
 0x374   : > { %p5036_p11 = scmp.lt.s32.totalorder %s5034_s20, %s5030_s24 }
 0x375   : > { %p5032_p7 = pnand %p5031_p6, %p5192_p4 }
 0x376   : > { %p5037_p12 = por %p5036_p11, %p5035_p10 }
 0x377   : > { %p5033_p9 = pneg %p5032_p7 }
 0x379   : > { %p5038_p13 = pnand %p5037_p12, %p5033_p9 }
 0x37b   : > { %5041 = shalt.err (!%p5038_p13)
}
 0x37c   : > { %4920 = dma.vmem_to_hbm [thread:$0]  (%p5192_p4), %s6385_s28, 16, %s3961_s29, %s3931_s13  }
 0x37d PF: > { %p4930_p0 = scmp.ge.s32.totalorder %s5098_s14, 2  ;;  %s3985_s23 = sand.u32 1, %s5078_s30  }
 0x37e   : > { %s3986_s17 = scalar_lea.sflag [#allocation5], %s3985_s23 }
 0x37f   : > { %p4924_p1 = pnand %p4930_p0, %p5199_p8 }
 0x381   : > { %p4925_p2 = pneg %p4924_p1 }
 0x383   : > { %5069 = dma.done.wait (%p4925_p2), %s3986_s17, 16  }
 0x384   : > { %5071 = vsyncadd (%p4925_p2), %s3986_s17, 4294967280  ;;  %s3995_s27 = scalar_lea.sflag [#allocation7], %s3985_s23 }
 0x385   : > { %5073 = dma.done.wait (%p4925_p2), %s3995_s27, 16  }
 0x386   : > { %5075 = vsyncadd (%p4925_p2), %s3995_s27, 4294967280  ;;  %s26_s14 = sadd.s32 1, %s5098_s14   ;;  %s6560_s19 = sld [smem:[#allocation15_spill]] }
 0x387   : > { %p23_p3 = scmp.ge.s32.totalorder %s26_s14, 4   ;;  %s6561_s12 = sld [smem:[#allocation13_spill]] }
 0x388   : > { %s6562_s13 = sld [smem:[#allocation14_spill]]  ;;  %s6563_s30 = smov %s5082_s10 }
 0x389   : > { %s6564_s10 = smov %s5086_s11  ;;  %25 = sbr.rel (!%p23_p3) target bundleno = 6 (0x6), region = 177 }
 0x38c   : > { %s6565_s11 = smov %s6560_s19 }
 0x38e   :  { %4000 = vsyncpa [#allocation5], 1 }
 0x38f   :  { %4002 = vsyncpa [#allocation5 + $0x1], 1 }
 0x390   :  { %4003 = vsyncpa [#allocation7], 1 }
 0x391   :  { %4005 = vsyncpa [#allocation7 + $0x1], 1 }
 0x392   :  { %4006 = vsyncmov [#allocation3] }
 0x395   :  { %s4007_s21 = vpop.sfrf %4006 }
 0x396   :  { %p4687_p4 = scmp.ne.s32.totalorder %s4007_s21, 0 }
 0x398   :  { %4011 = shalt.err (%p4687_p4)  }
 0x399   :  { %4013 = vsyncmov [#allocation3 + $0x1] }
 0x39c   :  { %s4014_s22 = vpop.sfrf %4013 }
 0x39d   :  { %p4688_p8 = scmp.ne.s32.totalorder %s4014_s22, 0 }
 0x39f   :  { %4018 = shalt.err (%p4688_p8)  }

</bundles_post_ra>
